<compile_context>
chip_gen: v7x
topology: tpu7x:2x2x1
jax: 0.10.0
libtpu: 0.0.40
codegen_flags: <defaults>
</compile_context>

<pallas_src>
import jax
import jax.numpy as jnp
from jax.experimental import pallas as pl
from jax.experimental.pallas import tpu as pltpu

BN_EPS = 1e-5
_LANE = 128


def _round_up(v, m):
    return (v + m - 1) // m * m


def _row_tile(m):
    # Largest power-of-two row tile (<= 8192) that divides m; fall back to m
    # (only reached for tiny inputs where a single block is cheap anyway).
    for t in (8192, 4096, 2048, 1024, 512, 256, 128, 64, 32, 16, 8):
        if m % t == 0:
            return t
    return m


def _vmem_limit_bytes():
    # Size the scoped-VMEM budget per generation: ~3/4 of physical VMEM
    # (96 MiB on v5e/v6e with 128 MiB, 48 MiB on v7x with 64 MiB); fall back to
    # a conservative 48 MiB if the hardware query is unavailable.
    cap = 64 * 1024 * 1024
    try:
        cap = int(getattr(pltpu.get_tpu_info(), "vmem_capacity_bytes", cap))
    except Exception:
        pass
    return min(cap * 3 // 4, 100 * 1024 * 1024)


_VMEM_LIMIT = _vmem_limit_bytes()


# ------------------------------ kernel helpers -------------------------------

def _shifted_pack_bf16(a):
    """concat([a[:, x-1], a[:, x], a[:, x+1]], channel axis), zero boundary
    columns, cast once to bf16.  Shifts use 2-D sublane rolls (XLU slot) plus a
    broadcast VPU mask — no sublane-unaligned slab copies."""
    h, w, cin = a.shape
    a2d = a.reshape(h * w, cin)
    m1 = pltpu.roll(a2d, shift=1, axis=0).reshape(h, w, cin)           # a[:, x-1]
    p1 = pltpu.roll(a2d, shift=h * w - 1, axis=0).reshape(h, w, cin)   # a[:, x+1]
    col = jax.lax.broadcasted_iota(jnp.int32, (w, cin), 0).reshape(1, w, cin)
    a_m1 = jnp.where(col == 0, 0.0, m1)        # cross-row wrap lands on masked col
    a_p1 = jnp.where(col == w - 1, 0.0, p1)
    return jnp.concatenate([a_m1, a, a_p1], axis=-1).astype(jnp.bfloat16)


def _conv3x3_body(a, w_ref, b_ref, pad_ref):
    """3x3 conv of the already-activated f32 input `a` (h, w, cin).

    dx taps are folded into the contraction (K = 3*cin): one bf16 halo scratch,
    only the two halo rows re-zeroed per step, three MXU matmuls over dy with
    register-resident accumulation.  Returns (h*w, cout) f32 with bias added."""
    h, w, _ = a.shape
    cin3 = pad_ref.shape[2]
    packed = _shifted_pack_bf16(a)                                   # (h, w, 3cin)

    # Scratch persists across grid steps, so the halo rows must be re-written
    # every iteration; the interior is fully overwritten right after.
    zrow = jnp.zeros((1, w, cin3), jnp.bfloat16)
    pad_ref[0:1] = zrow
    pad_ref[h + 1:h + 2] = zrow
    pad_ref[1:h + 1] = packed

    acc = jnp.dot(pad_ref[0:h].reshape(h * w, cin3), w_ref[0],
                  preferred_element_type=jnp.float32)
    acc = acc + jnp.dot(pad_ref[1:h + 1].reshape(h * w, cin3), w_ref[1],
                        preferred_element_type=jnp.float32)
    acc = acc + jnp.dot(pad_ref[2:h + 2].reshape(h * w, cin3), w_ref[2],
                        preferred_element_type=jnp.float32)
    return acc + b_ref[...]                                          # (h*w, cout)


# ------------------------------ kernel bodies -------------------------------

def _pre_kernel(x_ref, w_ref, yid_ref, xs_ref, ys_ref):
    """Identity 1x1 conv (bf16 output) + per-tile sum / sum-sq of x and conv1x1(x)."""
    x = x_ref[...]                                                   # (tm, Cin) f32
    yid = jnp.dot(x.astype(jnp.bfloat16), w_ref[...],
                  preferred_element_type=jnp.float32)                # (tm, Cout) f32
    yid_ref[...] = yid.astype(yid_ref.dtype)
    xs_ref[0, 0:1, :] = jnp.sum(x, axis=0, keepdims=True)
    xs_ref[0, 1:2, :] = jnp.sum(x * x, axis=0, keepdims=True)
    ys_ref[0, 0:1, :] = jnp.sum(yid, axis=0, keepdims=True)
    ys_ref[0, 1:2, :] = jnp.sum(yid * yid, axis=0, keepdims=True)


def _conv1_kernel(x_ref, scale_ref, shift_ref, w_ref, b_ref,
                  y_ref, stats_ref, pad_ref):
    """BN1-affine + ReLU -> 3x3 conv -> bias; y1 stored bf16, stats from f32."""
    _, h, w, cin = x_ref.shape
    cout = y_ref.shape[3]
    s = scale_ref[...].reshape(1, 1, cin)
    t = shift_ref[...].reshape(1, 1, cin)
    a = jnp.maximum(x_ref[0] * s + t, 0.0)                           # (h, w, cin)
    y2d = _conv3x3_body(a, w_ref, b_ref, pad_ref)                    # (h*w, cout) f32
    y_ref[0] = y2d.reshape(h, w, cout).astype(y_ref.dtype)
    # One-pass partial stats for BN2 (reduced in the wrapper), from f32 values.
    # TODO(synk): swap to a Welford-style reduction if tolerance ever tightens.
    stats_ref[0, 0:1, :] = jnp.sum(y2d, axis=0, keepdims=True)
    stats_ref[0, 1:2, :] = jnp.sum(y2d * y2d, axis=0, keepdims=True)


def _conv2_res_pool_kernel(y1_ref, yid_ref, s2_ref, t2_ref, sid_ref, tid_ref,
                           w_ref, b_ref, out_ref, down_ref, pad_ref):
    """BN2+ReLU -> 3x3 conv -> + BN_id(conv1x1(x)) residual -> out; fused
    2x2/stride-2 max pool -> down.  No intermediate y2 HBM round trip."""
    _, h, w, cin = y1_ref.shape
    cout = out_ref.shape[3]
    hh, wh = h // 2, w // 2

    s = s2_ref[...].reshape(1, 1, cin)
    t = t2_ref[...].reshape(1, 1, cin)
    a = jnp.maximum(y1_ref[0].astype(jnp.float32) * s + t, 0.0)
    y2d = _conv3x3_body(a, w_ref, b_ref, pad_ref)                    # (h*w, cout) f32

    sid = sid_ref[...].reshape(1, 1, cout)
    tid = tid_ref[...].reshape(1, 1, cout)
    out = y2d.reshape(h, w, cout) + (yid_ref[0].astype(jnp.float32) * sid + tid)
    out_ref[0] = out

    # 2x2 max pool with whole-vreg reshuffled maxes (no per-column loop).
    rowmax = jnp.max(out.reshape(hh, 2, w, cout), axis=1)            # (hh, w, cout)
    down_ref[0] = jnp.max(rowmax.reshape(hh, wh, 2, cout), axis=2)   # (hh, wh, cout)


# ----------------------------- pallas_call glue ------------------------------

def _pre_pass(x2d, w_id, cp_out):
    m, cp_in = x2d.shape
    tm = _row_tile(m)
    g = m // tm
    return pl.pallas_call(
        _pre_kernel,
        grid=(g,),
        in_specs=[
            pl.BlockSpec((tm, cp_in), lambda i: (i, 0)),
            pl.BlockSpec((cp_in, cp_out), lambda i: (0, 0)),
        ],
        out_specs=(
            pl.BlockSpec((tm, cp_out), lambda i: (i, 0)),
            pl.BlockSpec((1, 2, cp_in), lambda i: (i, 0, 0)),
            pl.BlockSpec((1, 2, cp_out), lambda i: (i, 0, 0)),
        ),
        out_shape=(
            jax.ShapeDtypeStruct((m, cp_out), jnp.bfloat16),
            jax.ShapeDtypeStruct((g, 2, cp_in), jnp.float32),
            jax.ShapeDtypeStruct((g, 2, cp_out), jnp.float32),
        ),
        compiler_params=pltpu.CompilerParams(
            dimension_semantics=("parallel",),
            vmem_limit_bytes=_VMEM_LIMIT),
    )(x2d, w_id)


# TODO(synk): for large images (e.g. 128x128xC) add an H-tiled grid with a
# halo-row DMA so per-image blocks fit v7x's 64 MiB VMEM; whole-image blocks
# are fine at the test sizes used here.
def _conv1(x4, scale, shift, w3, bias):
    n, h, w, cp_in = x4.shape
    cp_out = w3.shape[2]
    return pl.pallas_call(
        _conv1_kernel,
        grid=(n,),
        in_specs=[
            pl.BlockSpec((1, h, w, cp_in), lambda i: (i, 0, 0, 0)),
            pl.BlockSpec((1, cp_in), lambda i: (0, 0)),
            pl.BlockSpec((1, cp_in), lambda i: (0, 0)),
            pl.BlockSpec((3, 3 * cp_in, cp_out), lambda i: (0, 0, 0)),
            pl.BlockSpec((1, cp_out), lambda i: (0, 0)),
        ],
        out_specs=(
            pl.BlockSpec((1, h, w, cp_out), lambda i: (i, 0, 0, 0)),
            pl.BlockSpec((1, 2, cp_out), lambda i: (i, 0, 0)),
        ),
        out_shape=(
            jax.ShapeDtypeStruct((n, h, w, cp_out), jnp.bfloat16),
            jax.ShapeDtypeStruct((n, 2, cp_out), jnp.float32),
        ),
        scratch_shapes=[pltpu.VMEM((h + 2, w, 3 * cp_in), jnp.bfloat16)],
        compiler_params=pltpu.CompilerParams(
            dimension_semantics=("parallel",),
            vmem_limit_bytes=_VMEM_LIMIT),
    )(x4, scale, shift, w3, bias)


def _conv2_res_pool(y1, yid, s2, t2, sid, tid, w3, bias):
    n, h, w, cp_in = y1.shape
    cp_out = w3.shape[2]
    return pl.pallas_call(
        _conv2_res_pool_kernel,
        grid=(n,),
        in_specs=[
            pl.BlockSpec((1, h, w, cp_in), lambda i: (i, 0, 0, 0)),
            pl.BlockSpec((1, h, w, cp_out), lambda i: (i, 0, 0, 0)),
            pl.BlockSpec((1, cp_in), lambda i: (0, 0)),
            pl.BlockSpec((1, cp_in), lambda i: (0, 0)),
            pl.BlockSpec((1, cp_out), lambda i: (0, 0)),
            pl.BlockSpec((1, cp_out), lambda i: (0, 0)),
            pl.BlockSpec((3, 3 * cp_in, cp_out), lambda i: (0, 0, 0)),
            pl.BlockSpec((1, cp_out), lambda i: (0, 0)),
        ],
        out_specs=(
            pl.BlockSpec((1, h, w, cp_out), lambda i: (i, 0, 0, 0)),
            pl.BlockSpec((1, h // 2, w // 2, cp_out), lambda i: (i, 0, 0, 0)),
        ),
        out_shape=(
            jax.ShapeDtypeStruct((n, h, w, cp_out), jnp.float32),
            jax.ShapeDtypeStruct((n, h // 2, w // 2, cp_out), jnp.float32),
        ),
        scratch_shapes=[pltpu.VMEM((h + 2, w, 3 * cp_in), jnp.bfloat16)],
        compiler_params=pltpu.CompilerParams(
            dimension_semantics=("parallel",),
            vmem_limit_bytes=_VMEM_LIMIT),
    )(y1, yid, s2, t2, sid, tid, w3, bias)


# ------------------------------- JAX wrapper ---------------------------------

def _bn_fold(sums, count, gamma, beta):
    # sums: (2, C) = [sum, sum-of-squares]; biased batch variance (torch train).
    mean = sums[0:1, :] / count
    var = jnp.maximum(sums[1:2, :] / count - mean * mean, 0.0)
    scale = gamma / jnp.sqrt(var + BN_EPS)
    shift = beta - mean * scale
    return scale, shift


def _pad_channels(a, axis, new):
    pad = [(0, 0)] * a.ndim
    pad[axis] = (0, new - a.shape[axis])
    return jnp.pad(a, pad)


def _prepare_params(p, cp_in, cp_out):
    w_id = _pad_channels(_pad_channels(p["w_id"], 0, cp_in), 1, cp_out)

    def conv_w(w9, ci, co):
        # (9, cin, cout) with k = dy*3 + dx  ->  (3, 3*ci, co): dx folded into K
        # so packed channel index dx*ci + c matches the kernel's concat order.
        w9p = _pad_channels(_pad_channels(w9, 1, ci), 2, co)
        return w9p.reshape(3, 3 * ci, co).astype(jnp.bfloat16)

    def gpad(g, c):  # pad BN gamma with ones (padded channels are all-zero)
        return jnp.pad(g, ((0, 0), (0, c - g.shape[1])), constant_values=1.0)

    return dict(
        w_id=w_id.astype(jnp.bfloat16),
        w1=conv_w(p["w1"], cp_in, cp_out),
        w2=conv_w(p["w2"], cp_out, cp_out),
        b1=_pad_channels(p["b1"], 1, cp_out),
        b2=_pad_channels(p["b2"], 1, cp_out),
        bn1_g=gpad(p["bn1_g"], cp_in), bn1_b=_pad_channels(p["bn1_b"], 1, cp_in),
        bn2_g=gpad(p["bn2_g"], cp_out), bn2_b=_pad_channels(p["bn2_b"], 1, cp_out),
        bn_id_g=gpad(p["bn_id_g"], cp_out), bn_id_b=_pad_channels(p["bn_id_b"], 1, cp_out),
    )


def pre_activate_res_block(x_nchw, params):
    n, cin, h, w = x_nchw.shape
    assert h % 2 == 0 and w % 2 == 0, "MaxPool2d(2) needs even H and W"
    cout = params["w_id"].shape[1]
    cp_in = _round_up(cin, _LANE)
    cp_out = _round_up(cout, _LANE)
    m = n * h * w

    pp = _prepare_params(params, cp_in, cp_out)

    # NCHW -> lane-dense NHWC, channels zero-padded to a multiple of 128.
    # TODO(synk): keep activations in padded NHWC between blocks if the whole
    # network is Pallas, to avoid these transpose/pad HBM passes per block.
    x = jnp.transpose(x_nchw.astype(jnp.float32), (0, 2, 3, 1))
    x = _pad_channels(x, 3, cp_in)                                   # (n, h, w, cp_in)
    x2d = x.reshape(m, cp_in)

    # Pass 1 (row-tiled): identity 1x1 conv (bf16) + one-pass batch stats.
    yid2d, x_part, yid_part = _pre_pass(x2d, pp["w_id"], cp_out)
    s1, t1 = _bn_fold(jnp.sum(x_part, axis=0), m, pp["bn1_g"], pp["bn1_b"])
    sid, tid = _bn_fold(jnp.sum(yid_part, axis=0), m, pp["bn_id_g"], pp["bn_id_b"])

    # Pass 2: BN1+ReLU -> conv3x3 -> y1 (bf16) + BN2 partial stats.
    y1, y1_part = _conv1(x, s1, t1, pp["w1"], pp["b1"])
    s2, t2 = _bn_fold(jnp.sum(y1_part, axis=0), m, pp["bn2_g"], pp["bn2_b"])

    # Pass 3: BN2+ReLU -> conv3x3 -> +identity residual -> fused 2x2 max pool.
    yid4 = yid2d.reshape(n, h, w, cp_out)
    out4, down4 = _conv2_res_pool(y1, yid4, s2, t2, sid, tid, pp["w2"], pp["b2"])

    out = jnp.transpose(out4[..., :cout], (0, 3, 1, 2))
    down = jnp.transpose(down4[..., :cout], (0, 3, 1, 2))
    return down, out


# --------------------------- deterministic params ----------------------------

def init_params(key, cin, cout):
    ks = jax.random.split(key, 8)

    def uinit(k, shape, fan_in):
        bound = 1.0 / jnp.sqrt(jnp.float32(fan_in))
        return jax.random.uniform(k, shape, jnp.float32, -bound, bound)

    # torch conv weights: (cout, cin, kh, kw) -> kernel layouts
    w_id_t = uinit(ks[0], (cout, cin, 1, 1), cin)
    w1_t = uinit(ks[1], (cout, cin, 3, 3), cin * 9)
    w2_t = uinit(ks[2], (cout, cout, 3, 3), cout * 9)
    return dict(
        w_id=jnp.transpose(w_id_t[:, :, 0, 0], (1, 0)),                     # (cin, cout)
        w1=jnp.transpose(w1_t, (2, 3, 1, 0)).reshape(9, cin, cout),         # k=(dy,dx)
        w2=jnp.transpose(w2_t, (2, 3, 1, 0)).reshape(9, cout, cout),
        b1=uinit(ks[3], (1, cout), cin * 9),
        b2=uinit(ks[4], (1, cout), cout * 9),
        bn1_g=jax.random.uniform(ks[5], (1, cin), jnp.float32, 0.5, 1.5),
        bn1_b=jax.random.uniform(ks[6], (1, cin), jnp.float32, -0.5, 0.5),
        bn2_g=jnp.ones((1, cout), jnp.float32),
        bn2_b=jnp.zeros((1, cout), jnp.float32),
        bn_id_g=jax.random.uniform(ks[7], (1, cout), jnp.float32, 0.5, 1.5),
        bn_id_b=jnp.zeros((1, cout), jnp.float32),
    )


# ------------------------------ pure-JAX reference ---------------------------

def _reference(x_nchw, params):
    x = jnp.transpose(x_nchw.astype(jnp.float32), (0, 2, 3, 1))
    n, h, w, _ = x.shape

    def bn(z, gamma, beta):
        mean = jnp.mean(z, axis=(0, 1, 2), keepdims=True)
        var = jnp.mean((z - mean) ** 2, axis=(0, 1, 2), keepdims=True)
        return ((z - mean) / jnp.sqrt(var + BN_EPS) * gamma.reshape(1, 1, 1, -1)
                + beta.reshape(1, 1, 1, -1))

    def conv3x3(z, w9, bias):
        zp = jnp.pad(z, ((0, 0), (1, 1), (1, 1), (0, 0)))
        acc = 0.0
        for k in range(9):
            dy, dx = k // 3, k % 3
            acc = acc + jnp.einsum("nhwc,cd->nhwd",
                                   zp[:, dy:dy + h, dx:dx + w, :], w9[k])
        return acc + bias.reshape(1, 1, 1, -1)

    yid = jnp.einsum("nhwc,cd->nhwd", x, params["w_id"])
    identity = bn(yid, params["bn_id_g"], params["bn_id_b"])
    a1 = jax.nn.relu(bn(x, params["bn1_g"], params["bn1_b"]))
    y1 = conv3x3(a1, params["w1"], params["b1"])
    a2 = jax.nn.relu(bn(y1, params["bn2_g"], params["bn2_b"]))
    y2 = conv3x3(a2, params["w2"], params["b2"])
    out = y2 + identity
    c = out.shape[-1]
    down = jnp.max(out.reshape(n, h // 2, 2, w // 2, 2, c), axis=(2, 4))
    return jnp.transpose(down, (0, 3, 1, 2)), jnp.transpose(out, (0, 3, 1, 2))


if __name__ == "__main__":
    key = jax.random.PRNGKey(0)
    kx, kp = jax.random.split(key)
    N, Cin, H, W = 2, 4, 16, 16
    Cout = 8
    x = jax.random.normal(kx, (N, Cin, H, W), jnp.float32)
    params = init_params(kp, Cin, Cout)

    down, out = jax.jit(pre_activate_res_block)(x, params)
    jax.block_until_ready((down, out))
    assert down.shape == (N, Cout, H // 2, W // 2)
    assert out.shape == (N, Cout, H, W)

    # loose correctness check vs an f32 XLA reference (bf16 MXU / bf16 HBM
    # intermediates tolerance)
    down_r, out_r = _reference(x, params)

    def _relerr(a, b):
        return float(jnp.max(jnp.abs(a - b)) / (jnp.max(jnp.abs(b)) + 1e-6))

    assert _relerr(out, out_r) < 5e-2, f"out mismatch: {_relerr(out, out_r)}"
    assert _relerr(down, down_r) < 5e-2, f"down mismatch: {_relerr(down, down_r)}"
    print("KERNEL_OK")
</pallas_src>

<mosaic_0001>
module attributes {stable_mosaic.version = 11 : i64} {
  func.func @_pre_kernel(%arg0: i32, %arg1: memref<512x128xf32, #tpu.memory_space<vmem>>, %arg2: memref<128x128xbf16, #tpu.memory_space<vmem>>, %arg3: memref<512x128xbf16, #tpu.memory_space<vmem>>, %arg4: memref<1x2x128xf32, #tpu.memory_space<vmem>>, %arg5: memref<1x2x128xf32, #tpu.memory_space<vmem>>) attributes {dimension_semantics = [#tpu.dimension_semantics<parallel>], iteration_bounds = array<i64: 1>, scalar_prefetch = 0 : i64, scratch_operands = 0 : i64, tpu.core_type = #tpu.core_type<tc>, window_params = [{transform_indices = @transform_0, window_bounds = array<i64: 512, 128>}, {pipeline_mode = #tpu.pipeline_mode<synchronous>, transform_indices = @transform_1, window_bounds = array<i64: 128, 128>}, {transform_indices = @transform_2, window_bounds = array<i64: 512, 128>}, {transform_indices = @transform_3, window_bounds = array<i64: 1, 2, 128>}, {transform_indices = @transform_4, window_bounds = array<i64: 1, 2, 128>}]} {
    %c0 = arith.constant 0 : index
    %c0_0 = arith.constant 0 : index
    %0 = vector.load %arg1[%c0, %c0_0] : memref<512x128xf32, #tpu.memory_space<vmem>>, vector<512x128xf32>
    %1 = arith.truncf %0 : vector<512x128xf32> to vector<512x128xbf16>
    %c0_1 = arith.constant 0 : index
    %c0_2 = arith.constant 0 : index
    %2 = vector.load %arg2[%c0_1, %c0_2] : memref<128x128xbf16, #tpu.memory_space<vmem>>, vector<128x128xbf16>
    %cst = arith.constant dense<0.000000e+00> : vector<512x128xf32>
    %3 = tpu.matmul %1, %2, %cst {dimension_numbers = #tpu.dot_dimension_numbers<[1], [0], [0], [1], [0, 0, 1, 1], [], []>} : vector<512x128xbf16>, vector<128x128xbf16>, vector<512x128xf32> -> vector<512x128xf32>
    %4 = arith.truncf %3 : vector<512x128xf32> to vector<512x128xbf16>
    %c0_3 = arith.constant 0 : index
    %c0_4 = arith.constant 0 : index
    %5 = vector.load %arg3[%c0_3, %c0_4] : memref<512x128xbf16, #tpu.memory_space<vmem>>, vector<512x128xbf16>
    tpu.vector_store %arg3[%c0_3, %c0_4], %4 {strides = array<i32>} : memref<512x128xbf16, #tpu.memory_space<vmem>>, vector<512x128xbf16>,
    %cst_5 = arith.constant dense<0.000000e+00> : vector<128xf32>
    %6 = vector.multi_reduction <add>, %0, %cst_5 [0] : vector<512x128xf32> to vector<128xf32>
    %7 = vector.shape_cast %6 : vector<128xf32> to vector<1x128xf32>
    %c0_6 = arith.constant 0 : index
    %c0_7 = arith.constant 0 : index
    %c0_8 = arith.constant 0 : index
    %8 = vector.load %arg4[%c0_6, %c0_7, %c0_8] : memref<1x2x128xf32, #tpu.memory_space<vmem>>, vector<1x1x128xf32>
    %9 = vector.shape_cast %8 : vector<1x1x128xf32> to vector<1x128xf32>
    %10 = vector.shape_cast %7 : vector<1x128xf32> to vector<1x1x128xf32>
    tpu.vector_store %arg4[%c0_6, %c0_7, %c0_8], %10 {strides = array<i32>} : memref<1x2x128xf32, #tpu.memory_space<vmem>>, vector<1x1x128xf32>,
    %11 = arith.mulf %0, %0 : vector<512x128xf32>
    %cst_9 = arith.constant dense<0.000000e+00> : vector<128xf32>
    %12 = vector.multi_reduction <add>, %11, %cst_9 [0] : vector<512x128xf32> to vector<128xf32>
    %13 = vector.shape_cast %12 : vector<128xf32> to vector<1x128xf32>
    %c0_10 = arith.constant 0 : index
    %c1 = arith.constant 1 : index
    %c0_11 = arith.constant 0 : index
    %14 = vector.load %arg4[%c0_10, %c1, %c0_11] : memref<1x2x128xf32, #tpu.memory_space<vmem>>, vector<1x1x128xf32>
    %15 = vector.shape_cast %14 : vector<1x1x128xf32> to vector<1x128xf32>
    %16 = vector.shape_cast %13 : vector<1x128xf32> to vector<1x1x128xf32>
    tpu.vector_store %arg4[%c0_10, %c1, %c0_11], %16 {strides = array<i32>} : memref<1x2x128xf32, #tpu.memory_space<vmem>>, vector<1x1x128xf32>,
    %cst_12 = arith.constant dense<0.000000e+00> : vector<128xf32>
    %17 = vector.multi_reduction <add>, %3, %cst_12 [0] : vector<512x128xf32> to vector<128xf32>
    %18 = vector.shape_cast %17 : vector<128xf32> to vector<1x128xf32>
    %c0_13 = arith.constant 0 : index
    %c0_14 = arith.constant 0 : index
    %c0_15 = arith.constant 0 : index
    %19 = vector.load %arg5[%c0_13, %c0_14, %c0_15] : memref<1x2x128xf32, #tpu.memory_space<vmem>>, vector<1x1x128xf32>
    %20 = vector.shape_cast %19 : vector<1x1x128xf32> to vector<1x128xf32>
    %21 = vector.shape_cast %18 : vector<1x128xf32> to vector<1x1x128xf32>
    tpu.vector_store %arg5[%c0_13, %c0_14, %c0_15], %21 {strides = array<i32>} : memref<1x2x128xf32, #tpu.memory_space<vmem>>, vector<1x1x128xf32>,
    %22 = arith.mulf %3, %3 : vector<512x128xf32>
    %cst_16 = arith.constant dense<0.000000e+00> : vector<128xf32>
    %23 = vector.multi_reduction <add>, %22, %cst_16 [0] : vector<512x128xf32> to vector<128xf32>
    %24 = vector.shape_cast %23 : vector<128xf32> to vector<1x128xf32>
    %c0_17 = arith.constant 0 : index
    %c1_18 = arith.constant 1 : index
    %c0_19 = arith.constant 0 : index
    %25 = vector.load %arg5[%c0_17, %c1_18, %c0_19] : memref<1x2x128xf32, #tpu.memory_space<vmem>>, vector<1x1x128xf32>
    %26 = vector.shape_cast %25 : vector<1x1x128xf32> to vector<1x128xf32>
    %27 = vector.shape_cast %24 : vector<1x128xf32> to vector<1x1x128xf32>
    tpu.vector_store %arg5[%c0_17, %c1_18, %c0_19], %27 {strides = array<i32>} : memref<1x2x128xf32, #tpu.memory_space<vmem>>, vector<1x1x128xf32>,
    return
  }
  func.func @transform_0(%arg0: i32) -> (i32, i32) {
    %c0_i32 = arith.constant 0 : i32
    %c0_i32_0 = arith.constant 0 : i32
    return %arg0, %c0_i32 : i32, i32
  }
  func.func @transform_1(%arg0: i32) -> (i32, i32) {
    %c0_i32 = arith.constant 0 : i32
    %c0_i32_0 = arith.constant 0 : i32
    %c0_i32_1 = arith.constant 0 : i32
    return %c0_i32, %c0_i32_0 : i32, i32
  }
  func.func @transform_2(%arg0: i32) -> (i32, i32) {
    %c0_i32 = arith.constant 0 : i32
    %c0_i32_0 = arith.constant 0 : i32
    return %arg0, %c0_i32 : i32, i32
  }
  func.func @transform_3(%arg0: i32) -> (i32, i32, i32) {
    %c0_i32 = arith.constant 0 : i32
    %c0_i32_0 = arith.constant 0 : i32
    %c0_i32_1 = arith.constant 0 : i32
    return %arg0, %c0_i32, %c0_i32_0 : i32, i32, i32
  }
  func.func @transform_4(%arg0: i32) -> (i32, i32, i32) {
    %c0_i32 = arith.constant 0 : i32
    %c0_i32_0 = arith.constant 0 : i32
    %c0_i32_1 = arith.constant 0 : i32
    return %arg0, %c0_i32, %c0_i32_0 : i32, i32, i32
  }
}

module attributes {stable_mosaic.version = 11 : i64} {
  func.func @_conv1_kernel(%arg0: i32, %arg1: memref<1x16x16x128xf32, #tpu.memory_space<vmem>>, %arg2: memref<1x128xf32, #tpu.memory_space<vmem>>, %arg3: memref<1x128xf32, #tpu.memory_space<vmem>>, %arg4: memref<3x384x128xbf16, #tpu.memory_space<vmem>>, %arg5: memref<1x128xf32, #tpu.memory_space<vmem>>, %arg6: memref<1x16x16x128xbf16, #tpu.memory_space<vmem>>, %arg7: memref<1x2x128xf32, #tpu.memory_space<vmem>>, %arg8: memref<18x16x384xbf16, #tpu.memory_space<vmem>>) attributes {dimension_semantics = [#tpu.dimension_semantics<parallel>], iteration_bounds = array<i64: 2>, scalar_prefetch = 0 : i64, scratch_operands = 1 : i64, tpu.core_type = #tpu.core_type<tc>, window_params = [{transform_indices = @transform_0, window_bounds = array<i64: 1, 16, 16, 128>}, {pipeline_mode = #tpu.pipeline_mode<synchronous>, transform_indices = @transform_1, window_bounds = array<i64: 1, 128>}, {pipeline_mode = #tpu.pipeline_mode<synchronous>, transform_indices = @transform_2, window_bounds = array<i64: 1, 128>}, {pipeline_mode = #tpu.pipeline_mode<synchronous>, transform_indices = @transform_3, window_bounds = array<i64: 3, 384, 128>}, {pipeline_mode = #tpu.pipeline_mode<synchronous>, transform_indices = @transform_4, window_bounds = array<i64: 1, 128>}, {transform_indices = @transform_5, window_bounds = array<i64: 1, 16, 16, 128>}, {transform_indices = @transform_6, window_bounds = array<i64: 1, 2, 128>}]} {
    %c0 = arith.constant 0 : index
    %c0_0 = arith.constant 0 : index
    %0 = vector.load %arg2[%c0, %c0_0] : memref<1x128xf32, #tpu.memory_space<vmem>>, vector<1x128xf32>
    %1 = vector.shape_cast %0 : vector<1x128xf32> to vector<1x1x128xf32>
    %c0_1 = arith.constant 0 : index
    %c0_2 = arith.constant 0 : index
    %2 = vector.load %arg3[%c0_1, %c0_2] : memref<1x128xf32, #tpu.memory_space<vmem>>, vector<1x128xf32>
    %3 = vector.shape_cast %2 : vector<1x128xf32> to vector<1x1x128xf32>
    %c0_3 = arith.constant 0 : index
    %c0_4 = arith.constant 0 : index
    %c0_5 = arith.constant 0 : index
    %c0_6 = arith.constant 0 : index
    %4 = vector.load %arg1[%c0_3, %c0_4, %c0_5, %c0_6] : memref<1x16x16x128xf32, #tpu.memory_space<vmem>>, vector<1x16x16x128xf32>
    %5 = vector.shape_cast %4 : vector<1x16x16x128xf32> to vector<16x16x128xf32>
    %6 = vector.broadcast %1 : vector<1x1x128xf32> to vector<16x16x128xf32>
    %7 = arith.mulf %5, %6 : vector<16x16x128xf32>
    %8 = vector.broadcast %3 : vector<1x1x128xf32> to vector<16x16x128xf32>
    %9 = arith.addf %7, %8 : vector<16x16x128xf32>
    %cst = arith.constant 0.000000e+00 : f32
    %10 = vector.broadcast %cst : f32 to vector<16x16x128xf32>
    %11 = arith.maximumf %9, %10 : vector<16x16x128xf32>
    %12 = vector.shape_cast %11 : vector<16x16x128xf32> to vector<256x128xf32>
    %c1_i32 = arith.constant 1 : i32
    %13 = tpu.dynamic_rotate %12 by %c1_i32 dim 0 : vector<256x128xf32>, i32 -> vector<256x128xf32>
    %14 = vector.shape_cast %13 : vector<256x128xf32> to vector<16x16x128xf32>
    %c255_i32 = arith.constant 255 : i32
    %15 = tpu.dynamic_rotate %12 by %c255_i32 dim 0 : vector<256x128xf32>, i32 -> vector<256x128xf32>
    %16 = vector.shape_cast %15 : vector<256x128xf32> to vector<16x16x128xf32>
    %17 = tpu.iota {dimensions = array<i32: 0>} : vector<16x128xi32>
    %18 = vector.shape_cast %17 : vector<16x128xi32> to vector<1x16x128xi32>
    %c0_i32 = arith.constant 0 : i32
    %19 = vector.broadcast %c0_i32 : i32 to vector<1x16x128xi32>
    %20 = arith.cmpi eq, %18, %19 : vector<1x16x128xi32>
    %cst_7 = arith.constant 0.000000e+00 : f32
    %21 = vector.shape_cast %20 : vector<1x16x128xi1> to vector<1x16x128xi1>
    %22 = vector.broadcast %21 : vector<1x16x128xi1> to vector<16x16x128xi1>
    %23 = vector.broadcast %cst_7 : f32 to vector<16x16x128xf32>
    %24 = arith.select %22, %23, %14 : vector<16x16x128xi1>, vector<16x16x128xf32>
    %c15_i32 = arith.constant 15 : i32
    %25 = vector.broadcast %c15_i32 : i32 to vector<1x16x128xi32>
    %26 = arith.cmpi eq, %18, %25 : vector<1x16x128xi32>
    %cst_8 = arith.constant 0.000000e+00 : f32
    %27 = vector.shape_cast %26 : vector<1x16x128xi1> to vector<1x16x128xi1>
    %28 = vector.broadcast %27 : vector<1x16x128xi1> to vector<16x16x128xi1>
    %29 = vector.broadcast %cst_8 : f32 to vector<16x16x128xf32>
    %30 = arith.select %28, %29, %16 : vector<16x16x128xi1>, vector<16x16x128xf32>
    %31 = tpu.concatenate %24, %11, %30 in 2 : vector<16x16x128xf32>, vector<16x16x128xf32>, vector<16x16x128xf32> -> vector<16x16x384xf32>
    %32 = arith.truncf %31 : vector<16x16x384xf32> to vector<16x16x384xbf16>
    %cst_9 = arith.constant 0.000000e+00 : bf16
    %33 = vector.broadcast %cst_9 : bf16 to vector<1x16x384xbf16>
    %c0_10 = arith.constant 0 : index
    %c0_11 = arith.constant 0 : index
    %c0_12 = arith.constant 0 : index
    %34 = vector.load %arg8[%c0_10, %c0_11, %c0_12] : memref<18x16x384xbf16, #tpu.memory_space<vmem>>, vector<1x16x384xbf16>
    tpu.vector_store %arg8[%c0_10, %c0_11, %c0_12], %33 {strides = array<i32>} : memref<18x16x384xbf16, #tpu.memory_space<vmem>>, vector<1x16x384xbf16>,
    %c17 = arith.constant 17 : index
    %c0_13 = arith.constant 0 : index
    %c0_14 = arith.constant 0 : index
    %35 = vector.load %arg8[%c17, %c0_13, %c0_14] : memref<18x16x384xbf16, #tpu.memory_space<vmem>>, vector<1x16x384xbf16>
    tpu.vector_store %arg8[%c17, %c0_13, %c0_14], %33 {strides = array<i32>} : memref<18x16x384xbf16, #tpu.memory_space<vmem>>, vector<1x16x384xbf16>,
    %c1 = arith.constant 1 : index
    %c0_15 = arith.constant 0 : index
    %c0_16 = arith.constant 0 : index
    %36 = vector.load %arg8[%c1, %c0_15, %c0_16] : memref<18x16x384xbf16, #tpu.memory_space<vmem>>, vector<16x16x384xbf16>
    tpu.vector_store %arg8[%c1, %c0_15, %c0_16], %32 {strides = array<i32>} : memref<18x16x384xbf16, #tpu.memory_space<vmem>>, vector<16x16x384xbf16>,
    %c0_17 = arith.constant 0 : index
    %c0_18 = arith.constant 0 : index
    %c0_19 = arith.constant 0 : index
    %37 = vector.load %arg8[%c0_17, %c0_18, %c0_19] : memref<18x16x384xbf16, #tpu.memory_space<vmem>>, vector<16x16x384xbf16>
    %38 = vector.shape_cast %37 : vector<16x16x384xbf16> to vector<256x384xbf16>
    %c0_20 = arith.constant 0 : index
    %c0_21 = arith.constant 0 : index
    %c0_22 = arith.constant 0 : index
    %39 = vector.load %arg4[%c0_20, %c0_21, %c0_22] : memref<3x384x128xbf16, #tpu.memory_space<vmem>>, vector<1x384x128xbf16>
    %40 = vector.shape_cast %39 : vector<1x384x128xbf16> to vector<384x128xbf16>
    %cst_23 = arith.constant dense<0.000000e+00> : vector<256x128xf32>
    %41 = tpu.matmul %38, %40, %cst_23 {dimension_numbers = #tpu.dot_dimension_numbers<[1], [0], [0], [1], [0, 0, 1, 1], [], []>} : vector<256x384xbf16>, vector<384x128xbf16>, vector<256x128xf32> -> vector<256x128xf32>
    %c1_24 = arith.constant 1 : index
    %c0_25 = arith.constant 0 : index
    %c0_26 = arith.constant 0 : index
    %42 = vector.load %arg8[%c1_24, %c0_25, %c0_26] : memref<18x16x384xbf16, #tpu.memory_space<vmem>>, vector<16x16x384xbf16>
    %43 = vector.shape_cast %42 : vector<16x16x384xbf16> to vector<256x384xbf16>
    %c1_27 = arith.constant 1 : index
    %c0_28 = arith.constant 0 : index
    %c0_29 = arith.constant 0 : index
    %44 = vector.load %arg4[%c1_27, %c0_28, %c0_29] : memref<3x384x128xbf16, #tpu.memory_space<vmem>>, vector<1x384x128xbf16>
    %45 = vector.shape_cast %44 : vector<1x384x128xbf16> to vector<384x128xbf16>
    %cst_30 = arith.constant dense<0.000000e+00> : vector<256x128xf32>
    %46 = tpu.matmul %43, %45, %cst_30 {dimension_numbers = #tpu.dot_dimension_numbers<[1], [0], [0], [1], [0, 0, 1, 1], [], []>} : vector<256x384xbf16>, vector<384x128xbf16>, vector<256x128xf32> -> vector<256x128xf32>
    %47 = arith.addf %41, %46 : vector<256x128xf32>
    %c2 = arith.constant 2 : index
    %c0_31 = arith.constant 0 : index
    %c0_32 = arith.constant 0 : index
    %48 = vector.load %arg8[%c2, %c0_31, %c0_32] : memref<18x16x384xbf16, #tpu.memory_space<vmem>>, vector<16x16x384xbf16>
    %49 = vector.shape_cast %48 : vector<16x16x384xbf16> to vector<256x384xbf16>
    %c2_33 = arith.constant 2 : index
    %c0_34 = arith.constant 0 : index
    %c0_35 = arith.constant 0 : index
    %50 = vector.load %arg4[%c2_33, %c0_34, %c0_35] : memref<3x384x128xbf16, #tpu.memory_space<vmem>>, vector<1x384x128xbf16>
    %51 = vector.shape_cast %50 : vector<1x384x128xbf16> to vector<384x128xbf16>
    %cst_36 = arith.constant dense<0.000000e+00> : vector<256x128xf32>
    %52 = tpu.matmul %49, %51, %cst_36 {dimension_numbers = #tpu.dot_dimension_numbers<[1], [0], [0], [1], [0, 0, 1, 1], [], []>} : vector<256x384xbf16>, vector<384x128xbf16>, vector<256x128xf32> -> vector<256x128xf32>
    %53 = arith.addf %47, %52 : vector<256x128xf32>
    %c0_37 = arith.constant 0 : index
    %c0_38 = arith.constant 0 : index
    %54 = vector.load %arg5[%c0_37, %c0_38] : memref<1x128xf32, #tpu.memory_space<vmem>>, vector<1x128xf32>
    %55 = vector.broadcast %54 : vector<1x128xf32> to vector<256x128xf32>
    %56 = arith.addf %53, %55 : vector<256x128xf32>
    %57 = vector.shape_cast %56 : vector<256x128xf32> to vector<16x16x128xf32>
    %58 = arith.truncf %57 : vector<16x16x128xf32> to vector<16x16x128xbf16>
    %c0_39 = arith.constant 0 : index
    %c0_40 = arith.constant 0 : index
    %c0_41 = arith.constant 0 : index
    %c0_42 = arith.constant 0 : index
    %59 = vector.load %arg6[%c0_39, %c0_40, %c0_41, %c0_42] : memref<1x16x16x128xbf16, #tpu.memory_space<vmem>>, vector<1x16x16x128xbf16>
    %60 = vector.shape_cast %59 : vector<1x16x16x128xbf16> to vector<16x16x128xbf16>
    %61 = vector.shape_cast %58 : vector<16x16x128xbf16> to vector<1x16x16x128xbf16>
    tpu.vector_store %arg6[%c0_39, %c0_40, %c0_41, %c0_42], %61 {strides = array<i32>} : memref<1x16x16x128xbf16, #tpu.memory_space<vmem>>, vector<1x16x16x128xbf16>,
    %cst_43 = arith.constant dense<0.000000e+00> : vector<128xf32>
    %62 = vector.multi_reduction <add>, %56, %cst_43 [0] : vector<256x128xf32> to vector<128xf32>
    %63 = vector.shape_cast %62 : vector<128xf32> to vector<1x128xf32>
    %c0_44 = arith.constant 0 : index
    %c0_45 = arith.constant 0 : index
    %c0_46 = arith.constant 0 : index
    %64 = vector.load %arg7[%c0_44, %c0_45, %c0_46] : memref<1x2x128xf32, #tpu.memory_space<vmem>>, vector<1x1x128xf32>
    %65 = vector.shape_cast %64 : vector<1x1x128xf32> to vector<1x128xf32>
    %66 = vector.shape_cast %63 : vector<1x128xf32> to vector<1x1x128xf32>
    tpu.vector_store %arg7[%c0_44, %c0_45, %c0_46], %66 {strides = array<i32>} : memref<1x2x128xf32, #tpu.memory_space<vmem>>, vector<1x1x128xf32>,
    %67 = arith.mulf %56, %56 : vector<256x128xf32>
    %cst_47 = arith.constant dense<0.000000e+00> : vector<128xf32>
    %68 = vector.multi_reduction <add>, %67, %cst_47 [0] : vector<256x128xf32> to vector<128xf32>
    %69 = vector.shape_cast %68 : vector<128xf32> to vector<1x128xf32>
    %c0_48 = arith.constant 0 : index
    %c1_49 = arith.constant 1 : index
    %c0_50 = arith.constant 0 : index
    %70 = vector.load %arg7[%c0_48, %c1_49, %c0_50] : memref<1x2x128xf32, #tpu.memory_space<vmem>>, vector<1x1x128xf32>
    %71 = vector.shape_cast %70 : vector<1x1x128xf32> to vector<1x128xf32>
    %72 = vector.shape_cast %69 : vector<1x128xf32> to vector<1x1x128xf32>
    tpu.vector_store %arg7[%c0_48, %c1_49, %c0_50], %72 {strides = array<i32>} : memref<1x2x128xf32, #tpu.memory_space<vmem>>, vector<1x1x128xf32>,
    return
  }
  func.func @transform_0(%arg0: i32) -> (i32, i32, i32, i32) {
    %c0_i32 = arith.constant 0 : i32
    %c0_i32_0 = arith.constant 0 : i32
    %c0_i32_1 = arith.constant 0 : i32
    %c0_i32_2 = arith.constant 0 : i32
    return %arg0, %c0_i32, %c0_i32_0, %c0_i32_1 : i32, i32, i32, i32
  }
  func.func @transform_1(%arg0: i32) -> (i32, i32) {
    %c0_i32 = arith.constant 0 : i32
    %c0_i32_0 = arith.constant 0 : i32
    %c0_i32_1 = arith.constant 0 : i32
    return %c0_i32, %c0_i32_0 : i32, i32
  }
  func.func @transform_2(%arg0: i32) -> (i32, i32) {
    %c0_i32 = arith.constant 0 : i32
    %c0_i32_0 = arith.constant 0 : i32
    %c0_i32_1 = arith.constant 0 : i32
    return %c0_i32, %c0_i32_0 : i32, i32
  }
  func.func @transform_3(%arg0: i32) -> (i32, i32, i32) {
    %c0_i32 = arith.constant 0 : i32
    %c0_i32_0 = arith.constant 0 : i32
    %c0_i32_1 = arith.constant 0 : i32
    %c0_i32_2 = arith.constant 0 : i32
    return %c0_i32, %c0_i32_0, %c0_i32_1 : i32, i32, i32
  }
  func.func @transform_4(%arg0: i32) -> (i32, i32) {
    %c0_i32 = arith.constant 0 : i32
    %c0_i32_0 = arith.constant 0 : i32
    %c0_i32_1 = arith.constant 0 : i32
    return %c0_i32, %c0_i32_0 : i32, i32
  }
  func.func @transform_5(%arg0: i32) -> (i32, i32, i32, i32) {
    %c0_i32 = arith.constant 0 : i32
    %c0_i32_0 = arith.constant 0 : i32
    %c0_i32_1 = arith.constant 0 : i32
    %c0_i32_2 = arith.constant 0 : i32
    return %arg0, %c0_i32, %c0_i32_0, %c0_i32_1 : i32, i32, i32, i32
  }
  func.func @transform_6(%arg0: i32) -> (i32, i32, i32) {
    %c0_i32 = arith.constant 0 : i32
    %c0_i32_0 = arith.constant 0 : i32
    %c0_i32_1 = arith.constant 0 : i32
    return %arg0, %c0_i32, %c0_i32_0 : i32, i32, i32
  }
}

module attributes {stable_mosaic.version = 11 : i64} {
  func.func @_conv2_res_pool_kernel(%arg0: i32, %arg1: memref<1x16x16x128xbf16, #tpu.memory_space<vmem>>, %arg2: memref<1x16x16x128xbf16, #tpu.memory_space<vmem>>, %arg3: memref<1x128xf32, #tpu.memory_space<vmem>>, %arg4: memref<1x128xf32, #tpu.memory_space<vmem>>, %arg5: memref<1x128xf32, #tpu.memory_space<vmem>>, %arg6: memref<1x128xf32, #tpu.memory_space<vmem>>, %arg7: memref<3x384x128xbf16, #tpu.memory_space<vmem>>, %arg8: memref<1x128xf32, #tpu.memory_space<vmem>>, %arg9: memref<1x16x16x128xf32, #tpu.memory_space<vmem>>, %arg10: memref<1x8x8x128xf32, #tpu.memory_space<vmem>>, %arg11: memref<18x16x384xbf16, #tpu.memory_space<vmem>>) attributes {dimension_semantics = [#tpu.dimension_semantics<parallel>], iteration_bounds = array<i64: 2>, scalar_prefetch = 0 : i64, scratch_operands = 1 : i64, tpu.core_type = #tpu.core_type<tc>, window_params = [{transform_indices = @transform_0, window_bounds = array<i64: 1, 16, 16, 128>}, {transform_indices = @transform_1, window_bounds = array<i64: 1, 16, 16, 128>}, {pipeline_mode = #tpu.pipeline_mode<synchronous>, transform_indices = @transform_2, window_bounds = array<i64: 1, 128>}, {pipeline_mode = #tpu.pipeline_mode<synchronous>, transform_indices = @transform_3, window_bounds = array<i64: 1, 128>}, {pipeline_mode = #tpu.pipeline_mode<synchronous>, transform_indices = @transform_4, window_bounds = array<i64: 1, 128>}, {pipeline_mode = #tpu.pipeline_mode<synchronous>, transform_indices = @transform_5, window_bounds = array<i64: 1, 128>}, {pipeline_mode = #tpu.pipeline_mode<synchronous>, transform_indices = @transform_6, window_bounds = array<i64: 3, 384, 128>}, {pipeline_mode = #tpu.pipeline_mode<synchronous>, transform_indices = @transform_7, window_bounds = array<i64: 1, 128>}, {transform_indices = @transform_8, window_bounds = array<i64: 1, 16, 16, 128>}, {transform_indices = @transform_9, window_bounds = array<i64: 1, 8, 8, 128>}]} {
    %c0 = arith.constant 0 : index
    %c0_0 = arith.constant 0 : index
    %0 = vector.load %arg3[%c0, %c0_0] : memref<1x128xf32, #tpu.memory_space<vmem>>, vector<1x128xf32>
    %1 = vector.shape_cast %0 : vector<1x128xf32> to vector<1x1x128xf32>
    %c0_1 = arith.constant 0 : index
    %c0_2 = arith.constant 0 : index
    %2 = vector.load %arg4[%c0_1, %c0_2] : memref<1x128xf32, #tpu.memory_space<vmem>>, vector<1x128xf32>
    %3 = vector.shape_cast %2 : vector<1x128xf32> to vector<1x1x128xf32>
    %c0_3 = arith.constant 0 : index
    %c0_4 = arith.constant 0 : index
    %c0_5 = arith.constant 0 : index
    %c0_6 = arith.constant 0 : index
    %4 = vector.load %arg1[%c0_3, %c0_4, %c0_5, %c0_6] : memref<1x16x16x128xbf16, #tpu.memory_space<vmem>>, vector<1x16x16x128xbf16>
    %5 = vector.shape_cast %4 : vector<1x16x16x128xbf16> to vector<16x16x128xbf16>
    %6 = arith.extf %5 : vector<16x16x128xbf16> to vector<16x16x128xf32>
    %7 = vector.broadcast %1 : vector<1x1x128xf32> to vector<16x16x128xf32>
    %8 = arith.mulf %6, %7 : vector<16x16x128xf32>
    %9 = vector.broadcast %3 : vector<1x1x128xf32> to vector<16x16x128xf32>
    %10 = arith.addf %8, %9 : vector<16x16x128xf32>
    %cst = arith.constant 0.000000e+00 : f32
    %11 = vector.broadcast %cst : f32 to vector<16x16x128xf32>
    %12 = arith.maximumf %10, %11 : vector<16x16x128xf32>
    %13 = vector.shape_cast %12 : vector<16x16x128xf32> to vector<256x128xf32>
    %c1_i32 = arith.constant 1 : i32
    %14 = tpu.dynamic_rotate %13 by %c1_i32 dim 0 : vector<256x128xf32>, i32 -> vector<256x128xf32>
    %15 = vector.shape_cast %14 : vector<256x128xf32> to vector<16x16x128xf32>
    %c255_i32 = arith.constant 255 : i32
    %16 = tpu.dynamic_rotate %13 by %c255_i32 dim 0 : vector<256x128xf32>, i32 -> vector<256x128xf32>
    %17 = vector.shape_cast %16 : vector<256x128xf32> to vector<16x16x128xf32>
    %18 = tpu.iota {dimensions = array<i32: 0>} : vector<16x128xi32>
    %19 = vector.shape_cast %18 : vector<16x128xi32> to vector<1x16x128xi32>
    %c0_i32 = arith.constant 0 : i32
    %20 = vector.broadcast %c0_i32 : i32 to vector<1x16x128xi32>
    %21 = arith.cmpi eq, %19, %20 : vector<1x16x128xi32>
    %cst_7 = arith.constant 0.000000e+00 : f32
    %22 = vector.shape_cast %21 : vector<1x16x128xi1> to vector<1x16x128xi1>
    %23 = vector.broadcast %22 : vector<1x16x128xi1> to vector<16x16x128xi1>
    %24 = vector.broadcast %cst_7 : f32 to vector<16x16x128xf32>
    %25 = arith.select %23, %24, %15 : vector<16x16x128xi1>, vector<16x16x128xf32>
    %c15_i32 = arith.constant 15 : i32
    %26 = vector.broadcast %c15_i32 : i32 to vector<1x16x128xi32>
    %27 = arith.cmpi eq, %19, %26 : vector<1x16x128xi32>
    %cst_8 = arith.constant 0.000000e+00 : f32
    %28 = vector.shape_cast %27 : vector<1x16x128xi1> to vector<1x16x128xi1>
    %29 = vector.broadcast %28 : vector<1x16x128xi1> to vector<16x16x128xi1>
    %30 = vector.broadcast %cst_8 : f32 to vector<16x16x128xf32>
    %31 = arith.select %29, %30, %17 : vector<16x16x128xi1>, vector<16x16x128xf32>
    %32 = tpu.concatenate %25, %12, %31 in 2 : vector<16x16x128xf32>, vector<16x16x128xf32>, vector<16x16x128xf32> -> vector<16x16x384xf32>
    %33 = arith.truncf %32 : vector<16x16x384xf32> to vector<16x16x384xbf16>
    %cst_9 = arith.constant 0.000000e+00 : bf16
    %34 = vector.broadcast %cst_9 : bf16 to vector<1x16x384xbf16>
    %c0_10 = arith.constant 0 : index
    %c0_11 = arith.constant 0 : index
    %c0_12 = arith.constant 0 : index
    %35 = vector.load %arg11[%c0_10, %c0_11, %c0_12] : memref<18x16x384xbf16, #tpu.memory_space<vmem>>, vector<1x16x384xbf16>
    tpu.vector_store %arg11[%c0_10, %c0_11, %c0_12], %34 {strides = array<i32>} : memref<18x16x384xbf16, #tpu.memory_space<vmem>>, vector<1x16x384xbf16>,
    %c17 = arith.constant 17 : index
    %c0_13 = arith.constant 0 : index
    %c0_14 = arith.constant 0 : index
    %36 = vector.load %arg11[%c17, %c0_13, %c0_14] : memref<18x16x384xbf16, #tpu.memory_space<vmem>>, vector<1x16x384xbf16>
    tpu.vector_store %arg11[%c17, %c0_13, %c0_14], %34 {strides = array<i32>} : memref<18x16x384xbf16, #tpu.memory_space<vmem>>, vector<1x16x384xbf16>,
    %c1 = arith.constant 1 : index
    %c0_15 = arith.constant 0 : index
    %c0_16 = arith.constant 0 : index
    %37 = vector.load %arg11[%c1, %c0_15, %c0_16] : memref<18x16x384xbf16, #tpu.memory_space<vmem>>, vector<16x16x384xbf16>
    tpu.vector_store %arg11[%c1, %c0_15, %c0_16], %33 {strides = array<i32>} : memref<18x16x384xbf16, #tpu.memory_space<vmem>>, vector<16x16x384xbf16>,
    %c0_17 = arith.constant 0 : index
    %c0_18 = arith.constant 0 : index
    %c0_19 = arith.constant 0 : index
    %38 = vector.load %arg11[%c0_17, %c0_18, %c0_19] : memref<18x16x384xbf16, #tpu.memory_space<vmem>>, vector<16x16x384xbf16>
    %39 = vector.shape_cast %38 : vector<16x16x384xbf16> to vector<256x384xbf16>
    %c0_20 = arith.constant 0 : index
    %c0_21 = arith.constant 0 : index
    %c0_22 = arith.constant 0 : index
    %40 = vector.load %arg7[%c0_20, %c0_21, %c0_22] : memref<3x384x128xbf16, #tpu.memory_space<vmem>>, vector<1x384x128xbf16>
    %41 = vector.shape_cast %40 : vector<1x384x128xbf16> to vector<384x128xbf16>
    %cst_23 = arith.constant dense<0.000000e+00> : vector<256x128xf32>
    %42 = tpu.matmul %39, %41, %cst_23 {dimension_numbers = #tpu.dot_dimension_numbers<[1], [0], [0], [1], [0, 0, 1, 1], [], []>} : vector<256x384xbf16>, vector<384x128xbf16>, vector<256x128xf32> -> vector<256x128xf32>
    %c1_24 = arith.constant 1 : index
    %c0_25 = arith.constant 0 : index
    %c0_26 = arith.constant 0 : index
    %43 = vector.load %arg11[%c1_24, %c0_25, %c0_26] : memref<18x16x384xbf16, #tpu.memory_space<vmem>>, vector<16x16x384xbf16>
    %44 = vector.shape_cast %43 : vector<16x16x384xbf16> to vector<256x384xbf16>
    %c1_27 = arith.constant 1 : index
    %c0_28 = arith.constant 0 : index
    %c0_29 = arith.constant 0 : index
    %45 = vector.load %arg7[%c1_27, %c0_28, %c0_29] : memref<3x384x128xbf16, #tpu.memory_space<vmem>>, vector<1x384x128xbf16>
    %46 = vector.shape_cast %45 : vector<1x384x128xbf16> to vector<384x128xbf16>
    %cst_30 = arith.constant dense<0.000000e+00> : vector<256x128xf32>
    %47 = tpu.matmul %44, %46, %cst_30 {dimension_numbers = #tpu.dot_dimension_numbers<[1], [0], [0], [1], [0, 0, 1, 1], [], []>} : vector<256x384xbf16>, vector<384x128xbf16>, vector<256x128xf32> -> vector<256x128xf32>
    %48 = arith.addf %42, %47 : vector<256x128xf32>
    %c2 = arith.constant 2 : index
    %c0_31 = arith.constant 0 : index
    %c0_32 = arith.constant 0 : index
    %49 = vector.load %arg11[%c2, %c0_31, %c0_32] : memref<18x16x384xbf16, #tpu.memory_space<vmem>>, vector<16x16x384xbf16>
    %50 = vector.shape_cast %49 : vector<16x16x384xbf16> to vector<256x384xbf16>
    %c2_33 = arith.constant 2 : index
    %c0_34 = arith.constant 0 : index
    %c0_35 = arith.constant 0 : index
    %51 = vector.load %arg7[%c2_33, %c0_34, %c0_35] : memref<3x384x128xbf16, #tpu.memory_space<vmem>>, vector<1x384x128xbf16>
    %52 = vector.shape_cast %51 : vector<1x384x128xbf16> to vector<384x128xbf16>
    %cst_36 = arith.constant dense<0.000000e+00> : vector<256x128xf32>
    %53 = tpu.matmul %50, %52, %cst_36 {dimension_numbers = #tpu.dot_dimension_numbers<[1], [0], [0], [1], [0, 0, 1, 1], [], []>} : vector<256x384xbf16>, vector<384x128xbf16>, vector<256x128xf32> -> vector<256x128xf32>
    %54 = arith.addf %48, %53 : vector<256x128xf32>
    %c0_37 = arith.constant 0 : index
    %c0_38 = arith.constant 0 : index
    %55 = vector.load %arg8[%c0_37, %c0_38] : memref<1x128xf32, #tpu.memory_space<vmem>>, vector<1x128xf32>
    %56 = vector.broadcast %55 : vector<1x128xf32> to vector<256x128xf32>
    %57 = arith.addf %54, %56 : vector<256x128xf32>
    %c0_39 = arith.constant 0 : index
    %c0_40 = arith.constant 0 : index
    %58 = vector.load %arg5[%c0_39, %c0_40] : memref<1x128xf32, #tpu.memory_space<vmem>>, vector<1x128xf32>
    %59 = vector.shape_cast %58 : vector<1x128xf32> to vector<1x1x128xf32>
    %c0_41 = arith.constant 0 : index
    %c0_42 = arith.constant 0 : index
    %60 = vector.load %arg6[%c0_41, %c0_42] : memref<1x128xf32, #tpu.memory_space<vmem>>, vector<1x128xf32>
    %61 = vector.shape_cast %60 : vector<1x128xf32> to vector<1x1x128xf32>
    %62 = vector.shape_cast %57 : vector<256x128xf32> to vector<16x16x128xf32>
    %c0_43 = arith.constant 0 : index
    %c0_44 = arith.constant 0 : index
    %c0_45 = arith.constant 0 : index
    %c0_46 = arith.constant 0 : index
    %63 = vector.load %arg2[%c0_43, %c0_44, %c0_45, %c0_46] : memref<1x16x16x128xbf16, #tpu.memory_space<vmem>>, vector<1x16x16x128xbf16>
    %64 = vector.shape_cast %63 : vector<1x16x16x128xbf16> to vector<16x16x128xbf16>
    %65 = arith.extf %64 : vector<16x16x128xbf16> to vector<16x16x128xf32>
    %66 = vector.broadcast %59 : vector<1x1x128xf32> to vector<16x16x128xf32>
    %67 = arith.mulf %65, %66 : vector<16x16x128xf32>
    %68 = vector.broadcast %61 : vector<1x1x128xf32> to vector<16x16x128xf32>
    %69 = arith.addf %67, %68 : vector<16x16x128xf32>
    %70 = arith.addf %62, %69 : vector<16x16x128xf32>
    %c0_47 = arith.constant 0 : index
    %c0_48 = arith.constant 0 : index
    %c0_49 = arith.constant 0 : index
    %c0_50 = arith.constant 0 : index
    %71 = vector.load %arg9[%c0_47, %c0_48, %c0_49, %c0_50] : memref<1x16x16x128xf32, #tpu.memory_space<vmem>>, vector<1x16x16x128xf32>
    %72 = vector.shape_cast %71 : vector<1x16x16x128xf32> to vector<16x16x128xf32>
    %73 = vector.shape_cast %70 : vector<16x16x128xf32> to vector<1x16x16x128xf32>
    tpu.vector_store %arg9[%c0_47, %c0_48, %c0_49, %c0_50], %73 {strides = array<i32>} : memref<1x16x16x128xf32, #tpu.memory_space<vmem>>, vector<1x16x16x128xf32>,
    %74 = vector.shape_cast %70 : vector<16x16x128xf32> to vector<8x2x16x128xf32>
    %cst_51 = arith.constant dense<0xFF800000> : vector<8x16x128xf32>
    %75 = vector.multi_reduction <maximumf>, %74, %cst_51 [1] : vector<8x2x16x128xf32> to vector<8x16x128xf32>
    %76 = vector.shape_cast %75 : vector<8x16x128xf32> to vector<8x8x2x128xf32>
    %cst_52 = arith.constant dense<0xFF800000> : vector<8x8x128xf32>
    %77 = vector.multi_reduction <maximumf>, %76, %cst_52 [2] : vector<8x8x2x128xf32> to vector<8x8x128xf32>
    %c0_53 = arith.constant 0 : index
    %c0_54 = arith.constant 0 : index
    %c0_55 = arith.constant 0 : index
    %c0_56 = arith.constant 0 : index
    %78 = vector.load %arg10[%c0_53, %c0_54, %c0_55, %c0_56] : memref<1x8x8x128xf32, #tpu.memory_space<vmem>>, vector<1x8x8x128xf32>
    %79 = vector.shape_cast %78 : vector<1x8x8x128xf32> to vector<8x8x128xf32>
    %80 = vector.shape_cast %77 : vector<8x8x128xf32> to vector<1x8x8x128xf32>
    tpu.vector_store %arg10[%c0_53, %c0_54, %c0_55, %c0_56], %80 {strides = array<i32>} : memref<1x8x8x128xf32, #tpu.memory_space<vmem>>, vector<1x8x8x128xf32>,
    return
  }
  func.func @transform_0(%arg0: i32) -> (i32, i32, i32, i32) {
    %c0_i32 = arith.constant 0 : i32
    %c0_i32_0 = arith.constant 0 : i32
    %c0_i32_1 = arith.constant 0 : i32
    %c0_i32_2 = arith.constant 0 : i32
    return %arg0, %c0_i32, %c0_i32_0, %c0_i32_1 : i32, i32, i32, i32
  }
  func.func @transform_1(%arg0: i32) -> (i32, i32, i32, i32) {
    %c0_i32 = arith.constant 0 : i32
    %c0_i32_0 = arith.constant 0 : i32
    %c0_i32_1 = arith.constant 0 : i32
    %c0_i32_2 = arith.constant 0 : i32
    return %arg0, %c0_i32, %c0_i32_0, %c0_i32_1 : i32, i32, i32, i32
  }
  func.func @transform_2(%arg0: i32) -> (i32, i32) {
    %c0_i32 = arith.constant 0 : i32
    %c0_i32_0 = arith.constant 0 : i32
    %c0_i32_1 = arith.constant 0 : i32
    return %c0_i32, %c0_i32_0 : i32, i32
  }
  func.func @transform_3(%arg0: i32) -> (i32, i32) {
    %c0_i32 = arith.constant 0 : i32
    %c0_i32_0 = arith.constant 0 : i32
    %c0_i32_1 = arith.constant 0 : i32
    return %c0_i32, %c0_i32_0 : i32, i32
  }
  func.func @transform_4(%arg0: i32) -> (i32, i32) {
    %c0_i32 = arith.constant 0 : i32
    %c0_i32_0 = arith.constant 0 : i32
    %c0_i32_1 = arith.constant 0 : i32
    return %c0_i32, %c0_i32_0 : i32, i32
  }
  func.func @transform_5(%arg0: i32) -> (i32, i32) {
    %c0_i32 = arith.constant 0 : i32
    %c0_i32_0 = arith.constant 0 : i32
    %c0_i32_1 = arith.constant 0 : i32
    return %c0_i32, %c0_i32_0 : i32, i32
  }
  func.func @transform_6(%arg0: i32) -> (i32, i32, i32) {
    %c0_i32 = arith.constant 0 : i32
    %c0_i32_0 = arith.constant 0 : i32
    %c0_i32_1 = arith.constant 0 : i32
    %c0_i32_2 = arith.constant 0 : i32
    return %c0_i32, %c0_i32_0, %c0_i32_1 : i32, i32, i32
  }
  func.func @transform_7(%arg0: i32) -> (i32, i32) {
    %c0_i32 = arith.constant 0 : i32
    %c0_i32_0 = arith.constant 0 : i32
    %c0_i32_1 = arith.constant 0 : i32
    return %c0_i32, %c0_i32_0 : i32, i32
  }
  func.func @transform_8(%arg0: i32) -> (i32, i32, i32, i32) {
    %c0_i32 = arith.constant 0 : i32
    %c0_i32_0 = arith.constant 0 : i32
    %c0_i32_1 = arith.constant 0 : i32
    %c0_i32_2 = arith.constant 0 : i32
    return %arg0, %c0_i32, %c0_i32_0, %c0_i32_1 : i32, i32, i32, i32
  }
  func.func @transform_9(%arg0: i32) -> (i32, i32, i32, i32) {
    %c0_i32 = arith.constant 0 : i32
    %c0_i32_0 = arith.constant 0 : i32
    %c0_i32_1 = arith.constant 0 : i32
    %c0_i32_2 = arith.constant 0 : i32
    return %arg0, %c0_i32, %c0_i32_0, %c0_i32_1 : i32, i32, i32, i32
  }
}

</mosaic_0001>

<bundles_post_ra>
// kernel: pre_activate_res_block.3
= control target key start
LH: loop header
LB: loop body
LE: loop exit
PB: predicated region body
PF: predicated region fallthrough
CT: control target
= control target key end

     0   :  { %s2588_s1 = inlined_call_operand.vmem [shape: bf16[128,128], index: 1, kind: input, shape index: {}]   ;;  %s2589_s0 = inlined_call_operand.vmem [shape: f32[512,128], index: 0, kind: input, shape index: {}]   ;;  %s2590_s3 = inlined_call_operand.vmem [shape: f32[1,2,128], index: 3, kind: output, shape index: {1}]   ;;  %s2591_s2 = inlined_call_operand.vmem [shape: bf16[512,128], index: 2, kind: output, shape index: {0}]   ;;  %s2592_s4 = inlined_call_operand.vmem [shape: f32[1,2,128], index: 4, kind: output, shape index: {2}]  }
   0x1   :  { %v1667_v0 = vld [vmem:[%s2588_s1] sm:$0xff]   ;;  %v1668_v1 = vld [vmem:[%s2588_s1 + $0x8] sm:$0xff]   ;;  %v1669_v2 = vld [vmem:[%s2588_s1 + $0x10] sm:$0xff]  }
   0x2   :  { %1571 = vmatprep.subr.bf16.mxu0 %v1667_v0  ;;  %1651 = vmatprep.subr.bf16.mxu1 %v1667_v0  ;;  %v1670_v3 = vld [vmem:[%s2588_s1 + $0x18] sm:$0xff]   ;;  %v15_v4 = vld [vmem:[%s2589_s0] sm:$0xff]  ;;  %v16_v5 = vld [vmem:[%s2589_s0 + $0x8] sm:$0xff] }
   0x3   :  { %1572 = vmatpush3.bf16.msra.mxu0 %v1667_v0  ;;  %1659 = vmatpush3.bf16.msra.mxu1 %v1667_v0  ;;  %v79_v6 = vpack.c.bf16 %v16_v5, %v15_v4  ;;  %v784_v7 = vadd.f32 %v16_v5, %v15_v4  ;;  %v854_v8 = vmul.f32 %v15_v4, %v15_v4  ;;  %v1721_v10 = vld [vmem:[%s2589_s0 + $0x10] sm:$0xff]  ;;  %v1726_v11 = vld [vmem:[%s2589_s0 + $0x18] sm:$0xff]  ;;  %v1671_v16 = vld [vmem:[%s2588_s1 + $0x20] sm:$0xff]  }
   0x4   :  { %1573 = vmatprep.subr.bf16.mxu0 %v1668_v1  ;;  %1652 = vmatprep.subr.bf16.mxu1 %v1668_v1  ;;  %v855_v9 = vmul.f32 %v16_v5, %v16_v5  ;;  %v856_v12 = vmul.f32 %v1721_v10, %v1721_v10  ;;  %v857_v15 = vmul.f32 %v1726_v11, %v1726_v11  ;;  %v1739_v17 = vld [vmem:[%s2589_s0 + $0x20] sm:$0xff]  ;;  %v1747_v21 = vld [vmem:[%s2589_s0 + $0x28] sm:$0xff]  ;;  %v1758_v26 = vld [vmem:[%s2589_s0 + $0x30] sm:$0xff] }
   0x5   :  { %1587 = vmatprep.mubr.bf16.mxu0 %v79_v6  ;;  %v785_v14 = vadd.f32 %v784_v7, %v1721_v10  ;;  %v858_v20 = vmul.f32 %v1739_v17, %v1739_v17  ;;  %v859_v24 = vmul.f32 %v1747_v21, %v1747_v21  ;;  %v1672_v25 = vld [vmem:[%s2588_s1 + $0x28] sm:$0xff]   ;;  %v860_v29 = vmul.f32 %v1758_v26, %v1758_v26  ;;  %v1766_v30 = vld [vmem:[%s2589_s0 + $0x38] sm:$0xff]  ;;  %v1673_v34 = vld [vmem:[%s2588_s1 + $0x30] sm:$0xff]  }
   0x6   :  { %v918_v13 = vadd.f32 %v855_v9, %v854_v8  ;;  %v861_v33 = vmul.f32 %v1766_v30, %v1766_v30  ;;  %v1777_v35 = vld [vmem:[%s2589_s0 + $0x40] sm:$0xff]  ;;  %v1785_v39 = vld [vmem:[%s2589_s0 + $0x48] sm:$0xff]  ;;  %v1674_v45 = vld [vmem:[%s2588_s1 + $0x38] sm:$0xff]   ;;  %v80_v61 = vpack.c.bf16 %v1726_v11, %v1721_v10 }
   0x7   :  { %1574 = vmatpush3.bf16.msra.mxu0 %v1668_v1  ;;  %1660 = vmatpush3.bf16.msra.mxu1 %v1668_v1  ;;  %v786_v18 = vadd.f32 %v785_v14, %v1726_v11  ;;  %v862_v38 = vmul.f32 %v1777_v35, %v1777_v35  ;;  %v1790_v40 = vld [vmem:[%s2589_s0 + $0x100] sm:$0xff]  ;;  %v1795_v41 = vld [vmem:[%s2589_s0 + $0x108] sm:$0xff]  ;;  %v863_v44 = vmul.f32 %v1785_v39, %v1785_v39  ;;  %v1806_v46 = vld [vmem:[%s2589_s0 + $0x50] sm:$0xff] }
   0x8   :  { %1575 = vmatprep.subr.bf16.mxu0 %v1669_v2  ;;  %1653 = vmatprep.subr.bf16.mxu1 %v1669_v2  ;;  %v919_v19 = vadd.f32 %v918_v13, %v856_v12  ;;  %v864_v49 = vmul.f32 %v1806_v46, %v1806_v46  ;;  %v95_v50 = vpack.c.bf16 %v1795_v41, %v1790_v40  ;;  %v1816_v51 = vld [vmem:[%s2589_s0 + $0x58] sm:$0xff]  ;;  %v1824_v55 = vld [vmem:[%s2589_s0 + $0x60] sm:$0xff]  ;;  %v1832_v59 = vld [vmem:[%s2589_s0 + $0x110] sm:$0xff] }
   0x9   :  { %v787_v23 = vadd.f32 %v786_v18, %v1739_v17  ;;  %v865_v54 = vmul.f32 %v1816_v51, %v1816_v51  ;;  %v866_v58 = vmul.f32 %v1824_v55, %v1824_v55  ;;  %v1837_v60 = vld [vmem:[%s2589_s0 + $0x118] sm:$0xff]  ;;  %v1844_v62 = vld [vmem:[%s2589_s0 + $0x68] sm:$0xff]  ;;  %v1849_v63 = vld [vmem:[%s2589_s0 + $0x120] sm:$0xff]  ;;  %v81_v1 = vpack.c.bf16 %v1747_v21, %v1739_v17 }
   0xa   :  { %v920_v22 = vadd.f32 %v919_v19, %v857_v15  ;;  %1619 = vmatprep.mubr.bf16.mxu1 %v95_v50  ;;  %v1854_v0 = vld [vmem:[%s2589_s0 + $0x128] sm:$0xff]  ;;  %v867_v4 = vmul.f32 %v1844_v62, %v1844_v62  ;;  %v1864_v5 = vld [vmem:[%s2589_s0 + $0x70] sm:$0xff]  ;;  %v96_v6 = vpack.c.bf16 %v1837_v60, %v1832_v59  ;;  %v1876_v11 = vld [vmem:[%s2589_s0 + $0x78] sm:$0xff] }
   0xb   :  { %1576 = vmatpush3.bf16.msra.mxu0 %v1669_v2  ;;  %1661 = vmatpush3.bf16.msra.mxu1 %v1669_v2  ;;  %v788_v27 = vadd.f32 %v787_v23, %v1747_v21  ;;  %v868_v9 = vmul.f32 %v1864_v5, %v1864_v5  ;;  %v97_v10 = vpack.c.bf16 %v1854_v0, %v1849_v63  ;;  %v1884_v15 = vld [vmem:[%s2589_s0 + $0x80] sm:$0xff]  ;;  %v1892_v19 = vld [vmem:[%s2589_s0 + $0x130] sm:$0xff] }
   0xc   :  { %1577 = vmatprep.subr.bf16.mxu0 %v1670_v3  ;;  %1654 = vmatprep.subr.bf16.mxu1 %v1670_v3  ;;  %v921_v28 = vadd.f32 %v920_v22, %v858_v20  ;;  %v869_v14 = vmul.f32 %v1876_v11, %v1876_v11  ;;  %v870_v18 = vmul.f32 %v1884_v15, %v1884_v15  ;;  %v1897_v20 = vld [vmem:[%s2589_s0 + $0x138] sm:$0xff]  ;;  %v1904_v22 = vld [vmem:[%s2589_s0 + $0x88] sm:$0xff]  ;;  %v1909_v23 = vld [vmem:[%s2589_s0 + $0x140] sm:$0xff] }
   0xd   :  { %v789_v32 = vadd.f32 %v788_v27, %v1758_v26  ;;  %v82_v21 = vpack.c.bf16 %v1766_v30, %v1758_v26  ;;  %v1969_v50 = vld [vmem:[%s2589_s0 + $0x160] sm:$0xff] }
   0xe   :  { %v922_v31 = vadd.f32 %v921_v28, %v859_v24  ;;  %v1914_v24 = vld [vmem:[%s2589_s0 + $0x148] sm:$0xff]  ;;  %v871_v28 = vmul.f32 %v1904_v22, %v1904_v22 }
   0xf   :  { %1578 = vmatpush3.bf16.msra.mxu0 %v1670_v3  ;;  %1662 = vmatpush3.bf16.msra.mxu1 %v1670_v3  ;;  %v790_v36 = vadd.f32 %v789_v32, %v1766_v30  ;;  %v98_v30 = vpack.c.bf16 %v1897_v20, %v1892_v19 }
  0x10   :  { %1579 = vmatprep.subr.bf16.mxu0 %v1671_v16  ;;  %1655 = vmatprep.subr.bf16.mxu1 %v1671_v16  ;;  %v923_v37 = vadd.f32 %v922_v31, %v860_v29  ;;  %v1924_v29 = vld [vmem:[%s2589_s0 + $0x90] sm:$0xff] }
  0x11   :  { %v791_v43 = vadd.f32 %v790_v36, %v1777_v35 }
  0x12   :  { %v924_v42 = vadd.f32 %v923_v37, %v861_v33  ;;  %v872_v33 = vmul.f32 %v1924_v29, %v1924_v29 }
  0x13   :  { %1580 = vmatpush3.bf16.msra.mxu0 %v1671_v16  ;;  %1663 = vmatpush3.bf16.msra.mxu1 %v1671_v16  ;;  %v792_v47 = vadd.f32 %v791_v43, %v1785_v39 }
  0x14   :  { %1581 = vmatprep.subr.bf16.mxu0 %v1672_v25  ;;  %1656 = vmatprep.subr.bf16.mxu1 %v1672_v25  ;;  %v925_v48 = vadd.f32 %v924_v42, %v862_v38 }
  0x15   :  { %v793_v53 = vadd.f32 %v792_v47, %v1806_v46  ;;  %v1957_v47 = vld [vmem:[%s2589_s0 + $0x158] sm:$0xff] }
  0x16   :  { %v926_v52 = vadd.f32 %v925_v48, %v863_v44  ;;  %v84_v48 = vpack.c.bf16 %v1816_v51, %v1806_v46 }
  0x17   :  { %1582 = vmatpush3.bf16.msra.mxu0 %v1672_v25  ;;  %1664 = vmatpush3.bf16.msra.mxu1 %v1672_v25  ;;  %v794_v56 = vadd.f32 %v793_v53, %v1816_v51  ;;  %v83_v25 = vpack.c.bf16 %v1785_v39, %v1777_v35  ;;  %v1936_v35 = vld [vmem:[%s2589_s0 + $0x98] sm:$0xff]  ;;  %v1944_v39 = vld [vmem:[%s2589_s0 + $0xa0] sm:$0xff]  ;;  %v85_v53 = vpack.c.bf16 %v1844_v62, %v1824_v55 }
  0x18   :  { %1583 = vmatprep.subr.bf16.mxu0 %v1673_v34  ;;  %1657 = vmatprep.subr.bf16.mxu1 %v1673_v34  ;;  %v927_v57 = vadd.f32 %v926_v52, %v864_v49  ;;  %v873_v38 = vmul.f32 %v1936_v35, %v1936_v35  ;;  %v874_v44 = vmul.f32 %v1944_v39, %v1944_v39  ;;  %v1964_v49 = vld [vmem:[%s2589_s0 + $0xa8] sm:$0xff] }
  0x19   :  { %v795_v3 = vadd.f32 %v794_v56, %v1824_v55  ;;  %v1974_v52 = vld [vmem:[%s2589_s0 + $0x168] sm:$0xff]  ;;  %v875_v51 = vmul.f32 %v1964_v49, %v1964_v49  ;;  %v1984_v56 = vld [vmem:[%s2589_s0 + $0xb0] sm:$0xff] }
  0x1a   :  { %v928_v2 = vadd.f32 %v927_v57, %v865_v54  ;;  %v876_v55 = vmul.f32 %v1984_v56, %v1984_v56 }
  0x1b   :  { %1584 = vmatpush3.bf16.msra.mxu0 %v1673_v34  ;;  %1665 = vmatpush3.bf16.msra.mxu1 %v1673_v34  ;;  %v796_v7 = vadd.f32 %v795_v3, %v1844_v62  ;;  %v99_v34 = vpack.c.bf16 %v1914_v24, %v1909_v23  ;;  %v101_v62 = vpack.c.bf16 %v1974_v52, %v1969_v50 }
  0x1c   :  { %1585 = vmatprep.subr.bf16.mxu0 %v1674_v45  ;;  %1658 = vmatprep.subr.bf16.mxu1 %v1674_v45  ;;  %v929_v8 = vadd.f32 %v928_v2, %v866_v58 }
  0x1d   :  { %v797_v13 = vadd.f32 %v796_v7, %v1864_v5 }
  0x1e   :  { %v930_v12 = vadd.f32 %v929_v8, %v867_v4 }
  0x1f   :  { %1586 = vmatpush3.bf16.msra.mxu0 %v1674_v45  ;;  %1666 = vmatpush3.bf16.msra.mxu1 %v1674_v45  ;;  %v798_v16 = vadd.f32 %v797_v13, %v1876_v11  ;;  %v1952_v45 = vld [vmem:[%s2589_s0 + $0x150] sm:$0xff]  ;;  %v86_v13 = vpack.c.bf16 %v1876_v11, %v1864_v5 }
  0x20   :  { %v931_v17 = vadd.f32 %v930_v12, %v868_v9  ;;  %v100_v57 = vpack.c.bf16 %v1957_v47, %v1952_v45  ;;  %v2017_v12 = vld [vmem:[%s2589_s0 + $0x178] sm:$0xff] }
  0x21   :  { %v799_v26 = vadd.f32 %v798_v16, %v1884_v15  ;;  %v2029_v16 = vld [vmem:[%s2589_s0 + $0x180] sm:$0xff] }
  0x22   :  { %1588 = vmatmul.mubr.bf16.vlgmr.msra.gmra.mrb[0].mxu0 %v80_v61  ;;  %1620 = vmatmul.mubr.bf16.vlgmr.msra.gmra.mrb[0].mxu1 %v96_v6  ;;  %v932_v27 = vadd.f32 %v931_v17, %v869_v14  ;;  %v2004_v6 = vld [vmem:[%s2589_s0 + $0xc0] sm:$0xff]  ;;  %v2024_v14 = vld [vmem:[%s2589_s0 + $0xc8] sm:$0xff] }
  0x23   :  { %1591 = vmatprep.mubr.bf16.mxu0 %v81_v1  ;;  %1623 = vmatprep.mubr.bf16.mxu1 %v97_v10  ;;  %v800_v31 = vadd.f32 %v799_v26, %v1904_v22  ;;  %v1996_v1 = vld [vmem:[%s2589_s0 + $0xb8] sm:$0xff]  ;;  %v878_v9 = vmul.f32 %v2004_v6, %v2004_v6  ;;  %v2012_v10 = vld [vmem:[%s2589_s0 + $0x170] sm:$0xff]  ;;  %v2034_v17 = vld [vmem:[%s2589_s0 + $0x188] sm:$0xff]  ;;  %v879_v11 = vmul.f32 %v2024_v14, %v2024_v14 }
  0x24   :  { %v933_v32 = vadd.f32 %v932_v27, %v870_v18  ;;  %v877_v4 = vmul.f32 %v1996_v1, %v1996_v1  ;;  %v87_v18 = vpack.c.bf16 %v1904_v22, %v1884_v15  ;;  %v102_v27 = vpack.c.bf16 %v2017_v12, %v2012_v10 }
  0x25   :  { %v801_v37 = vadd.f32 %v800_v31, %v1924_v29  ;;  %v103_v22 = vpack.c.bf16 %v2034_v17, %v2029_v16 }
  0x26   :  { %v934_v36 = vadd.f32 %v933_v32, %v871_v28 }
  0x27   :  { %v802_v42 = vadd.f32 %v801_v37, %v1936_v35 }
  0x28   :  { %v935_v43 = vadd.f32 %v934_v36, %v872_v33 }
  0x29   :  { %v803_v46 = vadd.f32 %v802_v42, %v1944_v39  ;;  %v2072_v42 = vld [vmem:[%s2589_s0 + $0x190] sm:$0xff] }
  0x2a   :  { %1592 = vmatmul.mubr.bf16.gmra.mrb[4].mxu0 %v82_v21  ;;  %1624 = vmatmul.mubr.bf16.gmra.mrb[4].mxu1 %v98_v30  ;;  %v936_v54 = vadd.f32 %v935_v43, %v873_v38  ;;  %v2056_v30 = vld [vmem:[%s2589_s0 + $0xd8] sm:$0xff] }
  0x2b   :  { %1595 = vmatprep.mubr.bf16.mxu0 %v83_v25  ;;  %1627 = vmatprep.mubr.bf16.mxu1 %v99_v34  ;;  %v804_v58 = vadd.f32 %v803_v46, %v1964_v49  ;;  %v2044_v25 = vld [vmem:[%s2589_s0 + $0xd0] sm:$0xff]  ;;  %v881_v33 = vmul.f32 %v2056_v30, %v2056_v30  ;;  %v2064_v34 = vld [vmem:[%s2589_s0 + $0xe0] sm:$0xff]  ;;  %v2077_v43 = vld [vmem:[%s2589_s0 + $0x198] sm:$0xff]  ;;  %v89_v46 = vpack.c.bf16 %v1964_v49, %v1944_v39 }
  0x2c   :  { %v937_v61 = vadd.f32 %v936_v54, %v874_v44  ;;  %v880_v15 = vmul.f32 %v2044_v25, %v2044_v25  ;;  %v882_v38 = vmul.f32 %v2064_v34, %v2064_v34  ;;  %v88_v44 = vpack.c.bf16 %v1936_v35, %v1924_v29  ;;  %v2094_v54 = vld [vmem:[%s2589_s0 + $0x1a8] sm:$0xff] }
  0x2d   :  { %v805_v3 = vadd.f32 %v804_v58, %v1984_v56  ;;  %v104_v58 = vpack.c.bf16 %v2077_v43, %v2072_v42 }
  0x2e   :  { %v938_v2 = vadd.f32 %v937_v61, %v875_v51 }
  0x2f   :  { %v806_v7 = vadd.f32 %v805_v3, %v1996_v1 }
  0x30   :  { %v939_v8 = vadd.f32 %v938_v2, %v876_v55 }
  0x31   :  { %v807_v5 = vadd.f32 %v806_v7, %v2004_v6 }
  0x32   :  { %1596 = vmatmul.mubr.bf16.gmra.mrb[8].mxu0 %v84_v48  ;;  %1628 = vmatmul.mubr.bf16.gmra.mrb[8].mxu1 %v100_v57  ;;  %v940_v21 = vadd.f32 %v939_v8, %v877_v4  ;;  %v2084_v48 = vld [vmem:[%s2589_s0 + $0xe8] sm:$0xff]  ;;  %v2104_v57 = vld [vmem:[%s2589_s0 + $0xf0] sm:$0xff]  ;;  %v886_v8 = vmul.f32 %v1790_v40, %v1790_v40 }
  0x33   :  { %1599 = vmatprep.mubr.bf16.mxu0 %v85_v53  ;;  %1631 = vmatprep.mubr.bf16.mxu1 %v101_v62  ;;  %v808_v26 = vadd.f32 %v807_v5, %v2024_v14  ;;  %v2089_v53 = vld [vmem:[%s2589_s0 + $0x1a0] sm:$0xff]  ;;  %v883_v35 = vmul.f32 %v2084_v48, %v2084_v48  ;;  %v884_v39 = vmul.f32 %v2104_v57, %v2104_v57  ;;  %v2116_v62 = vld [vmem:[%s2589_s0 + $0xf8] sm:$0xff] }
  0x34   :  { %v941_v28 = vadd.f32 %v940_v21, %v878_v9  ;;  %v105_v49 = vpack.c.bf16 %v2094_v54, %v2089_v53  ;;  %v885_v3 = vmul.f32 %v2116_v62, %v2116_v62  ;;  %v90_v21 = vpack.c.bf16 %v1996_v1, %v1984_v56  ;;  %v2139_v5 = vld [vmem:[%s2589_s0 + $0x1c0] sm:$0xff] }
  0x35   :  { %v809_v32 = vadd.f32 %v808_v26, %v2044_v25 }
  0x36   :  { %v942_v31 = vadd.f32 %v941_v28, %v879_v11  ;;  %v2144_v11 = vld [vmem:[%s2589_s0 + $0x1c8] sm:$0xff]  ;;  %v887_v28 = vmul.f32 %v1795_v41, %v1795_v41 }
  0x37   :  { %v810_v36 = vadd.f32 %v809_v32, %v2056_v30  ;;  %v107_v32 = vpack.c.bf16 %v2144_v11, %v2139_v5 }
  0x38   :  { %v943_v37 = vadd.f32 %v942_v31, %v880_v15  ;;  %v888_v31 = vmul.f32 %v1832_v59, %v1832_v59 }
  0x39   :  { %v811_v29 = vadd.f32 %v810_v36, %v2064_v34 }
  0x3a   :  { %1600 = vmatmul.mubr.bf16.gmra.mrb[12].mxu0 %v86_v13  ;;  %1632 = vmatmul.mubr.bf16.gmra.mrb[12].mxu1 %v102_v27  ;;  %v944_v51 = vadd.f32 %v943_v37, %v881_v33  ;;  %v2127_v13 = vld [vmem:[%s2589_s0 + $0x1b0] sm:$0xff]  ;;  %v91_v27 = vpack.c.bf16 %v2024_v14, %v2004_v6  ;;  %v889_v14 = vmul.f32 %v1837_v60, %v1837_v60 }
  0x3b   :  { %1603 = vmatprep.mubr.bf16.mxu0 %v87_v18  ;;  %1635 = vmatprep.mubr.bf16.mxu1 %v103_v22  ;;  %v812_v61 = vadd.f32 %v811_v29, %v2084_v48  ;;  %v2132_v18 = vld [vmem:[%s2589_s0 + $0x1b8] sm:$0xff]  ;;  %v2167_v37 = vld [vmem:[%s2589_s0 + $0x1d0] sm:$0xff] }
  0x3c   :  { %v945_v55 = vadd.f32 %v944_v51, %v882_v38  ;;  %v106_v56 = vpack.c.bf16 %v2132_v18, %v2127_v13  ;;  %v92_v38 = vpack.c.bf16 %v2056_v30, %v2044_v25 }
  0x3d   :  { %v813_v4 = vadd.f32 %v812_v61, %v2104_v57  ;;  %v892_v61 = vmul.f32 %v1892_v19, %v1892_v19 }
  0x3e   :  { %v946_v2 = vadd.f32 %v945_v55, %v883_v35  ;;  %v891_v35 = vmul.f32 %v1854_v0, %v1854_v0 }
  0x3f   :  { %v814_v7 = vadd.f32 %v813_v4, %v2116_v62 }
  0x40   :  { %v947_v9 = vadd.f32 %v946_v2, %v884_v39  ;;  %v2207_v2 = vld [vmem:[%s2589_s0 + $0x1f0] sm:$0xff] }
  0x41   :  { %v815_v26 = vadd.f32 %v814_v7, %v1790_v40  ;;  %v895_v7 = vmul.f32 %v1914_v24, %v1914_v24 }
  0x42   :  { %1604 = vmatmul.mubr.bf16.gmra.mrb[16].mxu0 %v88_v44  ;;  %1636 = vmatmul.mubr.bf16.gmra.mrb[16].mxu1 %v104_v58  ;;  %v948_v15 = vadd.f32 %v947_v9, %v885_v3  ;;  %v2184_v44 = vld [vmem:[%s2589_s0 + $0x1e8] sm:$0xff]  ;;  %v94_v3 = vpack.c.bf16 %v2116_v62, %v2104_v57  ;;  %v897_v57 = vmul.f32 %v1957_v47, %v1957_v47 }
  0x43   :  { %1607 = vmatprep.mubr.bf16.mxu0 %v89_v46  ;;  %1639 = vmatprep.mubr.bf16.mxu1 %v105_v49  ;;  %v816_v1 = vadd.f32 %v815_v26, %v1795_v41  ;;  %v890_v41 = vmul.f32 %v1849_v63, %v1849_v63  ;;  %v93_v46 = vpack.c.bf16 %v2084_v48, %v2064_v34 }
  0x44   :  { %v949_v22 = vadd.f32 %v948_v15, %v886_v8  ;;  %v893_v48 = vmul.f32 %v1897_v20, %v1897_v20  ;;  %v898_v15 = vmul.f32 %v1969_v50, %v1969_v50 }
  0x45   :  { %v817_v40 = vadd.f32 %v816_v1, %v1832_v59  ;;  %v2172_v59 = vld [vmem:[%s2589_s0 + $0x1d8] sm:$0xff]  ;;  %v899_v1 = vmul.f32 %v1974_v52, %v1974_v52 }
  0x46   :  { %v950_v6 = vadd.f32 %v949_v22, %v887_v28  ;;  %v108_v25 = vpack.c.bf16 %v2172_v59, %v2167_v37 }
  0x47   :  { %v818_v33 = vadd.f32 %v817_v40, %v1837_v60  ;;  %v2179_v60 = vld [vmem:[%s2589_s0 + $0x1e0] sm:$0xff] }
  0x48   :  { %v951_v36 = vadd.f32 %v950_v6, %v888_v31  ;;  %v109_v55 = vpack.c.bf16 %v2184_v44, %v2179_v60 }
  0x49   :  { %v819_v29 = vadd.f32 %v818_v33, %v1849_v63 }
  0x4a   :  { %1608 = vmatmul.mubr.bf16.gmra.mrb[20].mxu0 %v90_v21  ;;  %1640 = vmatmul.mubr.bf16.gmra.mrb[20].mxu1 %v106_v56  ;;  %v952_v51 = vadd.f32 %v951_v36, %v889_v14 }
  0x4b   :  { %1611 = vmatprep.mubr.bf16.mxu0 %v91_v27  ;;  %1643 = vmatprep.mubr.bf16.mxu1 %v107_v32  ;;  %v820_v30 = vadd.f32 %v819_v29, %v1854_v0  ;;  %v894_v0 = vmul.f32 %v1909_v23, %v1909_v23  ;;  %v896_v27 = vmul.f32 %v1952_v45, %v1952_v45 }
  0x4c   :  { %v953_v58 = vadd.f32 %v952_v51, %v890_v41 }
  0x4d   :  { %v821_v63 = vadd.f32 %v820_v30, %v1892_v19  ;;  %v2212_v19 = vld [vmem:[%s2589_s0 + $0x1f8] sm:$0xff] }
  0x4e   :  { %v954_v34 = vadd.f32 %v953_v58, %v891_v35  ;;  %v110_v8 = vpack.c.bf16 %v2212_v19, %v2207_v2 }
  0x4f   :  { %v822_v39 = vadd.f32 %v821_v63, %v1897_v20 }
  0x50   :  { %v955_v49 = vadd.f32 %v954_v34, %v892_v61 }
  0x51   :  { %v823_v20 = vadd.f32 %v822_v39, %v1909_v23 }
  0x52   :  { %1612 = vmatmul.mubr.bf16.gmra.mrb[24].mxu0 %v92_v38  ;;  %1644 = vmatmul.mubr.bf16.gmra.mrb[24].mxu1 %v108_v25  ;;  %v956_v4 = vadd.f32 %v955_v49, %v893_v48 }
  0x53   :  { %1615 = vmatprep.mubr.bf16.mxu0 %v93_v46  ;;  %1647 = vmatprep.mubr.bf16.mxu1 %v109_v55  ;;  %v824_v9 = vadd.f32 %v823_v20, %v1914_v24 }
  0x54   :  { %v957_v21 = vadd.f32 %v956_v4, %v894_v0 }
  0x55   :  { %v825_v28 = vadd.f32 %v824_v9, %v1952_v45  ;;  %v900_v45 = vmul.f32 %v2012_v10, %v2012_v10 }
  0x56   :  { %v958_v26 = vadd.f32 %v957_v21, %v895_v7 }
  0x57   :  { %v826_v23 = vadd.f32 %v825_v28, %v1957_v47  ;;  %v901_v47 = vmul.f32 %v2017_v12, %v2017_v12 }
  0x58   :  { %v959_v62 = vadd.f32 %v958_v26, %v896_v27 }
  0x59   :  { %v827_v24 = vadd.f32 %v826_v23, %v1969_v50  ;;  %v902_v50 = vmul.f32 %v2029_v16, %v2029_v16 }
  0x5a   :  { %1616 = vmatmul.mubr.bf16.gmra.mrb[28].mxu0 %v94_v3  ;;  %1648 = vmatmul.mubr.bf16.gmra.mrb[28].mxu1 %v110_v8  ;;  %v960_v56 = vadd.f32 %v959_v62, %v897_v57 }
  0x5b   :  { %v828_v22 = vadd.f32 %v827_v24, %v1974_v52  ;;  %v903_v52 = vmul.f32 %v2034_v17, %v2034_v17 }
  0x5c   :  { %v961_v31 = vadd.f32 %v960_v56, %v898_v15 }
  0x5d   :  { %v829_v6 = vadd.f32 %v828_v22, %v2012_v10  ;;  %v904_v10 = vmul.f32 %v2072_v42, %v2072_v42 }
  0x5e   :  { %v962_v32 = vadd.f32 %v961_v31, %v899_v1 }
  0x5f   :  { %v830_v40 = vadd.f32 %v829_v6, %v2017_v12  ;;  %v905_v12 = vmul.f32 %v2077_v43, %v2077_v43 }
  0x60   :  { %v963_v14 = vadd.f32 %v962_v32, %v900_v45 }
  0x61   :  { %v831_v36 = vadd.f32 %v830_v40, %v2029_v16  ;;  %v906_v16 = vmul.f32 %v2089_v53, %v2089_v53 }
  0x62   :  { %v964_v33 = vadd.f32 %v963_v14, %v901_v47 }
  0x63   :  { %v832_v41 = vadd.f32 %v831_v36, %v2034_v17  ;;  %v907_v17 = vmul.f32 %v2094_v54, %v2094_v54 }
  0x64   :  { %v965_v38 = vadd.f32 %v964_v33, %v902_v50 }
  0x65   :  { %v833_v51 = vadd.f32 %v832_v41, %v2072_v42  ;;  %v908_v42 = vmul.f32 %v2127_v13, %v2127_v13 }
  0x66   :  { %v966_v46 = vadd.f32 %v965_v38, %v903_v52 }
  0x67   :  { %v834_v29 = vadd.f32 %v833_v51, %v2077_v43  ;;  %v909_v43 = vmul.f32 %v2132_v18, %v2132_v18 }
  0x68   :  { %v967_v35 = vadd.f32 %v966_v46, %v904_v10 }
  0x69   :  { %v835_v30 = vadd.f32 %v834_v29, %v2089_v53  ;;  %v910_v53 = vmul.f32 %v2139_v5, %v2139_v5 }
  0x6a   :  { %v968_v25 = vadd.f32 %v967_v35, %v905_v12 }
  0x6b   :  { %v836_v58 = vadd.f32 %v835_v30, %v2094_v54  ;;  %v911_v54 = vmul.f32 %v2144_v11, %v2144_v11 }
  0x6c   :  { %v969_v61 = vadd.f32 %v968_v25, %v906_v16 }
  0x6d   :  { %v837_v34 = vadd.f32 %v836_v58, %v2127_v13  ;;  %v912_v13 = vmul.f32 %v2167_v37, %v2167_v37 }
  0x6e   :  { %v970_v55 = vadd.f32 %v969_v61, %v907_v17 }
  0x6f   :  { %v838_v63 = vadd.f32 %v837_v34, %v2132_v18  ;;  %v913_v18 = vmul.f32 %v2172_v59, %v2172_v59 }
  0x70   :  { %v971_v48 = vadd.f32 %v970_v55, %v908_v42 }
  0x71   :  { %v839_v49 = vadd.f32 %v838_v63, %v2139_v5  ;;  %v914_v5 = vmul.f32 %v2179_v60, %v2179_v60 }
  0x72   :  { %v972_v39 = vadd.f32 %v971_v48, %v909_v43 }
  0x73   :  { %v840_v0 = vadd.f32 %v839_v49, %v2144_v11  ;;  %v915_v11 = vmul.f32 %v2184_v44, %v2184_v44 }
  0x74   :  { %v973_v3 = vadd.f32 %v972_v39, %v910_v53 }
  0x75   :  { %v841_v20 = vadd.f32 %v840_v0, %v2167_v37  ;;  %v916_v37 = vmul.f32 %v2207_v2, %v2207_v2 }
  0x76   :  { %v974_v4 = vadd.f32 %v973_v3, %v911_v54 }
  0x77   :  { %v842_v7 = vadd.f32 %v841_v20, %v2172_v59  ;;  %v917_v59 = vmul.f32 %v2212_v19, %v2212_v19 }
  0x78   :  { %v975_v8 = vadd.f32 %v974_v4, %v912_v13 }
  0x79   :  { %v843_v21 = vadd.f32 %v842_v7, %v2179_v60 }
  0x7a   :  { %v976_v9 = vadd.f32 %v975_v8, %v913_v18 }
  0x7b   :  { %v844_v27 = vadd.f32 %v843_v21, %v2184_v44 }
  0x7c   :  { %v977_v26 = vadd.f32 %v976_v9, %v914_v5 }
  0x7d   :  { %v845_v57 = vadd.f32 %v844_v27, %v2207_v2 }
  0x7e   :  { %v978_v28 = vadd.f32 %v977_v26, %v915_v11 }
  0x7f   :  { %v846_v23 = vadd.f32 %v845_v57, %v2212_v19 }
  0x80   :  { %v979_v62 = vadd.f32 %v978_v28, %v916_v37 }
  0x81   :  { %v847_v15 = vrot.slane %v846_v23, 4 }
  0x82   :  { %v980_v60 = vadd.f32 %v979_v62, %v917_v59 }
  0x83   :  { %v848_v56 = vadd.f32 %v847_v15, %v846_v23 }
  0x84   :  { %v981_v24 = vrot.slane %v980_v60, 4 }
  0x85   :  { %v849_v1 = vrot.slane %v848_v56, 2 }
  0x86   :  { %v982_v22 = vadd.f32 %v981_v24, %v980_v60 }
  0x87   :  { %v850_v44 = vadd.f32 %v849_v1, %v848_v56 }
  0x88   :  { %v983_v31 = vrot.slane %v982_v22, 2 }
  0x89   :  { %v851_v45 = vrot.slane %v850_v44, 1 }
  0x8a   :  { %v984_v32 = vadd.f32 %v983_v31, %v982_v22 }
  0x8b   :  { %v852_v6 = vadd.f32 %v851_v45, %v850_v44 }
  0x8c   :  { %v985_v47 = vrot.slane %v984_v32, 1 }
  0x8d   :  { %853 = vst [vmem:[%s2590_s3] sm:$0x1] %v852_v6 }
  0x8e   :  { %v986_v2 = vadd.f32 %v985_v47, %v984_v32 }
  0x90   :  { %987 = vst [vmem:[%s2590_s3 + $0x1] sm:$0x1] %v986_v2 }
  0xf5   :  { %v1589_v19 = vpop.f32.mrb[0].mxu0  ;;  %v2294_v50 = vpop.f32.mrb[0].mxu1 }
  0xf6   :  { %v209_v40 = vpop.f32.mrb[1].mxu0  ;;  %v2296_v52 = vpop.f32.mrb[1].mxu1  ;;  %v1060_v35 = vmul.f32 %v1589_v19, %v1589_v19 }
  0xf7   :  { %v1590_v14 = vpop.f32.mrb[2].mxu0  ;;  %v1058_v41 = vmul.f32 %v209_v40, %v209_v40  ;;  %v2298_v51 = vpop.f32.mrb[2].mxu1 }
  0xf8   :  { %v1348_v33 = vpack.c.bf16 %v1590_v14, %v1589_v19  ;;  %v212_v36 = vpop.f32.mrb[3].mxu0  ;;  %v1428_v12 = vpack.c.bf16 %v2298_v51, %v2294_v50  ;;  %v2305_v29 = vpop.f32.mrb[3].mxu1  ;;  %v1061_v17 = vmul.f32 %v1590_v14, %v1590_v14 }
  0xf9   :  { %v1343_v38 = vpack.c.bf16 %v212_v36, %v209_v40  ;;  %v988_v10 = vadd.f32 %v212_v36, %v209_v40  ;;  %v1059_v46 = vmul.f32 %v212_v36, %v212_v36  ;;  %v1423_v30 = vpack.c.bf16 %v2305_v29, %v2296_v52 }
  0xfa   :  { %1500 = vst [vmem:[%s2591_s2 + $0x8] sm:$0xff] %v1348_v33   ;;  %1516 = vst [vmem:[%s2591_s2 + $0x88] sm:$0xff] %v1428_v12  }
  0xfb   :  { %1344 = vst [vmem:[%s2591_s2] sm:$0xff] %v1343_v38   ;;  %v989_v16 = vadd.f32 %v1589_v19, %v988_v10  ;;  %v1122_v25 = vadd.f32 %v1059_v46, %v1058_v41  ;;  %1515 = vst [vmem:[%s2591_s2 + $0x80] sm:$0xff] %v1423_v30  }
  0xfd   :  { %v1123_v58 = vadd.f32 %v1122_v25, %v1060_v35  ;;  %v1593_v61 = vpop.f32.mrb[4].mxu0  ;;  %v990_v42 = vadd.f32 %v1590_v14, %v989_v16  ;;  %v2318_v53 = vpop.f32.mrb[4].mxu1 }
  0xfe   :  { %v225_v55 = vpop.f32.mrb[5].mxu0  ;;  %v2320_v54 = vpop.f32.mrb[5].mxu1  ;;  %v1064_v8 = vmul.f32 %v1593_v61, %v1593_v61 }
  0xff   :  { %v991_v34 = vadd.f32 %v990_v42, %v225_v55  ;;  %v1062_v43 = vmul.f32 %v225_v55, %v225_v55  ;;  %v1124_v63 = vadd.f32 %v1123_v58, %v1061_v17  ;;  %v1594_v48 = vpop.f32.mrb[6].mxu0  ;;  %v2322_v20 = vpop.f32.mrb[6].mxu1 }
 0x100   :  { %v1358_v39 = vpack.c.bf16 %v1594_v48, %v1593_v61  ;;  %v228_v49 = vpop.f32.mrb[7].mxu0  ;;  %v1438_v18 = vpack.c.bf16 %v2322_v20, %v2318_v53  ;;  %v2329_v7 = vpop.f32.mrb[7].mxu1  ;;  %v1065_v11 = vmul.f32 %v1594_v48, %v1594_v48 }
 0x101   :  { %v1125_v0 = vadd.f32 %v1124_v63, %v1062_v43  ;;  %v1353_v3 = vpack.c.bf16 %v228_v49, %v225_v55  ;;  %v992_v13 = vadd.f32 %v991_v34, %v228_v49  ;;  %v1063_v4 = vmul.f32 %v228_v49, %v228_v49 }
 0x102   :  { %1502 = vst [vmem:[%s2591_s2 + $0x18] sm:$0xff] %v1358_v39   ;;  %v1433_v21 = vpack.c.bf16 %v2329_v7, %v2320_v54  ;;  %1518 = vst [vmem:[%s2591_s2 + $0x98] sm:$0xff] %v1438_v18  }
 0x103   :  { %1501 = vst [vmem:[%s2591_s2 + $0x10] sm:$0xff] %v1353_v3   ;;  %v993_v5 = vadd.f32 %v1593_v61, %v992_v13  ;;  %v1126_v9 = vadd.f32 %v1125_v0, %v1063_v4 }
 0x104   :  { %1517 = vst [vmem:[%s2591_s2 + $0x90] sm:$0xff] %v1433_v21  }
 0x105   :  { %v1127_v27 = vadd.f32 %v1126_v9, %v1064_v8  ;;  %v1597_v26 = vpop.f32.mrb[8].mxu0  ;;  %v994_v37 = vadd.f32 %v1594_v48, %v993_v5  ;;  %v2342_v15 = vpop.f32.mrb[8].mxu1 }
 0x106   :  { %v241_v28 = vpop.f32.mrb[9].mxu0  ;;  %v2344_v24 = vpop.f32.mrb[9].mxu1  ;;  %v1068_v47 = vmul.f32 %v1597_v26, %v1597_v26 }
 0x107   :  { %v995_v57 = vadd.f32 %v994_v37, %v241_v28  ;;  %v1066_v59 = vmul.f32 %v241_v28, %v241_v28  ;;  %v1128_v23 = vadd.f32 %v1127_v27, %v1065_v11  ;;  %v1598_v62 = vpop.f32.mrb[10].mxu0  ;;  %v2346_v45 = vpop.f32.mrb[10].mxu1 }
 0x108   :  { %v1368_v60 = vpack.c.bf16 %v1598_v62, %v1597_v26  ;;  %v244_v56 = vpop.f32.mrb[11].mxu0  ;;  %v1448_v32 = vpack.c.bf16 %v2346_v45, %v2342_v15  ;;  %v2353_v6 = vpop.f32.mrb[11].mxu1  ;;  %v1069_v14 = vmul.f32 %v1598_v62, %v1598_v62 }
 0x109   :  { %v1129_v1 = vadd.f32 %v1128_v23, %v1066_v59  ;;  %v1363_v22 = vpack.c.bf16 %v244_v56, %v241_v28  ;;  %v996_v44 = vadd.f32 %v995_v57, %v244_v56  ;;  %v1067_v31 = vmul.f32 %v244_v56, %v244_v56 }
 0x10a   :  { %1504 = vst [vmem:[%s2591_s2 + $0x28] sm:$0xff] %v1368_v60   ;;  %v1443_v40 = vpack.c.bf16 %v2353_v6, %v2344_v24  ;;  %1520 = vst [vmem:[%s2591_s2 + $0xa8] sm:$0xff] %v1448_v32  }
 0x10b   :  { %1503 = vst [vmem:[%s2591_s2 + $0x20] sm:$0xff] %v1363_v22   ;;  %v997_v2 = vadd.f32 %v1597_v26, %v996_v44  ;;  %v1130_v19 = vadd.f32 %v1129_v1, %v1067_v31 }
 0x10c   :  { %1519 = vst [vmem:[%s2591_s2 + $0xa0] sm:$0xff] %v1443_v40  }
 0x10d   :  { %v1131_v33 = vadd.f32 %v1130_v19, %v1068_v47  ;;  %v1601_v36 = vpop.f32.mrb[12].mxu0  ;;  %v998_v41 = vadd.f32 %v1598_v62, %v997_v2  ;;  %v2366_v16 = vpop.f32.mrb[12].mxu1 }
 0x10e   :  { %v257_v38 = vpop.f32.mrb[13].mxu0  ;;  %v2368_v17 = vpop.f32.mrb[13].mxu1  ;;  %v1072_v48 = vmul.f32 %v1601_v36, %v1601_v36 }
 0x10f   :  { %v999_v10 = vadd.f32 %v998_v41, %v257_v38  ;;  %v1070_v46 = vmul.f32 %v257_v38, %v257_v38  ;;  %v1132_v12 = vadd.f32 %v1131_v33, %v1069_v14  ;;  %v1602_v35 = vpop.f32.mrb[14].mxu0  ;;  %v2370_v34 = vpop.f32.mrb[14].mxu1 }
 0x110   :  { %v1378_v25 = vpack.c.bf16 %v1602_v35, %v1601_v36  ;;  %v260_v30 = vpop.f32.mrb[15].mxu0  ;;  %v1458_v43 = vpack.c.bf16 %v2370_v34, %v2366_v16  ;;  %v2377_v63 = vpop.f32.mrb[15].mxu1  ;;  %v1073_v3 = vmul.f32 %v1602_v35, %v1602_v35 }
 0x111   :  { %v1133_v58 = vadd.f32 %v1132_v12, %v1070_v46  ;;  %v1373_v61 = vpack.c.bf16 %v260_v30, %v257_v38  ;;  %v1000_v42 = vadd.f32 %v999_v10, %v260_v30  ;;  %v1071_v55 = vmul.f32 %v260_v30, %v260_v30 }
 0x112   :  { %1506 = vst [vmem:[%s2591_s2 + $0x38] sm:$0xff] %v1378_v25   ;;  %v1453_v0 = vpack.c.bf16 %v2377_v63, %v2368_v17  ;;  %1522 = vst [vmem:[%s2591_s2 + $0xb8] sm:$0xff] %v1458_v43  }
 0x113   :  { %1505 = vst [vmem:[%s2591_s2 + $0x30] sm:$0xff] %v1373_v61   ;;  %v1001_v39 = vadd.f32 %v1601_v36, %v1000_v42  ;;  %v1134_v49 = vadd.f32 %v1133_v58, %v1071_v55 }
 0x114   :  { %1521 = vst [vmem:[%s2591_s2 + $0xb0] sm:$0xff] %v1453_v0  }
 0x115   :  { %v1135_v13 = vadd.f32 %v1134_v49, %v1072_v48  ;;  %v1605_v4 = vpop.f32.mrb[16].mxu0  ;;  %v1002_v18 = vadd.f32 %v1602_v35, %v1001_v39  ;;  %v2390_v27 = vpop.f32.mrb[16].mxu1 }
 0x116   :  { %v273_v8 = vpop.f32.mrb[17].mxu0  ;;  %v2392_v28 = vpop.f32.mrb[17].mxu1  ;;  %v1076_v22 = vmul.f32 %v1605_v4, %v1605_v4 }
 0x117   :  { %v1003_v5 = vadd.f32 %v1002_v18, %v273_v8  ;;  %v1074_v9 = vmul.f32 %v273_v8, %v273_v8  ;;  %v1136_v21 = vadd.f32 %v1135_v13, %v1073_v3  ;;  %v1606_v11 = vpop.f32.mrb[18].mxu0  ;;  %v2394_v60 = vpop.f32.mrb[18].mxu1 }
 0x118   :  { %v1388_v26 = vpack.c.bf16 %v1606_v11, %v1605_v4  ;;  %v276_v37 = vpop.f32.mrb[19].mxu0  ;;  %v1468_v56 = vpack.c.bf16 %v2394_v60, %v2390_v27  ;;  %v2401_v1 = vpop.f32.mrb[19].mxu1  ;;  %v1077_v47 = vmul.f32 %v1606_v11, %v1606_v11 }
 0x119   :  { %v1137_v57 = vadd.f32 %v1136_v21, %v1074_v9  ;;  %v1383_v59 = vpack.c.bf16 %v276_v37, %v273_v8  ;;  %v1004_v23 = vadd.f32 %v1003_v5, %v276_v37  ;;  %v1075_v62 = vmul.f32 %v276_v37, %v276_v37 }
 0x11a   :  { %1508 = vst [vmem:[%s2591_s2 + $0x48] sm:$0xff] %v1388_v26   ;;  %v1463_v32 = vpack.c.bf16 %v2401_v1, %v2392_v28  ;;  %1524 = vst [vmem:[%s2591_s2 + $0xc8] sm:$0xff] %v1468_v56  }
 0x11b   :  { %1507 = vst [vmem:[%s2591_s2 + $0x40] sm:$0xff] %v1383_v59   ;;  %v1005_v44 = vadd.f32 %v1605_v4, %v1004_v23  ;;  %v1138_v31 = vadd.f32 %v1137_v57, %v1075_v62 }
 0x11c   :  { %1523 = vst [vmem:[%s2591_s2 + $0xc0] sm:$0xff] %v1463_v32  }
 0x11d   :  { %v1139_v2 = vadd.f32 %v1138_v31, %v1076_v22  ;;  %v1609_v19 = vpop.f32.mrb[20].mxu0  ;;  %v1006_v40 = vadd.f32 %v1606_v11, %v1005_v44  ;;  %v2414_v10 = vpop.f32.mrb[20].mxu1 }
 0x11e   :  { %v289_v14 = vpop.f32.mrb[21].mxu0  ;;  %v2416_v35 = vpop.f32.mrb[21].mxu1  ;;  %v1080_v48 = vmul.f32 %v1609_v19, %v1609_v19 }
 0x11f   :  { %v1007_v33 = vadd.f32 %v1006_v40, %v289_v14  ;;  %v1078_v36 = vmul.f32 %v289_v14, %v289_v14  ;;  %v1140_v41 = vadd.f32 %v1139_v2, %v1077_v47  ;;  %v1610_v38 = vpop.f32.mrb[22].mxu0  ;;  %v2418_v42 = vpop.f32.mrb[22].mxu1 }
 0x120   :  { %v1398_v46 = vpack.c.bf16 %v1610_v38, %v1609_v19  ;;  %v292_v12 = vpop.f32.mrb[23].mxu0  ;;  %v1478_v55 = vpack.c.bf16 %v2418_v42, %v2414_v10  ;;  %v2425_v43 = vpop.f32.mrb[23].mxu1  ;;  %v1081_v3 = vmul.f32 %v1610_v38, %v1610_v38 }
 0x121   :  { %v1141_v25 = vadd.f32 %v1140_v41, %v1078_v36  ;;  %v1393_v30 = vpack.c.bf16 %v292_v12, %v289_v14  ;;  %v1008_v58 = vadd.f32 %v1007_v33, %v292_v12  ;;  %v1079_v61 = vmul.f32 %v292_v12, %v292_v12 }
 0x122   :  { %1510 = vst [vmem:[%s2591_s2 + $0x58] sm:$0xff] %v1398_v46   ;;  %v1473_v0 = vpack.c.bf16 %v2425_v43, %v2416_v35  ;;  %1526 = vst [vmem:[%s2591_s2 + $0xd8] sm:$0xff] %v1478_v55  }
 0x123   :  { %1509 = vst [vmem:[%s2591_s2 + $0x50] sm:$0xff] %v1393_v30   ;;  %v1009_v39 = vadd.f32 %v1609_v19, %v1008_v58  ;;  %v1142_v49 = vadd.f32 %v1141_v25, %v1079_v61 }
 0x124   :  { %1525 = vst [vmem:[%s2591_s2 + $0xd0] sm:$0xff] %v1473_v0  }
 0x125   :  { %v1143_v13 = vadd.f32 %v1142_v49, %v1080_v48  ;;  %v1613_v4 = vpop.f32.mrb[24].mxu0  ;;  %v1010_v18 = vadd.f32 %v1610_v38, %v1009_v39  ;;  %v2438_v26 = vpop.f32.mrb[24].mxu1 }
 0x126   :  { %v305_v8 = vpop.f32.mrb[25].mxu0  ;;  %v2440_v59 = vpop.f32.mrb[25].mxu1  ;;  %v1084_v47 = vmul.f32 %v1613_v4, %v1613_v4 }
 0x127   :  { %v1011_v5 = vadd.f32 %v1010_v18, %v305_v8  ;;  %v1082_v9 = vmul.f32 %v305_v8, %v305_v8  ;;  %v1144_v21 = vadd.f32 %v1143_v13, %v1081_v3  ;;  %v1614_v11 = vpop.f32.mrb[26].mxu0  ;;  %v2442_v44 = vpop.f32.mrb[26].mxu1 }
 0x128   :  { %v1408_v37 = vpack.c.bf16 %v1614_v11, %v1613_v4  ;;  %v308_v57 = vpop.f32.mrb[27].mxu0  ;;  %v1488_v31 = vpack.c.bf16 %v2442_v44, %v2438_v26  ;;  %v2449_v32 = vpop.f32.mrb[27].mxu1  ;;  %v1085_v14 = vmul.f32 %v1614_v11, %v1614_v11 }
 0x129   :  { %v1145_v23 = vadd.f32 %v1144_v21, %v1082_v9  ;;  %v1403_v62 = vpack.c.bf16 %v308_v57, %v305_v8  ;;  %v1012_v56 = vadd.f32 %v1011_v5, %v308_v57  ;;  %v1083_v22 = vmul.f32 %v308_v57, %v308_v57 }
 0x12a   :  { %1512 = vst [vmem:[%s2591_s2 + $0x68] sm:$0xff] %v1408_v37   ;;  %v1483_v40 = vpack.c.bf16 %v2449_v32, %v2440_v59  ;;  %1528 = vst [vmem:[%s2591_s2 + $0xe8] sm:$0xff] %v1488_v31  }
 0x12b   :  { %1511 = vst [vmem:[%s2591_s2 + $0x60] sm:$0xff] %v1403_v62   ;;  %v1013_v2 = vadd.f32 %v1613_v4, %v1012_v56  ;;  %v1146_v19 = vadd.f32 %v1145_v23, %v1083_v22  ;;  %v1090_v23 = vmul.f32 %v2296_v52, %v2296_v52 }
 0x12c   :  { %1527 = vst [vmem:[%s2591_s2 + $0xe0] sm:$0xff] %v1483_v40  }
 0x12d   :  { %v1147_v33 = vadd.f32 %v1146_v19, %v1084_v47  ;;  %v1617_v36 = vpop.f32.mrb[28].mxu0  ;;  %v1014_v41 = vadd.f32 %v1614_v11, %v1013_v2  ;;  %v2462_v58 = vpop.f32.mrb[28].mxu1  ;;  %v1091_v47 = vmul.f32 %v2305_v29, %v2305_v29  ;;  %v1092_v2 = vmul.f32 %v2294_v50, %v2294_v50 }
 0x12e   :  { %v321_v38 = vpop.f32.mrb[29].mxu0  ;;  %v2464_v48 = vpop.f32.mrb[29].mxu1  ;;  %v1088_v8 = vmul.f32 %v1617_v36, %v1617_v36 }
 0x12f   :  { %v1015_v46 = vadd.f32 %v1014_v41, %v321_v38  ;;  %v1086_v12 = vmul.f32 %v321_v38, %v321_v38  ;;  %v1148_v25 = vadd.f32 %v1147_v33, %v1085_v14  ;;  %v1618_v30 = vpop.f32.mrb[30].mxu0  ;;  %v2466_v13 = vpop.f32.mrb[30].mxu1  ;;  %v1093_v14 = vmul.f32 %v2298_v51, %v2298_v51 }
 0x130   :  { %v1418_v61 = vpack.c.bf16 %v1618_v30, %v1617_v36  ;;  %v324_v55 = vpop.f32.mrb[31].mxu0  ;;  %v1498_v4 = vpack.c.bf16 %v2466_v13, %v2462_v58  ;;  %v2473_v18 = vpop.f32.mrb[31].mxu1  ;;  %v1089_v11 = vmul.f32 %v1618_v30, %v1618_v30 }
 0x131   :  { %v1149_v39 = vadd.f32 %v1148_v25, %v1086_v12  ;;  %v1413_v49 = vpack.c.bf16 %v324_v55, %v321_v38  ;;  %v1016_v0 = vadd.f32 %v1015_v46, %v324_v55  ;;  %v1087_v3 = vmul.f32 %v324_v55, %v324_v55 }
 0x132   :  { %1514 = vst [vmem:[%s2591_s2 + $0x78] sm:$0xff] %v1418_v61   ;;  %v1493_v21 = vpack.c.bf16 %v2473_v18, %v2464_v48  ;;  %1530 = vst [vmem:[%s2591_s2 + $0xf8] sm:$0xff] %v1498_v4   ;;  %v1095_v12 = vmul.f32 %v2329_v7, %v2329_v7 }
 0x133   :  { %1513 = vst [vmem:[%s2591_s2 + $0x70] sm:$0xff] %v1413_v49   ;;  %v1017_v5 = vadd.f32 %v1617_v36, %v1016_v0  ;;  %v1150_v9 = vadd.f32 %v1149_v39, %v1087_v3  ;;  %v1099_v3 = vmul.f32 %v2353_v6, %v2353_v6 }
 0x134   :  { %1529 = vst [vmem:[%s2591_s2 + $0xf0] sm:$0xff] %v1493_v21  }
 0x135   :  { %v1151_v37 = vadd.f32 %v1150_v9, %v1088_v8  ;;  %v1018_v57 = vadd.f32 %v1618_v30, %v1017_v5 }
 0x137   :  { %v1019_v62 = vadd.f32 %v1018_v57, %v2296_v52  ;;  %v1152_v56 = vadd.f32 %v1151_v37, %v1089_v11  ;;  %v1094_v52 = vmul.f32 %v2320_v54, %v2320_v54  ;;  %v1103_v57 = vmul.f32 %v2377_v63, %v2377_v63 }
 0x139   :  { %v1153_v22 = vadd.f32 %v1152_v56, %v1090_v23  ;;  %v1020_v31 = vadd.f32 %v1019_v62, %v2305_v29 }
 0x13b   :  { %v1021_v19 = vadd.f32 %v2294_v50, %v1020_v31  ;;  %v1154_v40 = vadd.f32 %v1153_v22, %v1091_v47  ;;  %v1096_v50 = vmul.f32 %v2318_v53, %v2318_v53 }
 0x13d   :  { %v1155_v33 = vadd.f32 %v1154_v40, %v1092_v2  ;;  %v1022_v36 = vadd.f32 %v2298_v51, %v1021_v19  ;;  %v1097_v51 = vmul.f32 %v2322_v20, %v2322_v20  ;;  %v1107_v19 = vmul.f32 %v2401_v1, %v2401_v1 }
 0x13f   :  { %v1023_v41 = vadd.f32 %v1022_v36, %v2320_v54  ;;  %v1156_v38 = vadd.f32 %v1155_v33, %v1093_v14  ;;  %v1098_v54 = vmul.f32 %v2344_v24, %v2344_v24 }
 0x141   :  { %v1157_v46 = vadd.f32 %v1156_v38, %v1094_v52  ;;  %v1024_v29 = vadd.f32 %v1023_v41, %v2329_v7 }
 0x143   :  { %v1025_v25 = vadd.f32 %v2318_v53, %v1024_v29  ;;  %v1158_v30 = vadd.f32 %v1157_v46, %v1095_v12  ;;  %v1100_v53 = vmul.f32 %v2342_v15, %v2342_v15  ;;  %v1111_v46 = vmul.f32 %v2425_v43, %v2425_v43 }
 0x145   :  { %v1159_v61 = vadd.f32 %v1158_v30, %v1096_v50  ;;  %v1026_v55 = vadd.f32 %v2322_v20, %v1025_v25  ;;  %v1101_v20 = vmul.f32 %v2346_v45, %v2346_v45 }
 0x147   :  { %v1027_v39 = vadd.f32 %v1026_v55, %v2344_v24  ;;  %v1160_v49 = vadd.f32 %v1159_v61, %v1097_v51  ;;  %v1102_v24 = vmul.f32 %v2368_v17, %v2368_v17  ;;  %v1115_v55 = vmul.f32 %v2449_v32, %v2449_v32 }
 0x149   :  { %v1161_v0 = vadd.f32 %v1160_v49, %v1098_v54  ;;  %v1028_v7 = vadd.f32 %v1027_v39, %v2353_v6 }
 0x14b   :  { %v1029_v4 = vadd.f32 %v2342_v15, %v1028_v7  ;;  %v1162_v8 = vadd.f32 %v1161_v0, %v1099_v3  ;;  %v1104_v15 = vmul.f32 %v2366_v16, %v2366_v16 }
 0x14d   :  { %v1163_v5 = vadd.f32 %v1162_v8, %v1100_v53  ;;  %v1030_v9 = vadd.f32 %v2346_v45, %v1029_v4  ;;  %v1105_v45 = vmul.f32 %v2370_v34, %v2370_v34  ;;  %v1119_v4 = vmul.f32 %v2473_v18, %v2473_v18 }
 0x14f   :  { %v1031_v21 = vadd.f32 %v1030_v9, %v2368_v17  ;;  %v1164_v11 = vadd.f32 %v1163_v5, %v1101_v20  ;;  %v1106_v17 = vmul.f32 %v2392_v28, %v2392_v28 }
 0x151   :  { %v1165_v37 = vadd.f32 %v1164_v11, %v1102_v24  ;;  %v1032_v6 = vadd.f32 %v1031_v21, %v2377_v63 }
 0x153   :  { %v1033_v23 = vadd.f32 %v2366_v16, %v1032_v6  ;;  %v1166_v62 = vadd.f32 %v1165_v37, %v1103_v57  ;;  %v1108_v16 = vmul.f32 %v2390_v27, %v2390_v27 }
 0x155   :  { %v1167_v56 = vadd.f32 %v1166_v62, %v1104_v15  ;;  %v1034_v22 = vadd.f32 %v2370_v34, %v1033_v23  ;;  %v1109_v34 = vmul.f32 %v2394_v60, %v2394_v60 }
 0x157   :  { %v1035_v31 = vadd.f32 %v1034_v22, %v2392_v28  ;;  %v1168_v47 = vadd.f32 %v1167_v56, %v1105_v45  ;;  %v1110_v28 = vmul.f32 %v2416_v35, %v2416_v35 }
 0x159   :  { %v1169_v2 = vadd.f32 %v1168_v47, %v1106_v17  ;;  %v1036_v63 = vadd.f32 %v1035_v31, %v2401_v1 }
 0x15b   :  { %v1037_v40 = vadd.f32 %v2390_v27, %v1036_v63  ;;  %v1170_v14 = vadd.f32 %v1169_v2, %v1107_v19  ;;  %v1112_v27 = vmul.f32 %v2414_v10, %v2414_v10 }
 0x15d   :  { %v1171_v33 = vadd.f32 %v1170_v14, %v1108_v16  ;;  %v1038_v36 = vadd.f32 %v2394_v60, %v1037_v40  ;;  %v1113_v60 = vmul.f32 %v2418_v42, %v2418_v42 }
 0x15f   :  { %v1039_v52 = vadd.f32 %v1038_v36, %v2416_v35  ;;  %v1172_v41 = vadd.f32 %v1171_v33, %v1109_v34  ;;  %v1114_v35 = vmul.f32 %v2440_v59, %v2440_v59 }
 0x161   :  { %v1173_v38 = vadd.f32 %v1172_v41, %v1110_v28  ;;  %v1040_v1 = vadd.f32 %v1039_v52, %v2425_v43 }
 0x163   :  { %v1041_v29 = vadd.f32 %v2414_v10, %v1040_v1  ;;  %v1174_v12 = vadd.f32 %v1173_v38, %v1111_v46  ;;  %v1116_v10 = vmul.f32 %v2438_v26, %v2438_v26 }
 0x165   :  { %v1175_v50 = vadd.f32 %v1174_v12, %v1112_v27  ;;  %v1042_v25 = vadd.f32 %v2418_v42, %v1041_v29  ;;  %v1117_v42 = vmul.f32 %v2442_v44, %v2442_v44 }
 0x167   :  { %v1043_v30 = vadd.f32 %v1042_v25, %v2440_v59  ;;  %v1176_v51 = vadd.f32 %v1175_v50, %v1113_v60  ;;  %v1118_v59 = vmul.f32 %v2464_v48, %v2464_v48 }
 0x169   :  { %v1177_v61 = vadd.f32 %v1176_v51, %v1114_v35  ;;  %v1044_v43 = vadd.f32 %v1043_v30, %v2449_v32 }
 0x16b   :  { %v1045_v54 = vadd.f32 %v2438_v26, %v1044_v43  ;;  %v1178_v39 = vadd.f32 %v1177_v61, %v1115_v55  ;;  %v1120_v26 = vmul.f32 %v2462_v58, %v2462_v58 }
 0x16d   :  { %v1179_v49 = vadd.f32 %v1178_v39, %v1116_v10  ;;  %v1046_v0 = vadd.f32 %v2442_v44, %v1045_v54  ;;  %v1121_v44 = vmul.f32 %v2466_v13, %v2466_v13 }
 0x16f   :  { %v1047_v7 = vadd.f32 %v1046_v0, %v2464_v48  ;;  %v1180_v3 = vadd.f32 %v1179_v49, %v1117_v42 }
 0x171   :  { %v1181_v53 = vadd.f32 %v1180_v3, %v1118_v59  ;;  %v1048_v32 = vadd.f32 %v1047_v7, %v2473_v18 }
 0x173   :  { %v1049_v8 = vadd.f32 %v2462_v58, %v1048_v32  ;;  %v1182_v20 = vadd.f32 %v1181_v53, %v1119_v4 }
 0x175   :  { %v1050_v5 = vadd.f32 %v2466_v13, %v1049_v8  ;;  %v1183_v9 = vadd.f32 %v1182_v20, %v1120_v26 }
 0x177   :  { %v1051_v48 = vrot.slane %v1050_v5, 4  ;;  %v1184_v24 = vadd.f32 %v1183_v9, %v1121_v44 }
 0x179   :  { %v1052_v21 = vadd.f32 %v1051_v48, %v1050_v5  ;;  %v1185_v11 = vrot.slane %v1184_v24, 4 }
 0x17b   :  { %v1053_v37 = vrot.slane %v1052_v21, 2  ;;  %v1186_v6 = vadd.f32 %v1185_v11, %v1184_v24 }
 0x17d   :  { %v1054_v57 = vadd.f32 %v1053_v37, %v1052_v21  ;;  %v1187_v18 = vrot.slane %v1186_v6, 2 }
 0x17f   :  { %v1055_v15 = vrot.slane %v1054_v57, 1  ;;  %v1188_v23 = vadd.f32 %v1187_v18, %v1186_v6 }
 0x181   :  { %v1056_v62 = vadd.f32 %v1055_v15, %v1054_v57  ;;  %v1189_v45 = vrot.slane %v1188_v23, 1 }
 0x183   :  { %1057 = vst [vmem:[%s2592_s4] sm:$0x1] %v1056_v62  ;;  %v1190_v58 = vadd.f32 %v1189_v45, %v1188_v23 }
 0x185   :  { %1191 = vst [vmem:[%s2592_s4 + $0x1] sm:$0x1] %v1190_v58 }

// kernel: pre_activate_res_block.4
= control target key start
LH: loop header
LB: loop body
LE: loop exit
PB: predicated region body
PF: predicated region fallthrough
CT: control target
= control target key end

     0   :  { %s4402_s21 = smov 0   ;;  %s5939_s0 = inlined_call_operand.vmem [shape: f32[2,16,16,128], index: 0, kind: input, shape index: {}]   ;;  %s5940_s1 = inlined_call_operand.vmem [shape: f32[1,128], index: 1, kind: input, shape index: {}]   ;;  %s5941_s2 = inlined_call_operand.vmem [shape: f32[1,128], index: 2, kind: input, shape index: {}]   ;;  %s5942_s3 = inlined_call_operand.vmem [shape: bf16[3,384,128], index: 3, kind: input, shape index: {}]   ;;  %s5943_s4 = inlined_call_operand.vmem [shape: f32[1,128], index: 4, kind: input, shape index: {}]   ;;  %s5944_s5 = inlined_call_operand.vmem [shape: bf16[2,16,16,128], index: 5, kind: output, shape index: {0}]   ;;  %s5945_s6 = inlined_call_operand.vmem [shape: f32[2,2,128], index: 6, kind: output, shape index: {1}]  }
   0x1 LB: > { %s2833_s22 = sadd.s32 4294967295, %s4363_s21   ;;  %p2837_p0 = scmp.ge.s32.totalorder %s4363_s21, 1  ;;  %s4363_s21 = sphi %s4402_s21, %s17_s21  }
   0x2   : > { %p215_p1 = scmp.lt.s32.totalorder %s4363_s21, 3 }
   0x4   : > { %p216_p2 = pnand %p2837_p0, %p215_p1 }
   0x6   : > { %219 = sbr.rel (%p216_p2) target bundleno = 570 (0x23a), region = 40 }
   0xd   : > { %v4285_v0 = vld [vmem:[%s5942_s3 + $0x100] sm:$0xff]   ;;  %v438_v1 = vlaneseq  ;;  %v4288_v4 = vld [vmem:[%s5942_s3 + $0x108] sm:$0xff]   ;;  %v4291_v8 = vld [vmem:[%s5942_s3 + $0x110] sm:$0xff]   ;;  %p249_p3 = scmp.lt.s32.totalorder %s2833_s22, 1  ;;  %vm4365_vm4 = vmmov 1  }
   0xe   : > { %v4416_v2 = vld [vmem:[%s5942_s3 + $0x140] sm:$0xff]   ;;  %3545 = vmatprep.subr.bf16.mxu0 %v4285_v0  ;;  %v4431_v6 = vld [vmem:[%s5942_s3 + $0x148] sm:$0xff]   ;;  %v4446_v10 = vld [vmem:[%s5942_s3 + $0x150] sm:$0xff]  }
   0xf   : > { %v4287_v3 = vld [vmem:[%s5942_s3 + $0xc0] sm:$0xff]   ;;  %4097 = vmatprep.subr.bf16.mxu1 %v4416_v2  ;;  %v4425_v5 = vshrl.u32 %v438_v1, 7  ;;  %v4290_v7 = vld [vmem:[%s5942_s3 + $0xc8] sm:$0xff]   ;;  %v4293_v11 = vld [vmem:[%s5942_s3 + $0xd0] sm:$0xff]   ;;  %s6020_s22 = smov (!%p249_p3, %s2833_s22), 1 }
  0x10   : > { %3546 = vmatpush3.bf16.msra.mxu0 %v4287_v3  ;;  %4105 = vmatpush3.bf16.msra.mxu1 %v4416_v2  ;;  %v4294_v12 = vld [vmem:[%s5942_s3 + $0x118] sm:$0xff]   ;;  %v4297_v15 = vld [vmem:[%s5942_s3 + $0x120] sm:$0xff]   ;;  %v4300_v18 = vld [vmem:[%s5942_s3 + $0x128] sm:$0xff]   ;;  %s3048_s11 = sshll.u32 %s6020_s22, 8  ;;  %s3049_s24 = sshll.u32 %s6020_s22, 7 }
  0x11   : > { %3547 = vmatprep.subr.bf16.mxu0 %v4288_v4  ;;  %4098 = vmatprep.subr.bf16.mxu1 %v4431_v6  ;;  %v4441_v9 = vadd.s32 8, %v4425_v5  ;;  %v4459_v13 = vld [vmem:[%s5942_s3 + $0x158] sm:$0xff]   ;;  %v4474_v16 = vld [vmem:[%s5942_s3 + $0x160] sm:$0xff]   ;;  %v4491_v19 = vld [vmem:[%s5942_s3 + $0x168] sm:$0xff]   ;;  %s4510_s20 = scalar_lea.vmem %s5939_s0, %s3048_s11  ;;  %vm505_vm0 = vcmp.lt.s32.totalorder %v4425_v5, 7  ;;  %vm4273_vm1 = vcmp.ne.s32.totalorder %v4425_v5, 0  ;;  %s5833_s27 = scalar_lea.vmem %s5944_s5, %s3049_s24 }
  0x12   : > { %v4296_v14 = vld [vmem:[%s5942_s3 + $0xd8] sm:$0xff]   ;;  %v4299_v17 = vld [vmem:[%s5942_s3 + $0xe0] sm:$0xff]   ;;  %v4302_v20 = vld [vmem:[%s5942_s3 + $0xe8] sm:$0xff]   ;;  %vm440_vm3 = vcmp.lt.s32.totalorder %v4425_v5, 1  ;;  %v5980_v4 = vmov 0  ;;  %s2842_s28 = sshll.u32 %s6020_s22, 1 }
  0x13   : > { %v4303_v21 = vld [vmem:[%s5942_s3 + $0x130] sm:$0xff]   ;;  %v4306_v24 = vld [vmem:[%s5942_s3 + $0x138] sm:$0xff]   ;;  %v4527_v26 = vld [vmem:[%s5940_s1] ss:$0 sm:$0xff]  ;;  %vm4274_vm2 = vcmp.ne.s32.totalorder %v4441_v9, 15  ;;  %s262_s7 = scalar_lea.vmem %s5945_s6, %s2842_s28 }
  0x14   : > { %3548 = vmatpush3.bf16.msra.mxu0 %v4290_v7  ;;  %4106 = vmatpush3.bf16.msra.mxu1 %v4431_v6  ;;  %v4505_v22 = vld [vmem:[%s5942_s3 + $0x170] sm:$0xff]   ;;  %v4521_v25 = vld [vmem:[%s5942_s3 + $0x178] sm:$0xff]   ;;  %v4532_v27 = vld [vmem:[%s5941_s2] ss:$0 sm:$0xff] }
  0x15   : > { %3549 = vmatprep.subr.bf16.mxu0 %v4291_v8  ;;  %4099 = vmatprep.subr.bf16.mxu1 %v4446_v10  ;;  %v4305_v23 = vld [vmem:[%s5942_s3 + $0xf0] sm:$0xff]   ;;  %v266_v28 = vld [vmem:[%s4510_s20] sm:$0xff]  ;;  %v267_v29 = vld [vmem:[%s4510_s20 + $0x8] sm:$0xff] }
  0x16   : > { %v304_v30 = vmul.f32 %v4527_v26, %v266_v28  ;;  %v282_v31 = vld [vmem:[%s4510_s20 + $0x80] sm:$0xff]  ;;  %v283_v32 = vld [vmem:[%s4510_s20 + $0x88] sm:$0xff]  ;;  %v305_v33 = vmul.f32 %v4527_v26, %v267_v29  ;;  %v284_v34 = vld [vmem:[%s4510_s20 + $0x90] sm:$0xff] }
  0x17   : > { %v320_v35 = vmul.f32 %v4527_v26, %v282_v31  ;;  %v321_v36 = vmul.f32 %v4527_v26, %v283_v32  ;;  %v297_v37 = vld [vmem:[%s4510_s20 + $0xf8] sm:$0xff]  ;;  %v322_v39 = vmul.f32 %v4527_v26, %v284_v34  ;;  %v286_v42 = vld [vmem:[%s4510_s20 + $0xa0] sm:$0xff]  ;;  %vm4593_vm5 = vmpackc.low %vm4365_vm4, %vm4273_vm1 }
  0x18   : > { %3550 = vmatpush3.bf16.msra.mxu0 %v4293_v11  ;;  %4107 = vmatpush3.bf16.msra.mxu1 %v4446_v10  ;;  %v342_v38 = vadd.f32 %v4532_v27, %v304_v30  ;;  %v335_v40 = vmul.f32 %v4527_v26, %v297_v37  ;;  %v285_v41 = vld [vmem:[%s4510_s20 + $0x98] sm:$0xff]  ;;  %v343_v44 = vadd.f32 %v4532_v27, %v305_v33  ;;  %v4309_v51 = vld [vmem:[%s5942_s3 + $0x40] sm:$0xff]   ;;  %vm4601_vm6 = vmpackc.low %vm4274_vm2, %vm4365_vm4 }
  0x19   : > { %3551 = vmatprep.subr.bf16.mxu0 %v4294_v12  ;;  %4100 = vmatprep.subr.bf16.mxu1 %v4459_v13  ;;  %v4308_v43 = vld [vmem:[%s5942_s3 + $0xf8] sm:$0xff]   ;;  %v358_v45 = vadd.f32 %v4532_v27, %v320_v35  ;;  %v359_v46 = vadd.f32 %v4532_v27, %v321_v36  ;;  %v360_v48 = vadd.f32 %v4532_v27, %v322_v39  ;;  %v5981_v4 = vsel %vm4601_vm6, 4294967295, %v5980_v4  ;;  %v268_v11 = vld [vmem:[%s4510_s20 + $0x10] sm:$0xff]  ;;  %v290_v30 = vld [vmem:[%s4510_s20 + $0xc0] sm:$0xff] }
  0x1a   : > { %v4562_v47 = vmax.f32 %v342_v38, 0.0  ;;  %v373_v49 = vadd.f32 %v4532_v27, %v335_v40  ;;  %v323_v50 = vmul.f32 %v4527_v26, %v285_v41  ;;  %v4570_v52 = vmax.f32 %v343_v44, 0.0  ;;  %5982 = vst [vmem:[#allocation3_spill] sm:$0xff] %v5981_v4  ;;  %v289_v29 = vld [vmem:[%s4510_s20 + $0xb8] sm:$0xff]  ;;  %v276_v61 = vld [vmem:[%s4510_s20 + $0x50] sm:$0xff] }
  0x1b   : > { %v4572_v53 = vmax.f32 %v358_v45, 0.0  ;;  %v4574_v54 = vmax.f32 %v359_v46, 0.0  ;;  %v324_v55 = vmul.f32 %v4527_v26, %v286_v42  ;;  %v4579_v58 = vmax.f32 %v360_v48, 0.0 }
  0x1c   : > { %3552 = vmatpush3.bf16.msra.mxu0 %v4296_v14  ;;  %4108 = vmatpush3.bf16.msra.mxu1 %v4459_v13  ;;  %v406_v56 = vrot.slane %v4562_v47, 7  ;;  %v5951_v57 = vrot.slane %v4562_v47, 1  ;;  %v4581_v59 = vmax.f32 %v373_v49, 0.0  ;;  %v407_v60 = vrot.slane %v4570_v52, 7  ;;  %v269_v14 = vld [vmem:[%s4510_s20 + $0x18] sm:$0xff]  ;;  %v4310_v49 = vld [vmem:[%s5942_s3] sm:$0xff]  }
  0x1d   : > { %3553 = vmatprep.subr.bf16.mxu0 %v4297_v15  ;;  %4101 = vmatprep.subr.bf16.mxu1 %v4474_v16  ;;  %v4588_v62 = vpack.c.bf16 %v4570_v52, %v4562_v47  ;;  %v5946_v63 = vrot.slane %v4572_v53, 1  ;;  %v490_v1 = vrot.slane %v4574_v54, 1  ;;  %v491_v3 = vrot.slane %v4579_v58, 1 }
  0x1e   : > { %v5949_v7 = vrot.slane %v4581_v59, 7  ;;  %v361_v8 = vadd.f32 %v4532_v27, %v323_v50  ;;  %v471_v9 = vsel %vm440_vm3, %v406_v56, %v407_v60  ;;  %v362_v12 = vadd.f32 %v4532_v27, %v324_v55 }
  0x1f   : > { %1088 = vmatprep.mubr.bf16.mxu0 %v4588_v62  ;;  %v306_v15 = vmul.f32 %v4527_v26, %v268_v11  ;;  %v307_v34 = vmul.f32 %v4527_v26, %v269_v14  ;;  %v327_v41 = vmul.f32 %v4527_v26, %v289_v29  ;;  %v328_v42 = vmul.f32 %v4527_v26, %v290_v30  ;;  %v270_v11 = vld [vmem:[%s4510_s20 + $0x20] sm:$0xff] }
  0x20   : > { %3554 = vmatpush3.bf16.msra.mxu0 %v4299_v17  ;;  %4109 = vmatpush3.bf16.msra.mxu1 %v4474_v16  ;;  %v287_v17 = vld [vmem:[%s4510_s20 + $0xa8] sm:$0xff]  ;;  %v4630_v28 = vmax.f32 %v361_v8, 0.0  ;;  %v4638_v33 = vmax.f32 %v362_v12, 0.0 }
  0x21   : > { %3555 = vmatprep.subr.bf16.mxu0 %v4300_v18  ;;  %4102 = vmatprep.subr.bf16.mxu1 %v4491_v19  ;;  %v288_v18 = vld [vmem:[%s4510_s20 + $0xb0] sm:$0xff]  ;;  %v344_v36 = vadd.f32 %v4532_v27, %v306_v15  ;;  %v325_v37 = vmul.f32 %v4527_v26, %v287_v17  ;;  %v345_v40 = vadd.f32 %v4532_v27, %v307_v34  ;;  %v4312_v12 = vld [vmem:[%s5942_s3 + $0x8] sm:$0xff]  }
  0x22   : > { %v492_v35 = vrot.slane %v4630_v28, 1  ;;  %v326_v38 = vmul.f32 %v4527_v26, %v288_v18  ;;  %v493_v39 = vrot.slane %v4638_v33, 1  ;;  %v4313_v34 = vld [vmem:[%s5942_s3 + $0x50] sm:$0xff]  }
  0x23   : > { %v4658_v44 = vmax.f32 %v344_v36, 0.0  ;;  %v363_v45 = vadd.f32 %v4532_v27, %v325_v37  ;;  %v4667_v50 = vmax.f32 %v345_v40, 0.0  ;;  %v308_v37 = vmul.f32 %v4527_v26, %v270_v11  ;;  %v293_v40 = vld [vmem:[%s4510_s20 + $0xd8] sm:$0xff] }
  0x24   : > { %3556 = vmatpush3.bf16.msra.mxu0 %v4302_v20  ;;  %4110 = vmatpush3.bf16.msra.mxu1 %v4491_v19  ;;  %v5952_v20 = vrot.slane %v4581_v59, 1  ;;  %v364_v46 = vadd.f32 %v4532_v27, %v326_v38  ;;  %v517_v48 = vsel %vm505_vm0, %v492_v35, %v493_v39  ;;  %v331_v11 = vmul.f32 %v4527_v26, %v293_v40 }
  0x25   : > { %3557 = vmatprep.subr.bf16.mxu0 %v4303_v21  ;;  %4103 = vmatprep.subr.bf16.mxu1 %v4505_v22  ;;  %v519_v21 = vsel %vm505_vm0, %v490_v1, %v491_v3  ;;  %v408_v8 = vrot.slane %v4658_v44, 7  ;;  %v5948_v14 = vrot.slane %v4667_v50, 1  ;;  %v4690_v15 = vpack.c.bf16 %v4667_v50, %v4658_v44 }
  0x26   : > { %v409_v17 = vrot.slane %v4667_v50, 7 }
  0x27   : > { %v470_v29 = vsel %vm440_vm3, %v407_v60, %v408_v8 }
  0x28   : > { %3558 = vmatpush3.bf16.msra.mxu0 %v4305_v23  ;;  %4111 = vmatpush3.bf16.msra.mxu1 %v4505_v22  ;;  %v520_v23 = vsel %vm505_vm0, %v5946_v63, %v490_v1  ;;  %v4677_v1 = vmax.f32 %v363_v45, 0.0  ;;  %v469_v36 = vsel %vm440_vm3, %v408_v8, %v409_v17  ;;  %v294_v45 = vld [vmem:[%s4510_s20 + $0xe0] sm:$0xff] }
  0x29   : > { %3559 = vmatprep.subr.bf16.mxu0 %v4306_v24  ;;  %4104 = vmatprep.subr.bf16.mxu1 %v4521_v25  ;;  %v472_v24 = vsel %vm440_vm3, %v5949_v7, %v406_v56  ;;  %v4634_v31 = vpack.c.bf16 %v519_v21, %v520_v23  ;;  %v4311_v56 = vld [vmem:[%s5942_s3 + $0x48] sm:$0xff]   ;;  %v4317_v63 = vld [vmem:[%s5942_s3 + $0x60] sm:$0xff]  }
  0x2a   : > { %v4636_v32 = vpack.c.bf16 %v471_v9, %v472_v24  ;;  %v271_v9 = vld [vmem:[%s4510_s20 + $0x28] sm:$0xff]  ;;  %v494_v23 = vrot.slane %v4677_v1, 1 }
  0x2b   : > { %5983 = vst [vmem:[#allocation4_spill] sm:$0xff] %v4634_v31  ;;  %3985 = vmatprep.mubr.msk.bf16.mxu1 %vm4601_vm6, %v4634_v31  ;;  %v291_v21 = vld [vmem:[%s4510_s20 + $0xc8] sm:$0xff]  ;;  %v309_v38 = vmul.f32 %v4527_v26, %v271_v9 }
  0x2c   : > { %3560 = vmatpush3.bf16.msra.mxu0 %v4308_v43  ;;  %4112 = vmatpush3.bf16.msra.mxu1 %v4521_v25  ;;  %v518_v43 = vsel %vm505_vm0, %v491_v3, %v492_v35  ;;  %v4679_v3 = vmax.f32 %v364_v46, 0.0  ;;  %v292_v35 = vld [vmem:[%s4510_s20 + $0xd0] sm:$0xff]  ;;  %v275_v7 = vld [vmem:[%s4510_s20 + $0x48] sm:$0xff] }
  0x2d   : > { %3953 = vmatprep.subr.bf16.mxu0 %v4416_v2  ;;  %3681 = vmatprep.subr.bf16.mxu1 %v4309_v51  ;;  %v365_v51 = vadd.f32 %v4532_v27, %v327_v41  ;;  %v4672_v55 = vpack.c.bf16 %v517_v48, %v518_v43  ;;  %v516_v41 = vsel %vm505_vm0, %v493_v39, %v494_v23 }
  0x2e   : > { %v495_v24 = vrot.slane %v4679_v3, 1  ;;  %v330_v8 = vmul.f32 %v4527_v26, %v292_v35 }
  0x2f   : > { %3180 = vmatmul.mubr.msk.bf16.vlgmr.msra.gmra.mrb[0].mxu0 %vm4593_vm5, %v4636_v32  ;;  %5984 = vst [vmem:[#allocation5_spill] sm:$0xff] %v4672_v55  ;;  %v4693_v18 = vmax.f32 %v365_v51, 0.0  ;;  %3986 = vmatmul.mubr.msk.bf16.vlgmr.msra.gmra.mrb[0].mxu1 %vm4601_vm6, %v4672_v55  ;;  %v347_v51 = vadd.f32 %v4532_v27, %v309_v38  ;;  %v280_v55 = vld [vmem:[%s4510_s20 + $0x70] sm:$0xff] }
  0x30   : > { %3954 = vmatpush3.bf16.msra.mxu0 %v4416_v2  ;;  %v366_v2 = vadd.f32 %v4532_v27, %v328_v42  ;;  %3682 = vmatpush3.bf16.msra.mxu1 %v4310_v49  ;;  %v4725_v42 = vpack.c.bf16 %v469_v36, %v470_v29  ;;  %v346_v49 = vadd.f32 %v4532_v27, %v308_v37 }
  0x31   : > { %3955 = vmatprep.subr.bf16.mxu0 %v4431_v6  ;;  %1096 = vmatprep.mubr.bf16.mxu0 %v4690_v15  ;;  %v496_v60 = vrot.slane %v4693_v18, 1  ;;  %v4758_v29 = vmax.f32 %v347_v51, 0.0  ;;  %v368_v36 = vadd.f32 %v4532_v27, %v330_v8 }
  0x32   : > { %v4705_v30 = vmax.f32 %v366_v2, 0.0  ;;  %3683 = vmatprep.subr.bf16.mxu1 %v4311_v56  ;;  %v272_v2 = vld [vmem:[%s4510_s20 + $0x30] sm:$0xff]  ;;  %v329_v56 = vmul.f32 %v4527_v26, %v291_v21  ;;  %v4315_v21 = vld [vmem:[%s5942_s3 + $0x58] sm:$0xff]  }
  0x33   : > { %v514_v48 = vsel %vm505_vm0, %v495_v24, %v496_v60  ;;  %v310_v37 = vmul.f32 %v4527_v26, %v272_v2  ;;  %v295_v2 = vld [vmem:[%s4510_s20 + $0xe8] sm:$0xff] }
  0x34   : > { %3956 = vmatpush3.bf16.msra.mxu0 %v4431_v6  ;;  %v515_v6 = vsel %vm505_vm0, %v494_v23, %v495_v24  ;;  %v497_v43 = vrot.slane %v4705_v30, 1  ;;  %3684 = vmatpush3.bf16.msra.mxu1 %v4312_v12  ;;  %v4314_v23 = vld [vmem:[%s5942_s3 + $0x10] sm:$0xff]   ;;  %v4756_v24 = vmax.f32 %v346_v49, 0.0  ;;  %v332_v12 = vmul.f32 %v4527_v26, %v294_v45 }
  0x35   : > { %3957 = vmatprep.subr.bf16.mxu0 %v4446_v10  ;;  %v4730_v46 = vpack.c.bf16 %v515_v6, %v516_v41  ;;  %3685 = vmatprep.subr.bf16.mxu1 %v4313_v34  ;;  %v367_v35 = vadd.f32 %v4532_v27, %v329_v56  ;;  %v5950_v41 = vrot.slane %v4758_v29, 7  ;;  %v273_v34 = vld [vmem:[%s4510_s20 + $0x38] sm:$0xff] }
  0x36   : > { %v513_v39 = vsel %vm505_vm0, %v496_v60, %v497_v43  ;;  %v369_v60 = vadd.f32 %v4532_v27, %v331_v11  ;;  %v5947_v38 = vrot.slane %v4756_v24, 1  ;;  %v4768_v40 = vpack.c.bf16 %v4758_v29, %v4756_v24  ;;  %v296_v11 = vld [vmem:[%s4510_s20 + $0xf0] sm:$0xff] }
  0x37   : > { %5985 = vst [vmem:[#allocation6_spill] sm:$0xff] %v4730_v46  ;;  %3184 = vmatmul.mubr.msk.bf16.gmra.mrb[4].mxu0 %vm4593_vm5, %v4725_v42  ;;  %3989 = vmatprep.mubr.msk.bf16.mxu1 %vm4601_vm6, %v4730_v46  ;;  %v4748_v9 = vpack.c.bf16 %v513_v39, %v514_v48  ;;  %v410_v6 = vrot.slane %v4756_v24, 7  ;;  %v4777_v45 = vmax.f32 %v367_v35, 0.0  ;;  %v4779_v48 = vmax.f32 %v368_v36, 0.0 }
  0x38   : > { %3958 = vmatpush3.bf16.msra.mxu0 %v4446_v10  ;;  %v370_v49 = vadd.f32 %v4532_v27, %v332_v12  ;;  %v4782_v51 = vmax.f32 %v369_v60, 0.0  ;;  %3686 = vmatpush3.bf16.msra.mxu1 %v4314_v23  ;;  %v4316_v10 = vld [vmem:[%s5942_s3 + $0x18] sm:$0xff]   ;;  %v4795_v39 = vsel %vm505_vm0, %v5948_v14, %v5947_v38 }
  0x39   : > { %5986 = vst [vmem:[#allocation7_spill] sm:$0xff] %v4748_v9  ;;  %3990 = vmatmul.mubr.msk.bf16.gmra.mrb[4].mxu1 %vm4601_vm6, %v4748_v9  ;;  %3959 = vmatprep.subr.bf16.mxu0 %v4459_v13  ;;  %v467_v56 = vsel %vm440_vm3, %v410_v6, %v5950_v41  ;;  %v468_v8 = vsel %vm440_vm3, %v409_v17, %v410_v6  ;;  %v498_v12 = vrot.slane %v4777_v45, 1  ;;  %v499_v35 = vrot.slane %v4779_v48, 1  ;;  %v279_v9 = vld [vmem:[%s4510_s20 + $0x68] sm:$0xff] }
  0x3a   : > { %1104 = vmatprep.mubr.bf16.mxu0 %v4768_v40  ;;  %3687 = vmatprep.subr.bf16.mxu1 %v4315_v21  ;;  %v4810_v36 = vpack.c.bf16 %v467_v56, %v468_v8  ;;  %v4812_v60 = vmax.f32 %v370_v49, 0.0  ;;  %v500_v38 = vrot.slane %v4782_v51, 1  ;;  %v311_v17 = vmul.f32 %v4527_v26, %v273_v34  ;;  %v274_v8 = vld [vmem:[%s4510_s20 + $0x40] sm:$0xff] }
  0x3b   : > { %v348_v6 = vadd.f32 %v4532_v27, %v310_v37  ;;  %v333_v21 = vmul.f32 %v4527_v26, %v295_v2  ;;  %v511_v49 = vsel %vm505_vm0, %v498_v12, %v499_v35  ;;  %v512_v56 = vsel %vm505_vm0, %v497_v43, %v498_v12  ;;  %v4318_v37 = vld [vmem:[%s5942_s3 + $0x20] sm:$0xff]  }
  0x3c   : > { %3960 = vmatpush3.bf16.msra.mxu0 %v4459_v13  ;;  %v501_v34 = vrot.slane %v4812_v60, 1  ;;  %v334_v2 = vmul.f32 %v4527_v26, %v296_v11  ;;  %3688 = vmatpush3.bf16.msra.mxu1 %v4316_v10  ;;  %v4836_v13 = vpack.c.bf16 %v511_v49, %v512_v56  ;;  %v510_v43 = vsel %vm505_vm0, %v499_v35, %v500_v38  ;;  %v4319_v10 = vld [vmem:[%s5942_s3 + $0x68] sm:$0xff]   ;;  %v277_v56 = vld [vmem:[%s4510_s20 + $0x58] sm:$0xff] }
  0x3d   : > { %3961 = vmatprep.subr.bf16.mxu0 %v4474_v16  ;;  %v349_v12 = vadd.f32 %v4532_v27, %v311_v17  ;;  %v4841_v14 = vmax.f32 %v348_v6, 0.0  ;;  %3689 = vmatprep.subr.bf16.mxu1 %v4317_v63  ;;  %v371_v49 = vadd.f32 %v4532_v27, %v333_v21  ;;  %v537_v17 = vsel %vm505_vm0, %v5952_v20, %v5951_v57  ;;  %v4321_v20 = vld [vmem:[%s5942_s3 + $0x70] sm:$0xff]  }
  0x3e   : > { %5987 = vst [vmem:[#allocation8_spill] sm:$0xff] %v4836_v13  ;;  %v509_v11 = vsel %vm505_vm0, %v500_v38, %v501_v34  ;;  %v372_v35 = vadd.f32 %v4532_v27, %v334_v2  ;;  %3993 = vmatprep.mubr.msk.bf16.mxu1 %vm4601_vm6, %v4836_v13  ;;  %v312_v21 = vmul.f32 %v4527_v26, %v274_v8  ;;  %v278_v2 = vld [vmem:[%s4510_s20 + $0x60] sm:$0xff]  ;;  %v4320_v8 = vld [vmem:[%s5942_s3 + $0x28] sm:$0xff]  }
  0x3f   : > { %3188 = vmatmul.mubr.msk.bf16.gmra.mrb[8].mxu0 %vm4593_vm5, %v4810_v36  ;;  %v4861_v63 = vpack.c.bf16 %v509_v11, %v510_v43  ;;  %v4863_v38 = vmax.f32 %v349_v12, 0.0  ;;  %v412_v6 = vrot.slane %v4841_v14, 7  ;;  %v4870_v23 = vmax.f32 %v371_v49, 0.0 }
  0x40   : > { %3962 = vmatpush3.bf16.msra.mxu0 %v4474_v16  ;;  %v4872_v41 = vmax.f32 %v372_v35, 0.0  ;;  %v313_v57 = vmul.f32 %v4527_v26, %v275_v7  ;;  %v314_v43 = vmul.f32 %v4527_v26, %v276_v61  ;;  %v5990_v7 = vrot.slane %v4758_v29, 7  ;;  %3690 = vmatpush3.bf16.msra.mxu1 %v4318_v37 }
  0x41   : > { %5988 = vst [vmem:[#allocation9_spill] sm:$0xff] %v4861_v63  ;;  %3963 = vmatprep.subr.bf16.mxu0 %v4491_v19  ;;  %3994 = vmatmul.mubr.msk.bf16.gmra.mrb[8].mxu1 %vm4601_vm6, %v4861_v63  ;;  %v4885_v16 = vpack.c.bf16 %v4863_v38, %v4841_v14  ;;  %v413_v12 = vrot.slane %v4863_v38, 7  ;;  %v350_v11 = vadd.f32 %v4532_v27, %v312_v21  ;;  %v502_v49 = vrot.slane %v4870_v23, 1 }
  0x42   : > { %v466_v61 = vsel %vm440_vm3, %v5990_v7, %v412_v6  ;;  %v503_v35 = vrot.slane %v4872_v41, 1  ;;  %v351_v63 = vadd.f32 %v4532_v27, %v313_v57  ;;  %v315_v13 = vmul.f32 %v4527_v26, %v277_v56  ;;  %3691 = vmatprep.subr.bf16.mxu1 %v4319_v10 }
  0x43   : > { %5989 = vst [vmem:[#allocation10_spill] sm:$0xff] %v4885_v16  ;;  %1112 = vmatprep.mubr.bf16.mxu0 %v4885_v16  ;;  %v465_v21 = vsel %vm440_vm3, %v412_v6, %v413_v12  ;;  %v4904_v37 = vmax.f32 %v350_v11, 0.0  ;;  %v352_v7 = vadd.f32 %v4532_v27, %v314_v43  ;;  %v316_v46 = vmul.f32 %v4527_v26, %v278_v2  ;;  %v4322_v11 = vld [vmem:[%s5942_s3 + $0x30] sm:$0xff]  }
  0x44   : > { %v507_v31 = vsel %vm505_vm0, %v502_v49, %v503_v35  ;;  %v508_v57 = vsel %vm505_vm0, %v501_v34, %v502_v49  ;;  %v4913_v10 = vpack.c.bf16 %v465_v21, %v466_v61  ;;  %v5991_v56 = vrot.slane %v4581_v59, 1  ;;  %3964 = vmatpush3.bf16.msra.mxu0 %v4491_v19  ;;  %3692 = vmatpush3.bf16.msra.mxu1 %v4320_v8  ;;  %v281_v49 = vld [vmem:[%s4510_s20 + $0x78] sm:$0xff] }
  0x45   : > { %v4920_v43 = vpack.c.bf16 %v507_v31, %v508_v57  ;;  %v4927_v16 = vmax.f32 %v351_v63, 0.0  ;;  %v414_v34 = vrot.slane %v4904_v37, 7  ;;  %3965 = vmatprep.subr.bf16.mxu0 %v4505_v22  ;;  %v353_v19 = vadd.f32 %v4532_v27, %v315_v13  ;;  %3693 = vmatprep.subr.bf16.mxu1 %v4321_v20  ;;  %v4323_v63 = vld [vmem:[%s5942_s3 + $0x78] sm:$0xff]  }
  0x46   : > { %v506_v6 = vsel %vm505_vm0, %v503_v35, %v5991_v56  ;;  %v4935_v31 = vmax.f32 %v352_v7, 0.0  ;;  %v354_v61 = vadd.f32 %v4532_v27, %v316_v46  ;;  %v318_v46 = vmul.f32 %v4527_v26, %v280_v55 }
  0x47   : > { %5992 = vst [vmem:[#allocation11_spill] sm:$0xff] %v4920_v43  ;;  %v4922_v2 = vpack.c.bf16 %v537_v17, %v506_v6  ;;  %3192 = vmatmul.mubr.msk.bf16.gmra.mrb[12].mxu0 %vm4593_vm5, %v4913_v10  ;;  %v317_v17 = vmul.f32 %v4527_v26, %v279_v9  ;;  %3997 = vmatprep.mubr.msk.bf16.mxu1 %vm4601_vm6, %v4920_v43  ;;  %v415_v13 = vrot.slane %v4927_v16, 7  ;;  %v4954_v35 = vmax.f32 %v353_v19, 0.0  ;;  %v4332_v6 = vld [vmem:[%s5942_s3 + $0x1c0] sm:$0xff]  }
  0x48   : > { %v4948_v8 = vpack.c.bf16 %v4927_v16, %v4904_v37  ;;  %v464_v9 = vsel %vm440_vm3, %v413_v12, %v414_v34  ;;  %v416_v21 = vrot.slane %v4935_v31, 7  ;;  %v4958_v7 = vmax.f32 %v354_v61, 0.0  ;;  %3966 = vmatpush3.bf16.msra.mxu0 %v4505_v22  ;;  %3694 = vmatpush3.bf16.msra.mxu1 %v4322_v11  ;;  %v4324_v22 = vld [vmem:[%s5942_s3 + $0x38] sm:$0xff]   ;;  %v4325_v11 = vld [vmem:[%s5942_s3 + $0x80] sm:$0xff]  }
  0x49   : > { %5993 = vst [vmem:[#allocation12_spill] sm:$0xff] %v4922_v2  ;;  %v355_v20 = vadd.f32 %v4532_v27, %v317_v17  ;;  %3998 = vmatmul.mubr.msk.bf16.gmra.mrb[12].mxu1 %vm4601_vm6, %v4922_v2  ;;  %v463_v12 = vsel %vm440_vm3, %v414_v34, %v415_v13  ;;  %v319_v55 = vmul.f32 %v4527_v26, %v281_v49  ;;  %v423_v56 = vrot.slane %v4574_v54, 7 }
  0x4a   : > { %1120 = vmatprep.mubr.bf16.mxu0 %v4948_v8  ;;  %v356_v57 = vadd.f32 %v4532_v27, %v318_v46  ;;  %v5967_v19 = vmov 0   ;;  %v4977_v17 = vpack.c.bf16 %v463_v12, %v464_v9  ;;  %v4981_v26 = vpack.c.bf16 %v4954_v35, %v4935_v31  ;;  %3695 = vmatprep.subr.bf16.mxu1 %v4323_v63  ;;  %v6006_v5 = vld [vmem:[#allocation10_spill] sm:$0xff] }
  0x4b   : > { %1554 = vmatprep.mubr.bf16.mxu1 %v5967_v19  ;;  %v417_v34 = vrot.slane %v4954_v35, 7  ;;  %v462_v61 = vsel %vm440_vm3, %v415_v13, %v416_v21  ;;  %v4989_v49 = vmax.f32 %v355_v20, 0.0  ;;  %v418_v46 = vrot.slane %v4958_v7, 7  ;;  %3967 = vmatprep.subr.bf16.mxu0 %v4521_v25 }
  0x4c   : > { %5994 = vst [vmem:[#allocation13_spill] sm:$0xff] %v4977_v17  ;;  %5995 = vst [vmem:[#allocation14_spill] sm:$0xff] %v4981_v26  ;;  %v357_v9 = vadd.f32 %v4532_v27, %v319_v55  ;;  %v4993_v12 = vmax.f32 %v356_v57, 0.0  ;;  %v5000_v63 = vpack.c.bf16 %v4574_v54, %v4572_v53  ;;  %v5996_v13 = vrot.slane %v4572_v53, 7  ;;  %3968 = vmatpush3.bf16.msra.mxu0 %v4521_v25  ;;  %v4326_v54 = vld [vmem:[%s5942_s3 + $0x88] sm:$0xff]  }
  0x4d   : > { %v461_v19 = vsel %vm440_vm3, %v416_v21, %v417_v34  ;;  %v5008_v2 = vpack.c.bf16 %v4630_v28, %v4579_v58  ;;  %v419_v55 = vrot.slane %v4989_v49, 7  ;;  %v460_v21 = vsel %vm440_vm3, %v417_v34, %v418_v46  ;;  %3817 = vmatprep.subr.bf16.mxu0 %v4332_v6  ;;  %3696 = vmatpush3.bf16.msra.mxu1 %v4324_v22 }
  0x4e   : > { %v455_v20 = vsel %vm440_vm3, %v5996_v13, %v423_v56  ;;  %v5011_v27 = vpack.c.bf16 %v461_v19, %v462_v61  ;;  %v5022_v57 = vmax.f32 %v357_v9, 0.0  ;;  %v420_v25 = vrot.slane %v4993_v12, 7  ;;  %4001 = vmatprep.subr.bf16.mxu1 %v4325_v11 }
  0x4f   : > { %3196 = vmatmul.mubr.msk.bf16.gmra.mrb[16].mxu0 %vm4593_vm5, %v4977_v17  ;;  %v424_v19 = vrot.slane %v4579_v58, 7  ;;  %v425_v61 = vrot.slane %v4630_v28, 7  ;;  %v459_v34 = vsel %vm440_vm3, %v418_v46, %v419_v55  ;;  %v5032_v6 = vpack.c.bf16 %v4677_v1, %v4638_v33 }
  0x50   : > { %1128 = vmatprep.mubr.bf16.mxu0 %v4981_v26  ;;  %v426_v22 = vrot.slane %v4638_v33, 7  ;;  %v427_v9 = vrot.slane %v4677_v1, 7  ;;  %v5038_v13 = vpack.c.bf16 %v4989_v49, %v4958_v7  ;;  %v5040_v58 = vpack.c.bf16 %v459_v34, %v460_v21 }
  0x51   : > { %v5044_v28 = vpack.c.bf16 %v5022_v57, %v4993_v12  ;;  %v421_v46 = vrot.slane %v5022_v57, 7  ;;  %v5997_v43 = vmov 0   ;;  %v453_v4 = vsel %vm440_vm3, %v424_v19, %v425_v61 }
  0x52   : > { %1555 = vmatmul.mubr.bf16.vlgmr.msra.gmra.mrb[16].mxu1 %v5997_v43  ;;  %v454_v33 = vsel %vm440_vm3, %v423_v56, %v424_v19  ;;  %v451_v1 = vsel %vm440_vm3, %v426_v22, %v427_v9  ;;  %v452_v21 = vsel %vm440_vm3, %v425_v61, %v426_v22  ;;  %v5059_v34 = vsel %vm440_vm3, %v419_v55, %v420_v25 }
  0x53   : > { %4002 = vmatpush3.bf16.msra.mxu1 %v4325_v11  ;;  %1562 = vmatprep.mubr.bf16.mxu1 %v4588_v62  ;;  %v5998_v43 = vrot.slane %v4572_v53, 7  ;;  %v5065_v17 = vpack.c.bf16 %v453_v4, %v454_v33  ;;  %v428_v56 = vrot.slane %v4679_v3, 7  ;;  %v5070_v19 = vsel %vm440_vm3, %v420_v25, %v421_v46  ;;  %v4327_v62 = vld [vmem:[%s5942_s3 + $0x90] sm:$0xff]  }
  0x54   : > { %4003 = vmatprep.subr.bf16.mxu1 %v4326_v54  ;;  %v5077_v55 = vpack.c.bf16 %v451_v1, %v452_v21  ;;  %v429_v4 = vrot.slane %v4693_v18, 7  ;;  %v5088_v25 = vpack.c.bf16 %v4777_v45, %v4705_v30  ;;  %v5094_v22 = vpack.c.bf16 %v4782_v51, %v4779_v48 }
  0x55   : > { %v456_v26 = vsel %vm440_vm3, %v421_v46, %v5998_v43  ;;  %v5081_v43 = vpack.c.bf16 %v4693_v18, %v4679_v3  ;;  %v450_v61 = vsel %vm440_vm3, %v427_v9, %v428_v56  ;;  %v432_v3 = vrot.slane %v4779_v48, 7  ;;  %v4328_v48 = vld [vmem:[%s5942_s3 + $0x98] sm:$0xff]  }
  0x56   : > { %v5072_v11 = vpack.c.bf16 %v455_v20, %v456_v26  ;;  %v430_v26 = vrot.slane %v4705_v30, 7  ;;  %v431_v20 = vrot.slane %v4777_v45, 7  ;;  %v433_v46 = vrot.slane %v4782_v51, 7 }
  0x57   : > { %3200 = vmatmul.mubr.msk.bf16.gmra.mrb[20].mxu0 %vm4593_vm5, %v5011_v27  ;;  %4004 = vmatpush3.bf16.msra.mxu1 %v4326_v54  ;;  %v449_v18 = vsel %vm440_vm3, %v428_v56, %v429_v4  ;;  %v5107_v45 = vpack.c.bf16 %v4870_v23, %v4812_v60  ;;  %v434_v9 = vrot.slane %v4812_v60, 7  ;;  %v435_v1 = vrot.slane %v4870_v23, 7  ;;  %v4329_v23 = vld [vmem:[%s5942_s3 + $0xa0] sm:$0xff]  }
  0x58   : > { %v448_v30 = vsel %vm440_vm3, %v429_v4, %v430_v26  ;;  %1136 = vmatprep.mubr.bf16.mxu0 %v5038_v13  ;;  %4005 = vmatprep.subr.bf16.mxu1 %v4327_v62  ;;  %v5114_v51 = vpack.c.bf16 %v449_v18, %v450_v61  ;;  %v447_v54 = vsel %vm440_vm3, %v430_v26, %v431_v20  ;;  %v6000_v18 = vrot.slane %v4562_v47, 1 }
  0x59   : > { %v445_v33 = vsel %vm440_vm3, %v432_v3, %v433_v46  ;;  %v5121_v21 = vpack.c.bf16 %v447_v54, %v448_v30  ;;  %v446_v60 = vsel %vm440_vm3, %v431_v20, %v432_v3  ;;  %v444_v56 = vsel %vm440_vm3, %v433_v46, %v434_v9 }
  0x5a   : > { %v5129_v4 = vpack.c.bf16 %v4581_v59, %v4872_v41  ;;  %3308 = vmatmul.mubr.msk.bf16.gmra.mrb[20].mxu1 %vm4593_vm5, %v4636_v32  ;;  %v5137_v61 = vpack.c.bf16 %v445_v33, %v446_v60  ;;  %v443_v26 = vsel %vm440_vm3, %v434_v9, %v435_v1  ;;  %v436_v20 = vrot.slane %v4872_v41, 7 }
  0x5b   : > { %v475_v3 = vrot.slane %v4658_v44, 1  ;;  %1570 = vmatprep.mubr.bf16.mxu1 %v4690_v15  ;;  %4006 = vmatpush3.bf16.msra.mxu1 %v4327_v62  ;;  %v5144_v46 = vpack.c.bf16 %v443_v26, %v444_v56  ;;  %v5999_v32 = vrot.slane %v4570_v52, 1  ;;  %v478_v54 = vrot.slane %v4758_v29, 1 }
  0x5c   : > { %v479_v9 = vrot.slane %v4841_v14, 1  ;;  %4007 = vmatprep.subr.bf16.mxu1 %v4328_v48  ;;  %v6001_v41 = vrot.slane %v4581_v59, 7  ;;  %v442_v62 = vsel %vm440_vm3, %v435_v1, %v436_v20  ;;  %v6002_v33 = vrot.slane %v4667_v50, 1 }
  0x5d   : > { %v536_v30 = vsel %vm505_vm0, %v6000_v18, %v5999_v32  ;;  %v6003_v60 = vmov %v5999_v32  ;;  %v6004_v50 = vrot.slane %v4756_v24, 1  ;;  %v480_v52 = vrot.slane %v4863_v38, 1  ;;  %v4330_v38 = vld [vmem:[%s5942_s3 + $0xa8] sm:$0xff]  }
  0x5e   : > { %v441_v44 = vsel %vm440_vm3, %v436_v20, %v6001_v41  ;;  %v534_v47 = vsel %vm505_vm0, %v475_v3, %v6002_v33  ;;  %v535_v29 = vsel %vm505_vm0, %v6003_v60, %v475_v3  ;;  %v531_v1 = vsel %vm505_vm0, %v478_v54, %v479_v9 }
  0x5f   : > { %v5168_v14 = vpack.c.bf16 %v441_v44, %v442_v62  ;;  %v5170_v56 = vpack.c.bf16 %v535_v29, %v536_v30  ;;  %v5173_v59 = vpack.c.bf16 %v4795_v39, %v534_v47  ;;  %v532_v26 = vsel %vm505_vm0, %v6004_v50, %v478_v54  ;;  %3204 = vmatmul.mubr.msk.bf16.gmra.mrb[24].mxu0 %vm4593_vm5, %v5040_v58  ;;  %v4331_v47 = vld [vmem:[%s5942_s3 + $0xb0] sm:$0xff]   ;;  %v6008_v50 = vld [vmem:[#allocation14_spill] sm:$0xff] }
  0x60   : > { %v481_v20 = vrot.slane %v4904_v37, 1  ;;  %v482_v3 = vrot.slane %v4927_v16, 1  ;;  %4008 = vmatpush3.bf16.msra.mxu1 %v4328_v48  ;;  %v5187_v39 = vpack.c.bf16 %v531_v1, %v532_v26  ;;  %v483_v32 = vrot.slane %v4935_v31, 1  ;;  %1144 = vmatprep.mubr.bf16.mxu0 %v5044_v28 }
  0x61   : > { %v484_v24 = vrot.slane %v4954_v35, 1  ;;  %v485_v18 = vrot.slane %v4958_v7, 1  ;;  %4009 = vmatprep.subr.bf16.mxu1 %v4329_v23  ;;  %v530_v37 = vsel %vm505_vm0, %v479_v9, %v480_v52  ;;  %v486_v35 = vrot.slane %v4989_v49, 1 }
  0x62   : > { %v529_v16 = vsel %vm505_vm0, %v480_v52, %v481_v20  ;;  %v528_v31 = vsel %vm505_vm0, %v481_v20, %v482_v3  ;;  %v527_v7 = vsel %vm505_vm0, %v482_v3, %v483_v32  ;;  %3312 = vmatmul.mubr.msk.bf16.gmra.mrb[24].mxu1 %vm4593_vm5, %v4725_v42  ;;  %v487_v49 = vrot.slane %v4993_v12, 1  ;;  %v4333_v52 = vld [vmem:[%s5942_s3 + $0x180] sm:$0xff]   ;;  %v4334_v20 = vld [vmem:[%s5942_s3 + $0x1c8] sm:$0xff]  }
  0x63   : > { %v5203_v48 = vpack.c.bf16 %v529_v16, %v530_v37  ;;  %v525_v30 = vsel %vm505_vm0, %v484_v24, %v485_v18  ;;  %v526_v54 = vsel %vm505_vm0, %v483_v32, %v484_v24  ;;  %v5214_v9 = vpack.c.bf16 %v527_v7, %v528_v31  ;;  %1578 = vmatprep.mubr.bf16.mxu1 %v4768_v40  ;;  %v4335_v3 = vld [vmem:[%s5942_s3 + $0x188] sm:$0xff]   ;;  %v4336_v32 = vld [vmem:[%s5942_s3 + $0x1d0] sm:$0xff]   ;;  %v4341_v16 = vld [vmem:[%s5942_s3 + $0x1e0] sm:$0xff]  }
  0x64   : > { %v5216_v41 = vpack.c.bf16 %v525_v30, %v526_v54  ;;  %v524_v44 = vsel %vm505_vm0, %v485_v18, %v486_v35  ;;  %v5224_v62 = vpack.c.bf16 %v5070_v19, %v5059_v34  ;;  %4010 = vmatpush3.bf16.msra.mxu1 %v4329_v23  ;;  %v488_v33 = vrot.slane %v5022_v57, 1  ;;  %v5256_v57 = vld [vmem:[%s5942_s3 + $0x200] sm:$0xff]   ;;  %v6007_v23 = vld [vmem:[#allocation13_spill] sm:$0xff]  ;;  %v4338_v18 = vld [vmem:[%s5942_s3 + $0x1d8] sm:$0xff]  }
  0x65   : > { %4011 = vmatprep.subr.bf16.mxu1 %v4330_v38  ;;  %v523_v12 = vsel %vm505_vm0, %v486_v35, %v487_v49  ;;  %v6005_v29 = vrot.slane %v4572_v53, 1  ;;  %v4340_v53 = vld [vmem:[%s5942_s3 + $0xb8] sm:$0xff]   ;;  %v4337_v24 = vld [vmem:[%s5942_s3 + $0x190] sm:$0xff]   ;;  %v4342_v37 = vld [vmem:[%s5942_s3 + $0x1a0] sm:$0xff]  }
  0x66   : > { %v5232_v60 = vpack.c.bf16 %v523_v12, %v524_v44  ;;  %v522_v34 = vsel %vm505_vm0, %v487_v49, %v488_v33  ;;  %v4343_v31 = vld [vmem:[%s5942_s3 + $0x1e8] sm:$0xff]   ;;  %v4345_v7 = vld [vmem:[%s5942_s3 + $0x1f0] sm:$0xff]   ;;  %v4347_v54 = vld [vmem:[%s5942_s3 + $0x1f8] sm:$0xff]   ;;  %v6010_v44 = vmov 0  }
  0x67   : > { %v521_v1 = vsel %vm505_vm0, %v488_v33, %v6005_v29  ;;  %3208 = vmatmul.mubr.msk.bf16.gmra.mrb[28].mxu0 %vm4593_vm5, %v5224_v62  ;;  %v4344_v35 = vld [vmem:[%s5942_s3 + $0x1a8] sm:$0xff]   ;;  %v4346_v30 = vld [vmem:[%s5942_s3 + $0x1b0] sm:$0xff]   ;;  %v4348_v49 = vld [vmem:[%s5942_s3 + $0x1b8] sm:$0xff]  }
  0x68   : > { %v5240_v19 = vpack.c.bf16 %v521_v1, %v522_v34  ;;  %4012 = vmatpush3.bf16.msra.mxu1 %v4330_v38  ;;  %1152 = vmatprep.mubr.bf16.mxu0 %v5000_v63  ;;  %v4339_v38 = vld [vmem:[%s5942_s3 + $0x198] sm:$0xff]   ;;  %v4350_v33 = vld [vmem:[%s5942_s3 + $0x208] sm:$0xff]  }
  0x69   : > { %4013 = vmatprep.subr.bf16.mxu1 %v4331_v47  ;;  %v6013_v12 = vld [vmem:[#allocation6_spill] sm:$0xff] }
  0x6a   : > { %3316 = vmatmul.mubr.msk.bf16.gmra.mrb[28].mxu1 %vm4593_vm5, %v4810_v36 }
  0x6b   : > { %1586 = vmatprep.mubr.bf16.mxu1 %v6006_v5 }
  0x6c   : > { %4014 = vmatpush3.bf16.msra.mxu1 %v4331_v47  ;;  %v6012_v47 = vld [vmem:[#allocation5_spill] sm:$0xff] }
  0x6d   : > { %4015 = vmatprep.subr.bf16.mxu1 %v4340_v53 }
  0x6f   : > { %3212 = vmatmul.mubr.msk.bf16.gmra.mrb[32].mxu0 %vm4593_vm5, %v5072_v11 }
  0x70   : > { %4016 = vmatpush3.bf16.msra.mxu1 %v4340_v53  ;;  %1160 = vmatprep.mubr.bf16.mxu0 %v5008_v2 }
  0x71   : > { %4049 = vmatprep.subr.bf16.mxu1 %v5256_v57 }
  0x72   : > { %3320 = vmatmul.mubr.msk.bf16.gmra.mrb[32].mxu1 %vm4593_vm5, %v4913_v10 }
  0x73   : > { %1594 = vmatprep.mubr.bf16.mxu1 %v4948_v8 }
  0x77   : > { %3216 = vmatmul.mubr.msk.bf16.gmra.mrb[36].mxu0 %vm4593_vm5, %v5065_v17 }
  0x78   : > { %1168 = vmatprep.mubr.bf16.mxu0 %v5032_v6 }
  0x7a   : > { %3324 = vmatmul.mubr.msk.bf16.gmra.mrb[36].mxu1 %vm4593_vm5, %v6007_v23 }
  0x7b   : > { %1602 = vmatprep.mubr.bf16.mxu1 %v6008_v50 }
  0x7f   : > { %3220 = vmatmul.mubr.msk.bf16.gmra.mrb[40].mxu0 %vm4593_vm5, %v5077_v55 }
  0x80   : > { %1176 = vmatprep.mubr.bf16.mxu0 %v5081_v43 }
  0x82   : > { %3328 = vmatmul.mubr.msk.bf16.gmra.mrb[40].mxu1 %vm4593_vm5, %v5011_v27 }
  0x83   : > { %1610 = vmatprep.mubr.bf16.mxu1 %v5038_v13 }
  0x87   : > { %3224 = vmatmul.mubr.msk.bf16.gmra.mrb[44].mxu0 %vm4593_vm5, %v5114_v51 }
  0x88   : > { %1184 = vmatprep.mubr.bf16.mxu0 %v5088_v25 }
  0x8a   : > { %3332 = vmatmul.mubr.msk.bf16.gmra.mrb[44].mxu1 %vm4593_vm5, %v5040_v58 }
  0x8b   : > { %1618 = vmatprep.mubr.bf16.mxu1 %v5044_v28 }
  0x8f   : > { %3228 = vmatmul.mubr.msk.bf16.gmra.mrb[48].mxu0 %vm4593_vm5, %v5121_v21 }
  0x90   : > { %1192 = vmatprep.mubr.bf16.mxu0 %v5094_v22 }
  0x92   : > { %3336 = vmatmul.mubr.msk.bf16.gmra.mrb[48].mxu1 %vm4593_vm5, %v5224_v62 }
  0x93   : > { %1626 = vmatprep.mubr.bf16.mxu1 %v5000_v63 }
  0x97   : > { %3232 = vmatmul.mubr.msk.bf16.gmra.mrb[52].mxu0 %vm4593_vm5, %v5137_v61 }
  0x98   : > { %1200 = vmatprep.mubr.bf16.mxu0 %v5107_v45 }
  0x9a   : > { %3340 = vmatmul.mubr.msk.bf16.gmra.mrb[52].mxu1 %vm4593_vm5, %v5072_v11 }
  0x9b   : > { %1634 = vmatprep.mubr.bf16.mxu1 %v5008_v2 }
  0x9f   : > { %3236 = vmatmul.mubr.msk.bf16.gmra.mrb[56].mxu0 %vm4593_vm5, %v5144_v46 }
  0xa0   : > { %1208 = vmatprep.mubr.bf16.mxu0 %v5129_v4 }
  0xa2   : > { %3344 = vmatmul.mubr.msk.bf16.gmra.mrb[56].mxu1 %vm4593_vm5, %v5065_v17 }
  0xa3   : > { %1642 = vmatprep.mubr.bf16.mxu1 %v5032_v6 }
  0xa7   : > { %3240 = vmatmul.mubr.msk.bf16.gmra.mrb[60].mxu0 %vm4593_vm5, %v5168_v14 }
  0xa8   : > { %3969 = vmatprep.mubr.msk.bf16.mxu0 %vm4601_vm6, %v5170_v56 }
  0xaa   : > { %3348 = vmatmul.mubr.msk.bf16.gmra.mrb[60].mxu1 %vm4593_vm5, %v5077_v55 }
  0xab   : > { %1650 = vmatprep.mubr.bf16.mxu1 %v5081_v43 }
  0xaf   : > { %3970 = vmatmul.mubr.msk.bf16.vlgmr.msra.gmra.mrb[64].mxu0 %vm4601_vm6, %v5173_v59 }
  0xb0   : > { %3818 = vmatpush3.bf16.msra.mxu0 %v4333_v52  ;;  %3973 = vmatprep.mubr.msk.bf16.mxu0 %vm4601_vm6, %v5187_v39 }
  0xb1   : > { %3819 = vmatprep.subr.bf16.mxu0 %v4334_v20 }
  0xb2   : > { %3352 = vmatmul.mubr.msk.bf16.gmra.mrb[64].mxu1 %vm4593_vm5, %v5114_v51 }
  0xb3   : > { %1658 = vmatprep.mubr.bf16.mxu1 %v5088_v25 }
  0xb4   : > { %3820 = vmatpush3.bf16.msra.mxu0 %v4335_v3 }
  0xb5   : > { %3821 = vmatprep.subr.bf16.mxu0 %v4336_v32 }
  0xb7   : > { %3974 = vmatmul.mubr.msk.bf16.gmra.mrb[68].mxu0 %vm4601_vm6, %v5203_v48 }
  0xb8   : > { %3822 = vmatpush3.bf16.msra.mxu0 %v4337_v24  ;;  %3977 = vmatprep.mubr.msk.bf16.mxu0 %vm4601_vm6, %v5214_v9 }
  0xb9   : > { %3823 = vmatprep.subr.bf16.mxu0 %v4338_v18 }
  0xba   : > { %3356 = vmatmul.mubr.msk.bf16.gmra.mrb[68].mxu1 %vm4593_vm5, %v5121_v21 }
  0xbb   : > { %1666 = vmatprep.mubr.bf16.mxu1 %v5094_v22 }
  0xbc   : > { %3824 = vmatpush3.bf16.msra.mxu0 %v4339_v38 }
  0xbd   : > { %3825 = vmatprep.subr.bf16.mxu0 %v4341_v16 }
  0xbf   : > { %3978 = vmatmul.mubr.msk.bf16.gmra.mrb[72].mxu0 %vm4601_vm6, %v5216_v41 }
  0xc0   : > { %3826 = vmatpush3.bf16.msra.mxu0 %v4342_v37  ;;  %3981 = vmatprep.mubr.msk.bf16.mxu0 %vm4601_vm6, %v5232_v60 }
  0xc1   : > { %3827 = vmatprep.subr.bf16.mxu0 %v4343_v31 }
  0xc2   : > { %3360 = vmatmul.mubr.msk.bf16.gmra.mrb[72].mxu1 %vm4593_vm5, %v5137_v61 }
  0xc3   : > { %1674 = vmatprep.mubr.bf16.mxu1 %v5107_v45 }
  0xc4   : > { %3828 = vmatpush3.bf16.msra.mxu0 %v4344_v35 }
  0xc5   : > { %3829 = vmatprep.subr.bf16.mxu0 %v4345_v7 }
  0xc7   : > { %3982 = vmatmul.mubr.msk.bf16.gmra.mrb[76].mxu0 %vm4601_vm6, %v5240_v19 }
  0xc8   : > { %3830 = vmatpush3.bf16.msra.mxu0 %v4346_v30  ;;  %2118 = vmatprep.mubr.bf16.mxu0 %v4690_v15  ;;  %v4351_v15 = vld [vmem:[%s5942_s3 + $0x210] sm:$0xff]  }
  0xc9   : > { %3831 = vmatprep.subr.bf16.mxu0 %v4347_v54 }
  0xca   : > { %3364 = vmatmul.mubr.msk.bf16.gmra.mrb[76].mxu1 %vm4593_vm5, %v5144_v46 }
  0xcb   : > { %4017 = vmatprep.mubr.bf16.mxu1 %v6010_v44 }
  0xcc   : > { %3832 = vmatpush3.bf16.msra.mxu0 %v4348_v49 }
  0xcf   : > { %3428 = vmatmul.mubr.msk.bf16.vlgmr.msra.gmra.mrb[80].mxu0 %vm4593_vm5, %v4725_v42  ;;  %v4352_v42 = vld [vmem:[%s5942_s3 + $0x218] sm:$0xff]  }
  0xd0   : > { %2126 = vmatprep.mubr.bf16.mxu0 %v4768_v40  ;;  %v4353_v40 = vld [vmem:[%s5942_s3 + $0x220] sm:$0xff]  }
  0xd2   : > { %4018 = vmatmul.mubr.msk.bf16.vlgmr.msra.gmra.mrb[80].mxu1 %vm4601_vm6, %v5170_v56  ;;  %v6011_v56 = vld [vmem:[#allocation4_spill] sm:$0xff] }
  0xd3   : > { %4050 = vmatpush3.bf16.msra.mxu1 %v5256_v57  ;;  %4021 = vmatprep.mubr.msk.bf16.mxu1 %vm4601_vm6, %v5173_v59  ;;  %v6017_v57 = vld [vmem:[#allocation11_spill] sm:$0xff] }
  0xd4   : > { %4051 = vmatprep.subr.bf16.mxu1 %v4350_v33 }
  0xd7   : > { %3432 = vmatmul.mubr.msk.bf16.gmra.mrb[84].mxu0 %vm4593_vm5, %v4810_v36  ;;  %4052 = vmatpush3.bf16.msra.mxu1 %v4350_v33  ;;  %v4354_v36 = vld [vmem:[%s5942_s3 + $0x228] sm:$0xff]  }
  0xd8   : > { %2134 = vmatprep.mubr.bf16.mxu0 %v6006_v5  ;;  %4053 = vmatprep.subr.bf16.mxu1 %v4351_v15  ;;  %v6016_v5 = vld [vmem:[#allocation9_spill] sm:$0xff] }
  0xda   : > { %4022 = vmatmul.mubr.msk.bf16.gmra.mrb[84].mxu1 %vm4601_vm6, %v5187_v39 }
  0xdb   : > { %4025 = vmatprep.mubr.msk.bf16.mxu1 %vm4601_vm6, %v5203_v48  ;;  %4054 = vmatpush3.bf16.msra.mxu1 %v4351_v15 }
  0xdc   : > { %4055 = vmatprep.subr.bf16.mxu1 %v4352_v42 }
  0xdf   : > { %3436 = vmatmul.mubr.msk.bf16.gmra.mrb[88].mxu0 %vm4593_vm5, %v4913_v10  ;;  %4056 = vmatpush3.bf16.msra.mxu1 %v4352_v42  ;;  %v4355_v10 = vld [vmem:[%s5942_s3 + $0x230] sm:$0xff]  }
  0xe0   : > { %2142 = vmatprep.mubr.bf16.mxu0 %v4948_v8  ;;  %4057 = vmatprep.subr.bf16.mxu1 %v4353_v40  ;;  %v4356_v8 = vld [vmem:[%s5942_s3 + $0x238] sm:$0xff]  }
  0xe2   : > { %4026 = vmatmul.mubr.msk.bf16.gmra.mrb[88].mxu1 %vm4601_vm6, %v5214_v9 }
  0xe3   : > { %4029 = vmatprep.mubr.msk.bf16.mxu1 %vm4601_vm6, %v5216_v41  ;;  %4058 = vmatpush3.bf16.msra.mxu1 %v4353_v40 }
  0xe4   : > { %4059 = vmatprep.subr.bf16.mxu1 %v4354_v36 }
  0xe7   : > { %3440 = vmatmul.mubr.msk.bf16.gmra.mrb[92].mxu0 %vm4593_vm5, %v6007_v23  ;;  %4060 = vmatpush3.bf16.msra.mxu1 %v4354_v36 }
  0xe8   : > { %2150 = vmatprep.mubr.bf16.mxu0 %v6008_v50  ;;  %4061 = vmatprep.subr.bf16.mxu1 %v4355_v10 }
  0xea   : > { %4030 = vmatmul.mubr.msk.bf16.gmra.mrb[92].mxu1 %vm4601_vm6, %v5232_v60 }
  0xeb   : > { %4033 = vmatprep.mubr.msk.bf16.mxu1 %vm4601_vm6, %v5240_v19  ;;  %4062 = vmatpush3.bf16.msra.mxu1 %v4355_v10 }
  0xec   : > { %4063 = vmatprep.subr.bf16.mxu1 %v4356_v8 }
  0xef   : > { %3444 = vmatmul.mubr.msk.bf16.gmra.mrb[96].mxu0 %vm4593_vm5, %v5011_v27  ;;  %4064 = vmatpush3.bf16.msra.mxu1 %v4356_v8  ;;  %v6014_v27 = vld [vmem:[#allocation7_spill] sm:$0xff] }
  0xf0   : > { %2158 = vmatprep.mubr.bf16.mxu0 %v5038_v13 }
  0xf2   : > { %4034 = vmatmul.mubr.msk.bf16.gmra.mrb[0].mxu1 %vm4601_vm6, %v6011_v56 }
  0xf3   : > { %4037 = vmatprep.mubr.msk.bf16.mxu1 %vm4601_vm6, %v6012_v47 }
  0xf7   : > { %3448 = vmatmul.mubr.msk.bf16.gmra.mrb[100].mxu0 %vm4593_vm5, %v5040_v58 }
  0xf8   : > { %2166 = vmatprep.mubr.bf16.mxu0 %v5044_v28  ;;  %v6015_v28 = vld [vmem:[#allocation8_spill] sm:$0xff] }
  0xfa   : > { %4038 = vmatmul.mubr.msk.bf16.gmra.mrb[4].mxu1 %vm4601_vm6, %v6013_v12 }
  0xfb   : > { %4041 = vmatprep.mubr.msk.bf16.mxu1 %vm4601_vm6, %v6014_v27 }
  0xff   : > { %3452 = vmatmul.mubr.msk.bf16.gmra.mrb[104].mxu0 %vm4593_vm5, %v5224_v62 }
 0x100   : > { %2174 = vmatprep.mubr.bf16.mxu0 %v5000_v63 }
 0x102   : > { %v3561_v13 = vpop.f32.mrb[0].mxu0  ;;  %4042 = vmatmul.mubr.msk.bf16.gmra.mrb[8].mxu1 %vm4601_vm6, %v6015_v28 }
 0x103   : > { %v3562_v29 = vpop.f32.mrb[1].mxu0  ;;  %4045 = vmatprep.mubr.msk.bf16.mxu1 %vm4601_vm6, %v6016_v5 }
 0x104   : > { %v5494_v1 = vadd.f32 %v3562_v29, %v3561_v13  ;;  %v3564_v58 = vpop.f32.mrb[2].mxu0 }
 0x105   : > { %v3565_v34 = vpop.f32.mrb[3].mxu0 }
 0x106   : > { %v5499_v53 = vadd.f32 %v3565_v34, %v3564_v58 }
 0x107   : > { %3456 = vmatmul.mubr.msk.bf16.gmra.mrb[108].mxu0 %vm4593_vm5, %v5072_v11 }
 0x108   : > { %2182 = vmatprep.mubr.bf16.mxu0 %v5008_v2 }
 0x10a   : > { %v3567_v62 = vpop.f32.mrb[4].mxu0  ;;  %4046 = vmatmul.mubr.msk.bf16.gmra.mrb[12].mxu1 %vm4601_vm6, %v6017_v57 }
 0x10b   : > { %v3568_v63 = vpop.f32.mrb[5].mxu0  ;;  %4065 = vmatprep.mubr.msk.bf16.mxu1 %vm4601_vm6, %v5173_v59 }
 0x10c   : > { %v5511_v23 = vadd.f32 %v3568_v63, %v3567_v62  ;;  %v3570_v50 = vpop.f32.mrb[6].mxu0 }
 0x10d   : > { %v3571_v52 = vpop.f32.mrb[7].mxu0 }
 0x10e   : > { %v5516_v20 = vadd.f32 %v3571_v52, %v3570_v50 }
 0x10f   : > { %3460 = vmatmul.mubr.msk.bf16.gmra.mrb[112].mxu0 %vm4593_vm5, %v5065_v17 }
 0x110   : > { %2190 = vmatprep.mubr.bf16.mxu0 %v5032_v6 }
 0x112   : > { %v3573_v2 = vpop.f32.mrb[8].mxu0  ;;  %4066 = vmatmul.mubr.msk.bf16.vlgmr.msra.gmra.mrb[80].mxu1 %vm4601_vm6, %v5187_v39 }
 0x113   : > { %v3574_v11 = vpop.f32.mrb[9].mxu0  ;;  %4069 = vmatprep.mubr.msk.bf16.mxu1 %vm4601_vm6, %v5203_v48 }
 0x114   : > { %v5525_v3 = vadd.f32 %v3574_v11, %v3573_v2  ;;  %v3576_v32 = vpop.f32.mrb[10].mxu0 }
 0x115   : > { %v3577_v24 = vpop.f32.mrb[11].mxu0 }
 0x116   : > { %v5530_v59 = vadd.f32 %v3577_v24, %v3576_v32 }
 0x117   : > { %3464 = vmatmul.mubr.msk.bf16.gmra.mrb[116].mxu0 %vm4593_vm5, %v5077_v55 }
 0x118   : > { %2198 = vmatprep.mubr.bf16.mxu0 %v5081_v43 }
 0x11a   : > { %4070 = vmatmul.mubr.msk.bf16.gmra.mrb[84].mxu1 %vm4601_vm6, %v5214_v9  ;;  %v3579_v17 = vpop.f32.mrb[12].mxu0 }
 0x11b   : > { %v3580_v6 = vpop.f32.mrb[13].mxu0  ;;  %4073 = vmatprep.mubr.msk.bf16.mxu1 %vm4601_vm6, %v5216_v41 }
 0x11c   : > { %v5542_v39 = vadd.f32 %v3580_v6, %v3579_v17  ;;  %v3582_v48 = vpop.f32.mrb[14].mxu0 }
 0x11d   : > { %v3583_v18 = vpop.f32.mrb[15].mxu0 }
 0x11e   : > { %v5544_v38 = vadd.f32 %v3583_v18, %v3582_v48  ;;  %v6018_v18 = vld [vmem:[#allocation12_spill] sm:$0xff] }
 0x11f   : > { %3468 = vmatmul.mubr.msk.bf16.gmra.mrb[120].mxu0 %vm4593_vm5, %v5114_v51 }
 0x120   : > { %2206 = vmatprep.mubr.bf16.mxu0 %v5088_v25 }
 0x122   : > { %4074 = vmatmul.mubr.msk.bf16.gmra.mrb[88].mxu1 %vm4601_vm6, %v5232_v60  ;;  %v3585_v55 = vpop.f32.mrb[16].mxu0 }
 0x123   : > { %v3586_v43 = vpop.f32.mrb[17].mxu0  ;;  %4077 = vmatprep.mubr.msk.bf16.mxu1 %vm4601_vm6, %v5240_v19 }
 0x124   : > { %v5556_v9 = vadd.f32 %v3586_v43, %v3585_v55  ;;  %v3588_v41 = vpop.f32.mrb[18].mxu0 }
 0x125   : > { %v3697_v16 = vpop.f32.mrb[16].mxu1  ;;  %v3589_v37 = vpop.f32.mrb[19].mxu0 }
 0x126   : > { %v3698_v31 = vpop.f32.mrb[17].mxu1  ;;  %v5558_v35 = vadd.f32 %v3589_v37, %v3588_v41 }
 0x127   : > { %v5560_v51 = vadd.f32 %v3698_v31, %v3697_v16  ;;  %v3700_v25 = vpop.f32.mrb[18].mxu1  ;;  %3472 = vmatmul.mubr.msk.bf16.gmra.mrb[124].mxu0 %vm4593_vm5, %v5121_v21 }
 0x128   : > { %v3701_v60 = vpop.f32.mrb[19].mxu1  ;;  %2214 = vmatprep.mubr.bf16.mxu0 %v5094_v22 }
 0x129   : > { %v5566_v7 = vadd.f32 %v3701_v60, %v3700_v25 }
 0x12a   : > { %4078 = vmatmul.mubr.msk.bf16.gmra.mrb[92].mxu1 %vm4601_vm6, %v6011_v56  ;;  %v3591_v19 = vpop.f32.mrb[20].mxu0 }
 0x12b   : > { %v3592_v30 = vpop.f32.mrb[21].mxu0  ;;  %4081 = vmatprep.mubr.msk.bf16.mxu1 %vm4601_vm6, %v6012_v47 }
 0x12c   : > { %v5574_v54 = vadd.f32 %v3592_v30, %v3591_v19  ;;  %v3594_v49 = vpop.f32.mrb[22].mxu0 }
 0x12d   : > { %v3703_v33 = vpop.f32.mrb[20].mxu1  ;;  %v3595_v21 = vpop.f32.mrb[23].mxu0 }
 0x12e   : > { %v3704_v15 = vpop.f32.mrb[21].mxu1  ;;  %v5576_v42 = vadd.f32 %v3595_v21, %v3594_v49 }
 0x12f   : > { %v5578_v22 = vadd.f32 %v3704_v15, %v3703_v33  ;;  %v3706_v40 = vpop.f32.mrb[22].mxu1  ;;  %3476 = vmatmul.mubr.msk.bf16.gmra.mrb[128].mxu0 %vm4593_vm5, %v5137_v61 }
 0x130   : > { %v3707_v36 = vpop.f32.mrb[23].mxu1  ;;  %2222 = vmatprep.mubr.bf16.mxu0 %v5107_v45 }
 0x131   : > { %v5584_v10 = vadd.f32 %v3707_v36, %v3706_v40 }
 0x132   : > { %4082 = vmatmul.mubr.msk.bf16.gmra.mrb[0].mxu1 %vm4601_vm6, %v6013_v12  ;;  %v3597_v8 = vpop.f32.mrb[24].mxu0 }
 0x133   : > { %v3598_v56 = vpop.f32.mrb[25].mxu0  ;;  %4085 = vmatprep.mubr.msk.bf16.mxu1 %vm4601_vm6, %v6014_v27 }
 0x134   : > { %v5592_v47 = vadd.f32 %v3598_v56, %v3597_v8  ;;  %v3600_v13 = vpop.f32.mrb[26].mxu0 }
 0x135   : > { %v3709_v29 = vpop.f32.mrb[24].mxu1  ;;  %v3601_v61 = vpop.f32.mrb[27].mxu0 }
 0x136   : > { %v3710_v58 = vpop.f32.mrb[25].mxu1  ;;  %v5594_v34 = vadd.f32 %v3601_v61, %v3600_v13 }
 0x137   : > { %v5596_v45 = vadd.f32 %v3710_v58, %v3709_v29  ;;  %v3712_v62 = vpop.f32.mrb[26].mxu1  ;;  %3480 = vmatmul.mubr.msk.bf16.gmra.mrb[132].mxu0 %vm4593_vm5, %v5144_v46 }
 0x138   : > { %v3713_v12 = vpop.f32.mrb[27].mxu1  ;;  %2230 = vmatprep.mubr.bf16.mxu0 %v5129_v4 }
 0x139   : > { %v5602_v63 = vadd.f32 %v3713_v12, %v3712_v62 }
 0x13a   : > { %4086 = vmatmul.mubr.msk.bf16.gmra.mrb[4].mxu1 %vm4601_vm6, %v6015_v28  ;;  %v3603_v27 = vpop.f32.mrb[28].mxu0 }
 0x13b   : > { %v3604_v50 = vpop.f32.mrb[29].mxu0  ;;  %4089 = vmatprep.mubr.msk.bf16.mxu1 %vm4601_vm6, %v6016_v5 }
 0x13c   : > { %v5610_v52 = vadd.f32 %v3604_v50, %v3603_v27  ;;  %v3606_v2 = vpop.f32.mrb[30].mxu0 }
 0x13d   : > { %v3715_v11 = vpop.f32.mrb[28].mxu1  ;;  %v3607_v46 = vpop.f32.mrb[31].mxu0 }
 0x13e   : > { %v3716_v32 = vpop.f32.mrb[29].mxu1  ;;  %v5612_v24 = vadd.f32 %v3607_v46, %v3606_v2 }
 0x13f   : > { %v5614_v4 = vadd.f32 %v3716_v32, %v3715_v11  ;;  %v3718_v17 = vpop.f32.mrb[30].mxu1  ;;  %3484 = vmatmul.mubr.msk.bf16.gmra.mrb[136].mxu0 %vm4593_vm5, %v5168_v14 }
 0x140   : > { %v3719_v28 = vpop.f32.mrb[31].mxu1  ;;  %2238 = vmatprep.mubr.bf16.mxu0 %v6010_v44 }
 0x141   : > { %v5620_v6 = vadd.f32 %v3719_v28, %v3718_v17 }
 0x142   : > { %4090 = vmatmul.mubr.msk.bf16.gmra.mrb[8].mxu1 %vm4601_vm6, %v6017_v57  ;;  %v3609_v5 = vpop.f32.mrb[32].mxu0 }
 0x143   : > { %v3610_v48 = vpop.f32.mrb[33].mxu0  ;;  %4093 = vmatprep.mubr.msk.bf16.mxu1 %vm4601_vm6, %v6018_v18 }
 0x144   : > { %v3611_v55 = vadd.f32 %v3610_v48, %v3609_v5  ;;  %v3612_v43 = vpop.f32.mrb[34].mxu0 }
 0x145   : > { %v3721_v41 = vpop.f32.mrb[32].mxu1  ;;  %v3613_v0 = vpop.f32.mrb[35].mxu0 }
 0x146   : > { %v3722_v14 = vpop.f32.mrb[33].mxu1  ;;  %v3614_v16 = vadd.f32 %v3613_v0, %v3612_v43 }
 0x147   : > { %v5628_v37 = vadd.f32 %v3722_v14, %v3721_v41  ;;  %v3724_v31 = vpop.f32.mrb[34].mxu1  ;;  %2239 = vmatmul.mubr.bf16.gmra.mrb[140].mxu0 %v6010_v44 }
 0x148   : > { %v3725_v25 = vpop.f32.mrb[35].mxu1 }
 0x149   : > { %v5631_v60 = vadd.f32 %v3725_v25, %v3724_v31 }
 0x14a   : > { %4094 = vmatmul.mubr.bf16.gmra.mrb[12].mxu1 %v6010_v44  ;;  %v3615_v57 = vpop.f32.mrb[36].mxu0 }
 0x14b   : > { %v3616_v19 = vpop.f32.mrb[37].mxu0 }
 0x14c   : > { %v3617_v26 = vadd.f32 %v3616_v19, %v3615_v57  ;;  %v3618_v30 = vpop.f32.mrb[38].mxu0 }
 0x14d   : > { %v3727_v49 = vpop.f32.mrb[36].mxu1  ;;  %v3619_v33 = vpop.f32.mrb[39].mxu0 }
 0x14e   : > { %v3728_v21 = vpop.f32.mrb[37].mxu1  ;;  %v3620_v15 = vadd.f32 %v3619_v33, %v3618_v30 }
 0x14f   : > { %v5634_v40 = vadd.f32 %v3728_v21, %v3727_v49  ;;  %v3730_v36 = vpop.f32.mrb[38].mxu1 }
 0x150   : > { %v3731_v8 = vpop.f32.mrb[39].mxu1 }
 0x151   : > { %v5636_v56 = vadd.f32 %v3731_v8, %v3730_v36 }
 0x152   : > { %v3621_v13 = vpop.f32.mrb[40].mxu0 }
 0x153   : > { %v3622_v29 = vpop.f32.mrb[41].mxu0 }
 0x154   : > { %v3623_v61 = vadd.f32 %v3622_v29, %v3621_v13  ;;  %v3624_v58 = vpop.f32.mrb[42].mxu0 }
 0x155   : > { %v3733_v62 = vpop.f32.mrb[40].mxu1  ;;  %v3625_v44 = vpop.f32.mrb[43].mxu0 }
 0x156   : > { %v3734_v12 = vpop.f32.mrb[41].mxu1  ;;  %v3626_v27 = vadd.f32 %v3625_v44, %v3624_v58 }
 0x157   : > { %v5638_v50 = vadd.f32 %v3734_v12, %v3733_v62  ;;  %v3736_v2 = vpop.f32.mrb[42].mxu1 }
 0x158   : > { %v3737_v11 = vpop.f32.mrb[43].mxu1 }
 0x159   : > { %v5640_v46 = vadd.f32 %v3737_v11, %v3736_v2 }
 0x15a   : > { %v3627_v32 = vpop.f32.mrb[44].mxu0 }
 0x15b   : > { %v3628_v17 = vpop.f32.mrb[45].mxu0 }
 0x15c   : > { %v5642_v28 = vadd.f32 %v3628_v17, %v3627_v32  ;;  %v3630_v5 = vpop.f32.mrb[46].mxu0 }
 0x15d   : > { %v3739_v48 = vpop.f32.mrb[44].mxu1  ;;  %v3631_v18 = vpop.f32.mrb[47].mxu0 }
 0x15e   : > { %v3740_v43 = vpop.f32.mrb[45].mxu1  ;;  %v3632_v41 = vadd.f32 %v3631_v18, %v3630_v5 }
 0x15f   : > { %v5644_v0 = vadd.f32 %v3740_v43, %v3739_v48  ;;  %v3742_v14 = vpop.f32.mrb[46].mxu1 }
 0x160   : > { %v3743_v31 = vpop.f32.mrb[47].mxu1 }
 0x161   : > { %v5646_v25 = vadd.f32 %v3743_v31, %v3742_v14 }
 0x162   : > { %v3633_v57 = vpop.f32.mrb[48].mxu0 }
 0x163   : > { %v3634_v19 = vpop.f32.mrb[49].mxu0 }
 0x164   : > { %v5648_v30 = vadd.f32 %v3634_v19, %v3633_v57  ;;  %v3636_v49 = vpop.f32.mrb[50].mxu0 }
 0x165   : > { %v3745_v33 = vpop.f32.mrb[48].mxu1  ;;  %v3637_v21 = vpop.f32.mrb[51].mxu0 }
 0x166   : > { %v3746_v36 = vpop.f32.mrb[49].mxu1  ;;  %v5650_v8 = vadd.f32 %v3637_v21, %v3636_v49 }
 0x167   : > { %v3747_v13 = vadd.f32 %v3746_v36, %v3745_v33  ;;  %v3748_v29 = vpop.f32.mrb[50].mxu1 }
 0x168   : > { %v3749_v58 = vpop.f32.mrb[51].mxu1 }
 0x169   : > { %v5652_v62 = vadd.f32 %v3747_v13, %v3611_v55  ;;  %v3750_v44 = vadd.f32 %v3749_v58, %v3748_v29 }
 0x16a   : > { %v3639_v12 = vpop.f32.mrb[52].mxu0 }
 0x16b   : > { %v5654_v2 = vadd.f32 %v3750_v44, %v3614_v16  ;;  %v3640_v11 = vpop.f32.mrb[53].mxu0 }
 0x16c   : > { %v5656_v32 = vadd.f32 %v3640_v11, %v3639_v12  ;;  %v3642_v17 = vpop.f32.mrb[54].mxu0 }
 0x16d   : > { %v3751_v5 = vpop.f32.mrb[52].mxu1  ;;  %v3643_v48 = vpop.f32.mrb[55].mxu0 }
 0x16e   : > { %v3752_v18 = vpop.f32.mrb[53].mxu1  ;;  %v5658_v43 = vadd.f32 %v3643_v48, %v3642_v17 }
 0x16f   : > { %v3753_v14 = vadd.f32 %v3752_v18, %v3751_v5  ;;  %v3754_v31 = vpop.f32.mrb[54].mxu1 }
 0x170   : > { %v3755_v57 = vpop.f32.mrb[55].mxu1 }
 0x171   : > { %v5660_v19 = vadd.f32 %v3753_v14, %v3617_v26  ;;  %v3756_v55 = vadd.f32 %v3755_v57, %v3754_v31 }
 0x172   : > { %v3645_v49 = vpop.f32.mrb[56].mxu0 }
 0x173   : > { %v5662_v33 = vadd.f32 %v3756_v55, %v3620_v15  ;;  %v3646_v16 = vpop.f32.mrb[57].mxu0 }
 0x174   : > { %v5664_v21 = vadd.f32 %v3646_v16, %v3645_v49  ;;  %v3648_v36 = vpop.f32.mrb[58].mxu0 }
 0x175   : > { %v3757_v13 = vpop.f32.mrb[56].mxu1  ;;  %v3649_v29 = vpop.f32.mrb[59].mxu0 }
 0x176   : > { %v3758_v58 = vpop.f32.mrb[57].mxu1  ;;  %v5666_v44 = vadd.f32 %v3649_v29, %v3648_v36 }
 0x177   : > { %v3759_v12 = vadd.f32 %v3758_v58, %v3757_v13  ;;  %v3760_v11 = vpop.f32.mrb[58].mxu1 }
 0x178   : > { %v3761_v17 = vpop.f32.mrb[59].mxu1 }
 0x179   : > { %v5668_v5 = vadd.f32 %v3759_v12, %v3623_v61  ;;  %v3762_v26 = vadd.f32 %v3761_v17, %v3760_v11 }
 0x17a   : > { %v3651_v48 = vpop.f32.mrb[60].mxu0 }
 0x17b   : > { %v5670_v18 = vadd.f32 %v3762_v26, %v3626_v27  ;;  %v3652_v15 = vpop.f32.mrb[61].mxu0 }
 0x17c   : > { %v5672_v14 = vadd.f32 %v3652_v15, %v3651_v48  ;;  %v3654_v31 = vpop.f32.mrb[62].mxu0 }
 0x17d   : > { %v3763_v57 = vpop.f32.mrb[60].mxu1  ;;  %v3655_v55 = vpop.f32.mrb[63].mxu0 }
 0x17e   : > { %v3764_v49 = vpop.f32.mrb[61].mxu1  ;;  %v5674_v16 = vadd.f32 %v3655_v55, %v3654_v31 }
 0x17f   : > { %v3765_v36 = vadd.f32 %v3764_v49, %v3763_v57  ;;  %v3766_v29 = vpop.f32.mrb[62].mxu1 }
 0x180   : > { %v3767_v13 = vpop.f32.mrb[63].mxu1 }
 0x181   : > { %v5677_v58 = vadd.f32 %v3765_v36, %v5642_v28  ;;  %v3768_v61 = vadd.f32 %v3767_v13, %v3766_v29 }
 0x182   : > { %v3971_v12 = vpop.f32.mrb[64].mxu0 }
 0x183   : > { %v5679_v11 = vadd.f32 %v3768_v61, %v3632_v41  ;;  %v1260_v27 = vadd.f32 %v3971_v12, %v5511_v23  ;;  %v1251_v17 = vpop.f32.mrb[65].mxu0 }
 0x184   : > { %v1252_v26 = vadd.f32 %v5494_v1, %v1251_v17  ;;  %v3972_v48 = vpop.f32.mrb[66].mxu0 }
 0x185   : > { %v5684_v15 = vadd.f32 %v5578_v22, %v1260_v27  ;;  %v3769_v31 = vpop.f32.mrb[64].mxu1  ;;  %v1263_v57 = vadd.f32 %v3972_v48, %v5516_v20  ;;  %v1254_v55 = vpop.f32.mrb[67].mxu0 }
 0x186   : > { %v5688_v28 = vadd.f32 %v5560_v51, %v1252_v26  ;;  %v3770_v49 = vpop.f32.mrb[65].mxu1  ;;  %v1255_v41 = vadd.f32 %v5499_v53, %v1254_v55 }
 0x187   : > { %v3771_v36 = vadd.f32 %v3770_v49, %v3769_v31  ;;  %v5692_v23 = vadd.f32 %v5584_v10, %v1263_v57  ;;  %v3772_v29 = vpop.f32.mrb[66].mxu1 }
 0x188   : > { %v5695_v1 = vadd.f32 %v5566_v7, %v1255_v41  ;;  %v3773_v22 = vpop.f32.mrb[67].mxu1 }
 0x189   : > { %v5698_v13 = vadd.f32 %v3771_v36, %v5648_v30  ;;  %v3774_v20 = vadd.f32 %v3773_v22, %v3772_v29 }
 0x18a   : > { %v3975_v61 = vpop.f32.mrb[68].mxu0 }
 0x18b   : > { %v5701_v51 = vadd.f32 %v3774_v20, %v5650_v8  ;;  %v1276_v12 = vadd.f32 %v3975_v61, %v5542_v39  ;;  %v1267_v53 = vpop.f32.mrb[69].mxu0 }
 0x18c   : > { %v1268_v27 = vadd.f32 %v5525_v3, %v1267_v53  ;;  %v3976_v10 = vpop.f32.mrb[70].mxu0 }
 0x18d   : > { %v5706_v17 = vadd.f32 %v5614_v4, %v1276_v12  ;;  %v3775_v7 = vpop.f32.mrb[68].mxu1  ;;  %v1279_v26 = vadd.f32 %v3976_v10, %v5544_v38  ;;  %v1270_v48 = vpop.f32.mrb[71].mxu0 }
 0x18e   : > { %v5710_v30 = vadd.f32 %v5596_v45, %v1268_v27  ;;  %v3776_v31 = vpop.f32.mrb[69].mxu1  ;;  %v1271_v8 = vadd.f32 %v5530_v59, %v1270_v48 }
 0x18f   : > { %v3777_v57 = vadd.f32 %v3776_v31, %v3775_v7  ;;  %v5714_v39 = vadd.f32 %v5620_v6, %v1279_v26  ;;  %v3778_v55 = vpop.f32.mrb[70].mxu1 }
 0x190   : > { %v5717_v3 = vadd.f32 %v5602_v63, %v1271_v8  ;;  %v3779_v4 = vpop.f32.mrb[71].mxu1 }
 0x191   : > { %v5720_v49 = vadd.f32 %v3777_v57, %v5656_v32  ;;  %v3780_v38 = vadd.f32 %v3779_v4, %v3778_v55 }
 0x192   : > { %v3979_v41 = vpop.f32.mrb[72].mxu0 }
 0x193   : > { %v5723_v45 = vadd.f32 %v3780_v38, %v5658_v43  ;;  %v1292_v36 = vadd.f32 %v3979_v41, %v5574_v54  ;;  %v1283_v59 = vpop.f32.mrb[73].mxu0 }
 0x194   : > { %v1284_v29 = vadd.f32 %v5556_v9, %v1283_v59  ;;  %v3980_v6 = vpop.f32.mrb[74].mxu0 }
 0x195   : > { %v5728_v22 = vadd.f32 %v5634_v40, %v1292_v36  ;;  %v3781_v63 = vpop.f32.mrb[72].mxu1  ;;  %v1295_v20 = vadd.f32 %v3980_v6, %v5576_v42  ;;  %v1286_v61 = vpop.f32.mrb[75].mxu0 }
 0x196   : > { %v5732_v32 = vadd.f32 %v5628_v37, %v1284_v29  ;;  %v3782_v12 = vpop.f32.mrb[73].mxu1  ;;  %v1287_v43 = vadd.f32 %v5558_v35, %v1286_v61 }
 0x197   : > { %v3783_v53 = vadd.f32 %v3782_v12, %v3781_v63  ;;  %v5736_v54 = vadd.f32 %v5636_v56, %v1295_v20  ;;  %v3784_v27 = vpop.f32.mrb[74].mxu1 }
 0x198   : > { %v5739_v9 = vadd.f32 %v5631_v60, %v1287_v43  ;;  %v3785_v40 = vpop.f32.mrb[75].mxu1 }
 0x199   : > { %v5742_v10 = vadd.f32 %v3783_v53, %v5664_v21  ;;  %v3786_v42 = vadd.f32 %v3785_v40, %v3784_v27 }
 0x19a   : > { %v3983_v7 = vpop.f32.mrb[76].mxu0 }
 0x19b   : > { %v5745_v37 = vadd.f32 %v3786_v42, %v5666_v44  ;;  %v1308_v26 = vadd.f32 %v3983_v7, %v5610_v52  ;;  %v1299_v35 = vpop.f32.mrb[77].mxu0 }
 0x19c   : > { %v1300_v48 = vadd.f32 %v5592_v47, %v1299_v35  ;;  %v3984_v56 = vpop.f32.mrb[78].mxu0 }
 0x19d   : > { %v5750_v31 = vadd.f32 %v5644_v0, %v1308_v26  ;;  %v3787_v60 = vpop.f32.mrb[76].mxu1  ;;  %v1311_v8 = vadd.f32 %v3984_v56, %v5612_v24  ;;  %v1302_v57 = vpop.f32.mrb[79].mxu0 }
 0x19e   : > { %v5754_v21 = vadd.f32 %v5638_v50, %v1300_v48  ;;  %v3788_v55 = vpop.f32.mrb[77].mxu1  ;;  %v1303_v44 = vadd.f32 %v5594_v34, %v1302_v57 }
 0x19f   : > { %v3789_v4 = vadd.f32 %v3788_v55, %v3787_v60  ;;  %v5758_v52 = vadd.f32 %v5646_v25, %v1311_v8  ;;  %v3790_v38 = vpop.f32.mrb[78].mxu1 }
 0x1a0   : > { %v1608_v47 = vadd.f32 %v5640_v46, %v1303_v44  ;;  %v3791_v41 = vpop.f32.mrb[79].mxu1 }
 0x1a1   : > { %v5762_v0 = vadd.f32 %v3789_v4, %v5672_v14  ;;  %v3792_v36 = vadd.f32 %v3791_v41, %v3790_v38 }
 0x1a2   : > { %v3833_v24 = vpop.f32.mrb[80].mxu0 }
 0x1a3   : > { %v5765_v59 = vadd.f32 %v3792_v36, %v5674_v16  ;;  %v3834_v50 = vpop.f32.mrb[81].mxu0 }
 0x1a4   : > { %v3835_v29 = vadd.f32 %v3834_v50, %v3833_v24  ;;  %v3836_v6 = vpop.f32.mrb[82].mxu0 }
 0x1a5   : > { %v3837_v34 = vpop.f32.mrb[83].mxu0 }
 0x1a6   : > { %v3838_v63 = vadd.f32 %v3837_v34, %v3836_v6  ;;  %v5768_v25 = vadd.f32 %v3835_v29, %v5688_v28 }
 0x1a8   : > { %v5771_v20 = vadd.f32 %v3838_v63, %v5695_v1 }
 0x1aa   : > { %v3839_v46 = vpop.f32.mrb[84].mxu0 }
 0x1ab   : > { %v3840_v61 = vpop.f32.mrb[85].mxu0 }
 0x1ac   : > { %v3841_v14 = vadd.f32 %v3840_v61, %v3839_v46  ;;  %v3842_v12 = vpop.f32.mrb[86].mxu0 }
 0x1ad   : > { %v3843_v43 = vpop.f32.mrb[87].mxu0 }
 0x1ae   : > { %v3844_v53 = vadd.f32 %v3843_v43, %v3842_v12  ;;  %v4115_v16 = vadd.f32 %v3841_v14, %v5684_v15 }
 0x1b0   : > { %v5775_v27 = vadd.f32 %v3844_v53, %v5692_v23 }
 0x1b2   : > { %v3845_v40 = vpop.f32.mrb[88].mxu0 }
 0x1b3   : > { %v3846_v42 = vpop.f32.mrb[89].mxu0 }
 0x1b4   : > { %v3847_v7 = vadd.f32 %v3846_v42, %v3845_v40  ;;  %v3848_v26 = vpop.f32.mrb[90].mxu0 }
 0x1b5   : > { %v3849_v28 = vpop.f32.mrb[91].mxu0 }
 0x1b6   : > { %v3850_v35 = vadd.f32 %v3849_v28, %v3848_v26  ;;  %v5778_v1 = vadd.f32 %v3847_v7, %v5710_v30 }
 0x1b8   : > { %v5781_v48 = vadd.f32 %v3850_v35, %v5717_v3 }
 0x1ba   : > { %v3851_v56 = vpop.f32.mrb[92].mxu0 }
 0x1bb   : > { %v3852_v60 = vpop.f32.mrb[93].mxu0 }
 0x1bc   : > { %v3853_v8 = vadd.f32 %v3852_v60, %v3851_v56  ;;  %v3854_v57 = vpop.f32.mrb[94].mxu0 }
 0x1bd   : > { %v3855_v15 = vpop.f32.mrb[95].mxu0 }
 0x1be   : > { %v3856_v55 = vadd.f32 %v3855_v15, %v3854_v57  ;;  %v5784_v23 = vadd.f32 %v3853_v8, %v5706_v17 }
 0x1c0   : > { %v5787_v44 = vadd.f32 %v3856_v55, %v5714_v39 }
 0x1c2   : > { %v3857_v4 = vpop.f32.mrb[96].mxu0 }
 0x1c3   : > { %v3858_v38 = vpop.f32.mrb[97].mxu0 }
 0x1c4   : > { %v3859_v41 = vadd.f32 %v3858_v38, %v3857_v4  ;;  %v3860_v30 = vpop.f32.mrb[98].mxu0  ;;  %v5815_v38 = vld [vmem:[%s5943_s4] ss:$0 sm:$0xff] }
 0x1c5   : > { %v3861_v36 = vpop.f32.mrb[99].mxu0 }
 0x1c6   : > { %v3862_v24 = vadd.f32 %v3861_v36, %v3860_v30  ;;  %v5790_v3 = vadd.f32 %v3859_v41, %v5732_v32 }
 0x1c8   : > { %v5793_v50 = vadd.f32 %v3862_v24, %v5739_v9 }
 0x1ca   : > { %v3863_v29 = vpop.f32.mrb[100].mxu0 }
 0x1cb   : > { %v3864_v6 = vpop.f32.mrb[101].mxu0 }
 0x1cc   : > { %v3865_v34 = vadd.f32 %v3864_v6, %v3863_v29  ;;  %v3866_v17 = vpop.f32.mrb[102].mxu0 }
 0x1cd   : > { %v3867_v63 = vpop.f32.mrb[103].mxu0 }
 0x1ce   : > { %v3868_v46 = vadd.f32 %v3867_v63, %v3866_v17  ;;  %v5796_v39 = vadd.f32 %v3865_v34, %v5728_v22 }
 0x1d0   : > { %v5799_v61 = vadd.f32 %v3868_v46, %v5736_v54 }
 0x1d2   : > { %v3869_v14 = vpop.f32.mrb[104].mxu0 }
 0x1d3   : > { %v3870_v12 = vpop.f32.mrb[105].mxu0 }
 0x1d4   : > { %v3871_v43 = vadd.f32 %v3870_v12, %v3869_v14  ;;  %v3872_v32 = vpop.f32.mrb[106].mxu0 }
 0x1d5   : > { %v3873_v53 = vpop.f32.mrb[107].mxu0 }
 0x1d6   : > { %v3874_v40 = vadd.f32 %v3873_v53, %v3872_v32  ;;  %v5802_v9 = vadd.f32 %v3871_v43, %v5754_v21 }
 0x1d8   : > { %v5804_v42 = vadd.f32 %v3874_v40, %v1608_v47 }
 0x1da   : > { %v3875_v7 = vpop.f32.mrb[108].mxu0 }
 0x1db   : > { %v3876_v26 = vpop.f32.mrb[109].mxu0 }
 0x1dc   : > { %v3877_v28 = vadd.f32 %v3876_v26, %v3875_v7  ;;  %v3878_v35 = vpop.f32.mrb[110].mxu0 }
 0x1dd   : > { %v3879_v22 = vpop.f32.mrb[111].mxu0 }
 0x1de   : > { %v3880_v56 = vadd.f32 %v3879_v22, %v3878_v35  ;;  %v5807_v54 = vadd.f32 %v3877_v28, %v5750_v31 }
 0x1e0   : > { %v5810_v60 = vadd.f32 %v3880_v56, %v5758_v52 }
 0x1e2   : > { %v3881_v8 = vpop.f32.mrb[112].mxu0 }
 0x1e3   : > { %v3882_v57 = vpop.f32.mrb[113].mxu0 }
 0x1e4   : > { %v3883_v15 = vadd.f32 %v3882_v57, %v3881_v8  ;;  %v3884_v21 = vpop.f32.mrb[114].mxu0 }
 0x1e5   : > { %v4067_v55 = vpop.f32.mrb[80].mxu1  ;;  %v3885_v47 = vpop.f32.mrb[115].mxu0 }
 0x1e6   : > { %v4116_v4 = vadd.f32 %v4115_v16, %v4067_v55  ;;  %v2281_v41 = vpop.f32.mrb[81].mxu1  ;;  %v3886_v30 = vadd.f32 %v3885_v47, %v3884_v21  ;;  %v5818_v31 = vadd.f32 %v5652_v62, %v3883_v15 }
 0x1e7   : > { %v4120_v52 = vadd.f32 %v5768_v25, %v2281_v41  ;;  %v4068_v36 = vpop.f32.mrb[82].mxu1 }
 0x1e8   : > { %v4124_v24 = vadd.f32 %v5775_v27, %v4068_v36  ;;  %v2284_v29 = vpop.f32.mrb[83].mxu1  ;;  %v5824_v6 = vadd.f32 %v5654_v2, %v3886_v30  ;;  %v2449_v17 = vadd.f32 %v4116_v4, %v5815_v38 }
 0x1e9   : > { %v2447_v16 = vadd.f32 %v4120_v52, %v5815_v38  ;;  %v4128_v34 = vadd.f32 %v5771_v20, %v2284_v29 }
 0x1ea   : > { %v2450_v63 = vadd.f32 %v4124_v24, %v5815_v38  ;;  %v3887_v62 = vpop.f32.mrb[116].mxu0  ;;  %v2679_v22 = vmul.f32 %v2449_v17, %v2449_v17 }
 0x1eb   : > { %v2448_v25 = vadd.f32 %v4128_v34, %v5815_v38  ;;  %v3888_v27 = vpop.f32.mrb[117].mxu0  ;;  %v2677_v12 = vmul.f32 %v2447_v16, %v2447_v16 }
 0x1ec   : > { %v3090_v2 = vpack.c.bf16 %v2450_v63, %v2449_v17  ;;  %v3889_v46 = vadd.f32 %v3888_v27, %v3887_v62  ;;  %v3890_v14 = vpop.f32.mrb[118].mxu0  ;;  %v2680_v21 = vmul.f32 %v2450_v63, %v2450_v63 }
 0x1ed   : > { %v3085_v20 = vpack.c.bf16 %v2448_v25, %v2447_v16  ;;  %v2639_v43 = vadd.f32 %v2448_v25, %v2447_v16  ;;  %v2678_v32 = vmul.f32 %v2448_v25, %v2448_v25  ;;  %v4071_v53 = vpop.f32.mrb[84].mxu1  ;;  %v3891_v40 = vpop.f32.mrb[119].mxu0 }
 0x1ee   : > { %3162 = vst [vmem:[%s5833_s27 + $0x8] sm:$0xff] %v3090_v2   ;;  %v4132_v7 = vadd.f32 %v5784_v23, %v4071_v53  ;;  %v2297_v26 = vpop.f32.mrb[85].mxu1  ;;  %v3892_v28 = vadd.f32 %v3891_v40, %v3890_v14  ;;  %v5839_v35 = vadd.f32 %v5660_v19, %v3889_v46 }
 0x1ef   : > { %3086 = vst [vmem:[%s5833_s27] sm:$0xff] %v3085_v20   ;;  %v2640_v56 = vadd.f32 %v2639_v43, %v2449_v17  ;;  %v2709_v8 = vadd.f32 %v2678_v32, %v2677_v12  ;;  %v4136_v57 = vadd.f32 %v5778_v1, %v2297_v26  ;;  %v4072_v15 = vpop.f32.mrb[86].mxu1 }
 0x1f0   : > { %v4140_v55 = vadd.f32 %v5787_v44, %v4072_v15  ;;  %v2300_v47 = vpop.f32.mrb[87].mxu1  ;;  %v5845_v4 = vadd.f32 %v5662_v33, %v3892_v28  ;;  %v2453_v52 = vadd.f32 %v4132_v7, %v5815_v38 }
 0x1f1   : > { %v2710_v23 = vadd.f32 %v2709_v8, %v2679_v22  ;;  %v2451_v41 = vadd.f32 %v4136_v57, %v5815_v38  ;;  %v2641_v30 = vadd.f32 %v2640_v56, %v2450_v63  ;;  %v4144_v19 = vadd.f32 %v5781_v48, %v2300_v47 }
 0x1f2   : > { %v2454_v36 = vadd.f32 %v4140_v55, %v5815_v38  ;;  %v3893_v1 = vpop.f32.mrb[120].mxu0  ;;  %v2683_v32 = vmul.f32 %v2453_v52, %v2453_v52 }
 0x1f3   : > { %v2642_v24 = vadd.f32 %v2641_v30, %v2451_v41  ;;  %v2681_v29 = vmul.f32 %v2451_v41, %v2451_v41  ;;  %v2711_v16 = vadd.f32 %v2710_v23, %v2680_v21  ;;  %v2452_v44 = vadd.f32 %v4144_v19, %v5815_v38  ;;  %v3894_v34 = vpop.f32.mrb[121].mxu0 }
 0x1f4   : > { %v3100_v33 = vpack.c.bf16 %v2454_v36, %v2453_v52  ;;  %v3895_v17 = vadd.f32 %v3894_v34, %v3893_v1  ;;  %v3896_v62 = vpop.f32.mrb[122].mxu0  ;;  %v2684_v28 = vmul.f32 %v2454_v36, %v2454_v36 }
 0x1f5   : > { %v2712_v25 = vadd.f32 %v2711_v16, %v2681_v29  ;;  %v3095_v63 = vpack.c.bf16 %v2452_v44, %v2451_v41  ;;  %v2643_v27 = vadd.f32 %v2642_v24, %v2452_v44  ;;  %v2682_v48 = vmul.f32 %v2452_v44, %v2452_v44  ;;  %v4075_v2 = vpop.f32.mrb[88].mxu1  ;;  %v3897_v46 = vpop.f32.mrb[123].mxu0 }
 0x1f6   : > { %3164 = vst [vmem:[%s5833_s27 + $0x18] sm:$0xff] %v3100_v33   ;;  %v4148_v14 = vadd.f32 %v5796_v39, %v4075_v2  ;;  %v2313_v12 = vpop.f32.mrb[89].mxu1  ;;  %v3898_v20 = vadd.f32 %v3897_v46, %v3896_v62  ;;  %v5855_v43 = vadd.f32 %v5668_v5, %v3895_v17 }
 0x1f7   : > { %3163 = vst [vmem:[%s5833_s27 + $0x10] sm:$0xff] %v3095_v63   ;;  %v2644_v53 = vadd.f32 %v2643_v27, %v2453_v52  ;;  %v2713_v40 = vadd.f32 %v2712_v25, %v2682_v48  ;;  %v4152_v7 = vadd.f32 %v5790_v3, %v2313_v12  ;;  %v4076_v26 = vpop.f32.mrb[90].mxu1 }
 0x1f8   : > { %v4156_v22 = vadd.f32 %v5799_v61, %v4076_v26  ;;  %v2316_v56 = vpop.f32.mrb[91].mxu1  ;;  %v5861_v8 = vadd.f32 %v5670_v18, %v3898_v20  ;;  %v2457_v21 = vadd.f32 %v4148_v14, %v5815_v38 }
 0x1f9   : > { %v2714_v39 = vadd.f32 %v2713_v40, %v2683_v32  ;;  %v2455_v57 = vadd.f32 %v4152_v7, %v5815_v38  ;;  %v2645_v15 = vadd.f32 %v2644_v53, %v2454_v36  ;;  %v4160_v5 = vadd.f32 %v5793_v50, %v2316_v56 }
 0x1fa   : > { %v2458_v55 = vadd.f32 %v4156_v22, %v5815_v38  ;;  %v3899_v3 = vpop.f32.mrb[124].mxu0  ;;  %v2687_v62 = vmul.f32 %v2457_v21, %v2457_v21 }
 0x1fb   : > { %v2646_v47 = vadd.f32 %v2645_v15, %v2455_v57  ;;  %v2685_v23 = vmul.f32 %v2455_v57, %v2455_v57  ;;  %v2715_v41 = vadd.f32 %v2714_v39, %v2684_v28  ;;  %v2456_v61 = vadd.f32 %v4160_v5, %v5815_v38  ;;  %v3900_v30 = vpop.f32.mrb[125].mxu0 }
 0x1fc   : > { %v3110_v18 = vpack.c.bf16 %v2458_v55, %v2457_v21  ;;  %v3901_v19 = vadd.f32 %v3900_v30, %v3899_v3  ;;  %v3902_v52 = vpop.f32.mrb[126].mxu0  ;;  %v2688_v2 = vmul.f32 %v2458_v55, %v2458_v55 }
 0x1fd   : > { %v2716_v1 = vadd.f32 %v2715_v41, %v2685_v23  ;;  %v3105_v36 = vpack.c.bf16 %v2456_v61, %v2455_v57  ;;  %v2647_v24 = vadd.f32 %v2646_v47, %v2456_v61  ;;  %v2686_v50 = vmul.f32 %v2456_v61, %v2456_v61  ;;  %v4079_v29 = vpop.f32.mrb[92].mxu1  ;;  %v3903_v16 = vpop.f32.mrb[127].mxu0 }
 0x1fe   : > { %3166 = vst [vmem:[%s5833_s27 + $0x28] sm:$0xff] %v3110_v18   ;;  %v4164_v44 = vadd.f32 %v5807_v54, %v4079_v29  ;;  %v2329_v34 = vpop.f32.mrb[93].mxu1  ;;  %v3904_v33 = vadd.f32 %v3903_v16, %v3902_v52  ;;  %v5871_v17 = vadd.f32 %v5677_v58, %v3901_v19 }
 0x1ff   : > { %3165 = vst [vmem:[%s5833_s27 + $0x20] sm:$0xff] %v3105_v36   ;;  %v2648_v25 = vadd.f32 %v2647_v24, %v2457_v21  ;;  %v2717_v63 = vadd.f32 %v2716_v1, %v2686_v50  ;;  %v4168_v27 = vadd.f32 %v5802_v9, %v2329_v34  ;;  %v4080_v48 = vpop.f32.mrb[94].mxu1 }
 0x200   : > { %v4172_v46 = vadd.f32 %v5810_v60, %v4080_v48  ;;  %v2332_v14 = vpop.f32.mrb[95].mxu1  ;;  %v5877_v12 = vadd.f32 %v5679_v11, %v3904_v33  ;;  %v2461_v53 = vadd.f32 %v4164_v44, %v5815_v38 }
 0x201   : > { %v2718_v54 = vadd.f32 %v2717_v63, %v2687_v62  ;;  %v2459_v20 = vadd.f32 %v4168_v27, %v5815_v38  ;;  %v2649_v32 = vadd.f32 %v2648_v25, %v2458_v55  ;;  %v4176_v58 = vadd.f32 %v5804_v42, %v2332_v14 }
 0x202   : > { %v2462_v40 = vadd.f32 %v4172_v46, %v5815_v38  ;;  %v3905_v9 = vpop.f32.mrb[128].mxu0  ;;  %v2691_v61 = vmul.f32 %v2461_v53, %v2461_v53 }
 0x203   : > { %v2650_v7 = vadd.f32 %v2649_v32, %v2459_v20  ;;  %v2689_v26 = vmul.f32 %v2459_v20, %v2459_v20  ;;  %v2719_v28 = vadd.f32 %v2718_v54, %v2688_v2  ;;  %v2460_v60 = vadd.f32 %v4176_v58, %v5815_v38  ;;  %v3906_v22 = vpop.f32.mrb[129].mxu0 }
 0x204   : > { %v3120_v11 = vpack.c.bf16 %v2462_v40, %v2461_v53  ;;  %v3907_v56 = vadd.f32 %v3906_v22, %v3905_v9  ;;  %v3908_v39 = vpop.f32.mrb[130].mxu0  ;;  %v2692_v1 = vmul.f32 %v2462_v40, %v2462_v40 }
 0x205   : > { %v2720_v57 = vadd.f32 %v2719_v28, %v2689_v26  ;;  %v3115_v15 = vpack.c.bf16 %v2460_v60, %v2459_v20  ;;  %v2651_v5 = vadd.f32 %v2650_v7, %v2460_v60  ;;  %v2690_v42 = vmul.f32 %v2460_v60, %v2460_v60  ;;  %v4083_v21 = vpop.f32.mrb[0].mxu1  ;;  %v3909_v55 = vpop.f32.mrb[131].mxu0 }
 0x206   : > { %3168 = vst [vmem:[%s5833_s27 + $0x38] sm:$0xff] %v3120_v11   ;;  %v4179_v3 = vadd.f32 %v5839_v35, %v4083_v21  ;;  %v2345_v47 = vpop.f32.mrb[1].mxu1  ;;  %v3910_v23 = vadd.f32 %v3909_v55, %v3908_v39  ;;  %v5887_v41 = vadd.f32 %v5698_v13, %v3907_v56 }
 0x207   : > { %3167 = vst [vmem:[%s5833_s27 + $0x30] sm:$0xff] %v3115_v15   ;;  %v2652_v30 = vadd.f32 %v2651_v5, %v2461_v53  ;;  %v2721_v18 = vadd.f32 %v2720_v57, %v2690_v42  ;;  %v4182_v19 = vadd.f32 %v5818_v31, %v2345_v47  ;;  %v4084_v52 = vpop.f32.mrb[2].mxu1 }
 0x208   : > { %v4185_v36 = vadd.f32 %v5845_v4, %v4084_v52  ;;  %v2348_v24 = vpop.f32.mrb[3].mxu1  ;;  %v5893_v50 = vadd.f32 %v5701_v51, %v3910_v23  ;;  %v2465_v44 = vadd.f32 %v4179_v3, %v5815_v38 }
 0x209   : > { %v2722_v35 = vadd.f32 %v2721_v18, %v2691_v61  ;;  %v2463_v29 = vadd.f32 %v4182_v19, %v5815_v38  ;;  %v2653_v16 = vadd.f32 %v2652_v30, %v2462_v40  ;;  %v4188_v13 = vadd.f32 %v5824_v6, %v2348_v24 }
 0x20a   : > { %v2466_v34 = vadd.f32 %v4185_v36, %v5815_v38  ;;  %v3911_v31 = vpop.f32.mrb[132].mxu0  ;;  %v2695_v9 = vmul.f32 %v2465_v44, %v2465_v44 }
 0x20b   : > { %v2654_v33 = vadd.f32 %v2653_v16, %v2463_v29  ;;  %v2693_v62 = vmul.f32 %v2463_v29, %v2463_v29  ;;  %v2723_v25 = vadd.f32 %v2722_v35, %v2692_v1  ;;  %v2464_v4 = vadd.f32 %v4188_v13, %v5815_v38  ;;  %v3912_v63 = vpop.f32.mrb[133].mxu0 }
 0x20c   : > { %v3130_v51 = vpack.c.bf16 %v2466_v34, %v2465_v44  ;;  %v3913_v27 = vadd.f32 %v3912_v63, %v3911_v31  ;;  %v3914_v48 = vpop.f32.mrb[134].mxu0  ;;  %v2696_v22 = vmul.f32 %v2466_v34, %v2466_v34 }
 0x20d   : > { %v2724_v2 = vadd.f32 %v2723_v25, %v2693_v62  ;;  %v3125_v46 = vpack.c.bf16 %v2464_v4, %v2463_v29  ;;  %v2655_v14 = vadd.f32 %v2654_v33, %v2464_v4  ;;  %v2694_v6 = vmul.f32 %v2464_v4, %v2464_v4  ;;  %v4087_v54 = vpop.f32.mrb[4].mxu1  ;;  %v3915_v20 = vpop.f32.mrb[135].mxu0 }
 0x20e   : > { %3170 = vst [vmem:[%s5833_s27 + $0x48] sm:$0xff] %v3130_v51   ;;  %v4191_v32 = vadd.f32 %v5871_v17, %v4087_v54  ;;  %v2361_v58 = vpop.f32.mrb[5].mxu1  ;;  %v3916_v53 = vadd.f32 %v3915_v20, %v3914_v48  ;;  %v4202_v40 = vadd.f32 %v5720_v49, %v3913_v27 }
 0x20f   : > { %3169 = vst [vmem:[%s5833_s27 + $0x40] sm:$0xff] %v3125_v46   ;;  %v2656_v7 = vadd.f32 %v2655_v14, %v2465_v44  ;;  %v2725_v26 = vadd.f32 %v2724_v2, %v2694_v6  ;;  %v4194_v28 = vadd.f32 %v5855_v43, %v2361_v58  ;;  %v4088_v60 = vpop.f32.mrb[6].mxu1 }
 0x210   : > { %v4197_v11 = vadd.f32 %v5877_v12, %v4088_v60  ;;  %v2364_v56 = vpop.f32.mrb[7].mxu1  ;;  %v4208_v39 = vadd.f32 %v5723_v45, %v3916_v53  ;;  %v2469_v49 = vadd.f32 %v4191_v32, %v5815_v38 }
 0x211   : > { %v2726_v57 = vadd.f32 %v2725_v26, %v2695_v9  ;;  %v2467_v17 = vadd.f32 %v4194_v28, %v5815_v38  ;;  %v2657_v15 = vadd.f32 %v2656_v7, %v2466_v34  ;;  %v4200_v5 = vadd.f32 %v5861_v8, %v2364_v56 }
 0x212   : > { %v2470_v42 = vadd.f32 %v4197_v11, %v5815_v38  ;;  %v3917_v21 = vpop.f32.mrb[136].mxu0  ;;  %v2699_v16 = vmul.f32 %v2469_v49, %v2469_v49 }
 0x213   : > { %v2658_v43 = vadd.f32 %v2657_v15, %v2467_v17  ;;  %v2697_v55 = vmul.f32 %v2467_v17, %v2467_v17  ;;  %v2727_v3 = vadd.f32 %v2726_v57, %v2696_v22  ;;  %v2468_v12 = vadd.f32 %v4200_v5, %v5815_v38  ;;  %v3918_v47 = vpop.f32.mrb[137].mxu0 }
 0x214   : > { %v3140_v45 = vpack.c.bf16 %v2470_v42, %v2469_v49  ;;  %v3919_v23 = vadd.f32 %v3918_v47, %v3917_v21  ;;  %v3920_v61 = vpop.f32.mrb[138].mxu0  ;;  %v2700_v33 = vmul.f32 %v2470_v42, %v2470_v42 }
 0x215   : > { %v2728_v30 = vadd.f32 %v2727_v3, %v2697_v55  ;;  %v3135_v18 = vpack.c.bf16 %v2468_v12, %v2467_v17  ;;  %v2659_v19 = vadd.f32 %v2658_v43, %v2468_v12  ;;  %v2698_v8 = vmul.f32 %v2468_v12, %v2468_v12  ;;  %v4091_v52 = vpop.f32.mrb[8].mxu1  ;;  %v3921_v1 = vpop.f32.mrb[139].mxu0 }
 0x216   : > { %3172 = vst [vmem:[%s5833_s27 + $0x58] sm:$0xff] %v3140_v45   ;;  %v4203_v36 = vadd.f32 %v4202_v40, %v4091_v52  ;;  %v2377_v24 = vpop.f32.mrb[9].mxu1  ;;  %v3922_v35 = vadd.f32 %v3921_v1, %v3920_v61  ;;  %v4217_v29 = vadd.f32 %v5742_v10, %v3919_v23 }
 0x217   : > { %3171 = vst [vmem:[%s5833_s27 + $0x50] sm:$0xff] %v3135_v18   ;;  %v2660_v13 = vadd.f32 %v2659_v19, %v2469_v49  ;;  %v2729_v44 = vadd.f32 %v2728_v30, %v2698_v8  ;;  %v4206_v34 = vadd.f32 %v5887_v41, %v2377_v24  ;;  %v4092_v31 = vpop.f32.mrb[10].mxu1 }
 0x218   : > { %v4209_v62 = vadd.f32 %v4208_v39, %v4092_v31  ;;  %v2380_v25 = vpop.f32.mrb[11].mxu1  ;;  %v4223_v4 = vadd.f32 %v5745_v37, %v3922_v35  ;;  %v2473_v10 = vadd.f32 %v4203_v36, %v5815_v38 }
 0x219   : > { %v2730_v63 = vadd.f32 %v2729_v44, %v2699_v16  ;;  %v2471_v51 = vadd.f32 %v4206_v34, %v5815_v38  ;;  %v2661_v27 = vadd.f32 %v2660_v13, %v2470_v42  ;;  %v4212_v48 = vadd.f32 %v5893_v50, %v2380_v25 }
 0x21a   : > { %v2474_v2 = vadd.f32 %v4209_v62, %v5815_v38  ;;  %v3923_v46 = vpop.f32.mrb[140].mxu0  ;;  %v2703_v11 = vmul.f32 %v2473_v10, %v2473_v10 }
 0x21b   : > { %v2662_v14 = vadd.f32 %v2661_v27, %v2471_v51  ;;  %v2701_v41 = vmul.f32 %v2471_v51, %v2471_v51  ;;  %v2731_v6 = vadd.f32 %v2730_v63, %v2700_v33  ;;  %v2472_v54 = vadd.f32 %v4212_v48, %v5815_v38  ;;  %v3924_v20 = vpop.f32.mrb[141].mxu0 }
 0x21c   : > { %v3150_v37 = vpack.c.bf16 %v2474_v2, %v2473_v10  ;;  %v3925_v32 = vadd.f32 %v3924_v20, %v3923_v46  ;;  %v3926_v58 = vpop.f32.mrb[142].mxu0  ;;  %v2704_v15 = vmul.f32 %v2474_v2, %v2474_v2 }
 0x21d   : > { %v2732_v53 = vadd.f32 %v2731_v6, %v2701_v41  ;;  %v3145_v40 = vpack.c.bf16 %v2472_v54, %v2471_v51  ;;  %v2663_v9 = vadd.f32 %v2662_v14, %v2472_v54  ;;  %v2702_v50 = vmul.f32 %v2472_v54, %v2472_v54  ;;  %v4095_v7 = vpop.f32.mrb[12].mxu1  ;;  %v3927_v26 = vpop.f32.mrb[143].mxu0 }
 0x21e   : > { %3174 = vst [vmem:[%s5833_s27 + $0x68] sm:$0xff] %v3150_v37   ;;  %v4214_v28 = vadd.f32 %v5762_v0, %v3925_v32  ;;  %v2393_v60 = vpop.f32.mrb[13].mxu1  ;;  %v3928_v22 = vadd.f32 %v3927_v26, %v3926_v58 }
 0x21f   : > { %3173 = vst [vmem:[%s5833_s27 + $0x60] sm:$0xff] %v3145_v40   ;;  %v2664_v56 = vadd.f32 %v2663_v9, %v2473_v10  ;;  %v2733_v39 = vadd.f32 %v2732_v53, %v2702_v50  ;;  %v4218_v57 = vadd.f32 %v4217_v29, %v2393_v60  ;;  %v4096_v17 = vpop.f32.mrb[14].mxu1 }
 0x220   : > { %v4215_v5 = vadd.f32 %v4214_v28, %v4095_v7  ;;  %v4220_v49 = vadd.f32 %v5765_v59, %v3928_v22  ;;  %v2396_v42 = vpop.f32.mrb[15].mxu1 }
 0x221   : > { %v2734_v21 = vadd.f32 %v2733_v39, %v2703_v11  ;;  %v2475_v43 = vadd.f32 %v4218_v57, %v5815_v38  ;;  %v2665_v55 = vadd.f32 %v2664_v56, %v2474_v2  ;;  %v4224_v3 = vadd.f32 %v4223_v4, %v2396_v42 }
 0x222   : > { %v2477_v0 = vadd.f32 %v4215_v5, %v5815_v38  ;;  %v4221_v12 = vadd.f32 %v4220_v49, %v4096_v17 }
 0x223   : > { %v2666_v47 = vadd.f32 %v2665_v55, %v2475_v43  ;;  %v2705_v45 = vmul.f32 %v2475_v43, %v2475_v43  ;;  %v2735_v23 = vadd.f32 %v2734_v21, %v2704_v15  ;;  %v2476_v61 = vadd.f32 %v4224_v3, %v5815_v38 }
 0x224   : > { %v2707_v30 = vmul.f32 %v2477_v0, %v2477_v0  ;;  %v2478_v18 = vadd.f32 %v4221_v12, %v5815_v38 }
 0x225   : > { %v2736_v59 = vadd.f32 %v2735_v23, %v2705_v45  ;;  %v3155_v19 = vpack.c.bf16 %v2476_v61, %v2475_v43  ;;  %v2667_v8 = vadd.f32 %v2666_v47, %v2476_v61  ;;  %v2706_v52 = vmul.f32 %v2476_v61, %v2476_v61 }
 0x226   : > { %v3160_v1 = vpack.c.bf16 %v2478_v18, %v2477_v0  ;;  %v2708_v36 = vmul.f32 %v2478_v18, %v2478_v18 }
 0x227   : > { %3175 = vst [vmem:[%s5833_s27 + $0x70] sm:$0xff] %v3155_v19   ;;  %v2668_v24 = vadd.f32 %v2667_v8, %v2477_v0  ;;  %v2737_v35 = vadd.f32 %v2736_v59, %v2706_v52 }
 0x228   : > { %3176 = vst [vmem:[%s5833_s27 + $0x78] sm:$0xff] %v3160_v1  }
 0x229   : > { %v2669_v29 = vadd.f32 %v2668_v24, %v2478_v18  ;;  %v2738_v16 = vadd.f32 %v2737_v35, %v2707_v30 }
 0x22b   : > { %v2670_v13 = vrot.slane %v2669_v29, 4  ;;  %v2739_v44 = vadd.f32 %v2738_v16, %v2708_v36 }
 0x22d   : > { %v2671_v34 = vadd.f32 %v2670_v13, %v2669_v29  ;;  %v2740_v31 = vrot.slane %v2739_v44, 4 }
 0x22f   : > { %v2672_v33 = vrot.slane %v2671_v34, 2  ;;  %v2741_v62 = vadd.f32 %v2740_v31, %v2739_v44 }
 0x231   : > { %v2673_v38 = vadd.f32 %v2672_v33, %v2671_v34  ;;  %v2742_v25 = vrot.slane %v2741_v62, 2 }
 0x233   : > { %v2674_v4 = vrot.slane %v2673_v38, 1  ;;  %v2743_v63 = vadd.f32 %v2742_v25, %v2741_v62 }
 0x235   : > { %v2675_v51 = vadd.f32 %v2674_v4, %v2673_v38  ;;  %v2744_v27 = vrot.slane %v2743_v63, 1 }
 0x237   : > { %2676 = vst [vmem:[%s262_s7] sm:$0x1] %v2675_v51  ;;  %v2745_v48 = vadd.f32 %v2744_v27, %v2743_v63 }
 0x239   : > { %2746 = vst [vmem:[%s262_s7 + $0x1] sm:$0x1] %v2745_v48 }
 0x23a PF: > { %s17_s21 = sadd.s32 1, %s4363_s21  }
 0x23b   : > { %p14_p4 = scmp.ge.s32.totalorder %s17_s21, 4  }
 0x23d   :  { %16 = sbr.rel (!%p14_p4) target bundleno = 1 (0x1), region = 87 }

// kernel: pre_activate_res_block.5
= control target key start
LH: loop header
LB: loop body
LE: loop exit
PB: predicated region body
PF: predicated region fallthrough
CT: control target
= control target key end

     0   :  { %s5475_s30 = smov 0   ;;  %s7566_s0 = inlined_call_operand.vmem [shape: bf16[2,16,16,128], index: 0, kind: input, shape index: {}]   ;;  %s7567_s1 = inlined_call_operand.vmem [shape: bf16[2,16,16,128], index: 1, kind: input, shape index: {}]   ;;  %s7568_s2 = inlined_call_operand.vmem [shape: f32[1,128], index: 2, kind: input, shape index: {}]   ;;  %s7569_s3 = inlined_call_operand.vmem [shape: f32[1,128], index: 3, kind: input, shape index: {}]   ;;  %s7570_s4 = inlined_call_operand.vmem [shape: f32[1,128], index: 4, kind: input, shape index: {}]   ;;  %s7571_s5 = inlined_call_operand.vmem [shape: f32[1,128], index: 5, kind: input, shape index: {}]   ;;  %s7572_s6 = inlined_call_operand.vmem [shape: bf16[3,384,128], index: 6, kind: input, shape index: {}]   ;;  %s7573_s7 = inlined_call_operand.vmem [shape: f32[1,128], index: 7, kind: input, shape index: {}]   ;;  %s7574_s8 = inlined_call_operand.vmem [shape: f32[2,16,16,128], index: 8, kind: output, shape index: {0}]   ;;  %s7575_s9 = inlined_call_operand.vmem [shape: f32[2,8,8,128], index: 9, kind: output, shape index: {1}]  }
   0x1 LB: > { %s3880_s10 = sadd.s32 4294967295, %s5420_s30   ;;  %p3884_p0 = scmp.ge.s32.totalorder %s5420_s30, 1  ;;  %s5420_s30 = sphi %s5475_s30, %s20_s30  }
   0x2   : > { %p300_p1 = scmp.lt.s32.totalorder %s5420_s30, 3 }
   0x4   : > { %p301_p2 = pnand %p3884_p0, %p300_p1 }
   0x6   : > { %304 = sbr.rel (%p301_p2) target bundleno = 694 (0x2b6), region = 52 }
   0xd   : > { %v5339_v0 = vld [vmem:[%s7572_s6 + $0x100] sm:$0xff]   ;;  %v573_v1 = vlaneseq  ;;  %v5342_v4 = vld [vmem:[%s7572_s6 + $0x108] sm:$0xff]   ;;  %v5345_v8 = vld [vmem:[%s7572_s6 + $0x110] sm:$0xff]   ;;  %p346_p3 = scmp.lt.s32.totalorder %s3880_s10, 1  ;;  %vm5422_vm4 = vmmov 1   ;;  %vm3188_vm7 = vcmask 1041408  }
   0xe   : > { %v5489_v2 = vld [vmem:[%s7572_s6 + $0x140] sm:$0xff]   ;;  %4598 = vmatprep.subr.bf16.mxu0 %v5339_v0  ;;  %v5504_v6 = vld [vmem:[%s7572_s6 + $0x148] sm:$0xff]   ;;  %v5516_v9 = vld [vmem:[%s7572_s6 + $0x150] sm:$0xff]   ;;  %vm3701_vm8 = vcmask 1041409   ;;  %vm3703_vm9 = vcmask 1042434   ;;  %vm3705_vm10 = vcmask 1043459  }
   0xf   : > { %v5341_v3 = vld [vmem:[%s7572_s6 + $0xc0] sm:$0xff]   ;;  %5150 = vmatprep.subr.bf16.mxu1 %v5489_v2  ;;  %v5498_v5 = vshrl.u32 %v573_v1, 7  ;;  %v5344_v7 = vld [vmem:[%s7572_s6 + $0xc8] sm:$0xff]   ;;  %v5347_v11 = vld [vmem:[%s7572_s6 + $0xd0] sm:$0xff]   ;;  %s7718_s10 = smov (!%p346_p3, %s3880_s10), 1  ;;  %vm3707_vm11 = vcmask 1044484  }
  0x10   : > { %4599 = vmatpush3.bf16.msra.mxu0 %v5341_v3  ;;  %5158 = vmatpush3.bf16.msra.mxu1 %v5489_v2  ;;  %v5348_v12 = vld [vmem:[%s7572_s6 + $0x118] sm:$0xff]   ;;  %v5351_v15 = vld [vmem:[%s7572_s6 + $0x120] sm:$0xff]   ;;  %v5354_v18 = vld [vmem:[%s7572_s6 + $0x128] sm:$0xff]   ;;  %s4068_s26 = sshll.u32 %s7718_s10, 7  ;;  %s4070_s28 = sshll.u32 %s7718_s10, 8  ;;  %vm3709_vm12 = vcmask 1045509  }
  0x11   : > { %4600 = vmatprep.subr.bf16.mxu0 %v5342_v4  ;;  %5151 = vmatprep.subr.bf16.mxu1 %v5504_v6  ;;  %v5519_v10 = vadd.s32 8, %v5498_v5  ;;  %v5532_v13 = vld [vmem:[%s7572_s6 + $0x158] sm:$0xff]   ;;  %v5547_v16 = vld [vmem:[%s7572_s6 + $0x160] sm:$0xff]   ;;  %v5564_v19 = vld [vmem:[%s7572_s6 + $0x168] sm:$0xff]   ;;  %s5585_s16 = scalar_lea.vmem %s7566_s0, %s4068_s26  ;;  %vm640_vm0 = vcmp.lt.s32.totalorder %v5498_v5, 7  ;;  %vm5326_vm2 = vcmp.ne.s32.totalorder %v5498_v5, 0  ;;  %s6862_s21 = scalar_lea.vmem %s7567_s1, %s4068_s26 }
  0x12   : > { %v5350_v14 = vld [vmem:[%s7572_s6 + $0xd8] sm:$0xff]   ;;  %v5353_v17 = vld [vmem:[%s7572_s6 + $0xe0] sm:$0xff]   ;;  %v5356_v20 = vld [vmem:[%s7572_s6 + $0xe8] sm:$0xff]   ;;  %vm575_vm3 = vcmp.lt.s32.totalorder %v5498_v5, 1  ;;  %s6998_s11 = scalar_lea.vmem %s7574_s8, %s4070_s28  ;;  %vm3711_vm13 = vcmask 1046534   ;;  %vm3713_vm14 = vcmask 1047559  }
  0x13   : > { %v5357_v21 = vld [vmem:[%s7572_s6 + $0x130] sm:$0xff]   ;;  %v5360_v24 = vld [vmem:[%s7572_s6 + $0x138] sm:$0xff]   ;;  %v5597_v25 = vld [vmem:[%s7568_s2] ss:$0 sm:$0xff]  ;;  %vm5327_vm1 = vcmp.ne.s32.totalorder %v5519_v10, 15  ;;  %s4071_s12 = sshll.u32 %s7718_s10, 6 }
  0x14   : > { %4601 = vmatpush3.bf16.msra.mxu0 %v5344_v7  ;;  %5159 = vmatpush3.bf16.msra.mxu1 %v5504_v6  ;;  %v5578_v22 = vld [vmem:[%s7572_s6 + $0x170] sm:$0xff]   ;;  %v4073_v26 = vld [vmem:[%s5585_s16] sm:$0xff]   ;;  %v5604_v27 = vld [vmem:[%s7572_s6 + $0x178] sm:$0xff]   ;;  %s7134_s14 = scalar_lea.vmem %s7575_s9, %s4071_s12 }
  0x15   : > { %4602 = vmatprep.subr.bf16.mxu0 %v5345_v8  ;;  %5152 = vmatprep.subr.bf16.mxu1 %v5516_v9  ;;  %v5359_v23 = vld [vmem:[%s7572_s6 + $0xf0] sm:$0xff]   ;;  %v4074_v28 = vunpack.c.l.bf16 %v4073_v26  ;;  %v4075_v29 = vunpack.c.h.bf16 %v4073_v26  ;;  %v4207_v30 = vld [vmem:[%s5585_s16 + $0x40] sm:$0xff]   ;;  %v4208_v31 = vld [vmem:[%s5585_s16 + $0x48] sm:$0xff]  }
  0x16   : > { %v5612_v32 = vld [vmem:[%s7569_s3] ss:$0 sm:$0xff]  ;;  %v4106_v33 = vunpack.c.l.bf16 %v4207_v30  ;;  %v4107_v34 = vunpack.c.h.bf16 %v4207_v30  ;;  %v4110_v35 = vunpack.c.l.bf16 %v4208_v31  ;;  %v5616_v36 = vld [vmem:[%s5585_s16 + $0x78] sm:$0xff]   ;;  %v5619_v37 = vld [vmem:[%s5585_s16 + $0x50] sm:$0xff]   ;;  %v4111_v40 = vunpack.c.h.bf16 %v4208_v31 }
  0x17   : > { %v439_v38 = vmul.f32 %v4074_v28, %v5597_v25  ;;  %v440_v39 = vmul.f32 %v4075_v29, %v5597_v25  ;;  %v4135_v41 = vunpack.c.h.bf16 %v5616_v36  ;;  %v5362_v42 = vld [vmem:[%s7572_s6 + $0xf8] sm:$0xff]   ;;  %v4114_v46 = vunpack.c.l.bf16 %v5619_v37  ;;  %v5363_v50 = vld [vmem:[%s7572_s6 + $0x40] sm:$0xff]   ;;  %v4200_v62 = vld [vmem:[%s5585_s16 + $0x8] sm:$0xff]  }
  0x18   : > { %4603 = vmatpush3.bf16.msra.mxu0 %v5347_v11  ;;  %5160 = vmatpush3.bf16.msra.mxu1 %v5516_v9  ;;  %v455_v43 = vmul.f32 %v4106_v33, %v5597_v25  ;;  %v456_v44 = vmul.f32 %v4107_v34, %v5597_v25  ;;  %v457_v45 = vmul.f32 %v4110_v35, %v5597_v25  ;;  %vm5674_vm5 = vmpackc.low %vm5327_vm1, %vm5422_vm4  ;;  %v4115_v34 = vunpack.c.h.bf16 %v5619_v37  ;;  %v5378_v3 = vld [vmem:[%s7572_s6 + $0x38] sm:$0xff]  }
  0x19   : > { %4604 = vmatprep.subr.bf16.mxu0 %v5348_v12  ;;  %5153 = vmatprep.subr.bf16.mxu1 %v5532_v13  ;;  %v477_v47 = vadd.f32 %v5612_v32, %v439_v38  ;;  %v478_v48 = vadd.f32 %v5612_v32, %v440_v39  ;;  %v470_v49 = vmul.f32 %v4135_v41, %v5597_v25  ;;  %v7604_v12 = vmov 0  ;;  %v5705_v38 = vld [vmem:[%s5585_s16 + $0x60] sm:$0xff]   ;;  %vm5710_vm6 = vmpackc.low %vm5422_vm4, %vm5326_vm2 }
  0x1a   : > { %v493_v51 = vadd.f32 %v5612_v32, %v455_v43  ;;  %v494_v52 = vadd.f32 %v5612_v32, %v456_v44  ;;  %v495_v53 = vadd.f32 %v5612_v32, %v457_v45  ;;  %v458_v57 = vmul.f32 %v4111_v40, %v5597_v25  ;;  %v4201_v43 = vld [vmem:[%s5585_s16 + $0x10] sm:$0xff]  }
  0x1b   : > { %v5644_v54 = vmax.f32 %v477_v47, 0.0  ;;  %v5646_v55 = vmax.f32 %v478_v48, 0.0  ;;  %v508_v56 = vadd.f32 %v5612_v32, %v470_v49  ;;  %v459_v61 = vmul.f32 %v4114_v46, %v5597_v25 }
  0x1c   : > { %4605 = vmatpush3.bf16.msra.mxu0 %v5350_v14  ;;  %5161 = vmatpush3.bf16.msra.mxu1 %v5532_v13  ;;  %v5651_v58 = vmax.f32 %v493_v51, 0.0  ;;  %v5653_v59 = vmax.f32 %v494_v52, 0.0  ;;  %v5655_v60 = vmax.f32 %v495_v53, 0.0  ;;  %v7605_v12 = vsel %vm5674_vm5, 4294967295, %v7604_v12 }
  0x1d   : > { %4606 = vmatprep.subr.bf16.mxu0 %v5351_v15  ;;  %5154 = vmatprep.subr.bf16.mxu1 %v5547_v16  ;;  %v541_v63 = vrot.slane %v5644_v54, 7  ;;  %v542_v0 = vrot.slane %v5646_v55, 7  ;;  %v7580_v1 = vrot.slane %v5644_v54, 1  ;;  %v5666_v4 = vpack.c.bf16 %v5646_v55, %v5644_v54  ;;  %7606 = vst [vmem:[#allocation3_spill] sm:$0xff] %v7605_v12 }
  0x1e   : > { %v7576_v7 = vrot.slane %v5651_v58, 1  ;;  %v625_v8 = vrot.slane %v5653_v59, 1  ;;  %v626_v11 = vrot.slane %v5655_v60, 1  ;;  %v5678_v14 = vmax.f32 %v508_v56, 0.0  ;;  %v5365_v56 = vld [vmem:[%s7572_s6 + $0x48] sm:$0xff]  }
  0x1f   : > { %v606_v15 = vsel %vm575_vm3, %v541_v63, %v542_v0  ;;  %1223 = vmatprep.mubr.bf16.mxu0 %v5666_v4  ;;  %v460_v47 = vmul.f32 %v4115_v34, %v5597_v25  ;;  %v4122_v52 = vunpack.c.l.bf16 %v5705_v38 }
  0x20   : > { %4607 = vmatpush3.bf16.msra.mxu0 %v5353_v17  ;;  %5162 = vmatpush3.bf16.msra.mxu1 %v5547_v16  ;;  %v496_v17 = vadd.f32 %v5612_v32, %v458_v57  ;;  %v654_v10 = vsel %vm640_vm0, %v625_v8, %v626_v11  ;;  %v7579_v28 = vrot.slane %v5678_v14, 7 }
  0x21   : > { %4608 = vmatprep.subr.bf16.mxu0 %v5354_v18  ;;  %5155 = vmatprep.subr.bf16.mxu1 %v5564_v19  ;;  %v497_v18 = vadd.f32 %v5612_v32, %v459_v61 }
  0x22   : > { %v5697_v29 = vmax.f32 %v496_v17, 0.0  ;;  %v607_v40 = vsel %vm575_vm3, %v7579_v28, %v541_v63  ;;  %v5366_v17 = vld [vmem:[%s7572_s6 + $0x8] sm:$0xff]   ;;  %v5376_v28 = vld [vmem:[%s7572_s6 + $0x30] sm:$0xff]  }
  0x23   : > { %v5699_v30 = vmax.f32 %v497_v18, 0.0  ;;  %v5724_v44 = vpack.c.bf16 %v606_v15, %v607_v40  ;;  %v4082_v15 = vunpack.c.l.bf16 %v4201_v43  ;;  %v4083_v40 = vunpack.c.h.bf16 %v4201_v43 }
  0x24   : > { %4609 = vmatpush3.bf16.msra.mxu0 %v5356_v20  ;;  %5163 = vmatpush3.bf16.msra.mxu1 %v5564_v19  ;;  %v4210_v20 = vld [vmem:[%s5585_s16 + $0x58] sm:$0xff]   ;;  %v627_v37 = vrot.slane %v5697_v29, 1 }
  0x25   : > { %4610 = vmatprep.subr.bf16.mxu0 %v5357_v21  ;;  %5156 = vmatprep.subr.bf16.mxu1 %v5578_v22  ;;  %v655_v21 = vsel %vm640_vm0, %v7576_v7, %v625_v8  ;;  %v4118_v35 = vunpack.c.l.bf16 %v4210_v20  ;;  %v628_v41 = vrot.slane %v5699_v30, 1  ;;  %v444_v43 = vmul.f32 %v4083_v40, %v5597_v25 }
  0x26   : > { %v5694_v26 = vpack.c.bf16 %v654_v10, %v655_v21  ;;  %v653_v49 = vsel %vm640_vm0, %v626_v11, %v627_v37  ;;  %v463_v11 = vmul.f32 %v4122_v52, %v5597_v25 }
  0x27   : > { %v652_v48 = vsel %vm640_vm0, %v627_v37, %v628_v41  ;;  %v461_v51 = vmul.f32 %v4118_v35, %v5597_v25  ;;  %v5367_v35 = vld [vmem:[%s7572_s6 + $0x50] sm:$0xff]   ;;  %v443_v37 = vmul.f32 %v4082_v15, %v5597_v25 }
  0x28   : > { %4611 = vmatpush3.bf16.msra.mxu0 %v5359_v23  ;;  %5164 = vmatpush3.bf16.msra.mxu1 %v5578_v22  ;;  %v4078_v23 = vunpack.c.l.bf16 %v4200_v62  ;;  %7607 = vst [vmem:[#allocation4_spill] sm:$0xff] %v5694_v26  ;;  %v5741_v53 = vpack.c.bf16 %v652_v48, %v653_v49  ;;  %v4212_v48 = vld [vmem:[%s5585_s16 + $0x68] sm:$0xff]  }
  0x29   : > { %4612 = vmatprep.subr.bf16.mxu0 %v5360_v24  ;;  %5157 = vmatprep.subr.bf16.mxu1 %v5604_v27  ;;  %v4079_v24 = vunpack.c.h.bf16 %v4200_v62  ;;  %v498_v62 = vadd.f32 %v5612_v32, %v460_v47  ;;  %v499_v63 = vadd.f32 %v5612_v32, %v461_v51  ;;  %v4126_v15 = vunpack.c.l.bf16 %v4212_v48 }
  0x2a   : > { %v441_v31 = vmul.f32 %v4078_v23, %v5597_v25  ;;  %5038 = vmatprep.mubr.msk.bf16.mxu1 %vm5674_vm5, %v5694_v26  ;;  %7610 = vst [vmem:[#allocation5_spill] sm:$0xff] %v5741_v53  ;;  %v4206_v26 = vld [vmem:[%s5585_s16 + $0x38] sm:$0xff]  }
  0x2b   : > { %v442_v33 = vmul.f32 %v4079_v24, %v5597_v25  ;;  %v5770_v21 = vmax.f32 %v499_v63, 0.0 }
  0x2c   : > { %4613 = vmatpush3.bf16.msra.mxu0 %v5362_v42  ;;  %5165 = vmatpush3.bf16.msra.mxu1 %v5604_v27  ;;  %v4119_v42 = vunpack.c.h.bf16 %v4210_v20  ;;  %v479_v45 = vadd.f32 %v5612_v32, %v441_v31  ;;  %v5766_v20 = vmax.f32 %v498_v62, 0.0  ;;  %v501_v31 = vadd.f32 %v5612_v32, %v463_v11 }
  0x2d   : > { %5006 = vmatprep.subr.bf16.mxu0 %v5489_v2  ;;  %4734 = vmatprep.subr.bf16.mxu1 %v5363_v50  ;;  %v480_v46 = vadd.f32 %v5612_v32, %v442_v33  ;;  %v5364_v50 = vld [vmem:[%s7572_s6] sm:$0xff]   ;;  %v4123_v62 = vunpack.c.h.bf16 %v5705_v38 }
  0x2e   : > { %v5746_v57 = vmax.f32 %v479_v45, 0.0  ;;  %v462_v8 = vmul.f32 %v4119_v42, %v5597_v25  ;;  %v629_v33 = vrot.slane %v5766_v20, 1  ;;  %v630_v42 = vrot.slane %v5770_v21, 1 }
  0x2f   : > { %4233 = vmatmul.mubr.msk.bf16.vlgmr.msra.gmra.mrb[0].mxu0 %vm5710_vm6, %v5724_v44  ;;  %v5748_v61 = vmax.f32 %v480_v46, 0.0  ;;  %5039 = vmatmul.mubr.msk.bf16.vlgmr.msra.gmra.mrb[0].mxu1 %vm5674_vm5, %v5741_v53  ;;  %v5790_v47 = vmax.f32 %v501_v31, 0.0  ;;  %v464_v38 = vmul.f32 %v4123_v62, %v5597_v25  ;;  %v4127_v31 = vunpack.c.h.bf16 %v4212_v48 }
  0x30   : > { %5007 = vmatpush3.bf16.msra.mxu0 %v5489_v2  ;;  %v543_v10 = vrot.slane %v5746_v57, 7  ;;  %4735 = vmatpush3.bf16.msra.mxu1 %v5364_v50  ;;  %v500_v24 = vadd.f32 %v5612_v32, %v462_v8  ;;  %v481_v50 = vadd.f32 %v5612_v32, %v443_v37  ;;  %v650_v51 = vsel %vm640_vm0, %v629_v33, %v630_v42 }
  0x31   : > { %v7578_v18 = vrot.slane %v5748_v61, 1  ;;  %v5764_v2 = vpack.c.bf16 %v5748_v61, %v5746_v57  ;;  %5008 = vmatprep.subr.bf16.mxu0 %v5504_v6  ;;  %v544_v23 = vrot.slane %v5748_v61, 7  ;;  %4736 = vmatprep.subr.bf16.mxu1 %v5365_v56  ;;  %v5369_v56 = vld [vmem:[%s7572_s6 + $0x58] sm:$0xff]   ;;  %v482_v8 = vadd.f32 %v5612_v32, %v444_v43 }
  0x32   : > { %v605_v34 = vsel %vm575_vm3, %v542_v0, %v543_v10  ;;  %v5788_v46 = vmax.f32 %v500_v24, 0.0  ;;  %v651_v0 = vsel %vm640_vm0, %v628_v41, %v629_v33  ;;  %v5368_v41 = vld [vmem:[%s7572_s6 + $0x10] sm:$0xff]   ;;  %v5818_v11 = vmax.f32 %v481_v50, 0.0 }
  0x33   : > { %1231 = vmatprep.mubr.bf16.mxu0 %v5764_v2  ;;  %v604_v45 = vsel %vm575_vm3, %v543_v10, %v544_v23  ;;  %v5812_v63 = vpack.c.bf16 %v650_v51, %v651_v0  ;;  %v465_v37 = vmul.f32 %v4126_v15, %v5597_v25  ;;  %v466_v48 = vmul.f32 %v4127_v31, %v5597_v25  ;;  %v4202_v0 = vld [vmem:[%s5585_s16 + $0x18] sm:$0xff]  }
  0x34   : > { %5009 = vmatpush3.bf16.msra.mxu0 %v5504_v6  ;;  %v5796_v49 = vpack.c.bf16 %v604_v45, %v605_v34  ;;  %4737 = vmatpush3.bf16.msra.mxu1 %v5366_v17  ;;  %v631_v52 = vrot.slane %v5788_v46, 1  ;;  %v632_v6 = vrot.slane %v5790_v47, 1  ;;  %v4213_v17 = vld [vmem:[%s5585_s16 + $0x70] sm:$0xff]   ;;  %v5370_v34 = vld [vmem:[%s7572_s6 + $0x18] sm:$0xff]   ;;  %v7577_v40 = vrot.slane %v5818_v11, 1 }
  0x35   : > { %5010 = vmatprep.subr.bf16.mxu0 %v5516_v9  ;;  %7611 = vst [vmem:[#allocation6_spill] sm:$0xff] %v5812_v63  ;;  %4738 = vmatprep.subr.bf16.mxu1 %v5367_v35  ;;  %v5835_v35 = vmax.f32 %v482_v8, 0.0  ;;  %v4130_v45 = vunpack.c.l.bf16 %v4213_v17  ;;  %v503_v51 = vadd.f32 %v5612_v32, %v465_v37  ;;  %v504_v15 = vadd.f32 %v5612_v32, %v466_v48  ;;  %v5373_v48 = vld [vmem:[%s7572_s6 + $0x68] sm:$0xff]  }
  0x36   : > { %v648_v10 = vsel %vm640_vm0, %v631_v52, %v632_v6  ;;  %v649_v24 = vsel %vm640_vm0, %v630_v42, %v631_v52  ;;  %5042 = vmatprep.mubr.msk.bf16.mxu1 %vm5674_vm5, %v5812_v63  ;;  %v545_v42 = vrot.slane %v5818_v11, 7  ;;  %v5853_v43 = vsel %vm640_vm0, %v7578_v18, %v7577_v40 }
  0x37   : > { %4237 = vmatmul.mubr.msk.bf16.gmra.mrb[4].mxu0 %vm5710_vm6, %v5796_v49  ;;  %v5830_v33 = vpack.c.bf16 %v648_v10, %v649_v24  ;;  %v5857_v50 = vpack.c.bf16 %v5835_v35, %v5818_v11  ;;  %v546_v52 = vrot.slane %v5835_v35, 7  ;;  %v467_v8 = vmul.f32 %v4130_v45, %v5597_v25 }
  0x38   : > { %5011 = vmatpush3.bf16.msra.mxu0 %v5516_v9  ;;  %4739 = vmatpush3.bf16.msra.mxu1 %v5368_v41  ;;  %v502_v9 = vadd.f32 %v5612_v32, %v464_v38  ;;  %v5371_v41 = vld [vmem:[%s7572_s6 + $0x60] sm:$0xff]   ;;  %v603_v62 = vsel %vm575_vm3, %v544_v23, %v545_v42  ;;  %v5872_v10 = vmax.f32 %v503_v51, 0.0  ;;  %v4086_v23 = vunpack.c.l.bf16 %v4202_v0 }
  0x39   : > { %7612 = vst [vmem:[#allocation7_spill] sm:$0xff] %v5830_v33  ;;  %5012 = vmatprep.subr.bf16.mxu0 %v5532_v13  ;;  %5043 = vmatmul.mubr.msk.bf16.gmra.mrb[4].mxu1 %vm5674_vm5, %v5830_v33  ;;  %v602_v24 = vsel %vm575_vm3, %v545_v42, %v546_v52  ;;  %v5372_v38 = vld [vmem:[%s7572_s6 + $0x20] sm:$0xff]   ;;  %v4087_v31 = vunpack.c.h.bf16 %v4202_v0  ;;  %v5886_v45 = vmax.f32 %v504_v15, 0.0  ;;  %v4131_v51 = vunpack.c.h.bf16 %v4213_v17 }
  0x3a   : > { %4740 = vmatprep.subr.bf16.mxu1 %v5369_v56  ;;  %v5864_v56 = vmax.f32 %v502_v9, 0.0  ;;  %1239 = vmatprep.mubr.bf16.mxu0 %v5857_v50  ;;  %v5883_v37 = vpack.c.bf16 %v602_v24, %v603_v62  ;;  %v505_v9 = vadd.f32 %v5612_v32, %v467_v8  ;;  %v634_v42 = vrot.slane %v5872_v10, 1 }
  0x3b   : > { %v445_v0 = vmul.f32 %v4086_v23, %v5597_v25  ;;  %v4134_v15 = vunpack.c.l.bf16 %v5616_v36  ;;  %v5374_v36 = vld [vmem:[%s7572_s6 + $0x28] sm:$0xff]  }
  0x3c   : > { %5013 = vmatpush3.bf16.msra.mxu0 %v5532_v13  ;;  %4741 = vmatpush3.bf16.msra.mxu1 %v5370_v34  ;;  %v633_v13 = vrot.slane %v5864_v56, 1  ;;  %v446_v34 = vmul.f32 %v4087_v31, %v5597_v25  ;;  %v5899_v8 = vmax.f32 %v505_v9, 0.0  ;;  %v468_v31 = vmul.f32 %v4131_v51, %v5597_v25 }
  0x3d   : > { %5014 = vmatprep.subr.bf16.mxu0 %v5547_v16  ;;  %4742 = vmatprep.subr.bf16.mxu1 %v5371_v41  ;;  %v635_v41 = vrot.slane %v5886_v45, 1  ;;  %v483_v23 = vadd.f32 %v5612_v32, %v445_v0  ;;  %v639_v51 = vrot.slane %v5678_v14, 1 }
  0x3e   : > { %v647_v62 = vsel %vm640_vm0, %v632_v6, %v633_v13  ;;  %v646_v24 = vsel %vm640_vm0, %v633_v13, %v634_v42  ;;  %v484_v17 = vadd.f32 %v5612_v32, %v446_v34  ;;  %v4203_v6 = vld [vmem:[%s5585_s16 + $0x20] sm:$0xff]   ;;  %v636_v9 = vrot.slane %v5899_v8, 1 }
  0x3f   : > { %4241 = vmatmul.mubr.msk.bf16.gmra.mrb[8].mxu0 %vm5710_vm6, %v5883_v37  ;;  %v5910_v7 = vpack.c.bf16 %v646_v24, %v647_v62  ;;  %v645_v40 = vsel %vm640_vm0, %v634_v42, %v635_v41  ;;  %v469_v13 = vmul.f32 %v4134_v15, %v5597_v25  ;;  %v5920_v0 = vmax.f32 %v483_v23, 0.0  ;;  %v4204_v24 = vld [vmem:[%s5585_s16 + $0x28] sm:$0xff]  }
  0x40   : > { %5015 = vmatpush3.bf16.msra.mxu0 %v5547_v16  ;;  %4743 = vmatpush3.bf16.msra.mxu1 %v5372_v38  ;;  %v5922_v16 = vmax.f32 %v484_v17, 0.0  ;;  %v506_v34 = vadd.f32 %v5612_v32, %v468_v31  ;;  %v5375_v38 = vld [vmem:[%s7572_s6 + $0x70] sm:$0xff]   ;;  %v644_v42 = vsel %vm640_vm0, %v635_v41, %v636_v9  ;;  %v4090_v62 = vunpack.c.l.bf16 %v4203_v6 }
  0x41   : > { %7613 = vst [vmem:[#allocation8_spill] sm:$0xff] %v5910_v7  ;;  %5016 = vmatprep.subr.bf16.mxu0 %v5564_v19  ;;  %4744 = vmatprep.subr.bf16.mxu1 %v5373_v48  ;;  %v507_v48 = vadd.f32 %v5612_v32, %v469_v13  ;;  %v4091_v15 = vunpack.c.h.bf16 %v4203_v6  ;;  %v5936_v23 = vpack.c.bf16 %v644_v42, %v645_v40  ;;  %v547_v18 = vrot.slane %v5920_v0, 7 }
  0x42   : > { %5046 = vmatprep.mubr.msk.bf16.mxu1 %vm5674_vm5, %v5910_v7  ;;  %v5940_v17 = vpack.c.bf16 %v5922_v16, %v5920_v0  ;;  %v5942_v31 = vmax.f32 %v506_v34, 0.0  ;;  %v548_v40 = vrot.slane %v5922_v16, 7  ;;  %v672_v6 = vsel %vm640_vm0, %v639_v51, %v7580_v1  ;;  %v5377_v34 = vld [vmem:[%s7572_s6 + $0x78] sm:$0xff]   ;;  %v4205_v7 = vld [vmem:[%s5585_s16 + $0x30] sm:$0xff]  }
  0x43   : > { %7614 = vst [vmem:[#allocation9_spill] sm:$0xff] %v5936_v23  ;;  %v5949_v41 = vmax.f32 %v507_v48, 0.0  ;;  %v447_v13 = vmul.f32 %v4090_v62, %v5597_v25  ;;  %5047 = vmatmul.mubr.msk.bf16.gmra.mrb[8].mxu1 %vm5674_vm5, %v5936_v23  ;;  %v448_v42 = vmul.f32 %v4091_v15, %v5597_v25  ;;  %v4094_v48 = vunpack.c.l.bf16 %v4204_v24 }
  0x44   : > { %5017 = vmatpush3.bf16.msra.mxu0 %v5564_v19  ;;  %4745 = vmatpush3.bf16.msra.mxu1 %v5374_v36  ;;  %v637_v19 = vrot.slane %v5942_v31, 1  ;;  %v601_v36 = vsel %vm575_vm3, %v546_v52, %v547_v18  ;;  %v600_v1 = vsel %vm575_vm3, %v547_v18, %v548_v40  ;;  %v4095_v52 = vunpack.c.h.bf16 %v4204_v24 }
  0x45   : > { %5018 = vmatprep.subr.bf16.mxu0 %v5578_v22  ;;  %1247 = vmatprep.mubr.bf16.mxu0 %v5940_v17  ;;  %v638_v62 = vrot.slane %v5949_v41, 1  ;;  %v485_v23 = vadd.f32 %v5612_v32, %v447_v13  ;;  %v5981_v63 = vpack.c.bf16 %v600_v1, %v601_v36  ;;  %v486_v15 = vadd.f32 %v5612_v32, %v448_v42  ;;  %v5385_v1 = vld [vmem:[%s7572_s6 + $0x1c0] sm:$0xff]  }
  0x46   : > { %4746 = vmatprep.subr.bf16.mxu1 %v5375_v38  ;;  %v643_v33 = vsel %vm640_vm0, %v636_v9, %v637_v19  ;;  %v449_v53 = vmul.f32 %v4094_v48, %v5597_v25  ;;  %v450_v9 = vmul.f32 %v4095_v52, %v5597_v25  ;;  %v4098_v36 = vunpack.c.l.bf16 %v4205_v7 }
  0x47   : > { %v642_v18 = vsel %vm640_vm0, %v637_v19, %v638_v62  ;;  %v641_v38 = vsel %vm640_vm0, %v638_v62, %v639_v51  ;;  %v5991_v24 = vmax.f32 %v485_v23, 0.0  ;;  %4245 = vmatmul.mubr.msk.bf16.gmra.mrb[12].mxu0 %vm5710_vm6, %v5981_v63  ;;  %v5379_v19 = vld [vmem:[%s7572_s6 + $0x80] sm:$0xff]   ;;  %v4099_v42 = vunpack.c.h.bf16 %v4205_v7 }
  0x48   : > { %5019 = vmatpush3.bf16.msra.mxu0 %v5578_v22  ;;  %4747 = vmatpush3.bf16.msra.mxu1 %v5376_v28  ;;  %v5998_v13 = vpack.c.bf16 %v642_v18, %v643_v33  ;;  %v6003_v22 = vpack.c.bf16 %v672_v6, %v641_v38  ;;  %v6005_v28 = vmax.f32 %v486_v15, 0.0  ;;  %v487_v51 = vadd.f32 %v5612_v32, %v449_v53 }
  0x49   : > { %5020 = vmatprep.subr.bf16.mxu0 %v5604_v27  ;;  %4748 = vmatprep.subr.bf16.mxu1 %v5377_v34  ;;  %v549_v23 = vrot.slane %v5991_v24, 7  ;;  %v488_v33 = vadd.f32 %v5612_v32, %v450_v9  ;;  %v4102_v48 = vunpack.c.l.bf16 %v4206_v26  ;;  %v451_v52 = vmul.f32 %v4098_v36, %v5597_v25 }
  0x4a   : > { %7615 = vst [vmem:[#allocation10_spill] sm:$0xff] %v5998_v13  ;;  %7616 = vst [vmem:[#allocation11_spill] sm:$0xff] %v6003_v22  ;;  %5050 = vmatprep.mubr.msk.bf16.mxu1 %vm5674_vm5, %v5998_v13  ;;  %v6018_v6 = vpack.c.bf16 %v6005_v28, %v5991_v24  ;;  %v550_v53 = vrot.slane %v6005_v28, 7  ;;  %v6021_v34 = vmax.f32 %v487_v51, 0.0  ;;  %v452_v15 = vmul.f32 %v4099_v42, %v5597_v25 }
  0x4b   : > { %v599_v62 = vsel %vm575_vm3, %v548_v40, %v549_v23  ;;  %v6026_v7 = vmax.f32 %v488_v33, 0.0  ;;  %5051 = vmatmul.mubr.msk.bf16.gmra.mrb[12].mxu1 %vm5674_vm5, %v6003_v22  ;;  %v4103_v18 = vunpack.c.h.bf16 %v4206_v26  ;;  %v453_v40 = vmul.f32 %v4102_v48, %v5597_v25 }
  0x4c   : > { %5021 = vmatpush3.bf16.msra.mxu0 %v5604_v27  ;;  %4749 = vmatpush3.bf16.msra.mxu1 %v5378_v3  ;;  %v598_v27 = vsel %vm575_vm3, %v549_v23, %v550_v53  ;;  %v551_v3 = vrot.slane %v6021_v34, 7  ;;  %v7593_v38 = vmov 0   ;;  %v489_v33 = vadd.f32 %v5612_v32, %v451_v52 }
  0x4d   : > { %4870 = vmatprep.subr.bf16.mxu0 %v5385_v1  ;;  %1255 = vmatprep.mubr.bf16.mxu0 %v6018_v6  ;;  %v6039_v9 = vpack.c.bf16 %v598_v27, %v599_v62  ;;  %v6043_v1 = vpack.c.bf16 %v6026_v7, %v6021_v34  ;;  %v552_v51 = vrot.slane %v6026_v7, 7  ;;  %v490_v26 = vadd.f32 %v5612_v32, %v452_v15 }
  0x4e   : > { %1689 = vmatprep.mubr.bf16.mxu1 %v7593_v38  ;;  %5054 = vmatprep.subr.bf16.mxu1 %v5379_v19  ;;  %v597_v23 = vsel %vm575_vm3, %v550_v53, %v551_v3  ;;  %v454_v36 = vmul.f32 %v4103_v18, %v5597_v25  ;;  %v491_v42 = vadd.f32 %v5612_v32, %v453_v40  ;;  %v6054_v62 = vmax.f32 %v489_v33, 0.0 }
  0x4f   : > { %7617 = vst [vmem:[#allocation12_spill] sm:$0xff] %v6039_v9  ;;  %7618 = vst [vmem:[#allocation13_spill] sm:$0xff] %v6043_v1  ;;  %v596_v48 = vsel %vm575_vm3, %v551_v3, %v552_v51  ;;  %v6058_v27 = vpack.c.bf16 %v5653_v59, %v5651_v58  ;;  %v557_v52 = vrot.slane %v5651_v58, 7  ;;  %4249 = vmatmul.mubr.msk.bf16.gmra.mrb[16].mxu0 %vm5710_vm6, %v6039_v9  ;;  %v6066_v25 = vmax.f32 %v490_v26, 0.0  ;;  %v5380_v26 = vld [vmem:[%s7572_s6 + $0x88] sm:$0xff]  }
  0x50   : > { %v6064_v53 = vpack.c.bf16 %v596_v48, %v597_v23  ;;  %v492_v15 = vadd.f32 %v5612_v32, %v454_v36  ;;  %v6069_v18 = vmax.f32 %v491_v42, 0.0  ;;  %1263 = vmatprep.mubr.bf16.mxu0 %v6043_v1  ;;  %v553_v3 = vrot.slane %v6054_v62, 7 }
  0x51   : > { %v558_v40 = vrot.slane %v5653_v59, 7  ;;  %v6076_v33 = vpack.c.bf16 %v5697_v29, %v5655_v60  ;;  %v559_v38 = vrot.slane %v5655_v60, 7  ;;  %v6081_v23 = vpack.c.bf16 %v6066_v25, %v6054_v62 }
  0x52   : > { %v554_v32 = vrot.slane %v6066_v25, 7  ;;  %v6087_v36 = vmax.f32 %v492_v15, 0.0  ;;  %v555_v59 = vrot.slane %v6069_v18, 7  ;;  %v595_v42 = vsel %vm575_vm3, %v552_v51, %v553_v3 }
  0x53   : > { %v590_v60 = vsel %vm575_vm3, %v557_v52, %v558_v40  ;;  %v560_v48 = vrot.slane %v5697_v29, 7  ;;  %v589_v22 = vsel %vm575_vm3, %v558_v40, %v559_v38  ;;  %v7619_v13 = vmov 0  }
  0x54   : > { %1690 = vmatmul.mubr.bf16.vlgmr.msra.gmra.mrb[16].mxu1 %v7619_v13  ;;  %v594_v12 = vsel %vm575_vm3, %v553_v3, %v554_v32  ;;  %v6102_v15 = vpack.c.bf16 %v6087_v36, %v6069_v18  ;;  %v556_v1 = vrot.slane %v6087_v36, 7  ;;  %v593_v51 = vsel %vm575_vm3, %v554_v32, %v555_v59 }
  0x55   : > { %5055 = vmatpush3.bf16.msra.mxu1 %v5379_v19  ;;  %1697 = vmatprep.mubr.bf16.mxu1 %v5666_v4  ;;  %v6108_v29 = vpack.c.bf16 %v594_v12, %v595_v42  ;;  %v588_v40 = vsel %vm575_vm3, %v559_v38, %v560_v48  ;;  %v6114_v3 = vpack.c.bf16 %v5766_v20, %v5699_v30  ;;  %v561_v13 = vrot.slane %v5699_v30, 7  ;;  %v5381_v4 = vld [vmem:[%s7572_s6 + $0x90] sm:$0xff]  }
  0x56   : > { %5056 = vmatprep.subr.bf16.mxu1 %v5380_v26  ;;  %v592_v9 = vsel %vm575_vm3, %v555_v59, %v556_v1  ;;  %v591_v19 = vsel %vm575_vm3, %v556_v1, %v557_v52  ;;  %v6124_v12 = vpack.c.bf16 %v588_v40, %v589_v22  ;;  %v562_v38 = vrot.slane %v5766_v20, 7 }
  0x57   : > { %v6127_v32 = vpack.c.bf16 %v592_v9, %v593_v51  ;;  %v6129_v42 = vpack.c.bf16 %v590_v60, %v591_v19  ;;  %v587_v30 = vsel %vm575_vm3, %v560_v48, %v561_v13  ;;  %v6135_v59 = vpack.c.bf16 %v5788_v46, %v5770_v21  ;;  %4253 = vmatmul.mubr.msk.bf16.gmra.mrb[20].mxu0 %vm5710_vm6, %v6064_v53 }
  0x58   : > { %v586_v22 = vsel %vm575_vm3, %v561_v13, %v562_v38  ;;  %v563_v20 = vrot.slane %v5770_v21, 7  ;;  %v564_v9 = vrot.slane %v5788_v46, 7  ;;  %v6146_v1 = vpack.c.bf16 %v5864_v56, %v5790_v47  ;;  %1271 = vmatprep.mubr.bf16.mxu0 %v6081_v23  ;;  %v5382_v21 = vld [vmem:[%s7572_s6 + $0x98] sm:$0xff]  }
  0x59   : > { %5057 = vmatpush3.bf16.msra.mxu1 %v5380_v26  ;;  %v6149_v52 = vpack.c.bf16 %v586_v22, %v587_v30  ;;  %v565_v60 = vrot.slane %v5790_v47, 7  ;;  %v566_v48 = vrot.slane %v5864_v56, 7  ;;  %v6155_v13 = vpack.c.bf16 %v5886_v45, %v5872_v10 }
  0x5a   : > { %5058 = vmatprep.subr.bf16.mxu1 %v5381_v4  ;;  %v584_v46 = vsel %vm575_vm3, %v563_v20, %v564_v9  ;;  %v585_v26 = vsel %vm575_vm3, %v562_v38, %v563_v20  ;;  %v567_v51 = vrot.slane %v5872_v10, 7  ;;  %v568_v47 = vrot.slane %v5886_v45, 7 }
  0x5b   : > { %v6166_v56 = vpack.c.bf16 %v584_v46, %v585_v26  ;;  %v582_v40 = vsel %vm575_vm3, %v565_v60, %v566_v48  ;;  %v583_v19 = vsel %vm575_vm3, %v564_v9, %v565_v60  ;;  %v6174_v30 = vpack.c.bf16 %v5942_v31, %v5899_v8 }
  0x5c   : > { %4361 = vmatmul.mubr.msk.bf16.gmra.mrb[20].mxu1 %vm5710_vm6, %v5724_v44  ;;  %v6179_v38 = vpack.c.bf16 %v582_v40, %v583_v19  ;;  %v580_v10 = vsel %vm575_vm3, %v567_v51, %v568_v47  ;;  %v581_v45 = vsel %vm575_vm3, %v566_v48, %v567_v51  ;;  %v569_v22 = vrot.slane %v5899_v8, 7  ;;  %v5383_v48 = vld [vmem:[%s7572_s6 + $0xa0] sm:$0xff]  }
  0x5d   : > { %1705 = vmatprep.mubr.bf16.mxu1 %v5764_v2  ;;  %5059 = vmatpush3.bf16.msra.mxu1 %v5381_v4  ;;  %v6187_v20 = vpack.c.bf16 %v580_v10, %v581_v45  ;;  %v570_v9 = vrot.slane %v5942_v31, 7  ;;  %v6192_v44 = vpack.c.bf16 %v5678_v14, %v5949_v41  ;;  %v571_v60 = vrot.slane %v5949_v41, 7 }
  0x5e   : > { %5060 = vmatprep.subr.bf16.mxu1 %v5382_v21  ;;  %v579_v8 = vsel %vm575_vm3, %v568_v47, %v569_v22  ;;  %v610_v4 = vrot.slane %v5746_v57, 1  ;;  %v7620_v46 = vrot.slane %v5646_v55, 1  ;;  %v7621_v31 = vrot.slane %v5644_v54, 1  ;;  %v5384_v55 = vld [vmem:[%s7572_s6 + $0xa8] sm:$0xff]  }
  0x5f   : > { %v613_v51 = vrot.slane %v5835_v35, 1  ;;  %v578_v41 = vsel %vm575_vm3, %v569_v22, %v570_v9  ;;  %v7622_v40 = vrot.slane %v5678_v14, 7  ;;  %v577_v57 = vsel %vm575_vm3, %v570_v9, %v571_v60  ;;  %4257 = vmatmul.mubr.msk.bf16.gmra.mrb[24].mxu0 %vm5710_vm6, %v6108_v29 }
  0x60   : > { %v671_v26 = vsel %vm640_vm0, %v7621_v31, %v7620_v46  ;;  %v614_v47 = vrot.slane %v5920_v0, 1  ;;  %v6220_v54 = vpack.c.bf16 %v578_v41, %v579_v8  ;;  %v7623_v10 = vrot.slane %v5748_v61, 1  ;;  %1279 = vmatprep.mubr.bf16.mxu0 %v6102_v15 }
  0x61   : > { %v576_v19 = vsel %vm575_vm3, %v571_v60, %v7622_v40  ;;  %v7624_v45 = vmov %v7620_v46  ;;  %5061 = vmatpush3.bf16.msra.mxu1 %v5382_v21  ;;  %v615_v61 = vrot.slane %v5922_v16, 1  ;;  %v7625_v8 = vrot.slane %v5818_v11, 1 }
  0x62   : > { %v6222_v35 = vpack.c.bf16 %v576_v19, %v577_v57  ;;  %v669_v14 = vsel %vm640_vm0, %v610_v4, %v7623_v10  ;;  %v670_v22 = vsel %vm640_vm0, %v7624_v45, %v610_v4  ;;  %v666_v60 = vsel %vm640_vm0, %v613_v51, %v614_v47  ;;  %5062 = vmatprep.subr.bf16.mxu1 %v5383_v48  ;;  %v5387_v19 = vld [vmem:[%s7572_s6 + $0xb0] sm:$0xff]  }
  0x63   : > { %v6233_v0 = vpack.c.bf16 %v670_v22, %v671_v26  ;;  %v6236_v9 = vpack.c.bf16 %v5853_v43, %v669_v14  ;;  %v667_v21 = vsel %vm640_vm0, %v7625_v8, %v613_v51  ;;  %v616_v4 = vrot.slane %v5991_v24, 1 }
  0x64   : > { %v617_v43 = vrot.slane %v6005_v28, 1  ;;  %v618_v46 = vrot.slane %v6021_v34, 1  ;;  %v6251_v31 = vpack.c.bf16 %v666_v60, %v667_v21  ;;  %v665_v16 = vsel %vm640_vm0, %v614_v47, %v615_v61  ;;  %4365 = vmatmul.mubr.msk.bf16.gmra.mrb[24].mxu1 %vm5710_vm6, %v5796_v49  ;;  %v5396_v60 = vld [vmem:[%s7572_s6 + $0xb8] sm:$0xff]   ;;  %v5386_v21 = vld [vmem:[%s7572_s6 + $0x180] sm:$0xff]  }
  0x65   : > { %v619_v26 = vrot.slane %v6026_v7, 1  ;;  %v620_v41 = vrot.slane %v6054_v62, 1  ;;  %v664_v11 = vsel %vm640_vm0, %v615_v61, %v616_v4  ;;  %v621_v34 = vrot.slane %v6066_v25, 1  ;;  %1713 = vmatprep.mubr.bf16.mxu1 %v5857_v50  ;;  %5063 = vmatpush3.bf16.msra.mxu1 %v5383_v48  ;;  %v7627_v61 = vld [vmem:[#allocation12_spill] sm:$0xff] }
  0x66   : > { %v662_v24 = vsel %vm640_vm0, %v617_v43, %v618_v46  ;;  %v663_v28 = vsel %vm640_vm0, %v616_v4, %v617_v43  ;;  %v6268_v7 = vpack.c.bf16 %v664_v11, %v665_v16  ;;  %v622_v40 = vrot.slane %v6069_v18, 1  ;;  %5064 = vmatprep.subr.bf16.mxu1 %v5384_v55  ;;  %v5388_v4 = vld [vmem:[%s7572_s6 + $0x1c8] sm:$0xff]   ;;  %v5391_v16 = vld [vmem:[%s7572_s6 + $0x190] sm:$0xff]   ;;  %v5394_v11 = vld [vmem:[%s7572_s6 + $0x1e0] sm:$0xff]  }
  0x67   : > { %v6270_v62 = vpack.c.bf16 %v662_v24, %v663_v28  ;;  %v660_v51 = vsel %vm640_vm0, %v619_v26, %v620_v41  ;;  %v661_v25 = vsel %vm640_vm0, %v618_v46, %v619_v26  ;;  %v659_v48 = vsel %vm640_vm0, %v620_v41, %v621_v34  ;;  %4261 = vmatmul.mubr.msk.bf16.gmra.mrb[28].mxu0 %vm5710_vm6, %v6127_v32  ;;  %v5389_v43 = vld [vmem:[%s7572_s6 + $0x188] sm:$0xff]   ;;  %v5390_v46 = vld [vmem:[%s7572_s6 + $0x1d0] sm:$0xff]   ;;  %v5392_v26 = vld [vmem:[%s7572_s6 + $0x1d8] sm:$0xff]  }
  0x68   : > { %v623_v57 = vrot.slane %v6087_v36, 1  ;;  %v6283_v47 = vpack.c.bf16 %v660_v51, %v661_v25  ;;  %v658_v10 = vsel %vm640_vm0, %v621_v34, %v622_v40  ;;  %v7626_v14 = vrot.slane %v5651_v58, 1  ;;  %1287 = vmatprep.mubr.bf16.mxu0 %v6058_v27  ;;  %v6311_v58 = vld [vmem:[%s7572_s6 + $0x200] sm:$0xff]   ;;  %v5393_v41 = vld [vmem:[%s7572_s6 + $0x198] sm:$0xff]   ;;  %v5397_v28 = vld [vmem:[%s7572_s6 + $0x1e8] sm:$0xff]  }
  0x69   : > { %v6290_v18 = vpack.c.bf16 %v658_v10, %v659_v48  ;;  %5065 = vmatpush3.bf16.msra.mxu1 %v5384_v55  ;;  %v7628_v55 = vld [vmem:[#allocation13_spill] sm:$0xff]  ;;  %v5395_v24 = vld [vmem:[%s7572_s6 + $0x1a0] sm:$0xff]   ;;  %v5398_v34 = vld [vmem:[%s7572_s6 + $0x1a8] sm:$0xff]   ;;  %v7630_v48 = vmov 0  }
  0x6a   : > { %v656_v45 = vsel %vm640_vm0, %v623_v57, %v7626_v14  ;;  %v657_v22 = vsel %vm640_vm0, %v622_v40, %v623_v57  ;;  %5066 = vmatprep.subr.bf16.mxu1 %v5387_v19  ;;  %v5399_v51 = vld [vmem:[%s7572_s6 + $0x1f0] sm:$0xff]   ;;  %v5402_v25 = vld [vmem:[%s7572_s6 + $0x1b8] sm:$0xff]   ;;  %v5404_v57 = vld [vmem:[%s7572_s6 + $0x208] sm:$0xff]  }
  0x6b   : > { %v6299_v36 = vpack.c.bf16 %v656_v45, %v657_v22  ;;  %v5400_v40 = vld [vmem:[%s7572_s6 + $0x1b0] sm:$0xff]   ;;  %v7633_v10 = vld [vmem:[#allocation6_spill] sm:$0xff] }
  0x6c   : > { %4369 = vmatmul.mubr.msk.bf16.gmra.mrb[28].mxu1 %vm5710_vm6, %v5883_v37 }
  0x6d   : > { %1721 = vmatprep.mubr.bf16.mxu1 %v5940_v17  ;;  %5067 = vmatpush3.bf16.msra.mxu1 %v5387_v19  ;;  %v5401_v19 = vld [vmem:[%s7572_s6 + $0x1f8] sm:$0xff]  }
  0x6e   : > { %5068 = vmatprep.subr.bf16.mxu1 %v5396_v60 }
  0x6f   : > { %4265 = vmatmul.mubr.msk.bf16.gmra.mrb[32].mxu0 %vm5710_vm6, %v6129_v42 }
  0x70   : > { %1295 = vmatprep.mubr.bf16.mxu0 %v6076_v33 }
  0x71   : > { %5069 = vmatpush3.bf16.msra.mxu1 %v5396_v60  ;;  %v7635_v60 = vld [vmem:[#allocation8_spill] sm:$0xff] }
  0x72   : > { %5102 = vmatprep.subr.bf16.mxu1 %v6311_v58 }
  0x74   : > { %4373 = vmatmul.mubr.msk.bf16.gmra.mrb[32].mxu1 %vm5710_vm6, %v5981_v63 }
  0x75   : > { %1729 = vmatprep.mubr.bf16.mxu1 %v6018_v6 }
  0x77   : > { %4269 = vmatmul.mubr.msk.bf16.gmra.mrb[36].mxu0 %vm5710_vm6, %v6124_v12 }
  0x78   : > { %1303 = vmatprep.mubr.bf16.mxu0 %v6114_v3 }
  0x7c   : > { %4377 = vmatmul.mubr.msk.bf16.gmra.mrb[36].mxu1 %vm5710_vm6, %v7627_v61 }
  0x7d   : > { %1737 = vmatprep.mubr.bf16.mxu1 %v7628_v55 }
  0x7f   : > { %4273 = vmatmul.mubr.msk.bf16.gmra.mrb[40].mxu0 %vm5710_vm6, %v6149_v52 }
  0x80   : > { %1311 = vmatprep.mubr.bf16.mxu0 %v6135_v59 }
  0x84   : > { %4381 = vmatmul.mubr.msk.bf16.gmra.mrb[40].mxu1 %vm5710_vm6, %v6064_v53 }
  0x85   : > { %1745 = vmatprep.mubr.bf16.mxu1 %v6081_v23 }
  0x87   : > { %4277 = vmatmul.mubr.msk.bf16.gmra.mrb[44].mxu0 %vm5710_vm6, %v6166_v56 }
  0x88   : > { %1319 = vmatprep.mubr.bf16.mxu0 %v6146_v1 }
  0x8c   : > { %4385 = vmatmul.mubr.msk.bf16.gmra.mrb[44].mxu1 %vm5710_vm6, %v6108_v29 }
  0x8d   : > { %1753 = vmatprep.mubr.bf16.mxu1 %v6102_v15 }
  0x8f   : > { %4281 = vmatmul.mubr.msk.bf16.gmra.mrb[48].mxu0 %vm5710_vm6, %v6179_v38 }
  0x90   : > { %1327 = vmatprep.mubr.bf16.mxu0 %v6155_v13 }
  0x94   : > { %4389 = vmatmul.mubr.msk.bf16.gmra.mrb[48].mxu1 %vm5710_vm6, %v6127_v32 }
  0x95   : > { %1761 = vmatprep.mubr.bf16.mxu1 %v6058_v27 }
  0x97   : > { %4285 = vmatmul.mubr.msk.bf16.gmra.mrb[52].mxu0 %vm5710_vm6, %v6187_v20 }
  0x98   : > { %1335 = vmatprep.mubr.bf16.mxu0 %v6174_v30 }
  0x9c   : > { %4393 = vmatmul.mubr.msk.bf16.gmra.mrb[52].mxu1 %vm5710_vm6, %v6129_v42 }
  0x9d   : > { %1769 = vmatprep.mubr.bf16.mxu1 %v6076_v33 }
  0x9f   : > { %4289 = vmatmul.mubr.msk.bf16.gmra.mrb[56].mxu0 %vm5710_vm6, %v6220_v54 }
  0xa0   : > { %1343 = vmatprep.mubr.bf16.mxu0 %v6192_v44 }
  0xa4   : > { %4397 = vmatmul.mubr.msk.bf16.gmra.mrb[56].mxu1 %vm5710_vm6, %v6124_v12 }
  0xa5   : > { %1777 = vmatprep.mubr.bf16.mxu1 %v6114_v3 }
  0xa7   : > { %4293 = vmatmul.mubr.msk.bf16.gmra.mrb[60].mxu0 %vm5710_vm6, %v6222_v35 }
  0xa8   : > { %5022 = vmatprep.mubr.msk.bf16.mxu0 %vm5674_vm5, %v6233_v0 }
  0xac   : > { %4401 = vmatmul.mubr.msk.bf16.gmra.mrb[60].mxu1 %vm5710_vm6, %v6149_v52 }
  0xad   : > { %1785 = vmatprep.mubr.bf16.mxu1 %v6135_v59 }
  0xaf   : > { %5023 = vmatmul.mubr.msk.bf16.vlgmr.msra.gmra.mrb[64].mxu0 %vm5674_vm5, %v6236_v9 }
  0xb0   : > { %4871 = vmatpush3.bf16.msra.mxu0 %v5386_v21  ;;  %5026 = vmatprep.mubr.msk.bf16.mxu0 %vm5674_vm5, %v6251_v31 }
  0xb1   : > { %4872 = vmatprep.subr.bf16.mxu0 %v5388_v4 }
  0xb4   : > { %4405 = vmatmul.mubr.msk.bf16.gmra.mrb[64].mxu1 %vm5710_vm6, %v6166_v56  ;;  %4873 = vmatpush3.bf16.msra.mxu0 %v5389_v43  ;;  %v7637_v43 = vld [vmem:[#allocation10_spill] sm:$0xff] }
  0xb5   : > { %1793 = vmatprep.mubr.bf16.mxu1 %v6146_v1  ;;  %4874 = vmatprep.subr.bf16.mxu0 %v5390_v46 }
  0xb7   : > { %5027 = vmatmul.mubr.msk.bf16.gmra.mrb[68].mxu0 %vm5674_vm5, %v6268_v7 }
  0xb8   : > { %4875 = vmatpush3.bf16.msra.mxu0 %v5391_v16  ;;  %5030 = vmatprep.mubr.msk.bf16.mxu0 %vm5674_vm5, %v6270_v62 }
  0xb9   : > { %4876 = vmatprep.subr.bf16.mxu0 %v5392_v26 }
  0xbc   : > { %4409 = vmatmul.mubr.msk.bf16.gmra.mrb[68].mxu1 %vm5710_vm6, %v6179_v38  ;;  %4877 = vmatpush3.bf16.msra.mxu0 %v5393_v41 }
  0xbd   : > { %1801 = vmatprep.mubr.bf16.mxu1 %v6155_v13  ;;  %4878 = vmatprep.subr.bf16.mxu0 %v5394_v11 }
  0xbf   : > { %5031 = vmatmul.mubr.msk.bf16.gmra.mrb[72].mxu0 %vm5674_vm5, %v6283_v47 }
  0xc0   : > { %4879 = vmatpush3.bf16.msra.mxu0 %v5395_v24  ;;  %5034 = vmatprep.mubr.msk.bf16.mxu0 %vm5674_vm5, %v6290_v18 }
  0xc1   : > { %4880 = vmatprep.subr.bf16.mxu0 %v5397_v28 }
  0xc4   : > { %4413 = vmatmul.mubr.msk.bf16.gmra.mrb[72].mxu1 %vm5710_vm6, %v6187_v20  ;;  %4881 = vmatpush3.bf16.msra.mxu0 %v5398_v34 }
  0xc5   : > { %1809 = vmatprep.mubr.bf16.mxu1 %v6174_v30  ;;  %4882 = vmatprep.subr.bf16.mxu0 %v5399_v51 }
  0xc7   : > { %5035 = vmatmul.mubr.msk.bf16.gmra.mrb[76].mxu0 %vm5674_vm5, %v6299_v36 }
  0xc8   : > { %4883 = vmatpush3.bf16.msra.mxu0 %v5400_v40  ;;  %2253 = vmatprep.mubr.bf16.mxu0 %v5764_v2  ;;  %v5405_v2 = vld [vmem:[%s7572_s6 + $0x210] sm:$0xff]  }
  0xc9   : > { %4884 = vmatprep.subr.bf16.mxu0 %v5401_v19 }
  0xcc   : > { %4417 = vmatmul.mubr.msk.bf16.gmra.mrb[76].mxu1 %vm5710_vm6, %v6220_v54  ;;  %4885 = vmatpush3.bf16.msra.mxu0 %v5402_v25 }
  0xcd   : > { %5070 = vmatprep.mubr.bf16.mxu1 %v7630_v48 }
  0xcf   : > { %4481 = vmatmul.mubr.msk.bf16.vlgmr.msra.gmra.mrb[80].mxu0 %vm5710_vm6, %v5796_v49  ;;  %v5406_v49 = vld [vmem:[%s7572_s6 + $0x218] sm:$0xff]  }
  0xd0   : > { %2261 = vmatprep.mubr.bf16.mxu0 %v5857_v50  ;;  %v5407_v50 = vld [vmem:[%s7572_s6 + $0x220] sm:$0xff]  }
  0xd4   : > { %5071 = vmatmul.mubr.msk.bf16.vlgmr.msra.gmra.mrb[80].mxu1 %vm5674_vm5, %v6233_v0  ;;  %v7632_v0 = vld [vmem:[#allocation5_spill] sm:$0xff] }
  0xd5   : > { %5103 = vmatpush3.bf16.msra.mxu1 %v6311_v58  ;;  %5074 = vmatprep.mubr.msk.bf16.mxu1 %vm5674_vm5, %v6236_v9  ;;  %v7636_v58 = vld [vmem:[#allocation9_spill] sm:$0xff] }
  0xd6   : > { %5104 = vmatprep.subr.bf16.mxu1 %v5404_v57 }
  0xd7   : > { %4485 = vmatmul.mubr.msk.bf16.gmra.mrb[84].mxu0 %vm5710_vm6, %v5883_v37  ;;  %v5408_v37 = vld [vmem:[%s7572_s6 + $0x228] sm:$0xff]  }
  0xd8   : > { %2269 = vmatprep.mubr.bf16.mxu0 %v5940_v17  ;;  %v5410_v17 = vld [vmem:[%s7572_s6 + $0x238] sm:$0xff]  }
  0xd9   : > { %5105 = vmatpush3.bf16.msra.mxu1 %v5404_v57 }
  0xda   : > { %5106 = vmatprep.subr.bf16.mxu1 %v5405_v2 }
  0xdc   : > { %5075 = vmatmul.mubr.msk.bf16.gmra.mrb[84].mxu1 %vm5674_vm5, %v6251_v31 }
  0xdd   : > { %5078 = vmatprep.mubr.msk.bf16.mxu1 %vm5674_vm5, %v6268_v7  ;;  %5107 = vmatpush3.bf16.msra.mxu1 %v5405_v2 }
  0xde   : > { %5108 = vmatprep.subr.bf16.mxu1 %v5406_v49 }
  0xdf   : > { %4489 = vmatmul.mubr.msk.bf16.gmra.mrb[88].mxu0 %vm5710_vm6, %v5981_v63  ;;  %v5409_v63 = vld [vmem:[%s7572_s6 + $0x230] sm:$0xff]  }
  0xe0   : > { %2277 = vmatprep.mubr.bf16.mxu0 %v6018_v6  ;;  %v7631_v6 = vld [vmem:[#allocation4_spill] sm:$0xff] }
  0xe1   : > { %5109 = vmatpush3.bf16.msra.mxu1 %v5406_v49 }
  0xe2   : > { %5110 = vmatprep.subr.bf16.mxu1 %v5407_v50 }
  0xe4   : > { %5079 = vmatmul.mubr.msk.bf16.gmra.mrb[88].mxu1 %vm5674_vm5, %v6270_v62 }
  0xe5   : > { %5082 = vmatprep.mubr.msk.bf16.mxu1 %vm5674_vm5, %v6283_v47  ;;  %5111 = vmatpush3.bf16.msra.mxu1 %v5407_v50 }
  0xe6   : > { %5112 = vmatprep.subr.bf16.mxu1 %v5408_v37 }
  0xe7   : > { %4493 = vmatmul.mubr.msk.bf16.gmra.mrb[92].mxu0 %vm5710_vm6, %v7627_v61 }
  0xe8   : > { %2285 = vmatprep.mubr.bf16.mxu0 %v7628_v55 }
  0xe9   : > { %5113 = vmatpush3.bf16.msra.mxu1 %v5408_v37 }
  0xea   : > { %5114 = vmatprep.subr.bf16.mxu1 %v5409_v63 }
  0xec   : > { %5083 = vmatmul.mubr.msk.bf16.gmra.mrb[92].mxu1 %vm5674_vm5, %v6290_v18 }
  0xed   : > { %5086 = vmatprep.mubr.msk.bf16.mxu1 %vm5674_vm5, %v6299_v36  ;;  %5115 = vmatpush3.bf16.msra.mxu1 %v5409_v63 }
  0xee   : > { %5116 = vmatprep.subr.bf16.mxu1 %v5410_v17 }
  0xef   : > { %4497 = vmatmul.mubr.msk.bf16.gmra.mrb[96].mxu0 %vm5710_vm6, %v6064_v53  ;;  %v7634_v53 = vld [vmem:[#allocation7_spill] sm:$0xff] }
  0xf0   : > { %2293 = vmatprep.mubr.bf16.mxu0 %v6081_v23 }
  0xf1   : > { %5117 = vmatpush3.bf16.msra.mxu1 %v5410_v17 }
  0xf4   : > { %5087 = vmatmul.mubr.msk.bf16.gmra.mrb[0].mxu1 %vm5674_vm5, %v7631_v6 }
  0xf5   : > { %5090 = vmatprep.mubr.msk.bf16.mxu1 %vm5674_vm5, %v7632_v0 }
  0xf7   : > { %4501 = vmatmul.mubr.msk.bf16.gmra.mrb[100].mxu0 %vm5710_vm6, %v6108_v29 }
  0xf8   : > { %2301 = vmatprep.mubr.bf16.mxu0 %v6102_v15 }
  0xfc   : > { %5091 = vmatmul.mubr.msk.bf16.gmra.mrb[4].mxu1 %vm5674_vm5, %v7633_v10 }
  0xfd   : > { %5094 = vmatprep.mubr.msk.bf16.mxu1 %vm5674_vm5, %v7634_v53 }
  0xff   : > { %4505 = vmatmul.mubr.msk.bf16.gmra.mrb[104].mxu0 %vm5710_vm6, %v6127_v32 }
 0x100   : > { %2309 = vmatprep.mubr.bf16.mxu0 %v6058_v27 }
 0x102   : > { %v4614_v23 = vpop.f32.mrb[0].mxu0 }
 0x103   : > { %v4615_v14 = vpop.f32.mrb[1].mxu0 }
 0x104   : > { %v6548_v45 = vadd.f32 %v4615_v14, %v4614_v23  ;;  %v4617_v22 = vpop.f32.mrb[2].mxu0  ;;  %5095 = vmatmul.mubr.msk.bf16.gmra.mrb[8].mxu1 %vm5674_vm5, %v7635_v60 }
 0x105   : > { %v4618_v15 = vpop.f32.mrb[3].mxu0  ;;  %5098 = vmatprep.mubr.msk.bf16.mxu1 %vm5674_vm5, %v7636_v58 }
 0x106   : > { %v6551_v29 = vadd.f32 %v4618_v15, %v4617_v22 }
 0x107   : > { %4509 = vmatmul.mubr.msk.bf16.gmra.mrb[108].mxu0 %vm5710_vm6, %v6129_v42 }
 0x108   : > { %2317 = vmatprep.mubr.bf16.mxu0 %v6076_v33 }
 0x10a   : > { %v4620_v61 = vpop.f32.mrb[4].mxu0 }
 0x10b   : > { %v4621_v32 = vpop.f32.mrb[5].mxu0 }
 0x10c   : > { %v6562_v55 = vadd.f32 %v4621_v32, %v4620_v61  ;;  %v4623_v27 = vpop.f32.mrb[6].mxu0  ;;  %5099 = vmatmul.mubr.msk.bf16.gmra.mrb[12].mxu1 %vm5674_vm5, %v7637_v43 }
 0x10d   : > { %v4624_v21 = vpop.f32.mrb[7].mxu0  ;;  %5118 = vmatprep.mubr.msk.bf16.mxu1 %vm5674_vm5, %v6236_v9 }
 0x10e   : > { %v6565_v4 = vadd.f32 %v4624_v21, %v4623_v27 }
 0x10f   : > { %4513 = vmatmul.mubr.msk.bf16.gmra.mrb[112].mxu0 %vm5710_vm6, %v6124_v12 }
 0x110   : > { %2325 = vmatprep.mubr.bf16.mxu0 %v6114_v3 }
 0x112   : > { %v4626_v42 = vpop.f32.mrb[8].mxu0 }
 0x113   : > { %v4627_v46 = vpop.f32.mrb[9].mxu0 }
 0x114   : > { %v6577_v33 = vadd.f32 %v4627_v46, %v4626_v42  ;;  %v4629_v16 = vpop.f32.mrb[10].mxu0  ;;  %5119 = vmatmul.mubr.msk.bf16.vlgmr.msra.gmra.mrb[80].mxu1 %vm5674_vm5, %v6251_v31 }
 0x115   : > { %v4630_v26 = vpop.f32.mrb[11].mxu0  ;;  %5122 = vmatprep.mubr.msk.bf16.mxu1 %vm5674_vm5, %v6268_v7 }
 0x116   : > { %v6582_v41 = vadd.f32 %v4630_v26, %v4629_v16 }
 0x117   : > { %4517 = vmatmul.mubr.msk.bf16.gmra.mrb[116].mxu0 %vm5710_vm6, %v6149_v52 }
 0x118   : > { %2333 = vmatprep.mubr.bf16.mxu0 %v6135_v59 }
 0x11a   : > { %v4632_v3 = vpop.f32.mrb[12].mxu0 }
 0x11b   : > { %v4633_v12 = vpop.f32.mrb[13].mxu0 }
 0x11c   : > { %5123 = vmatmul.mubr.msk.bf16.gmra.mrb[84].mxu1 %vm5674_vm5, %v6270_v62  ;;  %v6594_v9 = vadd.f32 %v4633_v12, %v4632_v3  ;;  %v4635_v31 = vpop.f32.mrb[14].mxu0 }
 0x11d   : > { %5126 = vmatprep.mubr.msk.bf16.mxu1 %vm5674_vm5, %v6283_v47  ;;  %v4636_v7 = vpop.f32.mrb[15].mxu0 }
 0x11e   : > { %v6599_v11 = vadd.f32 %v4636_v7, %v4635_v31 }
 0x11f   : > { %4521 = vmatmul.mubr.msk.bf16.gmra.mrb[120].mxu0 %vm5710_vm6, %v6166_v56 }
 0x120   : > { %2341 = vmatprep.mubr.bf16.mxu0 %v6146_v1 }
 0x122   : > { %v4638_v59 = vpop.f32.mrb[16].mxu0 }
 0x123   : > { %v4639_v52 = vpop.f32.mrb[17].mxu0 }
 0x124   : > { %5127 = vmatmul.mubr.msk.bf16.gmra.mrb[88].mxu1 %vm5674_vm5, %v6290_v18  ;;  %v6608_v62 = vadd.f32 %v4639_v52, %v4638_v59  ;;  %v4641_v24 = vpop.f32.mrb[18].mxu0 }
 0x125   : > { %5130 = vmatprep.mubr.msk.bf16.mxu1 %vm5674_vm5, %v6299_v36  ;;  %v4642_v47 = vpop.f32.mrb[19].mxu0 }
 0x126   : > { %v6613_v34 = vadd.f32 %v4642_v47, %v4641_v24  ;;  %v7638_v24 = vld [vmem:[#allocation11_spill] sm:$0xff] }
 0x127   : > { %v4750_v28 = vpop.f32.mrb[16].mxu1  ;;  %4525 = vmatmul.mubr.msk.bf16.gmra.mrb[124].mxu0 %vm5710_vm6, %v6179_v38 }
 0x128   : > { %v4751_v56 = vpop.f32.mrb[17].mxu1  ;;  %2349 = vmatprep.mubr.bf16.mxu0 %v6155_v13 }
 0x129   : > { %v6618_v1 = vadd.f32 %v4751_v56, %v4750_v28  ;;  %v4753_v18 = vpop.f32.mrb[18].mxu1 }
 0x12a   : > { %v4754_v51 = vpop.f32.mrb[19].mxu1  ;;  %v4644_v19 = vpop.f32.mrb[20].mxu0 }
 0x12b   : > { %v6621_v40 = vadd.f32 %v4754_v51, %v4753_v18  ;;  %v4645_v36 = vpop.f32.mrb[21].mxu0 }
 0x12c   : > { %5131 = vmatmul.mubr.msk.bf16.gmra.mrb[92].mxu1 %vm5674_vm5, %v7631_v6  ;;  %v6626_v25 = vadd.f32 %v4645_v36, %v4644_v19  ;;  %v4647_v57 = vpop.f32.mrb[22].mxu0 }
 0x12d   : > { %5134 = vmatprep.mubr.msk.bf16.mxu1 %vm5674_vm5, %v7632_v0  ;;  %v4648_v38 = vpop.f32.mrb[23].mxu0 }
 0x12e   : > { %v6631_v49 = vadd.f32 %v4648_v38, %v4647_v57 }
 0x12f   : > { %v4756_v2 = vpop.f32.mrb[20].mxu1  ;;  %4529 = vmatmul.mubr.msk.bf16.gmra.mrb[128].mxu0 %vm5710_vm6, %v6187_v20 }
 0x130   : > { %v4757_v13 = vpop.f32.mrb[21].mxu1  ;;  %2357 = vmatprep.mubr.bf16.mxu0 %v6174_v30 }
 0x131   : > { %v6636_v50 = vadd.f32 %v4757_v13, %v4756_v2  ;;  %v4759_v37 = vpop.f32.mrb[22].mxu1 }
 0x132   : > { %v4760_v63 = vpop.f32.mrb[23].mxu1  ;;  %v4650_v6 = vpop.f32.mrb[24].mxu0 }
 0x133   : > { %v6639_v17 = vadd.f32 %v4760_v63, %v4759_v37  ;;  %v4651_v0 = vpop.f32.mrb[25].mxu0 }
 0x134   : > { %5135 = vmatmul.mubr.msk.bf16.gmra.mrb[0].mxu1 %vm5674_vm5, %v7633_v10  ;;  %v6644_v23 = vadd.f32 %v4651_v0, %v4650_v6  ;;  %v4653_v14 = vpop.f32.mrb[26].mxu0 }
 0x135   : > { %5138 = vmatprep.mubr.msk.bf16.mxu1 %vm5674_vm5, %v7634_v53  ;;  %v4654_v20 = vpop.f32.mrb[27].mxu0 }
 0x136   : > { %v6649_v15 = vadd.f32 %v4654_v20, %v4653_v14 }
 0x137   : > { %v4762_v22 = vpop.f32.mrb[24].mxu1  ;;  %4533 = vmatmul.mubr.msk.bf16.gmra.mrb[132].mxu0 %vm5710_vm6, %v6220_v54 }
 0x138   : > { %v4763_v30 = vpop.f32.mrb[25].mxu1  ;;  %2365 = vmatprep.mubr.bf16.mxu0 %v6192_v44 }
 0x139   : > { %v6654_v61 = vadd.f32 %v4763_v30, %v4762_v22  ;;  %v4765_v10 = vpop.f32.mrb[26].mxu1 }
 0x13a   : > { %v4766_v32 = vpop.f32.mrb[27].mxu1  ;;  %v4656_v21 = vpop.f32.mrb[28].mxu0 }
 0x13b   : > { %v6657_v27 = vadd.f32 %v4766_v32, %v4765_v10  ;;  %v4657_v53 = vpop.f32.mrb[29].mxu0 }
 0x13c   : > { %5139 = vmatmul.mubr.msk.bf16.gmra.mrb[4].mxu1 %vm5674_vm5, %v7635_v60  ;;  %v6662_v42 = vadd.f32 %v4657_v53, %v4656_v21  ;;  %v4659_v46 = vpop.f32.mrb[30].mxu0 }
 0x13d   : > { %5142 = vmatprep.mubr.msk.bf16.mxu1 %vm5674_vm5, %v7636_v58  ;;  %v4660_v54 = vpop.f32.mrb[31].mxu0 }
 0x13e   : > { %v6667_v26 = vadd.f32 %v4660_v54, %v4659_v46 }
 0x13f   : > { %v4768_v16 = vpop.f32.mrb[28].mxu1  ;;  %4537 = vmatmul.mubr.msk.bf16.gmra.mrb[136].mxu0 %vm5710_vm6, %v6222_v35 }
 0x140   : > { %v4769_v44 = vpop.f32.mrb[29].mxu1  ;;  %2373 = vmatprep.mubr.bf16.mxu0 %v7630_v48 }
 0x141   : > { %v6672_v3 = vadd.f32 %v4769_v44, %v4768_v16  ;;  %v4771_v60 = vpop.f32.mrb[30].mxu1 }
 0x142   : > { %v4772_v12 = vpop.f32.mrb[31].mxu1  ;;  %v4662_v7 = vpop.f32.mrb[32].mxu0 }
 0x143   : > { %v6675_v31 = vadd.f32 %v4772_v12, %v4771_v60  ;;  %v4663_v58 = vpop.f32.mrb[33].mxu0 }
 0x144   : > { %5143 = vmatmul.mubr.msk.bf16.gmra.mrb[8].mxu1 %vm5674_vm5, %v7637_v43  ;;  %v4664_v59 = vadd.f32 %v4663_v58, %v4662_v7  ;;  %v4665_v52 = vpop.f32.mrb[34].mxu0 }
 0x145   : > { %5146 = vmatprep.mubr.msk.bf16.mxu1 %vm5674_vm5, %v7638_v24  ;;  %v4666_v39 = vpop.f32.mrb[35].mxu0 }
 0x146   : > { %v4667_v47 = vadd.f32 %v4666_v39, %v4665_v52 }
 0x147   : > { %v4774_v35 = vpop.f32.mrb[32].mxu1  ;;  %2374 = vmatmul.mubr.bf16.gmra.mrb[140].mxu0 %v7630_v48 }
 0x148   : > { %v4775_v28 = vpop.f32.mrb[33].mxu1 }
 0x149   : > { %v6684_v56 = vadd.f32 %v4775_v28, %v4774_v35  ;;  %v4777_v18 = vpop.f32.mrb[34].mxu1 }
 0x14a   : > { %v4778_v51 = vpop.f32.mrb[35].mxu1  ;;  %v4668_v43 = vpop.f32.mrb[36].mxu0 }
 0x14b   : > { %v6686_v19 = vadd.f32 %v4778_v51, %v4777_v18  ;;  %v4669_v36 = vpop.f32.mrb[37].mxu0 }
 0x14c   : > { %5147 = vmatmul.mubr.bf16.gmra.mrb[12].mxu1 %v7630_v48  ;;  %v4670_v57 = vadd.f32 %v4669_v36, %v4668_v43  ;;  %v4671_v38 = vpop.f32.mrb[38].mxu0 }
 0x14d   : > { %v4672_v8 = vpop.f32.mrb[39].mxu0 }
 0x14e   : > { %v4673_v13 = vadd.f32 %v4672_v8, %v4671_v38 }
 0x14f   : > { %v4780_v2 = vpop.f32.mrb[36].mxu1 }
 0x150   : > { %v4781_v37 = vpop.f32.mrb[37].mxu1 }
 0x151   : > { %v6689_v63 = vadd.f32 %v4781_v37, %v4780_v2  ;;  %v4783_v6 = vpop.f32.mrb[38].mxu1 }
 0x152   : > { %v4784_v0 = vpop.f32.mrb[39].mxu1  ;;  %v4674_v20 = vpop.f32.mrb[40].mxu0 }
 0x153   : > { %v6691_v14 = vadd.f32 %v4784_v0, %v4783_v6  ;;  %v4675_v22 = vpop.f32.mrb[41].mxu0 }
 0x154   : > { %v4676_v30 = vadd.f32 %v4675_v22, %v4674_v20  ;;  %v4677_v10 = vpop.f32.mrb[42].mxu0 }
 0x155   : > { %v4678_v32 = vpop.f32.mrb[43].mxu0 }
 0x156   : > { %v4679_v48 = vadd.f32 %v4678_v32, %v4677_v10 }
 0x157   : > { %v4786_v21 = vpop.f32.mrb[40].mxu1 }
 0x158   : > { %v4787_v53 = vpop.f32.mrb[41].mxu1 }
 0x159   : > { %v6693_v46 = vadd.f32 %v4787_v53, %v4786_v21  ;;  %v4789_v54 = vpop.f32.mrb[42].mxu1 }
 0x15a   : > { %v4790_v16 = vpop.f32.mrb[43].mxu1  ;;  %v4680_v60 = vpop.f32.mrb[44].mxu0 }
 0x15b   : > { %v6695_v44 = vadd.f32 %v4790_v16, %v4789_v54  ;;  %v4681_v12 = vpop.f32.mrb[45].mxu0 }
 0x15c   : > { %v6697_v7 = vadd.f32 %v4681_v12, %v4680_v60  ;;  %v4683_v58 = vpop.f32.mrb[46].mxu0 }
 0x15d   : > { %v4684_v52 = vpop.f32.mrb[47].mxu0 }
 0x15e   : > { %v6699_v39 = vadd.f32 %v4684_v52, %v4683_v58 }
 0x15f   : > { %v4792_v24 = vpop.f32.mrb[44].mxu1 }
 0x160   : > { %v4793_v35 = vpop.f32.mrb[45].mxu1 }
 0x161   : > { %v6701_v28 = vadd.f32 %v4793_v35, %v4792_v24  ;;  %v4795_v18 = vpop.f32.mrb[46].mxu1 }
 0x162   : > { %v4796_v51 = vpop.f32.mrb[47].mxu1  ;;  %v4686_v36 = vpop.f32.mrb[48].mxu0 }
 0x163   : > { %v6703_v43 = vadd.f32 %v4796_v51, %v4795_v18  ;;  %v4687_v38 = vpop.f32.mrb[49].mxu0 }
 0x164   : > { %v6705_v8 = vadd.f32 %v4687_v38, %v4686_v36  ;;  %v4689_v2 = vpop.f32.mrb[50].mxu0 }
 0x165   : > { %v4690_v37 = vpop.f32.mrb[51].mxu0 }
 0x166   : > { %v6707_v0 = vadd.f32 %v4690_v37, %v4689_v2 }
 0x167   : > { %v4798_v6 = vpop.f32.mrb[48].mxu1 }
 0x168   : > { %v4799_v20 = vpop.f32.mrb[49].mxu1 }
 0x169   : > { %v4800_v22 = vadd.f32 %v4799_v20, %v4798_v6  ;;  %v4801_v10 = vpop.f32.mrb[50].mxu1 }
 0x16a   : > { %v4802_v32 = vpop.f32.mrb[51].mxu1  ;;  %v4692_v54 = vpop.f32.mrb[52].mxu0 }
 0x16b   : > { %v6709_v21 = vadd.f32 %v4800_v22, %v4664_v59  ;;  %v4803_v53 = vadd.f32 %v4802_v32, %v4801_v10  ;;  %v4693_v16 = vpop.f32.mrb[53].mxu0 }
 0x16c   : > { %v6713_v12 = vadd.f32 %v4693_v16, %v4692_v54  ;;  %v4695_v58 = vpop.f32.mrb[54].mxu0 }
 0x16d   : > { %v6711_v60 = vadd.f32 %v4803_v53, %v4667_v47  ;;  %v4696_v52 = vpop.f32.mrb[55].mxu0 }
 0x16e   : > { %v6715_v35 = vadd.f32 %v4696_v52, %v4695_v58 }
 0x16f   : > { %v4804_v24 = vpop.f32.mrb[52].mxu1 }
 0x170   : > { %v4805_v18 = vpop.f32.mrb[53].mxu1 }
 0x171   : > { %v4806_v51 = vadd.f32 %v4805_v18, %v4804_v24  ;;  %v4807_v36 = vpop.f32.mrb[54].mxu1 }
 0x172   : > { %v4808_v38 = vpop.f32.mrb[55].mxu1  ;;  %v4698_v37 = vpop.f32.mrb[56].mxu0 }
 0x173   : > { %v6717_v2 = vadd.f32 %v4806_v51, %v4670_v57  ;;  %v4809_v59 = vadd.f32 %v4808_v38, %v4807_v36  ;;  %v4699_v6 = vpop.f32.mrb[57].mxu0 }
 0x174   : > { %v6721_v47 = vadd.f32 %v4699_v6, %v4698_v37  ;;  %v4701_v22 = vpop.f32.mrb[58].mxu0 }
 0x175   : > { %v6719_v20 = vadd.f32 %v4809_v59, %v4673_v13  ;;  %v4702_v10 = vpop.f32.mrb[59].mxu0 }
 0x176   : > { %v6723_v53 = vadd.f32 %v4702_v10, %v4701_v22 }
 0x177   : > { %7639 = vst [vmem:[#allocation12_spill] sm:$0xff] %v6719_v20  ;;  %v4810_v32 = vpop.f32.mrb[56].mxu1 }
 0x178   : > { %v4811_v54 = vpop.f32.mrb[57].mxu1 }
 0x179   : > { %v4812_v16 = vadd.f32 %v4811_v54, %v4810_v32  ;;  %v4813_v58 = vpop.f32.mrb[58].mxu1 }
 0x17a   : > { %v4814_v52 = vpop.f32.mrb[59].mxu1  ;;  %v4704_v18 = vpop.f32.mrb[60].mxu0 }
 0x17b   : > { %v6725_v24 = vadd.f32 %v4812_v16, %v4676_v30  ;;  %v4815_v57 = vadd.f32 %v4814_v52, %v4813_v58  ;;  %v4705_v51 = vpop.f32.mrb[61].mxu0 }
 0x17c   : > { %v6729_v13 = vadd.f32 %v4705_v51, %v4704_v18  ;;  %v4707_v38 = vpop.f32.mrb[62].mxu0 }
 0x17d   : > { %7640 = vst [vmem:[#allocation13_spill] sm:$0xff] %v6725_v24  ;;  %v6727_v36 = vadd.f32 %v4815_v57, %v4679_v48  ;;  %v4708_v59 = vpop.f32.mrb[63].mxu0 }
 0x17e   : > { %v6731_v6 = vadd.f32 %v4708_v59, %v4707_v38 }
 0x17f   : > { %7641 = vst [vmem:[#allocation3_spill] sm:$0xff] %v6727_v36  ;;  %v4816_v37 = vpop.f32.mrb[60].mxu1 }
 0x180   : > { %v4817_v22 = vpop.f32.mrb[61].mxu1 }
 0x181   : > { %v4818_v10 = vadd.f32 %v4817_v22, %v4816_v37  ;;  %v4819_v20 = vpop.f32.mrb[62].mxu1 }
 0x182   : > { %v4820_v32 = vpop.f32.mrb[63].mxu1  ;;  %v5024_v16 = vpop.f32.mrb[64].mxu0 }
 0x183   : > { %v6734_v54 = vadd.f32 %v4818_v10, %v6697_v7  ;;  %v4821_v30 = vadd.f32 %v4820_v32, %v4819_v20  ;;  %v1395_v58 = vadd.f32 %v5024_v16, %v6562_v55  ;;  %v1386_v48 = vpop.f32.mrb[65].mxu0 }
 0x184   : > { %v1387_v57 = vadd.f32 %v6548_v45, %v1386_v48  ;;  %v5025_v18 = vpop.f32.mrb[66].mxu0 }
 0x185   : > { %7642 = vst [vmem:[#allocation4_spill] sm:$0xff] %v6734_v54  ;;  %v6738_v52 = vadd.f32 %v4821_v30, %v6699_v39  ;;  %v6742_v51 = vadd.f32 %v6636_v50, %v1395_v58  ;;  %v1398_v38 = vadd.f32 %v5025_v18, %v6565_v4  ;;  %v1389_v59 = vpop.f32.mrb[67].mxu0 }
 0x186   : > { %v6746_v7 = vadd.f32 %v6618_v1, %v1387_v57  ;;  %v1390_v20 = vadd.f32 %v6551_v29, %v1389_v59 }
 0x187   : > { %7643 = vst [vmem:[#allocation5_spill] sm:$0xff] %v6738_v52  ;;  %v4822_v37 = vpop.f32.mrb[64].mxu1  ;;  %v6750_v22 = vadd.f32 %v6639_v17, %v1398_v38 }
 0x188   : > { %v4823_v55 = vpop.f32.mrb[65].mxu1  ;;  %v6753_v45 = vadd.f32 %v6621_v40, %v1390_v20 }
 0x189   : > { %v4824_v39 = vadd.f32 %v4823_v55, %v4822_v37  ;;  %v4825_v10 = vpop.f32.mrb[66].mxu1 }
 0x18a   : > { %v4826_v50 = vpop.f32.mrb[67].mxu1  ;;  %v5028_v30 = vpop.f32.mrb[68].mxu0 }
 0x18b   : > { %v6756_v32 = vadd.f32 %v4824_v39, %v6705_v8  ;;  %v4827_v4 = vadd.f32 %v4826_v50, %v4825_v10  ;;  %v1411_v1 = vadd.f32 %v5028_v30, %v6594_v9  ;;  %v1402_v16 = vpop.f32.mrb[69].mxu0 }
 0x18c   : > { %v1403_v17 = vadd.f32 %v6577_v33, %v1402_v16  ;;  %v5029_v58 = vpop.f32.mrb[70].mxu0 }
 0x18d   : > { %7644 = vst [vmem:[#allocation6_spill] sm:$0xff] %v6756_v32  ;;  %v6760_v29 = vadd.f32 %v4827_v4, %v6707_v0  ;;  %v6764_v48 = vadd.f32 %v6672_v3, %v1411_v1  ;;  %v1414_v40 = vadd.f32 %v5029_v58, %v6599_v11  ;;  %v1405_v57 = vpop.f32.mrb[71].mxu0 }
 0x18e   : > { %v6768_v8 = vadd.f32 %v6654_v61, %v1403_v17  ;;  %v1406_v38 = vadd.f32 %v6582_v41, %v1405_v57 }
 0x18f   : > { %7645 = vst [vmem:[#allocation7_spill] sm:$0xff] %v6760_v29  ;;  %v4828_v18 = vpop.f32.mrb[68].mxu1  ;;  %v6772_v59 = vadd.f32 %v6675_v31, %v1414_v40 }
 0x190   : > { %v4829_v9 = vpop.f32.mrb[69].mxu1  ;;  %v6775_v33 = vadd.f32 %v6657_v27, %v1406_v38 }
 0x191   : > { %v4830_v0 = vadd.f32 %v4829_v9, %v4828_v18  ;;  %v4831_v37 = vpop.f32.mrb[70].mxu1 }
 0x192   : > { %v4832_v3 = vpop.f32.mrb[71].mxu1  ;;  %v5032_v55 = vpop.f32.mrb[72].mxu0 }
 0x193   : > { %v6778_v20 = vadd.f32 %v4830_v0, %v6713_v12  ;;  %v4833_v11 = vadd.f32 %v4832_v3, %v4831_v37  ;;  %v1427_v61 = vadd.f32 %v5032_v55, %v6626_v25  ;;  %v1418_v39 = vpop.f32.mrb[73].mxu0 }
 0x194   : > { %v1419_v31 = vadd.f32 %v6608_v62, %v1418_v39  ;;  %v5033_v10 = vpop.f32.mrb[74].mxu0 }
 0x195   : > { %7646 = vst [vmem:[#allocation8_spill] sm:$0xff] %v6778_v20  ;;  %v6782_v41 = vadd.f32 %v4833_v11, %v6715_v35  ;;  %v6786_v50 = vadd.f32 %v6689_v63, %v1427_v61  ;;  %v1430_v27 = vadd.f32 %v5033_v10, %v6631_v49  ;;  %v1421_v4 = vpop.f32.mrb[75].mxu0 }
 0x196   : > { %v6790_v12 = vadd.f32 %v6684_v56, %v1419_v31  ;;  %v1422_v1 = vadd.f32 %v6613_v34, %v1421_v4 }
 0x197   : > { %7647 = vst [vmem:[#allocation9_spill] sm:$0xff] %v6782_v41  ;;  %v4834_v30 = vpop.f32.mrb[72].mxu1  ;;  %v6794_v16 = vadd.f32 %v6691_v14, %v1430_v27 }
 0x198   : > { %v4835_v25 = vpop.f32.mrb[73].mxu1  ;;  %v6797_v62 = vadd.f32 %v6686_v19, %v1422_v1 }
 0x199   : > { %v4836_v35 = vadd.f32 %v4835_v25, %v4834_v30  ;;  %v4837_v17 = vpop.f32.mrb[74].mxu1 }
 0x19a   : > { %v4838_v63 = vpop.f32.mrb[75].mxu1  ;;  %v5036_v40 = vpop.f32.mrb[76].mxu0 }
 0x19b   : > { %v6800_v58 = vadd.f32 %v4836_v35, %v6721_v47  ;;  %v4839_v49 = vadd.f32 %v4838_v63, %v4837_v17  ;;  %v1443_v56 = vadd.f32 %v5036_v40, %v6662_v42  ;;  %v1434_v57 = vpop.f32.mrb[77].mxu0 }
 0x19c   : > { %v1435_v14 = vadd.f32 %v6644_v23, %v1434_v57  ;;  %v5037_v18 = vpop.f32.mrb[78].mxu0 }
 0x19d   : > { %7648 = vst [vmem:[#allocation10_spill] sm:$0xff] %v6800_v58  ;;  %v6804_v34 = vadd.f32 %v4839_v49, %v6723_v53  ;;  %v6808_v38 = vadd.f32 %v6701_v28, %v1443_v56  ;;  %v1446_v19 = vadd.f32 %v5037_v18, %v6667_v26  ;;  %v1437_v9 = vpop.f32.mrb[79].mxu0  ;;  %v6959_v58 = vld [vmem:[%s6862_s21 + $0x50] sm:$0xff]  }
 0x19e   : > { %v6812_v47 = vadd.f32 %v6693_v46, %v1435_v14  ;;  %v1438_v37 = vadd.f32 %v6649_v15, %v1437_v9  ;;  %v4178_v41 = vunpack.c.l.bf16 %v6959_v58 }
 0x19f   : > { %7649 = vst [vmem:[#allocation11_spill] sm:$0xff] %v6804_v34  ;;  %v4840_v0 = vpop.f32.mrb[76].mxu1  ;;  %v6816_v3 = vadd.f32 %v6703_v43, %v1446_v19 }
 0x1a0   : > { %v4841_v42 = vpop.f32.mrb[77].mxu1  ;;  %v6819_v23 = vadd.f32 %v6695_v44, %v1438_v37 }
 0x1a1   : > { %v4842_v53 = vadd.f32 %v4841_v42, %v4840_v0  ;;  %v4843_v11 = vpop.f32.mrb[78].mxu1 }
 0x1a2   : > { %v4844_v28 = vpop.f32.mrb[79].mxu1  ;;  %v4886_v61 = vpop.f32.mrb[80].mxu0 }
 0x1a3   : > { %v6822_v55 = vadd.f32 %v4842_v53, %v6729_v13  ;;  %v4845_v26 = vadd.f32 %v4844_v28, %v4843_v11  ;;  %v4887_v39 = vpop.f32.mrb[81].mxu0 }
 0x1a4   : > { %v4888_v15 = vadd.f32 %v4887_v39, %v4886_v61  ;;  %v4889_v31 = vpop.f32.mrb[82].mxu0 }
 0x1a5   : > { %7650 = vst [vmem:[#allocation14_spill] sm:$0xff] %v6822_v55  ;;  %v6825_v46 = vadd.f32 %v4845_v26, %v6731_v6  ;;  %v4890_v10 = vpop.f32.mrb[83].mxu0 }
 0x1a6   : > { %v4891_v43 = vadd.f32 %v4890_v10, %v4889_v31  ;;  %v6828_v27 = vadd.f32 %v4888_v15, %v6746_v7 }
 0x1a7   : > { %7651 = vst [vmem:[#allocation15_spill] sm:$0xff] %v6825_v46 }
 0x1a8   : > { %v6831_v44 = vadd.f32 %v4891_v43, %v6753_v45 }
 0x1aa   : > { %v4892_v4 = vpop.f32.mrb[84].mxu0 }
 0x1ab   : > { %v4893_v30 = vpop.f32.mrb[85].mxu0 }
 0x1ac   : > { %v4894_v13 = vadd.f32 %v4893_v30, %v4892_v4  ;;  %v4895_v1 = vpop.f32.mrb[86].mxu0  ;;  %v4215_v4 = vld [vmem:[%s6862_s21 + $0x8] sm:$0xff]  }
 0x1ad   : > { %v4896_v25 = vpop.f32.mrb[87].mxu0 }
 0x1ae   : > { %v4897_v35 = vadd.f32 %v4896_v25, %v4895_v1  ;;  %v6834_v17 = vadd.f32 %v4894_v13, %v6742_v51  ;;  %v5424_v13 = vmov 1983009808  }
 0x1af   : > { %v2854_v1 = vunpack.c.l.s4 %v5424_v13  ;;  %v4220_v13 = vld [vmem:[%s6862_s21 + $0x30] sm:$0xff]  }
 0x1b0   : > { %v6837_v6 = vadd.f32 %v4897_v35, %v6750_v22  ;;  %v4142_v35 = vunpack.c.l.bf16 %v4215_v4 }
 0x1b2   : > { %v4898_v63 = vpop.f32.mrb[88].mxu0 }
 0x1b3   : > { %v4899_v49 = vpop.f32.mrb[89].mxu0 }
 0x1b4   : > { %v4900_v40 = vadd.f32 %v4899_v49, %v4898_v63  ;;  %v4901_v7 = vpop.f32.mrb[90].mxu0  ;;  %v6875_v49 = vld [vmem:[%s7570_s4] ss:$0 sm:$0xff] }
 0x1b5   : > { %v4902_v56 = vpop.f32.mrb[91].mxu0 }
 0x1b6   : > { %v4903_v57 = vadd.f32 %v4902_v56, %v4901_v7  ;;  %v6840_v45 = vadd.f32 %v4900_v40, %v6768_v8  ;;  %v4143_v56 = vunpack.c.h.bf16 %v4215_v4  ;;  %v4221_v4 = vld [vmem:[%s6862_s21 + $0x38] sm:$0xff]  }
 0x1b8   : > { %v6843_v14 = vadd.f32 %v4903_v57, %v6775_v33 }
 0x1ba   : > { %v4904_v18 = vpop.f32.mrb[92].mxu0 }
 0x1bb   : > { %v4905_v19 = vpop.f32.mrb[93].mxu0 }
 0x1bc   : > { %v4906_v9 = vadd.f32 %v4905_v19, %v4904_v18  ;;  %v4907_v51 = vpop.f32.mrb[94].mxu0  ;;  %v2688_v19 = vmul.f32 %v4142_v35, %v6875_v49 }
 0x1bd   : > { %v4908_v0 = vpop.f32.mrb[95].mxu0 }
 0x1be   : > { %v4909_v22 = vadd.f32 %v4908_v0, %v4907_v51  ;;  %v6846_v37 = vadd.f32 %v4906_v9, %v6764_v48  ;;  %v4217_v9 = vld [vmem:[%s6862_s21 + $0x18] sm:$0xff]   ;;  %v4216_v51 = vld [vmem:[%s6862_s21 + $0x10] sm:$0xff]  }
 0x1c0   : > { %v6849_v42 = vadd.f32 %v4909_v22, %v6772_v59  ;;  %v6886_v22 = vld [vmem:[%s7571_s5] ss:$0 sm:$0xff] }
 0x1c2   : > { %v4910_v53 = vpop.f32.mrb[96].mxu0 }
 0x1c3   : > { %v4911_v11 = vpop.f32.mrb[97].mxu0 }
 0x1c4   : > { %v4912_v8 = vadd.f32 %v4911_v11, %v4910_v53  ;;  %v4913_v28 = vpop.f32.mrb[98].mxu0  ;;  %v2689_v11 = vmul.f32 %v4143_v56, %v6875_v49 }
 0x1c5   : > { %v4914_v26 = vpop.f32.mrb[99].mxu0 }
 0x1c6   : > { %v4915_v33 = vadd.f32 %v4914_v26, %v4913_v28  ;;  %v6852_v61 = vadd.f32 %v4912_v8, %v6790_v12  ;;  %v4219_v28 = vld [vmem:[%s6862_s21 + $0x28] sm:$0xff]   ;;  %v4218_v26 = vld [vmem:[%s6862_s21 + $0x20] sm:$0xff]  }
 0x1c7   : > { %v4159_v35 = vunpack.c.h.bf16 %v4219_v28 }
 0x1c8   : > { %v6855_v39 = vadd.f32 %v4915_v33, %v6797_v62  ;;  %v4137_v62 = vld [vmem:[%s6862_s21] sm:$0xff]  }
 0x1c9   : > { %v4139_v8 = vunpack.c.h.bf16 %v4137_v62 }
 0x1ca   : > { %v4916_v15 = vpop.f32.mrb[100].mxu0 }
 0x1cb   : > { %v4917_v31 = vpop.f32.mrb[101].mxu0 }
 0x1cc   : > { %v4918_v10 = vadd.f32 %v4917_v31, %v4916_v15  ;;  %v4919_v48 = vpop.f32.mrb[102].mxu0  ;;  %v4150_v15 = vunpack.c.l.bf16 %v4217_v9  ;;  %v4146_v31 = vunpack.c.l.bf16 %v4216_v51 }
 0x1cd   : > { %v4920_v59 = vpop.f32.mrb[103].mxu0 }
 0x1ce   : > { %v4921_v43 = vadd.f32 %v4920_v59, %v4919_v48  ;;  %v6865_v12 = vadd.f32 %v4918_v10, %v6786_v50  ;;  %v4138_v50 = vunpack.c.l.bf16 %v4137_v62  ;;  %v6899_v48 = vadd.f32 %v6886_v22, %v2688_v19 }
 0x1cf   : > { %v4151_v59 = vunpack.c.h.bf16 %v4217_v9  ;;  %v4162_v19 = vunpack.c.l.bf16 %v4220_v13 }
 0x1d0   : > { %v6870_v30 = vadd.f32 %v4921_v43, %v6794_v16  ;;  %v2855_v16 = vunpack.c.0.s8 %v2854_v1  ;;  %v2686_v53 = vmul.f32 %v4138_v50, %v6875_v49  ;;  %v4147_v43 = vunpack.c.h.bf16 %v4216_v51 }
 0x1d1   : > { %v2693_v51 = vmul.f32 %v4151_v59, %v6875_v49 }
 0x1d2   : > { %v4922_v25 = vpop.f32.mrb[104].mxu0  ;;  %v6904_v62 = vadd.f32 %v6886_v22, %v2686_v53  ;;  %v2691_v53 = vmul.f32 %v4147_v43, %v6875_v49 }
 0x1d3   : > { %v4923_v63 = vpop.f32.mrb[105].mxu0 }
 0x1d4   : > { %v4924_v40 = vadd.f32 %v4923_v63, %v4922_v25  ;;  %v4925_v7 = vpop.f32.mrb[106].mxu0  ;;  %v4158_v25 = vunpack.c.l.bf16 %v4219_v28 }
 0x1d5   : > { %v4926_v57 = vpop.f32.mrb[107].mxu0 }
 0x1d6   : > { %v4927_v18 = vadd.f32 %v4926_v57, %v4925_v7  ;;  %v6881_v0 = vadd.f32 %v4924_v40, %v6812_v47  ;;  %v6896_v47 = vsub.s32 %v2855_v16, %v5498_v5  ;;  %v6907_v5 = vadd.f32 %v6886_v22, %v2689_v11 }
 0x1d7   : > { %v2687_v40 = vmul.f32 %v4139_v8, %v6875_v49  ;;  %v4155_v7 = vunpack.c.h.bf16 %v4218_v26  ;;  %v2692_v57 = vmul.f32 %v4150_v15, %v6875_v49  ;;  %v2690_v16 = vmul.f32 %v4146_v31, %v6875_v49  ;;  %v4223_v15 = vld [vmem:[%s6862_s21 + $0x48] sm:$0xff]   ;;  %v4222_v31 = vld [vmem:[%s6862_s21 + $0x40] sm:$0xff]  }
 0x1d8   : > { %v6893_v33 = vadd.f32 %v4927_v18, %v6819_v23  ;;  %v4154_v23 = vunpack.c.l.bf16 %v4218_v26  ;;  %v4166_v18 = vunpack.c.l.bf16 %v4221_v4  ;;  %v2696_v28 = vmul.f32 %v4158_v25, %v6875_v49 }
 0x1d9   : > { %v2697_v26 = vmul.f32 %v4159_v35, %v6875_v49  ;;  %v2695_v59 = vmul.f32 %v4155_v7, %v6875_v49  ;;  %v6933_v25 = vadd.f32 %v6886_v22, %v2690_v16  ;;  %v4225_v7 = vld [vmem:[%s6862_s21 + $0x58] sm:$0xff]   ;;  %v4175_v34 = vunpack.c.h.bf16 %v4223_v15 }
 0x1da   : > { %v4928_v10 = vpop.f32.mrb[108].mxu0  ;;  %v2694_v8 = vmul.f32 %v4154_v23, %v6875_v49  ;;  %v2698_v23 = vmul.f32 %v4162_v19, %v6875_v49  ;;  %v4171_v55 = vunpack.c.h.bf16 %v4222_v31  ;;  %v4183_v32 = vunpack.c.h.bf16 %v4225_v7 }
 0x1db   : > { %v4929_v1 = vpop.f32.mrb[109].mxu0 }
 0x1dc   : > { %v4930_v63 = vadd.f32 %v4929_v1, %v4928_v10  ;;  %v4931_v50 = vpop.f32.mrb[110].mxu0  ;;  %v4167_v10 = vunpack.c.h.bf16 %v4221_v4  ;;  %v6923_v1 = vadd.f32 %v6886_v22, %v2687_v40  ;;  %v2700_v4 = vmul.f32 %v4166_v18, %v6875_v49 }
 0x1dd   : > { %v4932_v56 = vpop.f32.mrb[111].mxu0  ;;  %v6941_v40 = vadd.f32 %v6886_v22, %v2691_v53  ;;  %v6948_v16 = vadd.f32 %v6886_v22, %v2694_v8  ;;  %v6951_v18 = vadd.f32 %v6886_v22, %v2697_v26  ;;  %v6955_v53 = vadd.f32 %v6886_v22, %v2695_v59  ;;  %v6970_v59 = vld [vmem:[%s7573_s7] ss:$0 sm:$0xff] }
 0x1de   : > { %v4933_v9 = vadd.f32 %v4932_v56, %v4931_v50  ;;  %v6915_v11 = vadd.f32 %v4930_v63, %v6808_v38  ;;  %v4163_v38 = vunpack.c.h.bf16 %v4220_v13  ;;  %v6930_v63 = vadd.f32 %v6886_v22, %v2692_v57 }
 0x1df   : > { %v6938_v50 = vadd.f32 %v6886_v22, %v2693_v51  ;;  %v4170_v13 = vunpack.c.l.bf16 %v4222_v31  ;;  %v6945_v57 = vadd.f32 %v6886_v22, %v2696_v28  ;;  %v2701_v19 = vmul.f32 %v4167_v10, %v6875_v49 }
 0x1e0   : > { %v6927_v43 = vadd.f32 %v4933_v9, %v6816_v3  ;;  %v4174_v3 = vunpack.c.l.bf16 %v4223_v15  ;;  %v2699_v46 = vmul.f32 %v4163_v38, %v6875_v49  ;;  %v6962_v8 = vadd.f32 %v6886_v22, %v2700_v4 }
 0x1e1   : > { %v6965_v26 = vadd.f32 %v6886_v22, %v2698_v23  ;;  %v4182_v10 = vunpack.c.l.bf16 %v4225_v7  ;;  %v2702_v4 = vmul.f32 %v4170_v13, %v6875_v49  ;;  %v6980_v31 = vadd.f32 %v6886_v22, %v2701_v19 }
 0x1e2   : > { %v4934_v35 = vpop.f32.mrb[112].mxu0  ;;  %v2704_v15 = vmul.f32 %v4174_v3, %v6875_v49  ;;  %v6985_v3 = vadd.f32 %v6886_v22, %v2699_v46 }
 0x1e3   : > { %v4935_v56 = vpop.f32.mrb[113].mxu0  ;;  %v2708_v7 = vmul.f32 %v4182_v10, %v6875_v49 }
 0x1e4   : > { %v4936_v9 = vadd.f32 %v4935_v56, %v4934_v35  ;;  %v4937_v51 = vpop.f32.mrb[114].mxu0  ;;  %7653 = vst [vmem:[#allocation17_spill] sm:$0xff] %v6985_v3  ;;  %v7003_v46 = vadd.f32 %v6886_v22, %v2704_v15 }
 0x1e5   : > { %v4938_v28 = vpop.f32.mrb[115].mxu0 }
 0x1e6   : > { %v4939_v56 = vadd.f32 %v4938_v28, %v4937_v51  ;;  %v6974_v38 = vadd.f32 %v6709_v21, %v4936_v9  ;;  %v2705_v21 = vmul.f32 %v4175_v34, %v6875_v49  ;;  %7655 = vst [vmem:[#allocation19_spill] sm:$0xff] %v7003_v46 }
 0x1e7   : > { %v5120_v35 = vpop.f32.mrb[80].mxu1 }
 0x1e8   : > { %7652 = vst [vmem:[#allocation16_spill] sm:$0xff] %v6974_v38  ;;  %v5169_v23 = vadd.f32 %v6834_v17, %v5120_v35  ;;  %v2416_v29 = vpop.f32.mrb[81].mxu1  ;;  %v6989_v13 = vadd.f32 %v6711_v60, %v4939_v56  ;;  %v2703_v35 = vmul.f32 %v4171_v55, %v6875_v49  ;;  %v2706_v56 = vmul.f32 %v4178_v41, %v6875_v49 }
 0x1e9   : > { %v5173_v51 = vadd.f32 %v6828_v27, %v2416_v29  ;;  %v5121_v28 = vpop.f32.mrb[82].mxu1  ;;  %v7006_v27 = vadd.f32 %v6886_v22, %v2702_v4  ;;  %v4179_v4 = vunpack.c.h.bf16 %v6959_v58 }
 0x1ea   : > { %7654 = vst [vmem:[#allocation18_spill] sm:$0xff] %v6989_v13  ;;  %v2584_v17 = vadd.f32 %v5169_v23, %v6970_v59  ;;  %v5177_v9 = vadd.f32 %v6837_v6, %v5121_v28  ;;  %v2419_v19 = vpop.f32.mrb[83].mxu1  ;;  %v4940_v34 = vpop.f32.mrb[116].mxu0  ;;  %v2709_v23 = vmul.f32 %v4183_v32, %v6875_v49  ;;  %v7021_v41 = vadd.f32 %v6886_v22, %v2703_v35 }
 0x1eb   : > { %v2582_v29 = vadd.f32 %v5173_v51, %v6970_v59  ;;  %v5181_v60 = vadd.f32 %v6831_v44, %v2419_v19  ;;  %7656 = vst [vmem:[#allocation20_spill] sm:$0xff] %v7006_v27  ;;  %v4941_v10 = vpop.f32.mrb[117].mxu0  ;;  %v7024_v32 = vadd.f32 %v6886_v22, %v2708_v7  ;;  %v7034_v35 = vadd.f32 %v6886_v22, %v2706_v56 }
 0x1ec   : > { %v2758_v55 = vadd.f32 %v6899_v48, %v2584_v17  ;;  %v2585_v6 = vadd.f32 %v5177_v9, %v6970_v59  ;;  %v4942_v15 = vadd.f32 %v4941_v10, %v4940_v34  ;;  %v4943_v28 = vpop.f32.mrb[118].mxu0  ;;  %v7018_v9 = vadd.f32 %v6886_v22, %v2705_v21  ;;  %7658 = vst [vmem:[#allocation22_spill] sm:$0xff] %v7021_v41 }
 0x1ed   : > { %v2756_v51 = vadd.f32 %v6904_v62, %v2582_v29  ;;  %v2583_v44 = vadd.f32 %v5181_v60, %v6970_v59  ;;  %v4944_v17 = vpop.f32.mrb[119].mxu0  ;;  %7659 = vst [vmem:[#allocation23_spill] sm:$0xff] %v7024_v32  ;;  %7660 = vst [vmem:[#allocation24_spill] sm:$0xff] %v7034_v35  ;;  %v7037_v34 = vadd.f32 %v6886_v22, %v2709_v23 }
 0x1ee   : > { %2790 = vst [vmem:[%s6998_s11 + $0x10] sm:$0xff] %v2758_v55  ;;  %v2759_v48 = vadd.f32 %v6907_v5, %v2585_v6  ;;  %7657 = vst [vmem:[#allocation21_spill] sm:$0xff] %v7018_v9  ;;  %v4945_v58 = vadd.f32 %v4944_v17, %v4943_v28  ;;  %v7029_v60 = vadd.f32 %v6717_v2, %v4942_v15 }
 0x1ef   : > { %2788 = vst [vmem:[%s6998_s11] sm:$0xff] %v2756_v51  ;;  %v2820_v62 = vmax.f32 %v2756_v51, %v2758_v55  ;;  %v2757_v19 = vadd.f32 %v6923_v1, %v2583_v44  ;;  %v5124_v29 = vpop.f32.mrb[84].mxu1  ;;  %7661 = vst [vmem:[#allocation25_spill] sm:$0xff] %v7037_v34  ;;  %v2707_v7 = vmul.f32 %v4179_v4, %v6875_v49  ;;  %v7662_v44 = vld [vmem:[#allocation12_spill] sm:$0xff] }
 0x1f0   : > { %2791 = vst [vmem:[%s6998_s11 + $0x18] sm:$0xff] %v2759_v48  ;;  %v5185_v5 = vadd.f32 %v6846_v37, %v5124_v29  ;;  %v2432_v21 = vpop.f32.mrb[85].mxu1  ;;  %v7050_v23 = vadd.f32 %v7662_v44, %v4945_v58 }
 0x1f1   : > { %v2852_v55 = vcombine.high %v2820_v62, %v2820_v62  ;;  %v2859_v1 = vrot.slane %v2820_v62, %v6896_v47  ;;  %2789 = vst [vmem:[%s6998_s11 + $0x8] sm:$0xff] %v2757_v19  ;;  %v2821_v6 = vmax.f32 %v2757_v19, %v2759_v48  ;;  %v5189_v2 = vadd.f32 %v6840_v45, %v2432_v21  ;;  %v5125_v10 = vpop.f32.mrb[86].mxu1 }
 0x1f2   : > { %v2588_v51 = vadd.f32 %v5185_v5, %v6970_v59  ;;  %v7045_v37 = vadd.f32 %v6849_v42, %v5125_v10  ;;  %v7047_v56 = vpop.f32.mrb[87].mxu1  ;;  %7663 = vst [vmem:[#allocation12_spill] sm:$0xff] %v7050_v23  ;;  %v7053_v49 = vadd.f32 %v6886_v22, %v2707_v7  ;;  %v7057_v48 = vpop.f32.mrb[120].mxu0 }
 0x1f3   : > { %v2866_v15 = vrot.slane %v2852_v55, %v6896_v47  ;;  %v2867_v28 = vcombine.high %v2859_v1, %v2859_v1  ;;  %v3189_v4 = vsel %vm3188_vm7, %v2859_v1, -inf  ;;  %v2869_v45 = vcombine.high %v2821_v6, %v2821_v6  ;;  %v7066_v22 = vpop.f32.mrb[121].mxu0 }
 0x1f4   : > { %7664 = vst [vmem:[#allocation26_spill] sm:$0xff] %v7053_v49  ;;  %v3190_v17 = vrot.slane %v3189_v4, 4  ;;  %v2876_v42 = vrot.slane %v2821_v6, %v6896_v47  ;;  %v7061_v62 = vadd.f32 %v6930_v63, %v2588_v51  ;;  %v7064_v19 = vadd.f32 %v5189_v2, %v6970_v59  ;;  %v7071_v7 = vpop.f32.mrb[122].mxu0 }
 0x1f5   : > { %v2868_v29 = vcombine.high %v2866_v15, %v2866_v15  ;;  %v3196_v58 = vsel %vm3188_vm7, %v2867_v28, -inf  ;;  %v3203_v5 = vsel %vm3188_vm7, %v2866_v15, -inf  ;;  %v2883_v21 = vrot.slane %v2869_v45, %v6896_v47  ;;  %v7075_v63 = vpop.f32.mrb[123].mxu0 }
 0x1f6   : > { %v3191_v55 = vmax.f32 %v3189_v4, %v3190_v17  ;;  %v3197_v1 = vrot.slane %v3196_v58, 4  ;;  %v3204_v6 = vrot.slane %v3203_v5, 4  ;;  %v2884_v10 = vcombine.high %v2876_v42, %v2876_v42  ;;  %2794 = vst [vmem:[%s6998_s11 + $0x30] sm:$0xff] %v7061_v62 }
 0x1f7   : > { %v3210_v2 = vsel %vm3188_vm7, %v2868_v29, -inf  ;;  %v2885_v51 = vcombine.high %v2883_v21, %v2883_v21  ;;  %v3217_v44 = vsel %vm3188_vm7, %v2876_v42, -inf  ;;  %v3231_v15 = vsel %vm3188_vm7, %v2883_v21, -inf  ;;  %v7080_v28 = vpop.f32.mrb[88].mxu1 }
 0x1f8   : > { %v3192_v45 = vrot.slane %v3191_v55, 2  ;;  %v3198_v49 = vmax.f32 %v3196_v58, %v3197_v1  ;;  %v3205_v4 = vmax.f32 %v3203_v5, %v3204_v6  ;;  %v3211_v17 = vrot.slane %v3210_v2, 4  ;;  %v7082_v20 = vpop.f32.mrb[89].mxu1 }
 0x1f9   : > { %v3218_v36 = vrot.slane %v3217_v44, 4  ;;  %v3224_v34 = vsel %vm3188_vm7, %v2884_v10, -inf  ;;  %v3232_v35 = vrot.slane %v3231_v15, 4  ;;  %v3238_v29 = vsel %vm3188_vm7, %v2885_v51, -inf  ;;  %v7086_v32 = vpop.f32.mrb[90].mxu1 }
 0x1fa   : > { %v3193_v42 = vmax.f32 %v3191_v55, %v3192_v45  ;;  %v3199_v21 = vrot.slane %v3198_v49, 2  ;;  %v3206_v52 = vrot.slane %v3205_v4, 2  ;;  %v3212_v24 = vmax.f32 %v3210_v2, %v3211_v17  ;;  %v7088_v58 = vpop.f32.mrb[91].mxu1  ;;  %v7090_v41 = vpop.f32.mrb[124].mxu0 }
 0x1fb   : > { %v3219_v5 = vmax.f32 %v3217_v44, %v3218_v36  ;;  %v3225_v1 = vrot.slane %v3224_v34, 4  ;;  %v3233_v6 = vmax.f32 %v3231_v15, %v3232_v35  ;;  %v3239_v54 = vrot.slane %v3238_v29, 4  ;;  %v7092_v23 = vpop.f32.mrb[125].mxu0 }
 0x1fc   : > { %v3194_v10 = vrot.slane %v3193_v42, 1  ;;  %v3200_v9 = vmax.f32 %v3198_v49, %v3199_v21  ;;  %v3207_v13 = vmax.f32 %v3205_v4, %v3206_v52  ;;  %v3213_v51 = vrot.slane %v3212_v24, 2  ;;  %v7094_v17 = vpop.f32.mrb[126].mxu0 }
 0x1fd   : > { %v3220_v55 = vrot.slane %v3219_v5, 2  ;;  %v3226_v45 = vmax.f32 %v3224_v34, %v3225_v1  ;;  %v3234_v27 = vrot.slane %v3233_v6, 2  ;;  %v3240_v2 = vmax.f32 %v3238_v29, %v3239_v54  ;;  %v7096_v38 = vpop.f32.mrb[127].mxu0 }
 0x1fe   : > { %v3195_v36 = vmax.f32 %v3193_v42, %v3194_v10  ;;  %v3201_v44 = vrot.slane %v3200_v9, 1  ;;  %v3208_v35 = vrot.slane %v3207_v13, 1  ;;  %v3214_v15 = vmax.f32 %v3212_v24, %v3213_v51 }
 0x1ff   : > { %v3221_v49 = vmax.f32 %v3219_v5, %v3220_v55  ;;  %v3227_v52 = vrot.slane %v3226_v45, 2  ;;  %v3235_v4 = vmax.f32 %v3233_v6, %v3234_v27  ;;  %v3241_v21 = vrot.slane %v3240_v2, 2  ;;  %v7098_v46 = vpop.f32.mrb[92].mxu1 }
 0x200   : > { %v3202_v34 = vmax.f32 %v3200_v9, %v3201_v44  ;;  %v3209_v1 = vmax.f32 %v3207_v13, %v3208_v35  ;;  %v3215_v54 = vrot.slane %v3214_v15, 1  ;;  %v2760_v29 = vadd.f32 %v6933_v25, %v7064_v19  ;;  %v7102_v42 = vpop.f32.mrb[93].mxu1 }
 0x201   : > { %v3222_v10 = vrot.slane %v3221_v49, 1  ;;  %v3228_v24 = vmax.f32 %v3226_v45, %v3227_v52  ;;  %v3236_v51 = vrot.slane %v3235_v4, 1  ;;  %v3242_v3 = vmax.f32 %v3240_v2, %v3241_v21  ;;  %v7104_v5 = vpop.f32.mrb[94].mxu1 }
 0x202   : > { %v3216_v55 = vmax.f32 %v3214_v15, %v3215_v54  ;;  %v3702_v27 = vsel %vm3701_vm8, %v3202_v34, %v3195_v36  ;;  %2792 = vst [vmem:[%s6998_s11 + $0x20] sm:$0xff] %v2760_v29  ;;  %v2822_v9 = vmax.f32 %v2760_v29, %v7061_v62  ;;  %v2589_v13 = vadd.f32 %v7045_v37, %v6970_v59  ;;  %v7111_v6 = vpop.f32.mrb[95].mxu1  ;;  %v7114_v35 = vpop.f32.mrb[128].mxu0 }
 0x203   : > { %v3704_v25 = vsel %vm3703_vm9, %v3209_v1, %v3702_v27  ;;  %v3223_v19 = vmax.f32 %v3221_v49, %v3222_v10  ;;  %v3229_v44 = vrot.slane %v3228_v24, 1  ;;  %v3237_v45 = vmax.f32 %v3235_v4, %v3236_v51  ;;  %v7119_v52 = vpop.f32.mrb[129].mxu0 }
 0x204   : > { %v3243_v2 = vrot.slane %v3242_v3, 1  ;;  %v3706_v15 = vsel %vm3705_vm10, %v3216_v55, %v3704_v25  ;;  %v2886_v36 = vcombine.high %v2822_v9, %v2822_v9  ;;  %v2893_v62 = vrot.slane %v2822_v9, %v6896_v47  ;;  %v7125_v4 = vpop.f32.mrb[130].mxu0 }
 0x205   : > { %v3230_v37 = vmax.f32 %v3228_v24, %v3229_v44  ;;  %v3708_v21 = vsel %vm3707_vm11, %v3223_v19, %v3706_v15  ;;  %v2763_v34 = vadd.f32 %v6938_v50, %v2589_v13  ;;  %v5197_v49 = vadd.f32 %v6843_v14, %v7047_v56  ;;  %v7129_v51 = vpop.f32.mrb[131].mxu0 }
 0x206   : > { %v3244_v1 = vmax.f32 %v3242_v3, %v3243_v2  ;;  %v2900_v54 = vrot.slane %v2886_v36, %v6896_v47  ;;  %v2901_v29 = vcombine.high %v2893_v62, %v2893_v62  ;;  %v3245_v10 = vsel %vm3188_vm7, %v2893_v62, -inf }
 0x207   : > { %v3710_v50 = vsel %vm3709_vm12, %v3230_v37, %v3708_v21  ;;  %v3246_v24 = vrot.slane %v3245_v10, 4  ;;  %2795 = vst [vmem:[%s6998_s11 + $0x38] sm:$0xff] %v2763_v34  ;;  %v2587_v14 = vadd.f32 %v5197_v49, %v6970_v59  ;;  %v5201_v3 = vadd.f32 %v6865_v12, %v7080_v28  ;;  %v7141_v56 = vpop.f32.mrb[0].mxu1 }
 0x208   : > { %v3712_v55 = vsel %vm3711_vm13, %v3237_v45, %v3710_v50  ;;  %v2902_v27 = vcombine.high %v2900_v54, %v2900_v54  ;;  %v3252_v9 = vsel %vm3188_vm7, %v2901_v29, -inf  ;;  %v3259_v13 = vsel %vm3188_vm7, %v2900_v54, -inf  ;;  %v7146_v25 = vpop.f32.mrb[1].mxu1 }
 0x209   : > { %v3714_v19 = vsel %vm3713_vm14, %v3244_v1, %v3712_v55  ;;  %v3247_v44 = vmax.f32 %v3245_v10, %v3246_v24  ;;  %v3253_v2 = vrot.slane %v3252_v9, 4  ;;  %v3260_v15 = vrot.slane %v3259_v13, 4  ;;  %v7149_v36 = vpop.f32.mrb[2].mxu1 }
 0x20a   : > { %3772 = vst [vmem:[%s7134_s14] sm:$0xff] %v3714_v19  ;;  %v3266_v12 = vsel %vm3188_vm7, %v2902_v27, -inf  ;;  %v2761_v28 = vadd.f32 %v6941_v40, %v2587_v14  ;;  %v2592_v45 = vadd.f32 %v5201_v3, %v6970_v59  ;;  %v7157_v62 = vadd.f32 %v7066_v22, %v7057_v48  ;;  %v7159_v37 = vpop.f32.mrb[3].mxu1  ;;  %v7161_v29 = vpop.f32.mrb[132].mxu0 }
 0x20b   : > { %v3248_v21 = vrot.slane %v3247_v44, 2  ;;  %v3254_v49 = vmax.f32 %v3252_v9, %v3253_v2  ;;  %v3261_v1 = vmax.f32 %v3259_v13, %v3260_v15  ;;  %v3267_v54 = vrot.slane %v3266_v12, 4  ;;  %v7169_v22 = vpop.f32.mrb[133].mxu0 }
 0x20c   : > { %7665 = vst [vmem:[#allocation27_spill] sm:$0xff] %v7157_v62  ;;  %2793 = vst [vmem:[%s6998_s11 + $0x28] sm:$0xff] %v2761_v28  ;;  %v2823_v10 = vmax.f32 %v2761_v28, %v2763_v34  ;;  %v2766_v50 = vadd.f32 %v6945_v57, %v2592_v45  ;;  %v5205_v40 = vadd.f32 %v6852_v61, %v7082_v20  ;;  %v7171_v27 = vpop.f32.mrb[134].mxu0 }
 0x20d   : > { %v5209_v48 = vadd.f32 %v6870_v30, %v7086_v32  ;;  %v3249_v24 = vmax.f32 %v3247_v44, %v3248_v21  ;;  %v3255_v14 = vrot.slane %v3254_v49, 2  ;;  %v3262_v3 = vrot.slane %v3261_v1, 2  ;;  %7666 = vst [vmem:[#allocation28_spill] sm:$0xff] %v7171_v27  ;;  %v7177_v20 = vpop.f32.mrb[135].mxu0 }
 0x20e   : > { %v3268_v55 = vmax.f32 %v3266_v12, %v3267_v54  ;;  %v2903_v9 = vcombine.high %v2823_v10, %v2823_v10  ;;  %v2910_v13 = vrot.slane %v2823_v10, %v6896_v47  ;;  %2798 = vst [vmem:[%s6998_s11 + $0x50] sm:$0xff] %v2766_v50  ;;  %v2590_v57 = vadd.f32 %v5205_v40, %v6970_v59 }
 0x20f   : > { %v2593_v34 = vadd.f32 %v5209_v48, %v6970_v59  ;;  %7667 = vst [vmem:[#allocation29_spill] sm:$0xff] %v7177_v20  ;;  %v3250_v61 = vrot.slane %v3249_v24, 1  ;;  %v3256_v30 = vmax.f32 %v3254_v49, %v3255_v14  ;;  %v3263_v32 = vmax.f32 %v3261_v1, %v3262_v3  ;;  %v7179_v44 = vpop.f32.mrb[4].mxu1 }
 0x210   : > { %v3269_v19 = vrot.slane %v3268_v55, 2  ;;  %7668 = vst [vmem:[#allocation30_spill] sm:$0xff] %v7179_v44  ;;  %v2917_v2 = vrot.slane %v2903_v9, %v6896_v47  ;;  %v2918_v15 = vcombine.high %v2910_v13, %v2910_v13  ;;  %v3273_v12 = vsel %vm3188_vm7, %v2910_v13, -inf  ;;  %v7184_v45 = vpop.f32.mrb[5].mxu1 }
 0x211   : > { %v2764_v28 = vadd.f32 %v6948_v16, %v2590_v57  ;;  %7669 = vst [vmem:[#allocation31_spill] sm:$0xff] %v7184_v45  ;;  %v3251_v21 = vmax.f32 %v3249_v24, %v3250_v61  ;;  %v3257_v54 = vrot.slane %v3256_v30, 1  ;;  %v3264_v10 = vrot.slane %v3263_v32, 1  ;;  %v7186_v48 = vpop.f32.mrb[6].mxu1 }
 0x212   : > { %v3270_v40 = vmax.f32 %v3268_v55, %v3269_v19  ;;  %7670 = vst [vmem:[#allocation32_spill] sm:$0xff] %v7186_v48  ;;  %v2919_v49 = vcombine.high %v2917_v2, %v2917_v2  ;;  %v3274_v1 = vrot.slane %v3273_v12, 4  ;;  %v3280_v14 = vsel %vm3188_vm7, %v2918_v15, -inf  ;;  %v7191_v9 = vpop.f32.mrb[7].mxu1  ;;  %v7193_v27 = vpop.f32.mrb[136].mxu0 }
 0x213   : > { %v3287_v3 = vsel %vm3188_vm7, %v2917_v2, -inf  ;;  %2796 = vst [vmem:[%s6998_s11 + $0x40] sm:$0xff] %v2764_v28  ;;  %v3258_v13 = vmax.f32 %v3256_v30, %v3257_v54  ;;  %v3265_v20 = vmax.f32 %v3263_v32, %v3264_v10  ;;  %v3281_v57 = vrot.slane %v3280_v14, 4  ;;  %7671 = vst [vmem:[#allocation33_spill] sm:$0xff] %v7193_v27  ;;  %v7196_v48 = vpop.f32.mrb[137].mxu0 }
 0x214   : > { %v3271_v16 = vrot.slane %v3270_v40, 1  ;;  %v3275_v24 = vmax.f32 %v3273_v12, %v3274_v1  ;;  %v3288_v61 = vrot.slane %v3287_v3, 4  ;;  %v3294_v55 = vsel %vm3188_vm7, %v2919_v49, -inf  ;;  %7672 = vst [vmem:[#allocation34_spill] sm:$0xff] %v7196_v48  ;;  %v7199_v44 = vpop.f32.mrb[138].mxu0 }
 0x215   : > { %v2824_v19 = vmax.f32 %v2764_v28, %v2766_v50  ;;  %v3715_v15 = vsel %vm3701_vm8, %v3258_v13, %v3251_v21  ;;  %v3282_v2 = vmax.f32 %v3280_v14, %v3281_v57  ;;  %v3295_v62 = vrot.slane %v3294_v55, 4  ;;  %7673 = vst [vmem:[#allocation35_spill] sm:$0xff] %v7199_v44  ;;  %v7202_v27 = vpop.f32.mrb[139].mxu0 }
 0x216   : > { %v3272_v45 = vmax.f32 %v3270_v40, %v3271_v16  ;;  %v3716_v30 = vsel %vm3703_vm9, %v3265_v20, %v3715_v15  ;;  %v3276_v32 = vrot.slane %v3275_v24, 2  ;;  %v3289_v54 = vmax.f32 %v3287_v3, %v3288_v61  ;;  %7674 = vst [vmem:[#allocation36_spill] sm:$0xff] %v7202_v27 }
 0x217   : > { %v2920_v10 = vcombine.high %v2824_v19, %v2824_v19  ;;  %v3283_v12 = vrot.slane %v3282_v2, 2  ;;  %v3296_v1 = vmax.f32 %v3294_v55, %v3295_v62  ;;  %v2927_v28 = vrot.slane %v2824_v19, %v6896_v47  ;;  %v7206_v40 = vpop.f32.mrb[8].mxu1 }
 0x218   : > { %v3717_v50 = vsel %vm3705_vm10, %v3272_v45, %v3716_v30  ;;  %v3277_v21 = vmax.f32 %v3275_v24, %v3276_v32  ;;  %v3290_v49 = vrot.slane %v3289_v54, 2  ;;  %v7210_v20 = vadd.f32 %v6951_v18, %v2593_v34  ;;  %v7212_v3 = vpop.f32.mrb[9].mxu1 }
 0x219   : > { %v2934_v14 = vrot.slane %v2920_v10, %v6896_v47  ;;  %7675 = vst [vmem:[#allocation37_spill] sm:$0xff] %v7212_v3  ;;  %v3284_v13 = vmax.f32 %v3282_v2, %v3283_v12  ;;  %v3297_v16 = vrot.slane %v3296_v1, 2  ;;  %v2935_v57 = vcombine.high %v2927_v28, %v2927_v28  ;;  %v7215_v45 = vpop.f32.mrb[10].mxu1 }
 0x21a   : > { %v3301_v62 = vsel %vm3188_vm7, %v2927_v28, -inf  ;;  %7676 = vst [vmem:[#allocation38_spill] sm:$0xff] %v7215_v45  ;;  %v3278_v61 = vrot.slane %v3277_v21, 1  ;;  %v3291_v55 = vmax.f32 %v3289_v54, %v3290_v49  ;;  %2799 = vst [vmem:[%s6998_s11 + $0x58] sm:$0xff] %v7210_v20  ;;  %v7219_v24 = vpop.f32.mrb[11].mxu1  ;;  %v7223_v32 = vpop.f32.mrb[140].mxu0 }
 0x21b   : > { %v2936_v19 = vcombine.high %v2934_v14, %v2934_v14  ;;  %v3302_v15 = vrot.slane %v3301_v62, 4  ;;  %7677 = vst [vmem:[#allocation39_spill] sm:$0xff] %v7219_v24  ;;  %v3285_v30 = vrot.slane %v3284_v13, 1  ;;  %v3298_v18 = vmax.f32 %v3296_v1, %v3297_v16  ;;  %v7225_v44 = vpop.f32.mrb[141].mxu0 }
 0x21c   : > { %v3308_v34 = vsel %vm3188_vm7, %v2935_v57, -inf  ;;  %v3315_v2 = vsel %vm3188_vm7, %v2934_v14, -inf  ;;  %v3279_v10 = vmax.f32 %v3277_v21, %v3278_v61  ;;  %v3292_v12 = vrot.slane %v3291_v55, 1  ;;  %7678 = vst [vmem:[#allocation40_spill] sm:$0xff] %v7225_v44  ;;  %v7228_v24 = vpop.f32.mrb[142].mxu0 }
 0x21d   : > { %v3303_v28 = vmax.f32 %v3301_v62, %v3302_v15  ;;  %v3309_v27 = vrot.slane %v3308_v34, 4  ;;  %v3286_v54 = vmax.f32 %v3284_v13, %v3285_v30  ;;  %v3299_v49 = vrot.slane %v3298_v18, 1  ;;  %v7231_v48 = vpop.f32.mrb[143].mxu0 }
 0x21e   : > { %v3316_v45 = vrot.slane %v3315_v2, 4  ;;  %v3322_v3 = vsel %vm3188_vm7, %v2936_v19, -inf  ;;  %v3293_v1 = vmax.f32 %v3291_v55, %v3292_v12  ;;  %v3718_v16 = vsel %vm3707_vm11, %v3279_v10, %v3717_v50 }
 0x21f   : > { %v3304_v57 = vrot.slane %v3303_v28, 2  ;;  %v3310_v14 = vmax.f32 %v3308_v34, %v3309_v27  ;;  %v3300_v21 = vmax.f32 %v3298_v18, %v3299_v49  ;;  %v3719_v62 = vsel %vm3709_vm12, %v3286_v54, %v3718_v16  ;;  %v7234_v13 = vpop.f32.mrb[12].mxu1 }
 0x220   : > { %v3317_v61 = vmax.f32 %v3315_v2, %v3316_v45  ;;  %v3323_v15 = vrot.slane %v3322_v3, 4  ;;  %v3720_v30 = vsel %vm3711_vm13, %v3293_v1, %v3719_v62  ;;  %v7239_v55 = vadd.f32 %v7075_v63, %v7071_v7  ;;  %v7241_v50 = vpop.f32.mrb[13].mxu1 }
 0x221   : > { %v3305_v19 = vmax.f32 %v3303_v28, %v3304_v57  ;;  %v3311_v44 = vrot.slane %v3310_v14, 2  ;;  %v3721_v27 = vsel %vm3713_vm14, %v3300_v21, %v3720_v30  ;;  %v5213_v45 = vadd.f32 %v6855_v39, %v7088_v58  ;;  %v7246_v2 = vpop.f32.mrb[14].mxu1 }
 0x222   : > { %v3318_v34 = vrot.slane %v3317_v61, 2  ;;  %v3324_v18 = vmax.f32 %v3322_v3, %v3323_v15  ;;  %3773 = vst [vmem:[%s7134_s14 + $0x8] sm:$0xff] %v3721_v27  ;;  %v5217_v28 = vadd.f32 %v6915_v11, %v7098_v46  ;;  %v7253_v7 = vadd.f32 %v7092_v23, %v7090_v41  ;;  %v7255_v63 = vpop.f32.mrb[15].mxu1 }
 0x223   : > { %v3306_v10 = vrot.slane %v3305_v19, 1  ;;  %v3312_v12 = vmax.f32 %v3310_v14, %v3311_v44  ;;  %v2591_v3 = vadd.f32 %v5213_v45, %v6970_v59  ;;  %v5221_v39 = vadd.f32 %v6881_v0, %v7102_v42 }
 0x224   : > { %v3319_v54 = vmax.f32 %v3317_v61, %v3318_v34  ;;  %v3325_v49 = vrot.slane %v3324_v18, 2  ;;  %v2596_v44 = vadd.f32 %v5217_v28, %v6970_v59  ;;  %v5225_v11 = vadd.f32 %v6927_v43, %v7104_v5 }
 0x225   : > { %v3307_v58 = vmax.f32 %v3305_v19, %v3306_v10  ;;  %v3313_v1 = vrot.slane %v3312_v12, 1  ;;  %v2765_v23 = vadd.f32 %v6955_v53, %v2591_v3  ;;  %v2594_v16 = vadd.f32 %v5221_v39, %v6970_v59  ;;  %v7679_v10 = vld [vmem:[#allocation17_spill] sm:$0xff] }
 0x226   : > { %v3320_v46 = vrot.slane %v3319_v54, 1  ;;  %v3326_v41 = vmax.f32 %v3324_v18, %v3325_v49  ;;  %v2770_v14 = vadd.f32 %v6962_v8, %v2596_v44  ;;  %v2597_v21 = vadd.f32 %v5225_v11, %v6970_v59 }
 0x227   : > { %v3314_v57 = vmax.f32 %v3312_v12, %v3313_v1  ;;  %v7269_v0 = vadd.f32 %v7096_v38, %v7094_v17  ;;  %2797 = vst [vmem:[%s6998_s11 + $0x48] sm:$0xff] %v2765_v23  ;;  %v2825_v43 = vmax.f32 %v2765_v23, %v7210_v20  ;;  %v2768_v53 = vadd.f32 %v6965_v26, %v2594_v16 }
 0x228   : > { %v3321_v42 = vmax.f32 %v3319_v54, %v3320_v46  ;;  %v3327_v62 = vrot.slane %v3326_v41, 1  ;;  %2802 = vst [vmem:[%s6998_s11 + $0x70] sm:$0xff] %v2770_v14  ;;  %v2771_v8 = vadd.f32 %v6980_v31, %v2597_v21  ;;  %v5229_v61 = vadd.f32 %v6893_v33, %v7111_v6 }
 0x229   : > { %v3722_v5 = vsel %vm3701_vm8, %v3314_v57, %v3307_v58  ;;  %v5232_v38 = vadd.f32 %v7029_v60, %v7141_v56  ;;  %v2937_v30 = vcombine.high %v2825_v43, %v2825_v43  ;;  %v2944_v19 = vrot.slane %v2825_v43, %v6896_v47  ;;  %2800 = vst [vmem:[%s6998_s11 + $0x60] sm:$0xff] %v2768_v53 }
 0x22a   : > { %v3328_v17 = vmax.f32 %v3326_v41, %v3327_v62  ;;  %v3723_v15 = vsel %vm3703_vm9, %v3321_v42, %v3722_v5  ;;  %v2826_v20 = vmax.f32 %v2768_v53, %v2770_v14  ;;  %2803 = vst [vmem:[%s6998_s11 + $0x78] sm:$0xff] %v2771_v8  ;;  %v2595_v26 = vadd.f32 %v5229_v61, %v6970_v59 }
 0x22b   : > { %v2600_v27 = vadd.f32 %v5232_v38, %v6970_v59  ;;  %v7289_v31 = vadd.f32 %v7119_v52, %v7114_v35  ;;  %v2951_v33 = vrot.slane %v2937_v30, %v6896_v47  ;;  %v2952_v60 = vcombine.high %v2944_v19, %v2944_v19  ;;  %v7680_v52 = vld [vmem:[#allocation19_spill] sm:$0xff] }
 0x22c   : > { %v3329_v6 = vsel %vm3188_vm7, %v2944_v19, -inf  ;;  %v3724_v56 = vsel %vm3705_vm10, %v3328_v17, %v3723_v15  ;;  %v2954_v18 = vcombine.high %v2826_v20, %v2826_v20  ;;  %v2961_v45 = vrot.slane %v2826_v20, %v6896_v47 }
 0x22d   : > { %v3330_v34 = vrot.slane %v3329_v6, 4  ;;  %v2769_v12 = vadd.f32 %v7679_v10, %v2595_v26  ;;  %v2953_v28 = vcombine.high %v2951_v33, %v2951_v33  ;;  %v3336_v54 = vsel %vm3188_vm7, %v2952_v60, -inf }
 0x22e   : > { %v3343_v35 = vsel %vm3188_vm7, %v2951_v33, -inf  ;;  %v7299_v49 = vadd.f32 %v7680_v52, %v2600_v27  ;;  %v3337_v39 = vrot.slane %v3336_v54, 4  ;;  %v2968_v1 = vrot.slane %v2954_v18, %v6896_v47 }
 0x22f   : > { %v3331_v3 = vmax.f32 %v3329_v6, %v3330_v34  ;;  %v3344_v58 = vrot.slane %v3343_v35, 4  ;;  %2801 = vst [vmem:[%s6998_s11 + $0x68] sm:$0xff] %v2769_v12  ;;  %v3350_v44 = vsel %vm3188_vm7, %v2953_v28, -inf  ;;  %v2969_v11 = vcombine.high %v2961_v45, %v2961_v45 }
 0x230   : > { %v3357_v46 = vsel %vm3188_vm7, %v2961_v45, -inf  ;;  %v2827_v41 = vmax.f32 %v2769_v12, %v2771_v8  ;;  %2806 = vst [vmem:[%s6998_s11 + $0x90] sm:$0xff] %v7299_v49  ;;  %v3338_v16 = vmax.f32 %v3336_v54, %v3337_v39  ;;  %v3351_v14 = vrot.slane %v3350_v44, 4 }
 0x231   : > { %v3332_v23 = vrot.slane %v3331_v3, 2  ;;  %v3345_v57 = vmax.f32 %v3343_v35, %v3344_v58  ;;  %v2970_v21 = vcombine.high %v2968_v1, %v2968_v1  ;;  %v3358_v42 = vrot.slane %v3357_v46, 4 }
 0x232   : > { %v3364_v62 = vsel %vm3188_vm7, %v2969_v11, -inf  ;;  %v3371_v43 = vsel %vm3188_vm7, %v2968_v1, -inf  ;;  %v3339_v5 = vrot.slane %v3338_v16, 2  ;;  %v3352_v38 = vmax.f32 %v3350_v44, %v3351_v14 }
 0x233   : > { %v3333_v53 = vmax.f32 %v3331_v3, %v3332_v23  ;;  %v3346_v61 = vrot.slane %v3345_v57, 2  ;;  %v3359_v17 = vmax.f32 %v3357_v46, %v3358_v42  ;;  %v3365_v15 = vrot.slane %v3364_v62, 4 }
 0x234   : > { %v3372_v30 = vrot.slane %v3371_v43, 4  ;;  %v3378_v8 = vsel %vm3188_vm7, %v2970_v21, -inf  ;;  %v3340_v20 = vmax.f32 %v3338_v16, %v3339_v5  ;;  %v3353_v27 = vrot.slane %v3352_v38, 2 }
 0x235   : > { %v3334_v19 = vrot.slane %v3333_v53, 1  ;;  %v3347_v26 = vmax.f32 %v3345_v57, %v3346_v61  ;;  %v3360_v33 = vrot.slane %v3359_v17, 2  ;;  %v3366_v60 = vmax.f32 %v3364_v62, %v3365_v15 }
 0x236   : > { %v3373_v6 = vmax.f32 %v3371_v43, %v3372_v30  ;;  %v3379_v34 = vrot.slane %v3378_v8, 4  ;;  %v3341_v45 = vrot.slane %v3340_v20, 1  ;;  %v3354_v12 = vmax.f32 %v3352_v38, %v3353_v27 }
 0x237   : > { %v3335_v18 = vmax.f32 %v3333_v53, %v3334_v19  ;;  %v3348_v10 = vrot.slane %v3347_v26, 1  ;;  %v3361_v28 = vmax.f32 %v3359_v17, %v3360_v33  ;;  %v3367_v54 = vrot.slane %v3366_v60, 2 }
 0x238   : > { %v3374_v35 = vrot.slane %v3373_v6, 2  ;;  %v3380_v52 = vmax.f32 %v3378_v8, %v3379_v34  ;;  %v3342_v3 = vmax.f32 %v3340_v20, %v3341_v45  ;;  %v3355_v58 = vrot.slane %v3354_v12, 1  ;;  %v7681_v8 = vld [vmem:[#allocation16_spill] sm:$0xff] }
 0x239   : > { %v3349_v39 = vmax.f32 %v3347_v26, %v3348_v10  ;;  %v3725_v1 = vsel %vm3707_vm11, %v3335_v18, %v3724_v56  ;;  %v3362_v44 = vrot.slane %v3361_v28, 1  ;;  %v3368_v11 = vmax.f32 %v3366_v60, %v3367_v54  ;;  %v7682_v54 = vld [vmem:[#allocation20_spill] sm:$0xff] }
 0x23a   : > { %v3375_v46 = vmax.f32 %v3373_v6, %v3374_v35  ;;  %v3381_v23 = vrot.slane %v3380_v52, 2  ;;  %v3356_v16 = vmax.f32 %v3354_v12, %v3355_v58  ;;  %v3726_v57 = vsel %vm3709_vm12, %v3342_v3, %v3725_v1 }
 0x23b   : > { %v2971_v14 = vcombine.high %v2827_v41, %v2827_v41  ;;  %v2978_v21 = vrot.slane %v2827_v41, %v6896_v47  ;;  %v3727_v42 = vsel %vm3711_vm13, %v3349_v39, %v3726_v57  ;;  %v3363_v62 = vmax.f32 %v3361_v28, %v3362_v44 }
 0x23c   : > { %v3369_v43 = vrot.slane %v3368_v11, 1  ;;  %v3376_v53 = vrot.slane %v3375_v46, 1  ;;  %v3728_v5 = vsel %vm3713_vm14, %v3356_v16, %v3727_v42  ;;  %v3382_v61 = vmax.f32 %v3380_v52, %v3381_v23  ;;  %v7683_v52 = vld [vmem:[#allocation12_spill] sm:$0xff] }
 0x23d   : > { %v2985_v56 = vrot.slane %v2971_v14, %v6896_v47  ;;  %v2986_v38 = vcombine.high %v2978_v21, %v2978_v21  ;;  %3774 = vst [vmem:[%s7134_s14 + $0x10] sm:$0xff] %v3728_v5  ;;  %v3385_v30 = vsel %vm3188_vm7, %v2978_v21, -inf  ;;  %v5235_v19 = vadd.f32 %v7681_v8, %v7146_v25  ;;  %v7685_v5 = vld [vmem:[#allocation21_spill] sm:$0xff] }
 0x23e   : > { %v3370_v17 = vmax.f32 %v3368_v11, %v3369_v43  ;;  %v3377_v15 = vmax.f32 %v3375_v46, %v3376_v53  ;;  %v3383_v41 = vrot.slane %v3382_v61, 1  ;;  %v3386_v26 = vrot.slane %v3385_v30, 4 }
 0x23f   : > { %v2987_v20 = vcombine.high %v2985_v56, %v2985_v56  ;;  %v3392_v27 = vsel %vm3188_vm7, %v2986_v38, -inf  ;;  %v3399_v6 = vsel %vm3188_vm7, %v2985_v56, -inf  ;;  %v2598_v34 = vadd.f32 %v5235_v19, %v6970_v59 }
 0x240   : > { %v3729_v33 = vsel %vm3701_vm8, %v3370_v17, %v3363_v62  ;;  %v3393_v60 = vrot.slane %v3392_v27, 4  ;;  %v3384_v18 = vmax.f32 %v3382_v61, %v3383_v41  ;;  %v3387_v10 = vmax.f32 %v3385_v30, %v3386_v26 }
 0x241   : > { %v3730_v45 = vsel %vm3703_vm9, %v3377_v15, %v3729_v33  ;;  %v3400_v12 = vrot.slane %v3399_v6, 4  ;;  %v3406_v25 = vsel %vm3188_vm7, %v2987_v20, -inf  ;;  %v2772_v35 = vadd.f32 %v7682_v54, %v2598_v34 }
 0x242   : > { %v3394_v28 = vmax.f32 %v3392_v27, %v3393_v60  ;;  %v5238_v3 = vadd.f32 %v7683_v52, %v7149_v36  ;;  %v3388_v39 = vrot.slane %v3387_v10, 2  ;;  %v3407_v1 = vrot.slane %v3406_v25, 4  ;;  %v7684_v36 = vld [vmem:[#allocation18_spill] sm:$0xff] }
 0x243   : > { %v3401_v58 = vmax.f32 %v3399_v6, %v3400_v12  ;;  %v3731_v44 = vsel %vm3705_vm10, %v3384_v18, %v3730_v45  ;;  %2804 = vst [vmem:[%s6998_s11 + $0x80] sm:$0xff] %v2772_v35  ;;  %v2828_v46 = vmax.f32 %v2772_v35, %v7299_v49  ;;  %v7335_v16 = vadd.f32 %v7129_v51, %v7125_v4 }
 0x244   : > { %v3395_v11 = vrot.slane %v3394_v28, 2  ;;  %v2601_v23 = vadd.f32 %v5238_v3, %v6970_v59  ;;  %v3389_v57 = vmax.f32 %v3387_v10, %v3388_v39  ;;  %v3408_v21 = vmax.f32 %v3406_v25, %v3407_v1  ;;  %v7686_v39 = vld [vmem:[#allocation22_spill] sm:$0xff]  ;;  %v7687_v1 = vld [vmem:[#allocation4_spill] sm:$0xff] }
 0x245   : > { %v3402_v14 = vrot.slane %v3401_v58, 2  ;;  %v5241_v42 = vadd.f32 %v7684_v36, %v7159_v37  ;;  %v2988_v43 = vcombine.high %v2828_v46, %v2828_v46  ;;  %v2995_v53 = vrot.slane %v2828_v46, %v6896_v47 }
 0x246   : > { %v3396_v62 = vmax.f32 %v3394_v28, %v3395_v11  ;;  %v2775_v61 = vadd.f32 %v7685_v5, %v2601_v23  ;;  %v3390_v49 = vrot.slane %v3389_v57, 1  ;;  %v3409_v38 = vrot.slane %v3408_v21, 2  ;;  %v7689_v5 = vld [vmem:[#allocation27_spill] sm:$0xff] }
 0x247   : > { %v3403_v56 = vmax.f32 %v3401_v58, %v3402_v14  ;;  %v2599_v17 = vadd.f32 %v5241_v42, %v6970_v59  ;;  %v3002_v51 = vrot.slane %v2988_v43, %v6896_v47  ;;  %v3003_v15 = vcombine.high %v2995_v53, %v2995_v53  ;;  %v7688_v42 = vld [vmem:[#allocation30_spill] sm:$0xff] }
 0x248   : > { %v3397_v4 = vrot.slane %v3396_v62, 1  ;;  %v3413_v30 = vsel %vm3188_vm7, %v2995_v53, -inf  ;;  %2807 = vst [vmem:[%s6998_s11 + $0x98] sm:$0xff] %v2775_v61  ;;  %v3391_v8 = vmax.f32 %v3389_v57, %v3390_v49  ;;  %v3410_v19 = vmax.f32 %v3408_v21, %v3409_v38  ;;  %v7690_v49 = vld [vmem:[#allocation13_spill] sm:$0xff] }
 0x249   : > { %v3404_v37 = vrot.slane %v3403_v56, 1  ;;  %v3414_v41 = vrot.slane %v3413_v30, 4  ;;  %v3004_v26 = vcombine.high %v3002_v51, %v3002_v51  ;;  %v3420_v27 = vsel %vm3188_vm7, %v3003_v15, -inf }
 0x24a   : > { %v3398_v20 = vmax.f32 %v3396_v62, %v3397_v4  ;;  %v3427_v33 = vsel %vm3188_vm7, %v3002_v51, -inf  ;;  %v3411_v6 = vrot.slane %v3410_v19, 1  ;;  %v3732_v59 = vsel %vm3707_vm11, %v3391_v8, %v3731_v44  ;;  %v7692_v8 = vld [vmem:[#allocation31_spill] sm:$0xff] }
 0x24b   : > { %v3405_v60 = vmax.f32 %v3403_v56, %v3404_v37  ;;  %v3415_v34 = vmax.f32 %v3413_v30, %v3414_v41  ;;  %v3421_v45 = vrot.slane %v3420_v27, 4  ;;  %v3428_v10 = vrot.slane %v3427_v33, 4  ;;  %v7691_v56 = vld [vmem:[#allocation5_spill] sm:$0xff] }
 0x24c   : > { %v3733_v18 = vsel %vm3709_vm12, %v3398_v20, %v3732_v59  ;;  %v3434_v12 = vsel %vm3188_vm7, %v3004_v26, -inf  ;;  %v3412_v28 = vmax.f32 %v3410_v19, %v3411_v6  ;;  %v2773_v58 = vadd.f32 %v7686_v39, %v2599_v17 }
 0x24d   : > { %v3734_v25 = vsel %vm3711_vm13, %v3405_v60, %v3733_v18  ;;  %v3416_v54 = vrot.slane %v3415_v34, 2  ;;  %v3435_v35 = vrot.slane %v3434_v12, 4  ;;  %v3422_v52 = vmax.f32 %v3420_v27, %v3421_v45 }
 0x24e   : > { %v3429_v3 = vmax.f32 %v3427_v33, %v3428_v10  ;;  %v5243_v44 = vadd.f32 %v7687_v1, %v7253_v7  ;;  %v3735_v11 = vsel %vm3713_vm14, %v3412_v28, %v3734_v25  ;;  %v7357_v57 = vadd.f32 %v7169_v22, %v7161_v29  ;;  %2805 = vst [vmem:[%s6998_s11 + $0x88] sm:$0xff] %v2773_v58  ;;  %v7693_v33 = vld [vmem:[#allocation23_spill] sm:$0xff]  ;;  %v7694_v25 = vld [vmem:[#allocation24_spill] sm:$0xff] }
 0x24f   : > { %v3417_v46 = vmax.f32 %v3415_v34, %v3416_v54  ;;  %v3436_v23 = vmax.f32 %v3434_v12, %v3435_v35  ;;  %3775 = vst [vmem:[%s7134_s14 + $0x18] sm:$0xff] %v3735_v11  ;;  %v3423_v14 = vrot.slane %v3422_v52, 2  ;;  %v2829_v36 = vmax.f32 %v2773_v58, %v2775_v61  ;;  %v7370_v61 = vld [vmem:[%s7573_s7] ss:$0 sm:$0xff]  ;;  %v7695_v11 = vld [vmem:[#allocation32_spill] sm:$0xff] }
 0x250   : > { %v3430_v21 = vrot.slane %v3429_v3, 2  ;;  %v5244_v62 = vadd.f32 %v5243_v44, %v7688_v42  ;;  %v5246_v7 = vadd.f32 %v7690_v49, %v7689_v5  ;;  %v5249_v38 = vadd.f32 %v7691_v56, %v7269_v0 }
 0x251   : > { %v3418_v43 = vrot.slane %v3417_v46, 1  ;;  %v3437_v53 = vrot.slane %v3436_v23, 2  ;;  %v3424_v17 = vmax.f32 %v3422_v52, %v3423_v14  ;;  %v3005_v51 = vcombine.high %v2829_v36, %v2829_v36 }
 0x252   : > { %v3431_v4 = vmax.f32 %v3429_v3, %v3430_v21  ;;  %v3012_v29 = vrot.slane %v2829_v36, %v6896_v47  ;;  %v2604_v30 = vadd.f32 %v7370_v61, %v5244_v62  ;;  %v5247_v37 = vadd.f32 %v5246_v7, %v7692_v8 }
 0x253   : > { %v3419_v22 = vmax.f32 %v3417_v46, %v3418_v43  ;;  %v3438_v15 = vmax.f32 %v3436_v23, %v3437_v53  ;;  %v3425_v19 = vrot.slane %v3424_v17, 1  ;;  %v3019_v0 = vrot.slane %v3005_v51, %v6896_v47  ;;  %v7696_v51 = vld [vmem:[#allocation25_spill] sm:$0xff] }
 0x254   : > { %v3432_v41 = vrot.slane %v3431_v4, 1  ;;  %v3020_v20 = vcombine.high %v3012_v29, %v3012_v29  ;;  %v3441_v27 = vsel %vm3188_vm7, %v3012_v29, -inf  ;;  %v2778_v60 = vadd.f32 %v7693_v33, %v2604_v30 }
 0x255   : > { %v3439_v26 = vrot.slane %v3438_v15, 1  ;;  %v2602_v6 = vadd.f32 %v7370_v61, %v5247_v37  ;;  %v3426_v59 = vmax.f32 %v3424_v17, %v3425_v19  ;;  %v3021_v18 = vcombine.high %v3019_v0, %v3019_v0 }
 0x256   : > { %v3433_v34 = vmax.f32 %v3431_v4, %v3432_v41  ;;  %v3442_v45 = vrot.slane %v3441_v27, 4  ;;  %v3448_v12 = vsel %vm3188_vm7, %v3020_v20, -inf  ;;  %v3455_v28 = vsel %vm3188_vm7, %v3019_v0, -inf  ;;  %2810 = vst [vmem:[%s6998_s11 + $0xb0] sm:$0xff] %v2778_v60 }
 0x257   : > { %v3440_v10 = vmax.f32 %v3438_v15, %v3439_v26  ;;  %v2776_v54 = vadd.f32 %v7694_v25, %v2602_v6  ;;  %v3736_v35 = vsel %vm3701_vm8, %v3426_v59, %v3419_v22  ;;  %v3449_v3 = vrot.slane %v3448_v12, 4 }
 0x258   : > { %v3443_v52 = vmax.f32 %v3441_v27, %v3442_v45  ;;  %v3456_v39 = vrot.slane %v3455_v28, 4  ;;  %v3737_v58 = vsel %vm3703_vm9, %v3433_v34, %v3736_v35  ;;  %v3462_v1 = vsel %vm3188_vm7, %v3021_v18, -inf }
 0x259   : > { %2808 = vst [vmem:[%s6998_s11 + $0xa0] sm:$0xff] %v2776_v54  ;;  %v2830_v44 = vmax.f32 %v2776_v54, %v2778_v60  ;;  %v5250_v46 = vadd.f32 %v5249_v38, %v7695_v11  ;;  %v3450_v14 = vmax.f32 %v3448_v12, %v3449_v3  ;;  %v3463_v36 = vrot.slane %v3462_v1, 4 }
 0x25a   : > { %v3444_v23 = vrot.slane %v3443_v52, 2  ;;  %v3457_v21 = vmax.f32 %v3455_v28, %v3456_v39  ;;  %v3738_v42 = vsel %vm3705_vm10, %v3440_v10, %v3737_v58  ;;  %v7697_v39 = vld [vmem:[#allocation28_spill] sm:$0xff]  ;;  %v7698_v58 = vld [vmem:[#allocation29_spill] sm:$0xff] }
 0x25b   : > { %v3022_v62 = vcombine.high %v2830_v44, %v2830_v44  ;;  %v3029_v43 = vrot.slane %v2830_v44, %v6896_v47  ;;  %v2605_v53 = vadd.f32 %v7370_v61, %v5250_v46  ;;  %v3451_v49 = vrot.slane %v3450_v14, 2  ;;  %v7699_v44 = vld [vmem:[#allocation3_spill] sm:$0xff]  ;;  %v4227_v46 = vld [vmem:[%s6862_s21 + $0x68] sm:$0xff]  }
 0x25c   : > { %v3445_v5 = vmax.f32 %v3443_v52, %v3444_v23  ;;  %v3458_v7 = vrot.slane %v3457_v21, 2  ;;  %v3464_v56 = vmax.f32 %v3462_v1, %v3463_v36  ;;  %v4969_v1 = vadd.f32 %v7698_v58, %v7697_v39 }
 0x25d   : > { %v3036_v17 = vrot.slane %v3022_v62, %v6896_v47  ;;  %v3037_v4 = vcombine.high %v3029_v43, %v3029_v43  ;;  %v3469_v38 = vsel %vm3188_vm7, %v3029_v43, -inf  ;;  %v7393_v29 = vadd.f32 %v7696_v51, %v2605_v53  ;;  %v7700_v53 = vld [vmem:[#allocation8_spill] sm:$0xff]  ;;  %v7701_v51 = vld [vmem:[#allocation33_spill] sm:$0xff] }
 0x25e   : > { %v3446_v22 = vrot.slane %v3445_v5, 1  ;;  %v3452_v15 = vmax.f32 %v3450_v14, %v3451_v49  ;;  %v3459_v30 = vmax.f32 %v3457_v21, %v3458_v7  ;;  %v3465_v8 = vrot.slane %v3464_v56, 2 }
 0x25f   : > { %v3038_v37 = vcombine.high %v3036_v17, %v3036_v17  ;;  %v3470_v19 = vrot.slane %v3469_v38, 4  ;;  %v3476_v41 = vsel %vm3188_vm7, %v3037_v4, -inf  ;;  %v3483_v0 = vsel %vm3188_vm7, %v3036_v17, -inf  ;;  %2811 = vst [vmem:[%s6998_s11 + $0xb8] sm:$0xff] %v7393_v29 }
 0x260   : > { %v3447_v20 = vmax.f32 %v3445_v5, %v3446_v22  ;;  %v3453_v26 = vrot.slane %v3452_v15, 1  ;;  %v3460_v27 = vrot.slane %v3459_v30, 1  ;;  %v3466_v33 = vmax.f32 %v3464_v56, %v3465_v8  ;;  %v7702_v22 = vld [vmem:[#allocation34_spill] sm:$0xff] }
 0x261   : > { %v3471_v60 = vmax.f32 %v3469_v38, %v3470_v19  ;;  %v3477_v6 = vrot.slane %v3476_v41, 4  ;;  %v3484_v59 = vrot.slane %v3483_v0, 4  ;;  %v3490_v34 = vsel %vm3188_vm7, %v3038_v37, -inf  ;;  %v7425_v37 = vld [vmem:[%s7570_s4] ss:$0 sm:$0xff] }
 0x262   : > { %v3454_v18 = vmax.f32 %v3452_v15, %v3453_v26  ;;  %v3461_v45 = vmax.f32 %v3459_v30, %v3460_v27  ;;  %v3467_v10 = vrot.slane %v3466_v33, 1  ;;  %v3739_v12 = vsel %vm3707_vm11, %v3447_v20, %v3738_v42  ;;  %v7420_v30 = vld [vmem:[%s6862_s21 + $0x60] sm:$0xff]   ;;  %v7704_v26 = vld [vmem:[#allocation6_spill] sm:$0xff] }
 0x263   : > { %v3472_v28 = vrot.slane %v3471_v60, 2  ;;  %v3478_v25 = vmax.f32 %v3476_v41, %v3477_v6  ;;  %v3485_v54 = vmax.f32 %v3483_v0, %v3484_v59  ;;  %v3491_v35 = vrot.slane %v3490_v34, 4  ;;  %v7703_v0 = vld [vmem:[#allocation26_spill] sm:$0xff]  ;;  %v7435_v6 = vld [vmem:[%s7571_s5] ss:$0 sm:$0xff] }
 0x264   : > { %v3468_v52 = vmax.f32 %v3466_v33, %v3467_v10  ;;  %v3740_v3 = vsel %vm3709_vm12, %v3454_v18, %v3739_v12  ;;  %v5252_v11 = vadd.f32 %v7699_v44, %v7239_v55  ;;  %v5255_v5 = vadd.f32 %v7700_v53, %v7357_v57  ;;  %v7705_v10 = vld [vmem:[#allocation37_spill] sm:$0xff] }
 0x265   : > { %v3741_v23 = vsel %vm3711_vm13, %v3461_v45, %v3740_v3  ;;  %v3473_v14 = vmax.f32 %v3471_v60, %v3472_v28  ;;  %v3479_v21 = vrot.slane %v3478_v25, 2  ;;  %v3486_v36 = vrot.slane %v3485_v54, 2  ;;  %v7706_v28 = vld [vmem:[#allocation9_spill] sm:$0xff] }
 0x266   : > { %v3742_v42 = vsel %vm3713_vm14, %v3468_v52, %v3741_v23  ;;  %v3492_v62 = vmax.f32 %v3490_v34, %v3491_v35  ;;  %v5253_v43 = vadd.f32 %v5252_v11, %v7191_v9  ;;  %v4190_v55 = vunpack.c.l.bf16 %v4227_v46  ;;  %v7707_v23 = vld [vmem:[#allocation38_spill] sm:$0xff] }
 0x267   : > { %3776 = vst [vmem:[%s7134_s14 + $0x20] sm:$0xff] %v3742_v42  ;;  %v3474_v49 = vrot.slane %v3473_v14, 1  ;;  %v3480_v7 = vmax.f32 %v3478_v25, %v3479_v21  ;;  %v3487_v56 = vmax.f32 %v3485_v54, %v3486_v36  ;;  %v5256_v38 = vadd.f32 %v5255_v5, %v7206_v40 }
 0x268   : > { %v3493_v17 = vrot.slane %v3492_v62, 2  ;;  %v2603_v4 = vadd.f32 %v7370_v61, %v5253_v43  ;;  %v7417_v15 = vadd.f32 %v7702_v22, %v7701_v51  ;;  %v2712_v19 = vmul.f32 %v7425_v37, %v4190_v55  ;;  %v7708_v55 = vld [vmem:[#allocation35_spill] sm:$0xff] }
 0x269   : > { %v3475_v9 = vmax.f32 %v3473_v14, %v3474_v49  ;;  %v3481_v8 = vrot.slane %v3480_v7, 1  ;;  %v3488_v57 = vrot.slane %v3487_v56, 1  ;;  %v2608_v20 = vadd.f32 %v7370_v61, %v5256_v38 }
 0x26a   : > { %v3494_v41 = vmax.f32 %v3492_v62, %v3493_v17  ;;  %v2777_v40 = vadd.f32 %v7703_v0, %v2603_v4  ;;  %v5258_v27 = vadd.f32 %v7704_v26, %v7289_v31  ;;  %v2750_v59 = vadd.f32 %v7435_v6, %v2712_v19  ;;  %v7709_v17 = vld [vmem:[#allocation36_spill] sm:$0xff]  ;;  %v7710_v19 = vld [vmem:[#allocation7_spill] sm:$0xff] }
 0x26b   : > { %v3482_v33 = vmax.f32 %v3480_v7, %v3481_v8  ;;  %v3489_v60 = vmax.f32 %v3487_v56, %v3488_v57  ;;  %v4186_v34 = vunpack.c.l.bf16 %v7420_v30  ;;  %v5261_v31 = vadd.f32 %v7706_v28, %v4969_v1 }
 0x26c   : > { %v3495_v18 = vrot.slane %v3494_v41, 1  ;;  %2809 = vst [vmem:[%s6998_s11 + $0xa8] sm:$0xff] %v2777_v40  ;;  %v2831_v45 = vmax.f32 %v2777_v40, %v7393_v29  ;;  %v5259_v12 = vadd.f32 %v5258_v27, %v7705_v10  ;;  %v2782_v54 = vadd.f32 %v2750_v59, %v2608_v20  ;;  %v7711_v59 = vld [vmem:[#allocation39_spill] sm:$0xff] }
 0x26d   : > { %v3743_v25 = vsel %vm3701_vm8, %v3482_v33, %v3475_v9  ;;  %v2710_v35 = vmul.f32 %v7425_v37, %v4186_v34  ;;  %v4191_v52 = vunpack.c.h.bf16 %v4227_v46  ;;  %v5262_v14 = vadd.f32 %v5261_v31, %v7707_v23 }
 0x26e   : > { %v3496_v3 = vmax.f32 %v3494_v41, %v3495_v18  ;;  %v3744_v39 = vsel %vm3703_vm9, %v3489_v60, %v3743_v25  ;;  %v3039_v58 = vcombine.high %v2831_v45, %v2831_v45  ;;  %v3046_v44 = vrot.slane %v2831_v45, %v6896_v47  ;;  %2814 = vst [vmem:[%s6998_s11 + $0xd0] sm:$0xff] %v2782_v54 }
 0x26f   : > { %v2606_v11 = vadd.f32 %v7370_v61, %v5259_v12  ;;  %v2748_v29 = vadd.f32 %v7435_v6, %v2710_v35  ;;  %v2713_v1 = vmul.f32 %v7425_v37, %v4191_v52  ;;  %v2609_v53 = vadd.f32 %v7370_v61, %v5262_v14 }
 0x270   : > { %v3053_v21 = vrot.slane %v3039_v58, %v6896_v47  ;;  %v3054_v36 = vcombine.high %v3046_v44, %v3046_v44  ;;  %v3497_v46 = vsel %vm3188_vm7, %v3046_v44, -inf  ;;  %v3745_v42 = vsel %vm3705_vm10, %v3496_v3, %v3744_v39 }
 0x271   : > { %v3498_v62 = vrot.slane %v3497_v46, 4  ;;  %v2780_v43 = vadd.f32 %v2748_v29, %v2606_v11  ;;  %v2751_v5 = vadd.f32 %v7435_v6, %v2713_v1  ;;  %v7461_v4 = vadd.f32 %v7709_v17, %v7708_v55 }
 0x272   : > { %v3055_v49 = vcombine.high %v3053_v21, %v3053_v21  ;;  %v3504_v7 = vsel %vm3188_vm7, %v3054_v36, -inf  ;;  %v3511_v56 = vsel %vm3188_vm7, %v3053_v21, -inf  ;;  %v5264_v41 = vadd.f32 %v7710_v19, %v7335_v16 }
 0x273   : > { %v3499_v38 = vmax.f32 %v3497_v46, %v3498_v62  ;;  %v3505_v51 = vrot.slane %v3504_v7, 4  ;;  %v3512_v22 = vrot.slane %v3511_v56, 4  ;;  %2812 = vst [vmem:[%s6998_s11 + $0xc0] sm:$0xff] %v2780_v43  ;;  %v2832_v9 = vmax.f32 %v2780_v43, %v2782_v54 }
 0x274   : > { %v3518_v8 = vsel %vm3188_vm7, %v3055_v49, -inf  ;;  %v7465_v57 = vadd.f32 %v2751_v5, %v2609_v53  ;;  %v4187_v0 = vunpack.c.h.bf16 %v7420_v30  ;;  %v5265_v34 = vadd.f32 %v5264_v41, %v7711_v59 }
 0x275   : > { %v3500_v40 = vrot.slane %v3499_v38, 2  ;;  %v3506_v20 = vmax.f32 %v3504_v7, %v3505_v51  ;;  %v3513_v26 = vmax.f32 %v3511_v56, %v3512_v22  ;;  %v3519_v27 = vrot.slane %v3518_v8, 4 }
 0x276   : > { %v3056_v33 = vcombine.high %v2832_v9, %v2832_v9  ;;  %v3063_v60 = vrot.slane %v2832_v9, %v6896_v47  ;;  %2815 = vst [vmem:[%s6998_s11 + $0xd8] sm:$0xff] %v7465_v57  ;;  %v2711_v18 = vmul.f32 %v7425_v37, %v4187_v0  ;;  %v2607_v25 = vadd.f32 %v7370_v61, %v5265_v34  ;;  %v7712_v9 = vld [vmem:[#allocation40_spill] sm:$0xff] }
 0x277   : > { %v3501_v45 = vmax.f32 %v3499_v38, %v3500_v40  ;;  %v3507_v10 = vrot.slane %v3506_v20, 2  ;;  %v3514_v12 = vrot.slane %v3513_v26, 2  ;;  %v3520_v28 = vmax.f32 %v3518_v8, %v3519_v27  ;;  %v7713_v27 = vld [vmem:[#allocation14_spill] sm:$0xff] }
 0x278   : > { %v3070_v16 = vrot.slane %v3056_v33, %v6896_v47  ;;  %v3071_v30 = vcombine.high %v3063_v60, %v3063_v60  ;;  %v3525_v31 = vsel %vm3188_vm7, %v3063_v60, -inf  ;;  %v2749_v22 = vadd.f32 %v7435_v6, %v2711_v18  ;;  %v7490_v60 = vld [vmem:[%s6862_s21 + $0x70] sm:$0xff]  }
 0x279   : > { %v3502_v54 = vrot.slane %v3501_v45, 1  ;;  %v3508_v35 = vmax.f32 %v3506_v20, %v3507_v10  ;;  %v3515_v52 = vmax.f32 %v3513_v26, %v3514_v12  ;;  %v3521_v3 = vrot.slane %v3520_v28, 2 }
 0x27a   : > { %v3072_v39 = vcombine.high %v3070_v16, %v3070_v16  ;;  %v3526_v58 = vrot.slane %v3525_v31, 4  ;;  %v3532_v44 = vsel %vm3188_vm7, %v3071_v30, -inf  ;;  %v3539_v11 = vsel %vm3188_vm7, %v3070_v16, -inf  ;;  %v7499_v16 = vld [vmem:[%s6862_s21 + $0x78] sm:$0xff]  }
 0x27b   : > { %v3503_v29 = vmax.f32 %v3501_v45, %v3502_v54  ;;  %v3509_v23 = vrot.slane %v3508_v35, 1  ;;  %v3516_v14 = vrot.slane %v3515_v52, 1  ;;  %v3522_v1 = vmax.f32 %v3520_v28, %v3521_v3 }
 0x27c   : > { %v3527_v21 = vmax.f32 %v3525_v31, %v3526_v58  ;;  %v3533_v36 = vrot.slane %v3532_v44, 4  ;;  %v3540_v46 = vrot.slane %v3539_v11, 4  ;;  %v3546_v62 = vsel %vm3188_vm7, %v3072_v39, -inf }
 0x27d   : > { %v3510_v43 = vmax.f32 %v3508_v35, %v3509_v23  ;;  %v3517_v53 = vmax.f32 %v3515_v52, %v3516_v14  ;;  %v3523_v5 = vrot.slane %v3522_v1, 1  ;;  %v3746_v49 = vsel %vm3707_vm11, %v3503_v29, %v3745_v42 }
 0x27e   : > { %v3528_v7 = vrot.slane %v3527_v21, 2  ;;  %v3534_v56 = vmax.f32 %v3532_v44, %v3533_v36  ;;  %v3541_v55 = vmax.f32 %v3539_v11, %v3540_v46  ;;  %v3547_v17 = vrot.slane %v3546_v62, 4 }
 0x27f   : > { %v3524_v38 = vmax.f32 %v3522_v1, %v3523_v5  ;;  %v3747_v51 = vsel %vm3709_vm12, %v3510_v43, %v3746_v49  ;;  %v4978_v8 = vadd.f32 %v7712_v9, %v7223_v32  ;;  %v2781_v26 = vadd.f32 %v2749_v22, %v2607_v25  ;;  %v7714_v32 = vld [vmem:[#allocation10_spill] sm:$0xff] }
 0x280   : > { %v3748_v19 = vsel %vm3711_vm13, %v3517_v53, %v3747_v51  ;;  %v3529_v41 = vmax.f32 %v3527_v21, %v3528_v7  ;;  %v3535_v0 = vrot.slane %v3534_v56, 2  ;;  %v3542_v42 = vrot.slane %v3541_v55, 2 }
 0x281   : > { %v3749_v40 = vsel %vm3713_vm14, %v3524_v38, %v3748_v19  ;;  %v3548_v20 = vmax.f32 %v3546_v62, %v3547_v17  ;;  %v5267_v33 = vadd.f32 %v7713_v27, %v4978_v8  ;;  %v5270_v45 = vadd.f32 %v7714_v32, %v7417_v15  ;;  %2813 = vst [vmem:[%s6998_s11 + $0xc8] sm:$0xff] %v2781_v26 }
 0x282   : > { %3777 = vst [vmem:[%s7134_s14 + $0x28] sm:$0xff] %v3749_v40  ;;  %v3530_v59 = vrot.slane %v3529_v41, 1  ;;  %v3536_v34 = vmax.f32 %v3534_v56, %v3535_v0  ;;  %v3543_v18 = vmax.f32 %v3541_v55, %v3542_v42  ;;  %v2833_v12 = vmax.f32 %v2781_v26, %v7465_v57  ;;  %v7715_v42 = vld [vmem:[#allocation11_spill] sm:$0xff] }
 0x283   : > { %v3549_v10 = vrot.slane %v3548_v20, 2  ;;  %v5268_v28 = vadd.f32 %v5267_v33, %v7234_v13  ;;  %v5271_v25 = vadd.f32 %v5270_v45, %v7241_v50  ;;  %v4194_v54 = vunpack.c.l.bf16 %v7490_v60 }
 0x284   : > { %v3537_v30 = vrot.slane %v3536_v34, 1  ;;  %v3544_v31 = vrot.slane %v3543_v18, 1  ;;  %v3531_v35 = vmax.f32 %v3529_v41, %v3530_v59  ;;  %v3073_v3 = vcombine.high %v2833_v12, %v2833_v12 }
 0x285   : > { %v3550_v52 = vmax.f32 %v3548_v20, %v3549_v10  ;;  %v3080_v39 = vrot.slane %v2833_v12, %v6896_v47  ;;  %v2610_v44 = vadd.f32 %v7370_v61, %v5271_v25  ;;  %v4198_v57 = vunpack.c.l.bf16 %v7499_v16 }
 0x286   : > { %v3538_v15 = vmax.f32 %v3536_v34, %v3537_v30  ;;  %v3545_v58 = vmax.f32 %v3543_v18, %v3544_v31  ;;  %v3087_v11 = vrot.slane %v3073_v3, %v6896_v47  ;;  %v2714_v1 = vmul.f32 %v7425_v37, %v4194_v54  ;;  %v7716_v18 = vld [vmem:[#allocation15_spill] sm:$0xff] }
 0x287   : > { %v3551_v13 = vrot.slane %v3550_v52, 1  ;;  %v3088_v29 = vcombine.high %v3080_v39, %v3080_v39  ;;  %v3553_v23 = vsel %vm3188_vm7, %v3080_v39, -inf  ;;  %v2716_v21 = vmul.f32 %v7425_v37, %v4198_v57 }
 0x288   : > { %v3750_v50 = vsel %vm3701_vm8, %v3538_v15, %v3531_v35  ;;  %v3554_v14 = vrot.slane %v3553_v23, 4  ;;  %v3089_v46 = vcombine.high %v3087_v11, %v3087_v11  ;;  %v2612_v43 = vadd.f32 %v7370_v61, %v5268_v28 }
 0x289   : > { %v3552_v36 = vmax.f32 %v3550_v52, %v3551_v13  ;;  %v3560_v62 = vsel %vm3188_vm7, %v3088_v29, -inf  ;;  %v3567_v49 = vsel %vm3188_vm7, %v3087_v11, -inf  ;;  %v2752_v7 = vadd.f32 %v7435_v6, %v2714_v1 }
 0x28a   : > { %v3555_v53 = vmax.f32 %v3553_v23, %v3554_v14  ;;  %v3561_v5 = vrot.slane %v3560_v62, 4  ;;  %v3751_v56 = vsel %vm3703_vm9, %v3545_v58, %v3750_v50  ;;  %v3568_v55 = vrot.slane %v3567_v49, 4 }
 0x28b   : > { %v3574_v17 = vsel %vm3188_vm7, %v3089_v46, -inf  ;;  %v2754_v38 = vadd.f32 %v7435_v6, %v2716_v21  ;;  %v2784_v8 = vadd.f32 %v2752_v7, %v2610_v44  ;;  %v4981_v0 = vadd.f32 %v7231_v48, %v7228_v24 }
 0x28c   : > { %v3556_v51 = vrot.slane %v3555_v53, 2  ;;  %v3562_v22 = vmax.f32 %v3560_v62, %v3561_v5  ;;  %v3575_v9 = vrot.slane %v3574_v17, 4  ;;  %v3569_v19 = vmax.f32 %v3567_v49, %v3568_v55 }
 0x28d   : > { %v2786_v41 = vadd.f32 %v2754_v38, %v2612_v43  ;;  %v5276_v40 = vadd.f32 %v7715_v42, %v7461_v4  ;;  %v3752_v33 = vsel %vm3705_vm10, %v3552_v36, %v3751_v56  ;;  %2816 = vst [vmem:[%s6998_s11 + $0xe0] sm:$0xff] %v2784_v8  ;;  %v5273_v32 = vadd.f32 %v7716_v18, %v4981_v0 }
 0x28e   : > { %v3557_v20 = vmax.f32 %v3555_v53, %v3556_v51  ;;  %v3563_v26 = vrot.slane %v3562_v22, 2  ;;  %v3576_v27 = vmax.f32 %v3574_v17, %v3575_v9  ;;  %v3570_v59 = vrot.slane %v3569_v19, 2 }
 0x28f   : > { %2818 = vst [vmem:[%s6998_s11 + $0xf0] sm:$0xff] %v2786_v41  ;;  %v2834_v34 = vmax.f32 %v2784_v8, %v2786_v41  ;;  %v5277_v45 = vadd.f32 %v5276_v40, %v7255_v63  ;;  %v4195_v48 = vunpack.c.h.bf16 %v7490_v60  ;;  %v5274_v31 = vadd.f32 %v5273_v32, %v7246_v2 }
 0x290   : > { %v3558_v10 = vrot.slane %v3557_v20, 1  ;;  %v3564_v12 = vmax.f32 %v3562_v22, %v3563_v26  ;;  %v3577_v28 = vrot.slane %v3576_v27, 2  ;;  %v3571_v24 = vmax.f32 %v3569_v19, %v3570_v59 }
 0x291   : > { %v3090_v4 = vcombine.high %v2834_v34, %v2834_v34  ;;  %v3097_v30 = vrot.slane %v2834_v34, %v6896_v47  ;;  %v4199_v52 = vunpack.c.h.bf16 %v7499_v16  ;;  %v2611_v46 = vadd.f32 %v7370_v61, %v5277_v45 }
 0x292   : > { %v3559_v25 = vmax.f32 %v3557_v20, %v3558_v10  ;;  %v3565_v54 = vrot.slane %v3564_v12, 1  ;;  %v3578_v35 = vmax.f32 %v3576_v27, %v3577_v28  ;;  %v3572_v3 = vrot.slane %v3571_v24, 1 }
 0x293   : > { %v3104_v39 = vrot.slane %v3090_v4, %v6896_v47  ;;  %v3105_v63 = vcombine.high %v3097_v30, %v3097_v30  ;;  %v3581_v15 = vsel %vm3188_vm7, %v3097_v30, -inf  ;;  %v2613_v7 = vadd.f32 %v7370_v61, %v5274_v31 }
 0x294   : > { %v3566_v58 = vmax.f32 %v3564_v12, %v3565_v54  ;;  %v3579_v44 = vrot.slane %v3578_v35, 1  ;;  %v3753_v60 = vsel %vm3707_vm11, %v3559_v25, %v3752_v33  ;;  %v3582_v57 = vrot.slane %v3581_v15, 4 }
 0x295   : > { %v3573_v13 = vmax.f32 %v3571_v24, %v3572_v3  ;;  %v3106_v11 = vcombine.high %v3104_v39, %v3104_v39  ;;  %v3588_v2 = vsel %vm3188_vm7, %v3105_v63, -inf  ;;  %v3595_v29 = vsel %vm3188_vm7, %v3104_v39, -inf }
 0x296   : > { %v3580_v23 = vmax.f32 %v3578_v35, %v3579_v44  ;;  %v3754_v16 = vsel %vm3709_vm12, %v3566_v58, %v3753_v60  ;;  %v3583_v50 = vmax.f32 %v3581_v15, %v3582_v57  ;;  %v3589_v14 = vrot.slane %v3588_v2, 4 }
 0x297   : > { %v3755_v1 = vsel %vm3711_vm13, %v3573_v13, %v3754_v16  ;;  %v3596_v21 = vrot.slane %v3595_v29, 4  ;;  %v3602_v36 = vsel %vm3188_vm7, %v3106_v11, -inf  ;;  %v2715_v56 = vmul.f32 %v7425_v37, %v4195_v48 }
 0x298   : > { %v3756_v62 = vsel %vm3713_vm14, %v3580_v23, %v3755_v1  ;;  %v3584_v43 = vrot.slane %v3583_v50, 2  ;;  %v3590_v53 = vmax.f32 %v3588_v2, %v3589_v14  ;;  %v3603_v5 = vrot.slane %v3602_v36, 4 }
 0x299   : > { %3778 = vst [vmem:[%s7134_s14 + $0x30] sm:$0xff] %v3756_v62  ;;  %v3597_v49 = vmax.f32 %v3595_v29, %v3596_v21  ;;  %v2717_v55 = vmul.f32 %v7425_v37, %v4199_v52  ;;  %v2753_v22 = vadd.f32 %v7435_v6, %v2715_v56 }
 0x29a   : > { %v3591_v17 = vrot.slane %v3590_v53, 2  ;;  %v3604_v38 = vmax.f32 %v3602_v36, %v3603_v5  ;;  %v3585_v8 = vmax.f32 %v3583_v50, %v3584_v43 }
 0x29b   : > { %v3598_v51 = vrot.slane %v3597_v49, 2  ;;  %v2755_v9 = vadd.f32 %v7435_v6, %v2717_v55  ;;  %v2785_v42 = vadd.f32 %v2753_v22, %v2611_v46 }
 0x29c   : > { %v3592_v19 = vmax.f32 %v3590_v53, %v3591_v17  ;;  %v3605_v41 = vrot.slane %v3604_v38, 2  ;;  %v3586_v26 = vrot.slane %v3585_v8, 1 }
 0x29d   : > { %v3599_v0 = vmax.f32 %v3597_v49, %v3598_v51  ;;  %v2787_v40 = vadd.f32 %v2755_v9, %v2613_v7  ;;  %2817 = vst [vmem:[%s6998_s11 + $0xe8] sm:$0xff] %v2785_v42 }
 0x29e   : > { %v3593_v20 = vrot.slane %v3592_v19, 1  ;;  %v3606_v27 = vmax.f32 %v3604_v38, %v3605_v41  ;;  %v3587_v45 = vmax.f32 %v3585_v8, %v3586_v26 }
 0x29f   : > { %2819 = vst [vmem:[%s6998_s11 + $0xf8] sm:$0xff] %v2787_v40  ;;  %v2835_v61 = vmax.f32 %v2785_v42, %v2787_v40  ;;  %v3600_v37 = vrot.slane %v3599_v0, 1 }
 0x2a0   : > { %v3594_v34 = vmax.f32 %v3592_v19, %v3593_v20  ;;  %v3607_v10 = vrot.slane %v3606_v27, 1 }
 0x2a1   : > { %v3107_v33 = vcombine.high %v2835_v61, %v2835_v61  ;;  %v3114_v59 = vrot.slane %v2835_v61, %v6896_v47  ;;  %v3601_v28 = vmax.f32 %v3599_v0, %v3600_v37 }
 0x2a2   : > { %v3757_v30 = vsel %vm3701_vm8, %v3594_v34, %v3587_v45  ;;  %v3608_v63 = vmax.f32 %v3606_v27, %v3607_v10 }
 0x2a3   : > { %v3121_v18 = vrot.slane %v3107_v33, %v6896_v47  ;;  %v3122_v6 = vcombine.high %v3114_v59, %v3114_v59  ;;  %v3609_v32 = vsel %vm3188_vm7, %v3114_v59, -inf  ;;  %v3758_v15 = vsel %vm3703_vm9, %v3601_v28, %v3757_v30 }
 0x2a4   : > { %v3610_v12 = vrot.slane %v3609_v32, 4  ;;  %v3759_v23 = vsel %vm3705_vm10, %v3608_v63, %v3758_v15 }
 0x2a5   : > { %v3123_v48 = vcombine.high %v3121_v18, %v3121_v18  ;;  %v3616_v24 = vsel %vm3188_vm7, %v3122_v6, -inf  ;;  %v3623_v4 = vsel %vm3188_vm7, %v3121_v18, -inf }
 0x2a6   : > { %v3611_v31 = vmax.f32 %v3609_v32, %v3610_v12  ;;  %v3617_v25 = vrot.slane %v3616_v24, 4  ;;  %v3624_v54 = vrot.slane %v3623_v4, 4 }
 0x2a7   : > { %v3630_v35 = vsel %vm3188_vm7, %v3123_v48, -inf }
 0x2a8   : > { %v3612_v47 = vrot.slane %v3611_v31, 2  ;;  %v3618_v52 = vmax.f32 %v3616_v24, %v3617_v25  ;;  %v3625_v3 = vmax.f32 %v3623_v4, %v3624_v54  ;;  %v3631_v39 = vrot.slane %v3630_v35, 4 }
 0x2aa   : > { %v3613_v58 = vmax.f32 %v3611_v31, %v3612_v47  ;;  %v3619_v44 = vrot.slane %v3618_v52, 2  ;;  %v3626_v60 = vrot.slane %v3625_v3, 2  ;;  %v3632_v57 = vmax.f32 %v3630_v35, %v3631_v39 }
 0x2ac   : > { %v3614_v13 = vrot.slane %v3613_v58, 1  ;;  %v3620_v11 = vmax.f32 %v3618_v52, %v3619_v44  ;;  %v3627_v2 = vmax.f32 %v3625_v3, %v3626_v60  ;;  %v3633_v29 = vrot.slane %v3632_v57, 2 }
 0x2ae   : > { %v3615_v16 = vmax.f32 %v3613_v58, %v3614_v13  ;;  %v3621_v50 = vrot.slane %v3620_v11, 1  ;;  %v3628_v14 = vrot.slane %v3627_v2, 1  ;;  %v3634_v1 = vmax.f32 %v3632_v57, %v3633_v29 }
 0x2b0   : > { %v3622_v21 = vmax.f32 %v3620_v11, %v3621_v50  ;;  %v3635_v36 = vrot.slane %v3634_v1, 1  ;;  %v3760_v46 = vsel %vm3707_vm11, %v3615_v16, %v3759_v23  ;;  %v3629_v62 = vmax.f32 %v3627_v2, %v3628_v14 }
 0x2b2   : > { %v3636_v43 = vmax.f32 %v3634_v1, %v3635_v36  ;;  %v3761_v53 = vsel %vm3709_vm12, %v3622_v21, %v3760_v46 }
 0x2b3   : > { %v3762_v5 = vsel %vm3711_vm13, %v3629_v62, %v3761_v53 }
 0x2b4   : > { %v3763_v49 = vsel %vm3713_vm14, %v3636_v43, %v3762_v5 }
 0x2b5   : > { %3779 = vst [vmem:[%s7134_s14 + $0x38] sm:$0xff] %v3763_v49 }
 0x2b6 PF: > { %s20_s30 = sadd.s32 1, %s5420_s30  }
 0x2b7   : > { %p17_p4 = scmp.ge.s32.totalorder %s20_s30, 4  }
 0x2b9   :  { %19 = sbr.rel (!%p17_p4) target bundleno = 1 (0x1), region = 102 }

</bundles_post_ra>
